<compile_context>
chip_gen: v6e
topology: v6e:2x2x1
jax: 0.10.0
libtpu: 0.0.40
codegen_flags: <defaults>
</compile_context>

<pallas_src>
import functools

import jax
import jax.numpy as jnp
import numpy as np
from jax.experimental import pallas as pl
from jax.experimental.pallas import tpu as pltpu

EPS = 1e-5  # nn.InstanceNorm2d default eps (affine=False)


# ==================== fused matmul + bias + IN (+ReLU) kernel ====================

def _conv_in_kernel(a_ref, w_ref, b_ref, o_ref, *, relu, phases):
    """o = InstanceNorm(a @ w + b) [+ ReLU].  IN stats are per output column,
    optionally pooled across `phases` equal column blocks (transposed-conv
    phase layout, where columns = [phase0|phase1|phase2|phase3] x channels)."""
    o = jnp.dot(a_ref[0], w_ref[...], preferred_element_type=jnp.float32)
    o = o + b_ref[...]
    c = o.shape[-1] // phases

    def pool(v):                       # (1, phases*c) -> pooled, broadcast back
        if phases == 1:
            return v
        s = v[:, 0:c]
        for p in range(1, phases):
            s = s + v[:, p * c:(p + 1) * c]
        s = s / float(phases)
        return jnp.concatenate([s] * phases, axis=-1)

    mean = pool(jnp.mean(o, axis=0, keepdims=True))
    cent = o - mean
    var = pool(jnp.mean(cent * cent, axis=0, keepdims=True))   # biased, as PyTorch
    y = cent * jax.lax.rsqrt(var + EPS)
    if relu:
        y = jnp.maximum(y, 0.0)
    o_ref[0] = y


def _matmul_in_fused(patches, w2d, bias, *, relu, phases=1):
    """patches (N,M,K) bf16, w2d (K,Ct) bf16, bias (1,Ct) f32 -> (N,M,Ct) f32."""
    N, M, K = patches.shape
    Ct = w2d.shape[-1]
    return pl.pallas_call(
        functools.partial(_conv_in_kernel, relu=relu, phases=phases),
        out_shape=jax.ShapeDtypeStruct((N, M, Ct), jnp.float32),
        grid=(N,),
        in_specs=[
            pl.BlockSpec((1, M, K), lambda n: (n, 0, 0)),
            pl.BlockSpec((K, Ct), lambda n: (0, 0)),
            pl.BlockSpec((1, Ct), lambda n: (0, 0)),
        ],
        out_specs=pl.BlockSpec((1, M, Ct), lambda n: (n, 0, 0)),
        compiler_params=pltpu.CompilerParams(dimension_semantics=("parallel",)),
    )(patches, w2d, bias)


# ============================= conv stage wrappers ==============================

def _im2col(x, kh, kw, stride):
    N, H, W, C = x.shape
    Ho = (H - kh) // stride + 1
    Wo = (W - kw) // stride + 1
    cols = []
    for i in range(kh):
        for j in range(kw):
            cols.append(x[:, i:i + stride * Ho:stride, j:j + stride * Wo:stride, :])
    patches = jnp.stack(cols, axis=3)                    # (N, Ho, Wo, kh*kw, C)
    return patches.reshape(N, Ho * Wo, kh * kw * C), Ho, Wo


def conv_in_stage(x, p, stride=1, pad=0, pad_mode="zero", relu=True):
    """Conv2d + InstanceNorm2d(affine=False) + optional ReLU, fully fused."""
    w, b = p["w"], p["b"]
    kh, kw, cin, cout = w.shape
    if cin < 8:                               # sublane-align tiny cin (exact: zero weights)
        x = jnp.pad(x, ((0, 0), (0, 0), (0, 0), (0, 8 - cin)))
        w = jnp.pad(w, ((0, 0), (0, 0), (0, 8 - cin), (0, 0)))
        cin = 8
    if pad > 0:
        mode = "reflect" if pad_mode == "reflect" else "constant"
        x = jnp.pad(x, ((0, 0), (pad, pad), (pad, pad), (0, 0)), mode=mode)
    patches, Ho, Wo = _im2col(x, kh, kw, stride)
    N = x.shape[0]
    out = _matmul_in_fused(
        patches.astype(jnp.bfloat16),
        w.reshape(kh * kw * cin, cout).astype(jnp.bfloat16),
        b.reshape(1, cout).astype(jnp.float32),
        relu=relu, phases=1)
    return out.reshape(N, Ho, Wo, cout)


def upconv_in_stage(x, p):
    """ConvTranspose2d(3, stride=2, pad=1, out_pad=1) + IN + ReLU via the 4-phase
    decomposition: one lane-dense matmul over 2x2 tap neighborhoods, phase-pooled
    IN fused in the kernel, pixel-shuffle interleave as glue."""
    w, b = p["w"], p["b"]                     # w: (3,3,cin,cout) stride-1 equivalent
    _, _, cin, cout = w.shape
    N, H, W, _ = x.shape

    xe = jnp.pad(x, ((0, 0), (0, 1), (0, 1), (0, 0)))          # zero pad bottom/right
    taps = [xe[:, 0:H, 0:W, :], xe[:, 0:H, 1:W + 1, :],
            xe[:, 1:H + 1, 0:W, :], xe[:, 1:H + 1, 1:W + 1, :]]
    patches = jnp.concatenate(taps, axis=-1).reshape(N, H * W, 4 * cin)

    zero = jnp.zeros((cin, cout), w.dtype)
    # output column blocks ordered [phase(0,0) | (0,1) | (1,0) | (1,1)]
    w_t00 = jnp.concatenate([w[1, 1], w[1, 0], w[0, 1], w[0, 0]], axis=-1)
    w_t01 = jnp.concatenate([zero,    w[1, 2], zero,    w[0, 2]], axis=-1)
    w_t10 = jnp.concatenate([zero,    zero,    w[2, 1], w[2, 0]], axis=-1)
    w_t11 = jnp.concatenate([zero,    zero,    zero,    w[2, 2]], axis=-1)
    wp = jnp.concatenate([w_t00, w_t01, w_t10, w_t11], axis=0)  # (4cin, 4cout)
    bp = jnp.concatenate([b] * 4).reshape(1, 4 * cout)

    out = _matmul_in_fused(patches.astype(jnp.bfloat16),
                           wp.astype(jnp.bfloat16),
                           bp.astype(jnp.float32),
                           relu=True, phases=4)                 # (N, H*W, 4*cout)
    out = out.reshape(N, H, W, 2, 2, cout).transpose(0, 1, 3, 2, 4, 5)
    return out.reshape(N, 2 * H, 2 * W, cout)


# ================== final conv15 + residual add + tanh (lane-dense) =============

def _conv_add_tanh_kernel(wT_ref, aT_ref, b_ref, rT_ref, o_ref):
    o = jnp.dot(wT_ref[...], aT_ref[...], preferred_element_type=jnp.float32)
    o_ref[...] = jnp.tanh(o + b_ref[...] + rT_ref[...])


def conv_add_tanh(x, w, b, resid, pad=3):
    """tanh(ReflectPad + Conv2d(k7) + resid), computed as a transposed lane-dense
    (8, N*H*W) slab (cout rows padded to 8) to avoid masked 1/3-lane stores."""
    kh, kw, cin, cout = w.shape
    N, H, W, _ = x.shape
    xp = jnp.pad(x, ((0, 0), (pad, pad), (pad, pad), (0, 0)), mode="reflect")
    patches, Ho, Wo = _im2col(xp, kh, kw, 1)
    M = N * Ho * Wo
    K = kh * kw * cin
    R = 8

    aT = jnp.transpose(patches.reshape(M, K)).astype(jnp.bfloat16)       # (K, M)
    wT = jnp.zeros((R, K), jnp.float32).at[:cout].set(
        w.reshape(K, cout).T).astype(jnp.bfloat16)                       # (R, K)
    bT = jnp.zeros((R, 1), jnp.float32).at[:cout, 0].set(b)
    rT = jnp.zeros((R, M), jnp.float32).at[:cout].set(resid.reshape(M, cout).T)

    out = pl.pallas_call(
        _conv_add_tanh_kernel,
        out_shape=jax.ShapeDtypeStruct((R, M), jnp.float32),
        grid=(1,),
        in_specs=[
            pl.BlockSpec((R, K), lambda i: (0, 0)),
            pl.BlockSpec((K, M), lambda i: (0, 0)),
            pl.BlockSpec((R, 1), lambda i: (0, 0)),
            pl.BlockSpec((R, M), lambda i: (0, 0)),
        ],
        out_specs=pl.BlockSpec((R, M), lambda i: (0, 0)),
    )(wT, aT, bT, rT)
    return jnp.transpose(out[:cout]).reshape(N, Ho, Wo, cout)


# ===================== fused 9-residual-block chain kernels =====================

@functools.lru_cache(maxsize=None)
def _reflect_tap_mats(H, W):
    """Constant (9*H*W, H*W) stacked row-gather matrices: tap t of a reflect-padded
    3x3 conv is rows [t*HW:(t+1)*HW] of (P @ a); keeps the in-kernel conv purely
    2-D (no spatial reshapes) and lets ALL 9 taps be gathered with one matmul."""
    def refl(v, n):
        if v < 0:
            return -v
        if v >= n:
            return 2 * n - 2 - v
        return v
    HW = H * W
    mats = np.zeros((9 * HW, HW), np.float32)
    t = 0
    for dy in (-1, 0, 1):
        for dx in (-1, 0, 1):
            for i in range(H):
                for j in range(W):
                    mats[t * HW + i * W + j,
                         refl(i + dy, H) * W + refl(j + dx, W)] = 1.0
            t += 1
    return jnp.asarray(mats, jnp.bfloat16)


def _res_conv3x3(a, p_ref, w_ref, b_ref, relu):
    """Reflect-pad-1 3x3 conv + IN (+ReLU) on a (HW, C) activation, in-kernel.
    Two MXU matmuls: stacked tap gather (9HW,HW)@(HW,C) then deep-K weight
    matmul (HW,9C)@(9C,C)."""
    HW, C = a.shape
    a_bf = a.astype(jnp.bfloat16)
    g = jnp.dot(p_ref[...], a_bf, preferred_element_type=jnp.float32)   # (9HW, C)
    g_bf = g.astype(jnp.bfloat16)
    patch = jnp.concatenate([g_bf[t * HW:(t + 1) * HW] for t in range(9)],
                            axis=-1)                                     # (HW, 9C)
    acc = jnp.dot(patch, w_ref[0], preferred_element_type=jnp.float32)   # (HW, C)
    acc = acc + b_ref[0]
    mean = jnp.mean(acc, axis=0, keepdims=True)
    cent = acc - mean
    var = jnp.mean(cent * cent, axis=0, keepdims=True)
    y = cent * jax.lax.rsqrt(var + EPS)
    if relu:
        y = jnp.maximum(y, 0.0)
    return y


def _res_body(a, p_ref, w1_ref, b1_ref, w2_ref, b2_ref):
    y = _res_conv3x3(a, p_ref, w1_ref, b1_ref, relu=True)
    return _res_conv3x3(y, p_ref, w2_ref, b2_ref, relu=False)


def _res_chain_L_kernel(x_ref, p_ref, w1_ref, b1_ref, w2_ref, b2_ref,
                        out_ref, f0_ref, f1_ref, acc_ref):
    k = pl.program_id(1)

    @pl.when(k == 0)
    def _():
        acc_ref[...] = x_ref[0]

    acc = acc_ref[...]
    new = acc + _res_body(acc, p_ref, w1_ref, b1_ref, w2_ref, b2_ref)
    acc_ref[...] = new

    @pl.when(k == 0)
    def _():
        f0_ref[0] = new          # x4_L

    @pl.when(k == 1)
    def _():
        f1_ref[0] = new          # x5_L

    @pl.when(k == pl.num_programs(1) - 1)
    def _():
        out_ref[0] = new         # x12_L


def _res_chain_b_kernel(x_ref, lf_ref, p_ref, w1_ref, b1_ref, w2_ref, b2_ref,
                        out_ref, acc_ref):
    k = pl.program_id(1)

    @pl.when(k == 0)
    def _():
        acc_ref[...] = x_ref[0]

    acc = acc_ref[...]
    # blocks 0..2 multiply the carried activation by x3_L / x4_L / x5_L
    lf = jnp.where(k == 0, lf_ref[0], jnp.where(k == 1, lf_ref[1], lf_ref[2]))
    inp = jnp.where(k < 3, acc * lf, acc)

    new = acc + _res_body(inp, p_ref, w1_ref, b1_ref, w2_ref, b2_ref)
    acc_ref[...] = new

    @pl.when(k == pl.num_programs(1) - 1)
    def _():
        out_ref[0] = new


def _pack_res_weights(blocks, C):
    # weights packed tap-major as (9*C, C) so the in-kernel conv is one deep-K matmul
    w1 = jnp.stack([p["w1"].reshape(9 * C, C) for p in blocks]).astype(jnp.bfloat16)
    b1 = jnp.stack([p["b1"].reshape(1, C) for p in blocks]).astype(jnp.float32)
    w2 = jnp.stack([p["w2"].reshape(9 * C, C) for p in blocks]).astype(jnp.bfloat16)
    b2 = jnp.stack([p["b2"].reshape(1, C) for p in blocks]).astype(jnp.float32)
    return w1, b1, w2, b2


def res_chain_L(x3, blocks):
    N, H, W, C = x3.shape
    HW = H * W
    nb = len(blocks)
    P = _reflect_tap_mats(H, W)
    w1, b1, w2, b2 = _pack_res_weights(blocks, C)
    xr = x3.reshape(N, HW, C)
    sds = jax.ShapeDtypeStruct((N, HW, C), jnp.float32)
    out, f0, f1 = pl.pallas_call(
        _res_chain_L_kernel,
        out_shape=(sds, sds, sds),
        grid=(N, nb),
        in_specs=[
            pl.BlockSpec((1, HW, C), lambda n, k: (n, 0, 0)),
            pl.BlockSpec((9 * HW, HW), lambda n, k: (0, 0)),
            pl.BlockSpec((1, 9 * C, C), lambda n, k: (k, 0, 0)),
            pl.BlockSpec((1, 1, C), lambda n, k: (k, 0, 0)),
            pl.BlockSpec((1, 9 * C, C), lambda n, k: (k, 0, 0)),
            pl.BlockSpec((1, 1, C), lambda n, k: (k, 0, 0)),
        ],
        out_specs=(
            pl.BlockSpec((1, HW, C), lambda n, k: (n, 0, 0)),
            pl.BlockSpec((1, HW, C), lambda n, k: (n, 0, 0)),
            pl.BlockSpec((1, HW, C), lambda n, k: (n, 0, 0)),
        ),
        scratch_shapes=[pltpu.VMEM((HW, C), jnp.float32)],
        compiler_params=pltpu.CompilerParams(
            dimension_semantics=("parallel", "arbitrary")),
    )(xr, P, w1, b1, w2, b2)
    return (out.reshape(N, H, W, C), f0.reshape(N, H, W, C), f1.reshape(N, H, W, C))


def res_chain_b(x3, x3_L, x4_L, x5_L, blocks):
    N, H, W, C = x3.shape
    HW = H * W
    nb = len(blocks)
    P = _reflect_tap_mats(H, W)
    w1, b1, w2, b2 = _pack_res_weights(blocks, C)
    xr = x3.reshape(N, HW, C)
    lf = jnp.stack([x3_L.reshape(N, HW, C), x4_L.reshape(N, HW, C),
                    x5_L.reshape(N, HW, C)], axis=1).reshape(N * 3, HW, C)
    out = pl.pallas_call(
        _res_chain_b_kernel,
        out_shape=jax.ShapeDtypeStruct((N, HW, C), jnp.float32),
        grid=(N, nb),
        in_specs=[
            pl.BlockSpec((1, HW, C), lambda n, k: (n, 0, 0)),
            pl.BlockSpec((3, HW, C), lambda n, k: (n, 0, 0)),
            pl.BlockSpec((9 * HW, HW), lambda n, k: (0, 0)),
            pl.BlockSpec((1, 9 * C, C), lambda n, k: (k, 0, 0)),
            pl.BlockSpec((1, 1, C), lambda n, k: (k, 0, 0)),
            pl.BlockSpec((1, 9 * C, C), lambda n, k: (k, 0, 0)),
            pl.BlockSpec((1, 1, C), lambda n, k: (k, 0, 0)),
        ],
        out_specs=pl.BlockSpec((1, HW, C), lambda n, k: (n, 0, 0)),
        scratch_shapes=[pltpu.VMEM((HW, C), jnp.float32)],
        compiler_params=pltpu.CompilerParams(
            dimension_semantics=("parallel", "arbitrary")),
    )(xr, lf, P, w1, b1, w2, b2)
    return out.reshape(N, H, W, C)


# ================================= parameters ===================================

def _conv_params(key, kh, kw, cin, cout):
    kw_, kb_ = jax.random.split(key)
    scale = 1.0 / jnp.sqrt(float(kh * kw * cin))
    return {
        "w": jax.random.normal(kw_, (kh, kw, cin, cout), jnp.float32) * scale,
        "b": jax.random.normal(kb_, (cout,), jnp.float32) * 0.01,
    }


def _res_params(key, c):
    k1, k2 = jax.random.split(key)
    p1, p2 = _conv_params(k1, 3, 3, c, c), _conv_params(k2, 3, 3, c, c)
    return {"w1": p1["w"], "b1": p1["b"], "w2": p2["w"], "b2": p2["b"]}


def init_params(key):
    keys = jax.random.split(key, 32)
    it = iter(keys)
    L = {
        "conv1": _conv_params(next(it), 7, 7, 2, 32),
        "down2": _conv_params(next(it), 3, 3, 32, 64),
        "down3": _conv_params(next(it), 3, 3, 64, 128),
        "res": [_res_params(next(it), 128) for _ in range(9)],
        "up13": _conv_params(next(it), 3, 3, 128, 64),
        "up14": _conv_params(next(it), 3, 3, 64, 32),
        "conv15": _conv_params(next(it), 7, 7, 32, 1),
    }
    b = {
        "conv1": _conv_params(next(it), 7, 7, 4, 32),
        "down2": _conv_params(next(it), 3, 3, 32, 64),
        "down3": _conv_params(next(it), 3, 3, 64, 128),
        "blocks": [_res_params(next(it), 128) for _ in range(9)],
        "up13": _conv_params(next(it), 3, 3, 128, 64),
        "up14": _conv_params(next(it), 3, 3, 64, 32),
        "conv15": _conv_params(next(it), 7, 7, 32, 3),
    }
    return {"L": L, "b": b}


# =================================== forward ====================================

def generator_f2s(params, xin, xinl, mask, maskl):
    pL, pb = params["L"], params["b"]

    # ----- L branch -----
    x_L = jnp.concatenate([xinl, maskl], axis=-1)                       # (N,H,W,2)
    x1_L = conv_in_stage(x_L, pL["conv1"], pad=3, pad_mode="reflect")
    x2_L = conv_in_stage(x1_L, pL["down2"], stride=2, pad=1)
    x3_L = conv_in_stage(x2_L, pL["down3"], stride=2, pad=1)

    x12_L, x4_L, x5_L = res_chain_L(x3_L, pL["res"])                    # one kernel

    xl = upconv_in_stage(x12_L, pL["up13"])
    xl = upconv_in_stage(xl, pL["up14"])
    xout_L = conv_add_tanh(xl, pL["conv15"]["w"], pL["conv15"]["b"], xinl, pad=3)

    # ----- b branch -----
    x = jnp.concatenate([xin, mask], axis=-1)                           # (N,H,W,4)
    x1 = conv_in_stage(x, pb["conv1"], pad=3, pad_mode="reflect")
    x2 = conv_in_stage(x1, pb["down2"], stride=2, pad=1)
    x3 = conv_in_stage(x2, pb["down3"], stride=2, pad=1)

    x12 = res_chain_b(x3, x3_L, x4_L, x5_L, pb["blocks"])               # one kernel

    xb = upconv_in_stage(x12, pb["up13"])
    xb = upconv_in_stage(xb, pb["up14"])
    xout = conv_add_tanh(xb, pb["conv15"]["w"], pb["conv15"]["b"], xin, pad=3)

    return xout, xout_L


# ===================================== main =====================================

if __name__ == "__main__":
    key = jax.random.PRNGKey(0)
    kp, k1, k2, k3, k4 = jax.random.split(key, 5)
    params = init_params(kp)

    N, H, W = 2, 16, 16
    xin = jax.random.normal(k1, (N, H, W, 3), jnp.float32)   # NHWC ~ NCHW (2,3,16,16)
    xinl = jax.random.normal(k2, (N, H, W, 1), jnp.float32)
    mask = jax.random.normal(k3, (N, H, W, 1), jnp.float32)
    maskl = jax.random.normal(k4, (N, H, W, 1), jnp.float32)

    fwd = jax.jit(generator_f2s)
    xout, xout_L = fwd(params, xin, xinl, mask, maskl)
    jax.block_until_ready((xout, xout_L))

    assert xout.shape == (N, H, W, 3) and xout_L.shape == (N, H, W, 1)
    assert bool(jnp.all(jnp.isfinite(xout))) and bool(jnp.all(jnp.isfinite(xout_L)))
    print("KERNEL_OK")
</pallas_src>

<mosaic_0001>
module attributes {stable_mosaic.version = 11 : i64} {
  func.func @_conv_in_kernel(%arg0: i32, %arg1: memref<1x256x392xbf16, #tpu.memory_space<vmem>>, %arg2: memref<392x32xbf16, #tpu.memory_space<vmem>>, %arg3: memref<1x32xf32, #tpu.memory_space<vmem>>, %arg4: memref<1x256x32xf32, #tpu.memory_space<vmem>>) attributes {dimension_semantics = [#tpu.dimension_semantics<parallel>], iteration_bounds = array<i64: 2>, scalar_prefetch = 0 : i64, scratch_operands = 0 : i64, tpu.core_type = #tpu.core_type<tc>, window_params = [{transform_indices = @transform_0, window_bounds = array<i64: 1, 256, 392>}, {pipeline_mode = #tpu.pipeline_mode<synchronous>, transform_indices = @transform_1, window_bounds = array<i64: 392, 32>}, {pipeline_mode = #tpu.pipeline_mode<synchronous>, transform_indices = @transform_2, window_bounds = array<i64: 1, 32>}, {transform_indices = @transform_3, window_bounds = array<i64: 1, 256, 32>}]} {
    %c0 = arith.constant 0 : index
    %c0_0 = arith.constant 0 : index
    %c0_1 = arith.constant 0 : index
    %0 = vector.load %arg1[%c0, %c0_0, %c0_1] : memref<1x256x392xbf16, #tpu.memory_space<vmem>>, vector<1x256x392xbf16>
    %1 = vector.shape_cast %0 : vector<1x256x392xbf16> to vector<256x392xbf16>
    %c0_2 = arith.constant 0 : index
    %c0_3 = arith.constant 0 : index
    %2 = vector.load %arg2[%c0_2, %c0_3] : memref<392x32xbf16, #tpu.memory_space<vmem>>, vector<392x32xbf16>
    %cst = arith.constant dense<0.000000e+00> : vector<256x32xf32>
    %3 = tpu.matmul %1, %2, %cst {dimension_numbers = #tpu.dot_dimension_numbers<[1], [0], [0], [1], [0, 0, 1, 1], [], []>} : vector<256x392xbf16>, vector<392x32xbf16>, vector<256x32xf32> -> vector<256x32xf32>
    %c0_4 = arith.constant 0 : index
    %c0_5 = arith.constant 0 : index
    %4 = vector.load %arg3[%c0_4, %c0_5] : memref<1x32xf32, #tpu.memory_space<vmem>>, vector<1x32xf32>
    %5 = vector.broadcast %4 : vector<1x32xf32> to vector<256x32xf32>
    %6 = arith.addf %3, %5 : vector<256x32xf32>
    %cst_6 = arith.constant dense<0.000000e+00> : vector<32xf32>
    %7 = vector.multi_reduction <add>, %6, %cst_6 [0] : vector<256x32xf32> to vector<32xf32>
    %8 = vector.shape_cast %7 : vector<32xf32> to vector<1x32xf32>
    %cst_7 = arith.constant 2.560000e+02 : f32
    %9 = vector.broadcast %cst_7 : f32 to vector<1x32xf32>
    %10 = arith.divf %8, %9 : vector<1x32xf32>
    %11 = vector.broadcast %10 : vector<1x32xf32> to vector<256x32xf32>
    %12 = arith.subf %6, %11 : vector<256x32xf32>
    %13 = arith.mulf %12, %12 : vector<256x32xf32>
    %cst_8 = arith.constant dense<0.000000e+00> : vector<32xf32>
    %14 = vector.multi_reduction <add>, %13, %cst_8 [0] : vector<256x32xf32> to vector<32xf32>
    %15 = vector.shape_cast %14 : vector<32xf32> to vector<1x32xf32>
    %cst_9 = arith.constant 2.560000e+02 : f32
    %16 = vector.broadcast %cst_9 : f32 to vector<1x32xf32>
    %17 = arith.divf %15, %16 : vector<1x32xf32>
    %cst_10 = arith.constant 9.99999974E-6 : f32
    %18 = vector.broadcast %cst_10 : f32 to vector<1x32xf32>
    %19 = arith.addf %17, %18 : vector<1x32xf32>
    %20 = math.rsqrt %19 : vector<1x32xf32>
    %21 = vector.broadcast %20 : vector<1x32xf32> to vector<256x32xf32>
    %22 = arith.mulf %12, %21 : vector<256x32xf32>
    %cst_11 = arith.constant 0.000000e+00 : f32
    %23 = vector.broadcast %cst_11 : f32 to vector<256x32xf32>
    %24 = arith.maximumf %22, %23 : vector<256x32xf32>
    %c0_12 = arith.constant 0 : index
    %c0_13 = arith.constant 0 : index
    %c0_14 = arith.constant 0 : index
    %25 = vector.load %arg4[%c0_12, %c0_13, %c0_14] : memref<1x256x32xf32, #tpu.memory_space<vmem>>, vector<1x256x32xf32>
    %26 = vector.shape_cast %25 : vector<1x256x32xf32> to vector<256x32xf32>
    %27 = vector.shape_cast %24 : vector<256x32xf32> to vector<1x256x32xf32>
    tpu.vector_store %arg4[%c0_12, %c0_13, %c0_14], %27 {strides = array<i32>} : memref<1x256x32xf32, #tpu.memory_space<vmem>>, vector<1x256x32xf32>,
    return
  }
  func.func @transform_0(%arg0: i32) -> (i32, i32, i32) {
    %c0_i32 = arith.constant 0 : i32
    %c0_i32_0 = arith.constant 0 : i32
    %c0_i32_1 = arith.constant 0 : i32
    return %arg0, %c0_i32, %c0_i32_0 : i32, i32, i32
  }
  func.func @transform_1(%arg0: i32) -> (i32, i32) {
    %c0_i32 = arith.constant 0 : i32
    %c0_i32_0 = arith.constant 0 : i32
    %c0_i32_1 = arith.constant 0 : i32
    return %c0_i32, %c0_i32_0 : i32, i32
  }
  func.func @transform_2(%arg0: i32) -> (i32, i32) {
    %c0_i32 = arith.constant 0 : i32
    %c0_i32_0 = arith.constant 0 : i32
    %c0_i32_1 = arith.constant 0 : i32
    return %c0_i32, %c0_i32_0 : i32, i32
  }
  func.func @transform_3(%arg0: i32) -> (i32, i32, i32) {
    %c0_i32 = arith.constant 0 : i32
    %c0_i32_0 = arith.constant 0 : i32
    %c0_i32_1 = arith.constant 0 : i32
    return %arg0, %c0_i32, %c0_i32_0 : i32, i32, i32
  }
}

module attributes {stable_mosaic.version = 11 : i64} {
  func.func @_conv_in_kernel(%arg0: i32, %arg1: memref<1x64x288xbf16, #tpu.memory_space<vmem>>, %arg2: memref<288x64xbf16, #tpu.memory_space<vmem>>, %arg3: memref<1x64xf32, #tpu.memory_space<vmem>>, %arg4: memref<1x64x64xf32, #tpu.memory_space<vmem>>) attributes {dimension_semantics = [#tpu.dimension_semantics<parallel>], iteration_bounds = array<i64: 2>, scalar_prefetch = 0 : i64, scratch_operands = 0 : i64, tpu.core_type = #tpu.core_type<tc>, window_params = [{transform_indices = @transform_0, window_bounds = array<i64: 1, 64, 288>}, {pipeline_mode = #tpu.pipeline_mode<synchronous>, transform_indices = @transform_1, window_bounds = array<i64: 288, 64>}, {pipeline_mode = #tpu.pipeline_mode<synchronous>, transform_indices = @transform_2, window_bounds = array<i64: 1, 64>}, {transform_indices = @transform_3, window_bounds = array<i64: 1, 64, 64>}]} {
    %c0 = arith.constant 0 : index
    %c0_0 = arith.constant 0 : index
    %c0_1 = arith.constant 0 : index
    %0 = vector.load %arg1[%c0, %c0_0, %c0_1] : memref<1x64x288xbf16, #tpu.memory_space<vmem>>, vector<1x64x288xbf16>
    %1 = vector.shape_cast %0 : vector<1x64x288xbf16> to vector<64x288xbf16>
    %c0_2 = arith.constant 0 : index
    %c0_3 = arith.constant 0 : index
    %2 = vector.load %arg2[%c0_2, %c0_3] : memref<288x64xbf16, #tpu.memory_space<vmem>>, vector<288x64xbf16>
    %cst = arith.constant dense<0.000000e+00> : vector<64x64xf32>
    %3 = tpu.matmul %1, %2, %cst {dimension_numbers = #tpu.dot_dimension_numbers<[1], [0], [0], [1], [0, 0, 1, 1], [], []>} : vector<64x288xbf16>, vector<288x64xbf16>, vector<64x64xf32> -> vector<64x64xf32>
    %c0_4 = arith.constant 0 : index
    %c0_5 = arith.constant 0 : index
    %4 = vector.load %arg3[%c0_4, %c0_5] : memref<1x64xf32, #tpu.memory_space<vmem>>, vector<1x64xf32>
    %5 = vector.broadcast %4 : vector<1x64xf32> to vector<64x64xf32>
    %6 = arith.addf %3, %5 : vector<64x64xf32>
    %cst_6 = arith.constant dense<0.000000e+00> : vector<64xf32>
    %7 = vector.multi_reduction <add>, %6, %cst_6 [0] : vector<64x64xf32> to vector<64xf32>
    %8 = vector.shape_cast %7 : vector<64xf32> to vector<1x64xf32>
    %cst_7 = arith.constant 6.400000e+01 : f32
    %9 = vector.broadcast %cst_7 : f32 to vector<1x64xf32>
    %10 = arith.divf %8, %9 : vector<1x64xf32>
    %11 = vector.broadcast %10 : vector<1x64xf32> to vector<64x64xf32>
    %12 = arith.subf %6, %11 : vector<64x64xf32>
    %13 = arith.mulf %12, %12 : vector<64x64xf32>
    %cst_8 = arith.constant dense<0.000000e+00> : vector<64xf32>
    %14 = vector.multi_reduction <add>, %13, %cst_8 [0] : vector<64x64xf32> to vector<64xf32>
    %15 = vector.shape_cast %14 : vector<64xf32> to vector<1x64xf32>
    %cst_9 = arith.constant 6.400000e+01 : f32
    %16 = vector.broadcast %cst_9 : f32 to vector<1x64xf32>
    %17 = arith.divf %15, %16 : vector<1x64xf32>
    %cst_10 = arith.constant 9.99999974E-6 : f32
    %18 = vector.broadcast %cst_10 : f32 to vector<1x64xf32>
    %19 = arith.addf %17, %18 : vector<1x64xf32>
    %20 = math.rsqrt %19 : vector<1x64xf32>
    %21 = vector.broadcast %20 : vector<1x64xf32> to vector<64x64xf32>
    %22 = arith.mulf %12, %21 : vector<64x64xf32>
    %cst_11 = arith.constant 0.000000e+00 : f32
    %23 = vector.broadcast %cst_11 : f32 to vector<64x64xf32>
    %24 = arith.maximumf %22, %23 : vector<64x64xf32>
    %c0_12 = arith.constant 0 : index
    %c0_13 = arith.constant 0 : index
    %c0_14 = arith.constant 0 : index
    %25 = vector.load %arg4[%c0_12, %c0_13, %c0_14] : memref<1x64x64xf32, #tpu.memory_space<vmem>>, vector<1x64x64xf32>
    %26 = vector.shape_cast %25 : vector<1x64x64xf32> to vector<64x64xf32>
    %27 = vector.shape_cast %24 : vector<64x64xf32> to vector<1x64x64xf32>
    tpu.vector_store %arg4[%c0_12, %c0_13, %c0_14], %27 {strides = array<i32>} : memref<1x64x64xf32, #tpu.memory_space<vmem>>, vector<1x64x64xf32>,
    return
  }
  func.func @transform_0(%arg0: i32) -> (i32, i32, i32) {
    %c0_i32 = arith.constant 0 : i32
    %c0_i32_0 = arith.constant 0 : i32
    %c0_i32_1 = arith.constant 0 : i32
    return %arg0, %c0_i32, %c0_i32_0 : i32, i32, i32
  }
  func.func @transform_1(%arg0: i32) -> (i32, i32) {
    %c0_i32 = arith.constant 0 : i32
    %c0_i32_0 = arith.constant 0 : i32
    %c0_i32_1 = arith.constant 0 : i32
    return %c0_i32, %c0_i32_0 : i32, i32
  }
  func.func @transform_2(%arg0: i32) -> (i32, i32) {
    %c0_i32 = arith.constant 0 : i32
    %c0_i32_0 = arith.constant 0 : i32
    %c0_i32_1 = arith.constant 0 : i32
    return %c0_i32, %c0_i32_0 : i32, i32
  }
  func.func @transform_3(%arg0: i32) -> (i32, i32, i32) {
    %c0_i32 = arith.constant 0 : i32
    %c0_i32_0 = arith.constant 0 : i32
    %c0_i32_1 = arith.constant 0 : i32
    return %arg0, %c0_i32, %c0_i32_0 : i32, i32, i32
  }
}

module attributes {stable_mosaic.version = 11 : i64} {
  func.func @_conv_in_kernel(%arg0: i32, %arg1: memref<1x16x576xbf16, #tpu.memory_space<vmem>>, %arg2: memref<576x128xbf16, #tpu.memory_space<vmem>>, %arg3: memref<1x128xf32, #tpu.memory_space<vmem>>, %arg4: memref<1x16x128xf32, #tpu.memory_space<vmem>>) attributes {dimension_semantics = [#tpu.dimension_semantics<parallel>], iteration_bounds = array<i64: 2>, scalar_prefetch = 0 : i64, scratch_operands = 0 : i64, tpu.core_type = #tpu.core_type<tc>, window_params = [{transform_indices = @transform_0, window_bounds = array<i64: 1, 16, 576>}, {pipeline_mode = #tpu.pipeline_mode<synchronous>, transform_indices = @transform_1, window_bounds = array<i64: 576, 128>}, {pipeline_mode = #tpu.pipeline_mode<synchronous>, transform_indices = @transform_2, window_bounds = array<i64: 1, 128>}, {transform_indices = @transform_3, window_bounds = array<i64: 1, 16, 128>}]} {
    %c0 = arith.constant 0 : index
    %c0_0 = arith.constant 0 : index
    %c0_1 = arith.constant 0 : index
    %0 = vector.load %arg1[%c0, %c0_0, %c0_1] : memref<1x16x576xbf16, #tpu.memory_space<vmem>>, vector<1x16x576xbf16>
    %1 = vector.shape_cast %0 : vector<1x16x576xbf16> to vector<16x576xbf16>
    %c0_2 = arith.constant 0 : index
    %c0_3 = arith.constant 0 : index
    %2 = vector.load %arg2[%c0_2, %c0_3] : memref<576x128xbf16, #tpu.memory_space<vmem>>, vector<576x128xbf16>
    %cst = arith.constant dense<0.000000e+00> : vector<16x128xf32>
    %3 = tpu.matmul %1, %2, %cst {dimension_numbers = #tpu.dot_dimension_numbers<[1], [0], [0], [1], [0, 0, 1, 1], [], []>} : vector<16x576xbf16>, vector<576x128xbf16>, vector<16x128xf32> -> vector<16x128xf32>
    %c0_4 = arith.constant 0 : index
    %c0_5 = arith.constant 0 : index
    %4 = vector.load %arg3[%c0_4, %c0_5] : memref<1x128xf32, #tpu.memory_space<vmem>>, vector<1x128xf32>
    %5 = vector.broadcast %4 : vector<1x128xf32> to vector<16x128xf32>
    %6 = arith.addf %3, %5 : vector<16x128xf32>
    %cst_6 = arith.constant dense<0.000000e+00> : vector<128xf32>
    %7 = vector.multi_reduction <add>, %6, %cst_6 [0] : vector<16x128xf32> to vector<128xf32>
    %8 = vector.shape_cast %7 : vector<128xf32> to vector<1x128xf32>
    %cst_7 = arith.constant 1.600000e+01 : f32
    %9 = vector.broadcast %cst_7 : f32 to vector<1x128xf32>
    %10 = arith.divf %8, %9 : vector<1x128xf32>
    %11 = vector.broadcast %10 : vector<1x128xf32> to vector<16x128xf32>
    %12 = arith.subf %6, %11 : vector<16x128xf32>
    %13 = arith.mulf %12, %12 : vector<16x128xf32>
    %cst_8 = arith.constant dense<0.000000e+00> : vector<128xf32>
    %14 = vector.multi_reduction <add>, %13, %cst_8 [0] : vector<16x128xf32> to vector<128xf32>
    %15 = vector.shape_cast %14 : vector<128xf32> to vector<1x128xf32>
    %cst_9 = arith.constant 1.600000e+01 : f32
    %16 = vector.broadcast %cst_9 : f32 to vector<1x128xf32>
    %17 = arith.divf %15, %16 : vector<1x128xf32>
    %cst_10 = arith.constant 9.99999974E-6 : f32
    %18 = vector.broadcast %cst_10 : f32 to vector<1x128xf32>
    %19 = arith.addf %17, %18 : vector<1x128xf32>
    %20 = math.rsqrt %19 : vector<1x128xf32>
    %21 = vector.broadcast %20 : vector<1x128xf32> to vector<16x128xf32>
    %22 = arith.mulf %12, %21 : vector<16x128xf32>
    %cst_11 = arith.constant 0.000000e+00 : f32
    %23 = vector.broadcast %cst_11 : f32 to vector<16x128xf32>
    %24 = arith.maximumf %22, %23 : vector<16x128xf32>
    %c0_12 = arith.constant 0 : index
    %c0_13 = arith.constant 0 : index
    %c0_14 = arith.constant 0 : index
    %25 = vector.load %arg4[%c0_12, %c0_13, %c0_14] : memref<1x16x128xf32, #tpu.memory_space<vmem>>, vector<1x16x128xf32>
    %26 = vector.shape_cast %25 : vector<1x16x128xf32> to vector<16x128xf32>
    %27 = vector.shape_cast %24 : vector<16x128xf32> to vector<1x16x128xf32>
    tpu.vector_store %arg4[%c0_12, %c0_13, %c0_14], %27 {strides = array<i32>} : memref<1x16x128xf32, #tpu.memory_space<vmem>>, vector<1x16x128xf32>,
    return
  }
  func.func @transform_0(%arg0: i32) -> (i32, i32, i32) {
    %c0_i32 = arith.constant 0 : i32
    %c0_i32_0 = arith.constant 0 : i32
    %c0_i32_1 = arith.constant 0 : i32
    return %arg0, %c0_i32, %c0_i32_0 : i32, i32, i32
  }
  func.func @transform_1(%arg0: i32) -> (i32, i32) {
    %c0_i32 = arith.constant 0 : i32
    %c0_i32_0 = arith.constant 0 : i32
    %c0_i32_1 = arith.constant 0 : i32
    return %c0_i32, %c0_i32_0 : i32, i32
  }
  func.func @transform_2(%arg0: i32) -> (i32, i32) {
    %c0_i32 = arith.constant 0 : i32
    %c0_i32_0 = arith.constant 0 : i32
    %c0_i32_1 = arith.constant 0 : i32
    return %c0_i32, %c0_i32_0 : i32, i32
  }
  func.func @transform_3(%arg0: i32) -> (i32, i32, i32) {
    %c0_i32 = arith.constant 0 : i32
    %c0_i32_0 = arith.constant 0 : i32
    %c0_i32_1 = arith.constant 0 : i32
    return %arg0, %c0_i32, %c0_i32_0 : i32, i32, i32
  }
}

module attributes {stable_mosaic.version = 11 : i64} {
  func.func @_res_chain_b_kernel(%arg0: i32, %arg1: i32, %arg2: memref<1x16x128xf32, #tpu.memory_space<vmem>>, %arg3: memref<3x16x128xf32, #tpu.memory_space<vmem>>, %arg4: memref<144x16xbf16, #tpu.memory_space<vmem>>, %arg5: memref<1x1152x128xbf16, #tpu.memory_space<vmem>>, %arg6: memref<1x1x128xf32, #tpu.memory_space<vmem>>, %arg7: memref<1x1152x128xbf16, #tpu.memory_space<vmem>>, %arg8: memref<1x1x128xf32, #tpu.memory_space<vmem>>, %arg9: memref<1x16x128xf32, #tpu.memory_space<vmem>>, %arg10: memref<16x128xf32, #tpu.memory_space<vmem>>) attributes {dimension_semantics = [#tpu.dimension_semantics<parallel>, #tpu.dimension_semantics<arbitrary>], iteration_bounds = array<i64: 2, 9>, scalar_prefetch = 0 : i64, scratch_operands = 1 : i64, tpu.core_type = #tpu.core_type<tc>, window_params = [{transform_indices = @transform_0, window_bounds = array<i64: 1, 16, 128>}, {transform_indices = @transform_1, window_bounds = array<i64: 3, 16, 128>}, {pipeline_mode = #tpu.pipeline_mode<synchronous>, transform_indices = @transform_2, window_bounds = array<i64: 144, 16>}, {transform_indices = @transform_3, window_bounds = array<i64: 1, 1152, 128>}, {transform_indices = @transform_4, window_bounds = array<i64: 1, 1, 128>}, {transform_indices = @transform_5, window_bounds = array<i64: 1, 1152, 128>}, {transform_indices = @transform_6, window_bounds = array<i64: 1, 1, 128>}, {transform_indices = @transform_7, window_bounds = array<i64: 1, 16, 128>}]} {
    %c0_i32 = arith.constant 0 : i32
    %0 = arith.cmpi eq, %arg1, %c0_i32 : i32
    %1 = arith.extui %0 : i1 to i32
    %c0_i32_0 = arith.constant 0 : i32
    %2 = arith.cmpi ne, %1, %c0_i32_0 : i32
    scf.if %2 {
      %c0_43 = arith.constant 0 : index
      %c0_44 = arith.constant 0 : index
      %c0_45 = arith.constant 0 : index
      %98 = vector.load %arg2[%c0_43, %c0_44, %c0_45] : memref<1x16x128xf32, #tpu.memory_space<vmem>>, vector<1x16x128xf32>
      %99 = vector.shape_cast %98 : vector<1x16x128xf32> to vector<16x128xf32>
      %c0_46 = arith.constant 0 : index
      %c0_47 = arith.constant 0 : index
      %100 = vector.load %arg10[%c0_46, %c0_47] : memref<16x128xf32, #tpu.memory_space<vmem>>, vector<16x128xf32>
      tpu.vector_store %arg10[%c0_46, %c0_47], %99 {strides = array<i32>} : memref<16x128xf32, #tpu.memory_space<vmem>>, vector<16x128xf32>,
    } else {
    }
    %c0 = arith.constant 0 : index
    %c0_1 = arith.constant 0 : index
    %3 = vector.load %arg10[%c0, %c0_1] : memref<16x128xf32, #tpu.memory_space<vmem>>, vector<16x128xf32>
    %c0_i32_2 = arith.constant 0 : i32
    %4 = arith.cmpi eq, %arg1, %c0_i32_2 : i32
    %c0_3 = arith.constant 0 : index
    %c0_4 = arith.constant 0 : index
    %c0_5 = arith.constant 0 : index
    %5 = vector.load %arg3[%c0_3, %c0_4, %c0_5] : memref<3x16x128xf32, #tpu.memory_space<vmem>>, vector<1x16x128xf32>
    %6 = vector.shape_cast %5 : vector<1x16x128xf32> to vector<16x128xf32>
    %c1_i32 = arith.constant 1 : i32
    %7 = arith.cmpi eq, %arg1, %c1_i32 : i32
    %c1 = arith.constant 1 : index
    %c0_6 = arith.constant 0 : index
    %c0_7 = arith.constant 0 : index
    %8 = vector.load %arg3[%c1, %c0_6, %c0_7] : memref<3x16x128xf32, #tpu.memory_space<vmem>>, vector<1x16x128xf32>
    %9 = vector.shape_cast %8 : vector<1x16x128xf32> to vector<16x128xf32>
    %c2 = arith.constant 2 : index
    %c0_8 = arith.constant 0 : index
    %c0_9 = arith.constant 0 : index
    %10 = vector.load %arg3[%c2, %c0_8, %c0_9] : memref<3x16x128xf32, #tpu.memory_space<vmem>>, vector<1x16x128xf32>
    %11 = vector.shape_cast %10 : vector<1x16x128xf32> to vector<16x128xf32>
    %12 = arith.select %7, %9, %11 : vector<16x128xf32>
    %13 = arith.select %4, %6, %12 : vector<16x128xf32>
    %c3_i32 = arith.constant 3 : i32
    %14 = arith.cmpi slt, %arg1, %c3_i32 : i32
    %15 = arith.mulf %3, %13 : vector<16x128xf32>
    %16 = arith.select %14, %15, %3 : vector<16x128xf32>
    %17 = arith.truncf %16 : vector<16x128xf32> to vector<16x128xbf16>
    %c0_10 = arith.constant 0 : index
    %c0_11 = arith.constant 0 : index
    %18 = vector.load %arg4[%c0_10, %c0_11] : memref<144x16xbf16, #tpu.memory_space<vmem>>, vector<144x16xbf16>
    %cst = arith.constant dense<0.000000e+00> : vector<144x128xf32>
    %19 = tpu.matmul %18, %17, %cst {dimension_numbers = #tpu.dot_dimension_numbers<[1], [0], [0], [1], [0, 0, 1, 1], [], []>} : vector<144x16xbf16>, vector<16x128xbf16>, vector<144x128xf32> -> vector<144x128xf32>
    %20 = arith.truncf %19 : vector<144x128xf32> to vector<144x128xbf16>
    %21 = vector.extract_strided_slice %20 {offsets = [0, 0], sizes = [16, 128], strides = [1, 1]} : vector<144x128xbf16> to vector<16x128xbf16>
    %22 = vector.extract_strided_slice %20 {offsets = [16, 0], sizes = [16, 128], strides = [1, 1]} : vector<144x128xbf16> to vector<16x128xbf16>
    %23 = vector.extract_strided_slice %20 {offsets = [32, 0], sizes = [16, 128], strides = [1, 1]} : vector<144x128xbf16> to vector<16x128xbf16>
    %24 = vector.extract_strided_slice %20 {offsets = [48, 0], sizes = [16, 128], strides = [1, 1]} : vector<144x128xbf16> to vector<16x128xbf16>
    %25 = vector.extract_strided_slice %20 {offsets = [64, 0], sizes = [16, 128], strides = [1, 1]} : vector<144x128xbf16> to vector<16x128xbf16>
    %26 = vector.extract_strided_slice %20 {offsets = [80, 0], sizes = [16, 128], strides = [1, 1]} : vector<144x128xbf16> to vector<16x128xbf16>
    %27 = vector.extract_strided_slice %20 {offsets = [96, 0], sizes = [16, 128], strides = [1, 1]} : vector<144x128xbf16> to vector<16x128xbf16>
    %28 = vector.extract_strided_slice %20 {offsets = [112, 0], sizes = [16, 128], strides = [1, 1]} : vector<144x128xbf16> to vector<16x128xbf16>
    %29 = vector.extract_strided_slice %20 {offsets = [128, 0], sizes = [16, 128], strides = [1, 1]} : vector<144x128xbf16> to vector<16x128xbf16>
    %30 = tpu.concatenate %21, %22, %23, %24, %25, %26, %27, %28, %29 in 1 : vector<16x128xbf16>, vector<16x128xbf16>, vector<16x128xbf16>, vector<16x128xbf16>, vector<16x128xbf16>, vector<16x128xbf16>, vector<16x128xbf16>, vector<16x128xbf16>, vector<16x128xbf16> -> vector<16x1152xbf16>
    %c0_12 = arith.constant 0 : index
    %c0_13 = arith.constant 0 : index
    %c0_14 = arith.constant 0 : index
    %31 = vector.load %arg5[%c0_12, %c0_13, %c0_14] : memref<1x1152x128xbf16, #tpu.memory_space<vmem>>, vector<1x1152x128xbf16>
    %32 = vector.shape_cast %31 : vector<1x1152x128xbf16> to vector<1152x128xbf16>
    %cst_15 = arith.constant dense<0.000000e+00> : vector<16x128xf32>
    %33 = tpu.matmul %30, %32, %cst_15 {dimension_numbers = #tpu.dot_dimension_numbers<[1], [0], [0], [1], [0, 0, 1, 1], [], []>} : vector<16x1152xbf16>, vector<1152x128xbf16>, vector<16x128xf32> -> vector<16x128xf32>
    %c0_16 = arith.constant 0 : index
    %c0_17 = arith.constant 0 : index
    %c0_18 = arith.constant 0 : index
    %34 = vector.load %arg6[%c0_16, %c0_17, %c0_18] : memref<1x1x128xf32, #tpu.memory_space<vmem>>, vector<1x1x128xf32>
    %35 = vector.shape_cast %34 : vector<1x1x128xf32> to vector<1x128xf32>
    %36 = vector.broadcast %35 : vector<1x128xf32> to vector<16x128xf32>
    %37 = arith.addf %33, %36 : vector<16x128xf32>
    %cst_19 = arith.constant dense<0.000000e+00> : vector<128xf32>
    %38 = vector.multi_reduction <add>, %37, %cst_19 [0] : vector<16x128xf32> to vector<128xf32>
    %39 = vector.shape_cast %38 : vector<128xf32> to vector<1x128xf32>
    %cst_20 = arith.constant 1.600000e+01 : f32
    %40 = vector.broadcast %cst_20 : f32 to vector<1x128xf32>
    %41 = arith.divf %39, %40 : vector<1x128xf32>
    %42 = vector.broadcast %41 : vector<1x128xf32> to vector<16x128xf32>
    %43 = arith.subf %37, %42 : vector<16x128xf32>
    %44 = arith.mulf %43, %43 : vector<16x128xf32>
    %cst_21 = arith.constant dense<0.000000e+00> : vector<128xf32>
    %45 = vector.multi_reduction <add>, %44, %cst_21 [0] : vector<16x128xf32> to vector<128xf32>
    %46 = vector.shape_cast %45 : vector<128xf32> to vector<1x128xf32>
    %cst_22 = arith.constant 1.600000e+01 : f32
    %47 = vector.broadcast %cst_22 : f32 to vector<1x128xf32>
    %48 = arith.divf %46, %47 : vector<1x128xf32>
    %cst_23 = arith.constant 9.99999974E-6 : f32
    %49 = vector.broadcast %cst_23 : f32 to vector<1x128xf32>
    %50 = arith.addf %48, %49 : vector<1x128xf32>
    %51 = math.rsqrt %50 : vector<1x128xf32>
    %52 = vector.broadcast %51 : vector<1x128xf32> to vector<16x128xf32>
    %53 = arith.mulf %43, %52 : vector<16x128xf32>
    %cst_24 = arith.constant 0.000000e+00 : f32
    %54 = vector.broadcast %cst_24 : f32 to vector<16x128xf32>
    %55 = arith.maximumf %53, %54 : vector<16x128xf32>
    %56 = arith.truncf %55 : vector<16x128xf32> to vector<16x128xbf16>
    %c0_25 = arith.constant 0 : index
    %c0_26 = arith.constant 0 : index
    %57 = vector.load %arg4[%c0_25, %c0_26] : memref<144x16xbf16, #tpu.memory_space<vmem>>, vector<144x16xbf16>
    %cst_27 = arith.constant dense<0.000000e+00> : vector<144x128xf32>
    %58 = tpu.matmul %57, %56, %cst_27 {dimension_numbers = #tpu.dot_dimension_numbers<[1], [0], [0], [1], [0, 0, 1, 1], [], []>} : vector<144x16xbf16>, vector<16x128xbf16>, vector<144x128xf32> -> vector<144x128xf32>
    %59 = arith.truncf %58 : vector<144x128xf32> to vector<144x128xbf16>
    %60 = vector.extract_strided_slice %59 {offsets = [0, 0], sizes = [16, 128], strides = [1, 1]} : vector<144x128xbf16> to vector<16x128xbf16>
    %61 = vector.extract_strided_slice %59 {offsets = [16, 0], sizes = [16, 128], strides = [1, 1]} : vector<144x128xbf16> to vector<16x128xbf16>
    %62 = vector.extract_strided_slice %59 {offsets = [32, 0], sizes = [16, 128], strides = [1, 1]} : vector<144x128xbf16> to vector<16x128xbf16>
    %63 = vector.extract_strided_slice %59 {offsets = [48, 0], sizes = [16, 128], strides = [1, 1]} : vector<144x128xbf16> to vector<16x128xbf16>
    %64 = vector.extract_strided_slice %59 {offsets = [64, 0], sizes = [16, 128], strides = [1, 1]} : vector<144x128xbf16> to vector<16x128xbf16>
    %65 = vector.extract_strided_slice %59 {offsets = [80, 0], sizes = [16, 128], strides = [1, 1]} : vector<144x128xbf16> to vector<16x128xbf16>
    %66 = vector.extract_strided_slice %59 {offsets = [96, 0], sizes = [16, 128], strides = [1, 1]} : vector<144x128xbf16> to vector<16x128xbf16>
    %67 = vector.extract_strided_slice %59 {offsets = [112, 0], sizes = [16, 128], strides = [1, 1]} : vector<144x128xbf16> to vector<16x128xbf16>
    %68 = vector.extract_strided_slice %59 {offsets = [128, 0], sizes = [16, 128], strides = [1, 1]} : vector<144x128xbf16> to vector<16x128xbf16>
    %69 = tpu.concatenate %60, %61, %62, %63, %64, %65, %66, %67, %68 in 1 : vector<16x128xbf16>, vector<16x128xbf16>, vector<16x128xbf16>, vector<16x128xbf16>, vector<16x128xbf16>, vector<16x128xbf16>, vector<16x128xbf16>, vector<16x128xbf16>, vector<16x128xbf16> -> vector<16x1152xbf16>
    %c0_28 = arith.constant 0 : index
    %c0_29 = arith.constant 0 : index
    %c0_30 = arith.constant 0 : index
    %70 = vector.load %arg7[%c0_28, %c0_29, %c0_30] : memref<1x1152x128xbf16, #tpu.memory_space<vmem>>, vector<1x1152x128xbf16>
    %71 = vector.shape_cast %70 : vector<1x1152x128xbf16> to vector<1152x128xbf16>
    %cst_31 = arith.constant dense<0.000000e+00> : vector<16x128xf32>
    %72 = tpu.matmul %69, %71, %cst_31 {dimension_numbers = #tpu.dot_dimension_numbers<[1], [0], [0], [1], [0, 0, 1, 1], [], []>} : vector<16x1152xbf16>, vector<1152x128xbf16>, vector<16x128xf32> -> vector<16x128xf32>
    %c0_32 = arith.constant 0 : index
    %c0_33 = arith.constant 0 : index
    %c0_34 = arith.constant 0 : index
    %73 = vector.load %arg8[%c0_32, %c0_33, %c0_34] : memref<1x1x128xf32, #tpu.memory_space<vmem>>, vector<1x1x128xf32>
    %74 = vector.shape_cast %73 : vector<1x1x128xf32> to vector<1x128xf32>
    %75 = vector.broadcast %74 : vector<1x128xf32> to vector<16x128xf32>
    %76 = arith.addf %72, %75 : vector<16x128xf32>
    %cst_35 = arith.constant dense<0.000000e+00> : vector<128xf32>
    %77 = vector.multi_reduction <add>, %76, %cst_35 [0] : vector<16x128xf32> to vector<128xf32>
    %78 = vector.shape_cast %77 : vector<128xf32> to vector<1x128xf32>
    %cst_36 = arith.constant 1.600000e+01 : f32
    %79 = vector.broadcast %cst_36 : f32 to vector<1x128xf32>
    %80 = arith.divf %78, %79 : vector<1x128xf32>
    %81 = vector.broadcast %80 : vector<1x128xf32> to vector<16x128xf32>
    %82 = arith.subf %76, %81 : vector<16x128xf32>
    %83 = arith.mulf %82, %82 : vector<16x128xf32>
    %cst_37 = arith.constant dense<0.000000e+00> : vector<128xf32>
    %84 = vector.multi_reduction <add>, %83, %cst_37 [0] : vector<16x128xf32> to vector<128xf32>
    %85 = vector.shape_cast %84 : vector<128xf32> to vector<1x128xf32>
    %cst_38 = arith.constant 1.600000e+01 : f32
    %86 = vector.broadcast %cst_38 : f32 to vector<1x128xf32>
    %87 = arith.divf %85, %86 : vector<1x128xf32>
    %cst_39 = arith.constant 9.99999974E-6 : f32
    %88 = vector.broadcast %cst_39 : f32 to vector<1x128xf32>
    %89 = arith.addf %87, %88 : vector<1x128xf32>
    %90 = math.rsqrt %89 : vector<1x128xf32>
    %91 = vector.broadcast %90 : vector<1x128xf32> to vector<16x128xf32>
    %92 = arith.mulf %82, %91 : vector<16x128xf32>
    %93 = arith.addf %3, %92 : vector<16x128xf32>
    %c0_40 = arith.constant 0 : index
    %c0_41 = arith.constant 0 : index
    %94 = vector.load %arg10[%c0_40, %c0_41] : memref<16x128xf32, #tpu.memory_space<vmem>>, vector<16x128xf32>
    tpu.vector_store %arg10[%c0_40, %c0_41], %93 {strides = array<i32>} : memref<16x128xf32, #tpu.memory_space<vmem>>, vector<16x128xf32>,
    %c8_i32 = arith.constant 8 : i32
    %95 = arith.cmpi eq, %arg1, %c8_i32 : i32
    %96 = arith.extui %95 : i1 to i32
    %c0_i32_42 = arith.constant 0 : i32
    %97 = arith.cmpi ne, %96, %c0_i32_42 : i32
    scf.if %97 {
      %c0_43 = arith.constant 0 : index
      %c0_44 = arith.constant 0 : index
      %c0_45 = arith.constant 0 : index
      %98 = vector.load %arg9[%c0_43, %c0_44, %c0_45] : memref<1x16x128xf32, #tpu.memory_space<vmem>>, vector<1x16x128xf32>
      %99 = vector.shape_cast %98 : vector<1x16x128xf32> to vector<16x128xf32>
      %100 = vector.shape_cast %93 : vector<16x128xf32> to vector<1x16x128xf32>
      tpu.vector_store %arg9[%c0_43, %c0_44, %c0_45], %100 {strides = array<i32>} : memref<1x16x128xf32, #tpu.memory_space<vmem>>, vector<1x16x128xf32>,
    } else {
    }
    return
  }
  func.func @transform_0(%arg0: i32, %arg1: i32) -> (i32, i32, i32) {
    %c0_i32 = arith.constant 0 : i32
    %c0_i32_0 = arith.constant 0 : i32
    %c0_i32_1 = arith.constant 0 : i32
    return %arg0, %c0_i32, %c0_i32_0 : i32, i32, i32
  }
  func.func @transform_1(%arg0: i32, %arg1: i32) -> (i32, i32, i32) {
    %c0_i32 = arith.constant 0 : i32
    %c0_i32_0 = arith.constant 0 : i32
    %c0_i32_1 = arith.constant 0 : i32
    return %arg0, %c0_i32, %c0_i32_0 : i32, i32, i32
  }
  func.func @transform_2(%arg0: i32, %arg1: i32) -> (i32, i32) {
    %c0_i32 = arith.constant 0 : i32
    %c0_i32_0 = arith.constant 0 : i32
    %c0_i32_1 = arith.constant 0 : i32
    return %c0_i32, %c0_i32_0 : i32, i32
  }
  func.func @transform_3(%arg0: i32, %arg1: i32) -> (i32, i32, i32) {
    %c0_i32 = arith.constant 0 : i32
    %c0_i32_0 = arith.constant 0 : i32
    %c0_i32_1 = arith.constant 0 : i32
    return %arg1, %c0_i32, %c0_i32_0 : i32, i32, i32
  }
  func.func @transform_4(%arg0: i32, %arg1: i32) -> (i32, i32, i32) {
    %c0_i32 = arith.constant 0 : i32
    %c0_i32_0 = arith.constant 0 : i32
    %c0_i32_1 = arith.constant 0 : i32
    return %arg1, %c0_i32, %c0_i32_0 : i32, i32, i32
  }
  func.func @transform_5(%arg0: i32, %arg1: i32) -> (i32, i32, i32) {
    %c0_i32 = arith.constant 0 : i32
    %c0_i32_0 = arith.constant 0 : i32
    %c0_i32_1 = arith.constant 0 : i32
    return %arg1, %c0_i32, %c0_i32_0 : i32, i32, i32
  }
  func.func @transform_6(%arg0: i32, %arg1: i32) -> (i32, i32, i32) {
    %c0_i32 = arith.constant 0 : i32
    %c0_i32_0 = arith.constant 0 : i32
    %c0_i32_1 = arith.constant 0 : i32
    return %arg1, %c0_i32, %c0_i32_0 : i32, i32, i32
  }
  func.func @transform_7(%arg0: i32, %arg1: i32) -> (i32, i32, i32) {
    %c0_i32 = arith.constant 0 : i32
    %c0_i32_0 = arith.constant 0 : i32
    %c0_i32_1 = arith.constant 0 : i32
    return %arg0, %c0_i32, %c0_i32_0 : i32, i32, i32
  }
}

module attributes {stable_mosaic.version = 11 : i64} {
  func.func @_res_chain_L_kernel(%arg0: i32, %arg1: i32, %arg2: memref<1x16x128xf32, #tpu.memory_space<vmem>>, %arg3: memref<144x16xbf16, #tpu.memory_space<vmem>>, %arg4: memref<1x1152x128xbf16, #tpu.memory_space<vmem>>, %arg5: memref<1x1x128xf32, #tpu.memory_space<vmem>>, %arg6: memref<1x1152x128xbf16, #tpu.memory_space<vmem>>, %arg7: memref<1x1x128xf32, #tpu.memory_space<vmem>>, %arg8: memref<1x16x128xf32, #tpu.memory_space<vmem>>, %arg9: memref<1x16x128xf32, #tpu.memory_space<vmem>>, %arg10: memref<1x16x128xf32, #tpu.memory_space<vmem>>, %arg11: memref<16x128xf32, #tpu.memory_space<vmem>>) attributes {dimension_semantics = [#tpu.dimension_semantics<parallel>, #tpu.dimension_semantics<arbitrary>], iteration_bounds = array<i64: 2, 9>, scalar_prefetch = 0 : i64, scratch_operands = 1 : i64, tpu.core_type = #tpu.core_type<tc>, window_params = [{transform_indices = @transform_0, window_bounds = array<i64: 1, 16, 128>}, {pipeline_mode = #tpu.pipeline_mode<synchronous>, transform_indices = @transform_1, window_bounds = array<i64: 144, 16>}, {transform_indices = @transform_2, window_bounds = array<i64: 1, 1152, 128>}, {transform_indices = @transform_3, window_bounds = array<i64: 1, 1, 128>}, {transform_indices = @transform_4, window_bounds = array<i64: 1, 1152, 128>}, {transform_indices = @transform_5, window_bounds = array<i64: 1, 1, 128>}, {transform_indices = @transform_6, window_bounds = array<i64: 1, 16, 128>}, {transform_indices = @transform_7, window_bounds = array<i64: 1, 16, 128>}, {transform_indices = @transform_8, window_bounds = array<i64: 1, 16, 128>}]} {
    %c0_i32 = arith.constant 0 : i32
    %0 = arith.cmpi eq, %arg1, %c0_i32 : i32
    %1 = arith.extui %0 : i1 to i32
    %c0_i32_0 = arith.constant 0 : i32
    %2 = arith.cmpi ne, %1, %c0_i32_0 : i32
    scf.if %2 {
      %c0_38 = arith.constant 0 : index
      %c0_39 = arith.constant 0 : index
      %c0_40 = arith.constant 0 : index
      %91 = vector.load %arg2[%c0_38, %c0_39, %c0_40] : memref<1x16x128xf32, #tpu.memory_space<vmem>>, vector<1x16x128xf32>
      %92 = vector.shape_cast %91 : vector<1x16x128xf32> to vector<16x128xf32>
      %c0_41 = arith.constant 0 : index
      %c0_42 = arith.constant 0 : index
      %93 = vector.load %arg11[%c0_41, %c0_42] : memref<16x128xf32, #tpu.memory_space<vmem>>, vector<16x128xf32>
      tpu.vector_store %arg11[%c0_41, %c0_42], %92 {strides = array<i32>} : memref<16x128xf32, #tpu.memory_space<vmem>>, vector<16x128xf32>,
    } else {
    }
    %c0 = arith.constant 0 : index
    %c0_1 = arith.constant 0 : index
    %3 = vector.load %arg11[%c0, %c0_1] : memref<16x128xf32, #tpu.memory_space<vmem>>, vector<16x128xf32>
    %4 = arith.truncf %3 : vector<16x128xf32> to vector<16x128xbf16>
    %c0_2 = arith.constant 0 : index
    %c0_3 = arith.constant 0 : index
    %5 = vector.load %arg3[%c0_2, %c0_3] : memref<144x16xbf16, #tpu.memory_space<vmem>>, vector<144x16xbf16>
    %cst = arith.constant dense<0.000000e+00> : vector<144x128xf32>
    %6 = tpu.matmul %5, %4, %cst {dimension_numbers = #tpu.dot_dimension_numbers<[1], [0], [0], [1], [0, 0, 1, 1], [], []>} : vector<144x16xbf16>, vector<16x128xbf16>, vector<144x128xf32> -> vector<144x128xf32>
    %7 = arith.truncf %6 : vector<144x128xf32> to vector<144x128xbf16>
    %8 = vector.extract_strided_slice %7 {offsets = [0, 0], sizes = [16, 128], strides = [1, 1]} : vector<144x128xbf16> to vector<16x128xbf16>
    %9 = vector.extract_strided_slice %7 {offsets = [16, 0], sizes = [16, 128], strides = [1, 1]} : vector<144x128xbf16> to vector<16x128xbf16>
    %10 = vector.extract_strided_slice %7 {offsets = [32, 0], sizes = [16, 128], strides = [1, 1]} : vector<144x128xbf16> to vector<16x128xbf16>
    %11 = vector.extract_strided_slice %7 {offsets = [48, 0], sizes = [16, 128], strides = [1, 1]} : vector<144x128xbf16> to vector<16x128xbf16>
    %12 = vector.extract_strided_slice %7 {offsets = [64, 0], sizes = [16, 128], strides = [1, 1]} : vector<144x128xbf16> to vector<16x128xbf16>
    %13 = vector.extract_strided_slice %7 {offsets = [80, 0], sizes = [16, 128], strides = [1, 1]} : vector<144x128xbf16> to vector<16x128xbf16>
    %14 = vector.extract_strided_slice %7 {offsets = [96, 0], sizes = [16, 128], strides = [1, 1]} : vector<144x128xbf16> to vector<16x128xbf16>
    %15 = vector.extract_strided_slice %7 {offsets = [112, 0], sizes = [16, 128], strides = [1, 1]} : vector<144x128xbf16> to vector<16x128xbf16>
    %16 = vector.extract_strided_slice %7 {offsets = [128, 0], sizes = [16, 128], strides = [1, 1]} : vector<144x128xbf16> to vector<16x128xbf16>
    %17 = tpu.concatenate %8, %9, %10, %11, %12, %13, %14, %15, %16 in 1 : vector<16x128xbf16>, vector<16x128xbf16>, vector<16x128xbf16>, vector<16x128xbf16>, vector<16x128xbf16>, vector<16x128xbf16>, vector<16x128xbf16>, vector<16x128xbf16>, vector<16x128xbf16> -> vector<16x1152xbf16>
    %c0_4 = arith.constant 0 : index
    %c0_5 = arith.constant 0 : index
    %c0_6 = arith.constant 0 : index
    %18 = vector.load %arg4[%c0_4, %c0_5, %c0_6] : memref<1x1152x128xbf16, #tpu.memory_space<vmem>>, vector<1x1152x128xbf16>
    %19 = vector.shape_cast %18 : vector<1x1152x128xbf16> to vector<1152x128xbf16>
    %cst_7 = arith.constant dense<0.000000e+00> : vector<16x128xf32>
    %20 = tpu.matmul %17, %19, %cst_7 {dimension_numbers = #tpu.dot_dimension_numbers<[1], [0], [0], [1], [0, 0, 1, 1], [], []>} : vector<16x1152xbf16>, vector<1152x128xbf16>, vector<16x128xf32> -> vector<16x128xf32>
    %c0_8 = arith.constant 0 : index
    %c0_9 = arith.constant 0 : index
    %c0_10 = arith.constant 0 : index
    %21 = vector.load %arg5[%c0_8, %c0_9, %c0_10] : memref<1x1x128xf32, #tpu.memory_space<vmem>>, vector<1x1x128xf32>
    %22 = vector.shape_cast %21 : vector<1x1x128xf32> to vector<1x128xf32>
    %23 = vector.broadcast %22 : vector<1x128xf32> to vector<16x128xf32>
    %24 = arith.addf %20, %23 : vector<16x128xf32>
    %cst_11 = arith.constant dense<0.000000e+00> : vector<128xf32>
    %25 = vector.multi_reduction <add>, %24, %cst_11 [0] : vector<16x128xf32> to vector<128xf32>
    %26 = vector.shape_cast %25 : vector<128xf32> to vector<1x128xf32>
    %cst_12 = arith.constant 1.600000e+01 : f32
    %27 = vector.broadcast %cst_12 : f32 to vector<1x128xf32>
    %28 = arith.divf %26, %27 : vector<1x128xf32>
    %29 = vector.broadcast %28 : vector<1x128xf32> to vector<16x128xf32>
    %30 = arith.subf %24, %29 : vector<16x128xf32>
    %31 = arith.mulf %30, %30 : vector<16x128xf32>
    %cst_13 = arith.constant dense<0.000000e+00> : vector<128xf32>
    %32 = vector.multi_reduction <add>, %31, %cst_13 [0] : vector<16x128xf32> to vector<128xf32>
    %33 = vector.shape_cast %32 : vector<128xf32> to vector<1x128xf32>
    %cst_14 = arith.constant 1.600000e+01 : f32
    %34 = vector.broadcast %cst_14 : f32 to vector<1x128xf32>
    %35 = arith.divf %33, %34 : vector<1x128xf32>
    %cst_15 = arith.constant 9.99999974E-6 : f32
    %36 = vector.broadcast %cst_15 : f32 to vector<1x128xf32>
    %37 = arith.addf %35, %36 : vector<1x128xf32>
    %38 = math.rsqrt %37 : vector<1x128xf32>
    %39 = vector.broadcast %38 : vector<1x128xf32> to vector<16x128xf32>
    %40 = arith.mulf %30, %39 : vector<16x128xf32>
    %cst_16 = arith.constant 0.000000e+00 : f32
    %41 = vector.broadcast %cst_16 : f32 to vector<16x128xf32>
    %42 = arith.maximumf %40, %41 : vector<16x128xf32>
    %43 = arith.truncf %42 : vector<16x128xf32> to vector<16x128xbf16>
    %c0_17 = arith.constant 0 : index
    %c0_18 = arith.constant 0 : index
    %44 = vector.load %arg3[%c0_17, %c0_18] : memref<144x16xbf16, #tpu.memory_space<vmem>>, vector<144x16xbf16>
    %cst_19 = arith.constant dense<0.000000e+00> : vector<144x128xf32>
    %45 = tpu.matmul %44, %43, %cst_19 {dimension_numbers = #tpu.dot_dimension_numbers<[1], [0], [0], [1], [0, 0, 1, 1], [], []>} : vector<144x16xbf16>, vector<16x128xbf16>, vector<144x128xf32> -> vector<144x128xf32>
    %46 = arith.truncf %45 : vector<144x128xf32> to vector<144x128xbf16>
    %47 = vector.extract_strided_slice %46 {offsets = [0, 0], sizes = [16, 128], strides = [1, 1]} : vector<144x128xbf16> to vector<16x128xbf16>
    %48 = vector.extract_strided_slice %46 {offsets = [16, 0], sizes = [16, 128], strides = [1, 1]} : vector<144x128xbf16> to vector<16x128xbf16>
    %49 = vector.extract_strided_slice %46 {offsets = [32, 0], sizes = [16, 128], strides = [1, 1]} : vector<144x128xbf16> to vector<16x128xbf16>
    %50 = vector.extract_strided_slice %46 {offsets = [48, 0], sizes = [16, 128], strides = [1, 1]} : vector<144x128xbf16> to vector<16x128xbf16>
    %51 = vector.extract_strided_slice %46 {offsets = [64, 0], sizes = [16, 128], strides = [1, 1]} : vector<144x128xbf16> to vector<16x128xbf16>
    %52 = vector.extract_strided_slice %46 {offsets = [80, 0], sizes = [16, 128], strides = [1, 1]} : vector<144x128xbf16> to vector<16x128xbf16>
    %53 = vector.extract_strided_slice %46 {offsets = [96, 0], sizes = [16, 128], strides = [1, 1]} : vector<144x128xbf16> to vector<16x128xbf16>
    %54 = vector.extract_strided_slice %46 {offsets = [112, 0], sizes = [16, 128], strides = [1, 1]} : vector<144x128xbf16> to vector<16x128xbf16>
    %55 = vector.extract_strided_slice %46 {offsets = [128, 0], sizes = [16, 128], strides = [1, 1]} : vector<144x128xbf16> to vector<16x128xbf16>
    %56 = tpu.concatenate %47, %48, %49, %50, %51, %52, %53, %54, %55 in 1 : vector<16x128xbf16>, vector<16x128xbf16>, vector<16x128xbf16>, vector<16x128xbf16>, vector<16x128xbf16>, vector<16x128xbf16>, vector<16x128xbf16>, vector<16x128xbf16>, vector<16x128xbf16> -> vector<16x1152xbf16>
    %c0_20 = arith.constant 0 : index
    %c0_21 = arith.constant 0 : index
    %c0_22 = arith.constant 0 : index
    %57 = vector.load %arg6[%c0_20, %c0_21, %c0_22] : memref<1x1152x128xbf16, #tpu.memory_space<vmem>>, vector<1x1152x128xbf16>
    %58 = vector.shape_cast %57 : vector<1x1152x128xbf16> to vector<1152x128xbf16>
    %cst_23 = arith.constant dense<0.000000e+00> : vector<16x128xf32>
    %59 = tpu.matmul %56, %58, %cst_23 {dimension_numbers = #tpu.dot_dimension_numbers<[1], [0], [0], [1], [0, 0, 1, 1], [], []>} : vector<16x1152xbf16>, vector<1152x128xbf16>, vector<16x128xf32> -> vector<16x128xf32>
    %c0_24 = arith.constant 0 : index
    %c0_25 = arith.constant 0 : index
    %c0_26 = arith.constant 0 : index
    %60 = vector.load %arg7[%c0_24, %c0_25, %c0_26] : memref<1x1x128xf32, #tpu.memory_space<vmem>>, vector<1x1x128xf32>
    %61 = vector.shape_cast %60 : vector<1x1x128xf32> to vector<1x128xf32>
    %62 = vector.broadcast %61 : vector<1x128xf32> to vector<16x128xf32>
    %63 = arith.addf %59, %62 : vector<16x128xf32>
    %cst_27 = arith.constant dense<0.000000e+00> : vector<128xf32>
    %64 = vector.multi_reduction <add>, %63, %cst_27 [0] : vector<16x128xf32> to vector<128xf32>
    %65 = vector.shape_cast %64 : vector<128xf32> to vector<1x128xf32>
    %cst_28 = arith.constant 1.600000e+01 : f32
    %66 = vector.broadcast %cst_28 : f32 to vector<1x128xf32>
    %67 = arith.divf %65, %66 : vector<1x128xf32>
    %68 = vector.broadcast %67 : vector<1x128xf32> to vector<16x128xf32>
    %69 = arith.subf %63, %68 : vector<16x128xf32>
    %70 = arith.mulf %69, %69 : vector<16x128xf32>
    %cst_29 = arith.constant dense<0.000000e+00> : vector<128xf32>
    %71 = vector.multi_reduction <add>, %70, %cst_29 [0] : vector<16x128xf32> to vector<128xf32>
    %72 = vector.shape_cast %71 : vector<128xf32> to vector<1x128xf32>
    %cst_30 = arith.constant 1.600000e+01 : f32
    %73 = vector.broadcast %cst_30 : f32 to vector<1x128xf32>
    %74 = arith.divf %72, %73 : vector<1x128xf32>
    %cst_31 = arith.constant 9.99999974E-6 : f32
    %75 = vector.broadcast %cst_31 : f32 to vector<1x128xf32>
    %76 = arith.addf %74, %75 : vector<1x128xf32>
    %77 = math.rsqrt %76 : vector<1x128xf32>
    %78 = vector.broadcast %77 : vector<1x128xf32> to vector<16x128xf32>
    %79 = arith.mulf %69, %78 : vector<16x128xf32>
    %80 = arith.addf %3, %79 : vector<16x128xf32>
    %c0_32 = arith.constant 0 : index
    %c0_33 = arith.constant 0 : index
    %81 = vector.load %arg11[%c0_32, %c0_33] : memref<16x128xf32, #tpu.memory_space<vmem>>, vector<16x128xf32>
    tpu.vector_store %arg11[%c0_32, %c0_33], %80 {strides = array<i32>} : memref<16x128xf32, #tpu.memory_space<vmem>>, vector<16x128xf32>,
    %c0_i32_34 = arith.constant 0 : i32
    %82 = arith.cmpi eq, %arg1, %c0_i32_34 : i32
    %83 = arith.extui %82 : i1 to i32
    %c0_i32_35 = arith.constant 0 : i32
    %84 = arith.cmpi ne, %83, %c0_i32_35 : i32
    scf.if %84 {
      %c0_38 = arith.constant 0 : index
      %c0_39 = arith.constant 0 : index
      %c0_40 = arith.constant 0 : index
      %91 = vector.load %arg9[%c0_38, %c0_39, %c0_40] : memref<1x16x128xf32, #tpu.memory_space<vmem>>, vector<1x16x128xf32>
      %92 = vector.shape_cast %91 : vector<1x16x128xf32> to vector<16x128xf32>
      %93 = vector.shape_cast %80 : vector<16x128xf32> to vector<1x16x128xf32>
      tpu.vector_store %arg9[%c0_38, %c0_39, %c0_40], %93 {strides = array<i32>} : memref<1x16x128xf32, #tpu.memory_space<vmem>>, vector<1x16x128xf32>,
    } else {
    }
    %c1_i32 = arith.constant 1 : i32
    %85 = arith.cmpi eq, %arg1, %c1_i32 : i32
    %86 = arith.extui %85 : i1 to i32
    %c0_i32_36 = arith.constant 0 : i32
    %87 = arith.cmpi ne, %86, %c0_i32_36 : i32
    scf.if %87 {
      %c0_38 = arith.constant 0 : index
      %c0_39 = arith.constant 0 : index
      %c0_40 = arith.constant 0 : index
      %91 = vector.load %arg10[%c0_38, %c0_39, %c0_40] : memref<1x16x128xf32, #tpu.memory_space<vmem>>, vector<1x16x128xf32>
      %92 = vector.shape_cast %91 : vector<1x16x128xf32> to vector<16x128xf32>
      %93 = vector.shape_cast %80 : vector<16x128xf32> to vector<1x16x128xf32>
      tpu.vector_store %arg10[%c0_38, %c0_39, %c0_40], %93 {strides = array<i32>} : memref<1x16x128xf32, #tpu.memory_space<vmem>>, vector<1x16x128xf32>,
    } else {
    }
    %c8_i32 = arith.constant 8 : i32
    %88 = arith.cmpi eq, %arg1, %c8_i32 : i32
    %89 = arith.extui %88 : i1 to i32
    %c0_i32_37 = arith.constant 0 : i32
    %90 = arith.cmpi ne, %89, %c0_i32_37 : i32
    scf.if %90 {
      %c0_38 = arith.constant 0 : index
      %c0_39 = arith.constant 0 : index
      %c0_40 = arith.constant 0 : index
      %91 = vector.load %arg8[%c0_38, %c0_39, %c0_40] : memref<1x16x128xf32, #tpu.memory_space<vmem>>, vector<1x16x128xf32>
      %92 = vector.shape_cast %91 : vector<1x16x128xf32> to vector<16x128xf32>
      %93 = vector.shape_cast %80 : vector<16x128xf32> to vector<1x16x128xf32>
      tpu.vector_store %arg8[%c0_38, %c0_39, %c0_40], %93 {strides = array<i32>} : memref<1x16x128xf32, #tpu.memory_space<vmem>>, vector<1x16x128xf32>,
    } else {
    }
    return
  }
  func.func @transform_0(%arg0: i32, %arg1: i32) -> (i32, i32, i32) {
    %c0_i32 = arith.constant 0 : i32
    %c0_i32_0 = arith.constant 0 : i32
    %c0_i32_1 = arith.constant 0 : i32
    return %arg0, %c0_i32, %c0_i32_0 : i32, i32, i32
  }
  func.func @transform_1(%arg0: i32, %arg1: i32) -> (i32, i32) {
    %c0_i32 = arith.constant 0 : i32
    %c0_i32_0 = arith.constant 0 : i32
    %c0_i32_1 = arith.constant 0 : i32
    return %c0_i32, %c0_i32_0 : i32, i32
  }
  func.func @transform_2(%arg0: i32, %arg1: i32) -> (i32, i32, i32) {
    %c0_i32 = arith.constant 0 : i32
    %c0_i32_0 = arith.constant 0 : i32
    %c0_i32_1 = arith.constant 0 : i32
    return %arg1, %c0_i32, %c0_i32_0 : i32, i32, i32
  }
  func.func @transform_3(%arg0: i32, %arg1: i32) -> (i32, i32, i32) {
    %c0_i32 = arith.constant 0 : i32
    %c0_i32_0 = arith.constant 0 : i32
    %c0_i32_1 = arith.constant 0 : i32
    return %arg1, %c0_i32, %c0_i32_0 : i32, i32, i32
  }
  func.func @transform_4(%arg0: i32, %arg1: i32) -> (i32, i32, i32) {
    %c0_i32 = arith.constant 0 : i32
    %c0_i32_0 = arith.constant 0 : i32
    %c0_i32_1 = arith.constant 0 : i32
    return %arg1, %c0_i32, %c0_i32_0 : i32, i32, i32
  }
  func.func @transform_5(%arg0: i32, %arg1: i32) -> (i32, i32, i32) {
    %c0_i32 = arith.constant 0 : i32
    %c0_i32_0 = arith.constant 0 : i32
    %c0_i32_1 = arith.constant 0 : i32
    return %arg1, %c0_i32, %c0_i32_0 : i32, i32, i32
  }
  func.func @transform_6(%arg0: i32, %arg1: i32) -> (i32, i32, i32) {
    %c0_i32 = arith.constant 0 : i32
    %c0_i32_0 = arith.constant 0 : i32
    %c0_i32_1 = arith.constant 0 : i32
    return %arg0, %c0_i32, %c0_i32_0 : i32, i32, i32
  }
  func.func @transform_7(%arg0: i32, %arg1: i32) -> (i32, i32, i32) {
    %c0_i32 = arith.constant 0 : i32
    %c0_i32_0 = arith.constant 0 : i32
    %c0_i32_1 = arith.constant 0 : i32
    return %arg0, %c0_i32, %c0_i32_0 : i32, i32, i32
  }
  func.func @transform_8(%arg0: i32, %arg1: i32) -> (i32, i32, i32) {
    %c0_i32 = arith.constant 0 : i32
    %c0_i32_0 = arith.constant 0 : i32
    %c0_i32_1 = arith.constant 0 : i32
    return %arg0, %c0_i32, %c0_i32_0 : i32, i32, i32
  }
}

module attributes {stable_mosaic.version = 11 : i64} {
  func.func @_conv_in_kernel(%arg0: i32, %arg1: memref<1x16x512xbf16, #tpu.memory_space<vmem>>, %arg2: memref<512x256xbf16, #tpu.memory_space<vmem>>, %arg3: memref<1x256xf32, #tpu.memory_space<vmem>>, %arg4: memref<1x16x256xf32, #tpu.memory_space<vmem>>) attributes {dimension_semantics = [#tpu.dimension_semantics<parallel>], iteration_bounds = array<i64: 2>, scalar_prefetch = 0 : i64, scratch_operands = 0 : i64, tpu.core_type = #tpu.core_type<tc>, window_params = [{transform_indices = @transform_0, window_bounds = array<i64: 1, 16, 512>}, {pipeline_mode = #tpu.pipeline_mode<synchronous>, transform_indices = @transform_1, window_bounds = array<i64: 512, 256>}, {pipeline_mode = #tpu.pipeline_mode<synchronous>, transform_indices = @transform_2, window_bounds = array<i64: 1, 256>}, {transform_indices = @transform_3, window_bounds = array<i64: 1, 16, 256>}]} {
    %c0 = arith.constant 0 : index
    %c0_0 = arith.constant 0 : index
    %c0_1 = arith.constant 0 : index
    %0 = vector.load %arg1[%c0, %c0_0, %c0_1] : memref<1x16x512xbf16, #tpu.memory_space<vmem>>, vector<1x16x512xbf16>
    %1 = vector.shape_cast %0 : vector<1x16x512xbf16> to vector<16x512xbf16>
    %c0_2 = arith.constant 0 : index
    %c0_3 = arith.constant 0 : index
    %2 = vector.load %arg2[%c0_2, %c0_3] : memref<512x256xbf16, #tpu.memory_space<vmem>>, vector<512x256xbf16>
    %cst = arith.constant dense<0.000000e+00> : vector<16x256xf32>
    %3 = tpu.matmul %1, %2, %cst {dimension_numbers = #tpu.dot_dimension_numbers<[1], [0], [0], [1], [0, 0, 1, 1], [], []>} : vector<16x512xbf16>, vector<512x256xbf16>, vector<16x256xf32> -> vector<16x256xf32>
    %c0_4 = arith.constant 0 : index
    %c0_5 = arith.constant 0 : index
    %4 = vector.load %arg3[%c0_4, %c0_5] : memref<1x256xf32, #tpu.memory_space<vmem>>, vector<1x256xf32>
    %5 = vector.broadcast %4 : vector<1x256xf32> to vector<16x256xf32>
    %6 = arith.addf %3, %5 : vector<16x256xf32>
    %cst_6 = arith.constant dense<0.000000e+00> : vector<256xf32>
    %7 = vector.multi_reduction <add>, %6, %cst_6 [0] : vector<16x256xf32> to vector<256xf32>
    %8 = vector.shape_cast %7 : vector<256xf32> to vector<1x256xf32>
    %cst_7 = arith.constant 1.600000e+01 : f32
    %9 = vector.broadcast %cst_7 : f32 to vector<1x256xf32>
    %10 = arith.divf %8, %9 : vector<1x256xf32>
    %11 = vector.extract_strided_slice %10 {offsets = [0, 0], sizes = [1, 64], strides = [1, 1]} : vector<1x256xf32> to vector<1x64xf32>
    %12 = vector.extract_strided_slice %10 {offsets = [0, 64], sizes = [1, 64], strides = [1, 1]} : vector<1x256xf32> to vector<1x64xf32>
    %13 = arith.addf %11, %12 : vector<1x64xf32>
    %14 = vector.extract_strided_slice %10 {offsets = [0, 128], sizes = [1, 64], strides = [1, 1]} : vector<1x256xf32> to vector<1x64xf32>
    %15 = arith.addf %13, %14 : vector<1x64xf32>
    %16 = vector.extract_strided_slice %10 {offsets = [0, 192], sizes = [1, 64], strides = [1, 1]} : vector<1x256xf32> to vector<1x64xf32>
    %17 = arith.addf %15, %16 : vector<1x64xf32>
    %cst_8 = arith.constant 4.000000e+00 : f32
    %18 = vector.broadcast %cst_8 : f32 to vector<1x64xf32>
    %19 = arith.divf %17, %18 : vector<1x64xf32>
    %20 = tpu.concatenate %19, %19, %19, %19 in 1 : vector<1x64xf32>, vector<1x64xf32>, vector<1x64xf32>, vector<1x64xf32> -> vector<1x256xf32>
    %21 = vector.broadcast %20 : vector<1x256xf32> to vector<16x256xf32>
    %22 = arith.subf %6, %21 : vector<16x256xf32>
    %23 = arith.mulf %22, %22 : vector<16x256xf32>
    %cst_9 = arith.constant dense<0.000000e+00> : vector<256xf32>
    %24 = vector.multi_reduction <add>, %23, %cst_9 [0] : vector<16x256xf32> to vector<256xf32>
    %25 = vector.shape_cast %24 : vector<256xf32> to vector<1x256xf32>
    %cst_10 = arith.constant 1.600000e+01 : f32
    %26 = vector.broadcast %cst_10 : f32 to vector<1x256xf32>
    %27 = arith.divf %25, %26 : vector<1x256xf32>
    %28 = vector.extract_strided_slice %27 {offsets = [0, 0], sizes = [1, 64], strides = [1, 1]} : vector<1x256xf32> to vector<1x64xf32>
    %29 = vector.extract_strided_slice %27 {offsets = [0, 64], sizes = [1, 64], strides = [1, 1]} : vector<1x256xf32> to vector<1x64xf32>
    %30 = arith.addf %28, %29 : vector<1x64xf32>
    %31 = vector.extract_strided_slice %27 {offsets = [0, 128], sizes = [1, 64], strides = [1, 1]} : vector<1x256xf32> to vector<1x64xf32>
    %32 = arith.addf %30, %31 : vector<1x64xf32>
    %33 = vector.extract_strided_slice %27 {offsets = [0, 192], sizes = [1, 64], strides = [1, 1]} : vector<1x256xf32> to vector<1x64xf32>
    %34 = arith.addf %32, %33 : vector<1x64xf32>
    %cst_11 = arith.constant 4.000000e+00 : f32
    %35 = vector.broadcast %cst_11 : f32 to vector<1x64xf32>
    %36 = arith.divf %34, %35 : vector<1x64xf32>
    %37 = tpu.concatenate %36, %36, %36, %36 in 1 : vector<1x64xf32>, vector<1x64xf32>, vector<1x64xf32>, vector<1x64xf32> -> vector<1x256xf32>
    %cst_12 = arith.constant 9.99999974E-6 : f32
    %38 = vector.broadcast %cst_12 : f32 to vector<1x256xf32>
    %39 = arith.addf %37, %38 : vector<1x256xf32>
    %40 = math.rsqrt %39 : vector<1x256xf32>
    %41 = vector.broadcast %40 : vector<1x256xf32> to vector<16x256xf32>
    %42 = arith.mulf %22, %41 : vector<16x256xf32>
    %cst_13 = arith.constant 0.000000e+00 : f32
    %43 = vector.broadcast %cst_13 : f32 to vector<16x256xf32>
    %44 = arith.maximumf %42, %43 : vector<16x256xf32>
    %c0_14 = arith.constant 0 : index
    %c0_15 = arith.constant 0 : index
    %c0_16 = arith.constant 0 : index
    %45 = vector.load %arg4[%c0_14, %c0_15, %c0_16] : memref<1x16x256xf32, #tpu.memory_space<vmem>>, vector<1x16x256xf32>
    %46 = vector.shape_cast %45 : vector<1x16x256xf32> to vector<16x256xf32>
    %47 = vector.shape_cast %44 : vector<16x256xf32> to vector<1x16x256xf32>
    tpu.vector_store %arg4[%c0_14, %c0_15, %c0_16], %47 {strides = array<i32>} : memref<1x16x256xf32, #tpu.memory_space<vmem>>, vector<1x16x256xf32>,
    return
  }
  func.func @transform_0(%arg0: i32) -> (i32, i32, i32) {
    %c0_i32 = arith.constant 0 : i32
    %c0_i32_0 = arith.constant 0 : i32
    %c0_i32_1 = arith.constant 0 : i32
    return %arg0, %c0_i32, %c0_i32_0 : i32, i32, i32
  }
  func.func @transform_1(%arg0: i32) -> (i32, i32) {
    %c0_i32 = arith.constant 0 : i32
    %c0_i32_0 = arith.constant 0 : i32
    %c0_i32_1 = arith.constant 0 : i32
    return %c0_i32, %c0_i32_0 : i32, i32
  }
  func.func @transform_2(%arg0: i32) -> (i32, i32) {
    %c0_i32 = arith.constant 0 : i32
    %c0_i32_0 = arith.constant 0 : i32
    %c0_i32_1 = arith.constant 0 : i32
    return %c0_i32, %c0_i32_0 : i32, i32
  }
  func.func @transform_3(%arg0: i32) -> (i32, i32, i32) {
    %c0_i32 = arith.constant 0 : i32
    %c0_i32_0 = arith.constant 0 : i32
    %c0_i32_1 = arith.constant 0 : i32
    return %arg0, %c0_i32, %c0_i32_0 : i32, i32, i32
  }
}

module attributes {stable_mosaic.version = 11 : i64} {
  func.func @_conv_in_kernel(%arg0: i32, %arg1: memref<1x64x256xbf16, #tpu.memory_space<vmem>>, %arg2: memref<256x128xbf16, #tpu.memory_space<vmem>>, %arg3: memref<1x128xf32, #tpu.memory_space<vmem>>, %arg4: memref<1x64x128xf32, #tpu.memory_space<vmem>>) attributes {dimension_semantics = [#tpu.dimension_semantics<parallel>], iteration_bounds = array<i64: 2>, scalar_prefetch = 0 : i64, scratch_operands = 0 : i64, tpu.core_type = #tpu.core_type<tc>, window_params = [{transform_indices = @transform_0, window_bounds = array<i64: 1, 64, 256>}, {pipeline_mode = #tpu.pipeline_mode<synchronous>, transform_indices = @transform_1, window_bounds = array<i64: 256, 128>}, {pipeline_mode = #tpu.pipeline_mode<synchronous>, transform_indices = @transform_2, window_bounds = array<i64: 1, 128>}, {transform_indices = @transform_3, window_bounds = array<i64: 1, 64, 128>}]} {
    %c0 = arith.constant 0 : index
    %c0_0 = arith.constant 0 : index
    %c0_1 = arith.constant 0 : index
    %0 = vector.load %arg1[%c0, %c0_0, %c0_1] : memref<1x64x256xbf16, #tpu.memory_space<vmem>>, vector<1x64x256xbf16>
    %1 = vector.shape_cast %0 : vector<1x64x256xbf16> to vector<64x256xbf16>
    %c0_2 = arith.constant 0 : index
    %c0_3 = arith.constant 0 : index
    %2 = vector.load %arg2[%c0_2, %c0_3] : memref<256x128xbf16, #tpu.memory_space<vmem>>, vector<256x128xbf16>
    %cst = arith.constant dense<0.000000e+00> : vector<64x128xf32>
    %3 = tpu.matmul %1, %2, %cst {dimension_numbers = #tpu.dot_dimension_numbers<[1], [0], [0], [1], [0, 0, 1, 1], [], []>} : vector<64x256xbf16>, vector<256x128xbf16>, vector<64x128xf32> -> vector<64x128xf32>
    %c0_4 = arith.constant 0 : index
    %c0_5 = arith.constant 0 : index
    %4 = vector.load %arg3[%c0_4, %c0_5] : memref<1x128xf32, #tpu.memory_space<vmem>>, vector<1x128xf32>
    %5 = vector.broadcast %4 : vector<1x128xf32> to vector<64x128xf32>
    %6 = arith.addf %3, %5 : vector<64x128xf32>
    %cst_6 = arith.constant dense<0.000000e+00> : vector<128xf32>
    %7 = vector.multi_reduction <add>, %6, %cst_6 [0] : vector<64x128xf32> to vector<128xf32>
    %8 = vector.shape_cast %7 : vector<128xf32> to vector<1x128xf32>
    %cst_7 = arith.constant 6.400000e+01 : f32
    %9 = vector.broadcast %cst_7 : f32 to vector<1x128xf32>
    %10 = arith.divf %8, %9 : vector<1x128xf32>
    %11 = vector.extract_strided_slice %10 {offsets = [0, 0], sizes = [1, 32], strides = [1, 1]} : vector<1x128xf32> to vector<1x32xf32>
    %12 = vector.extract_strided_slice %10 {offsets = [0, 32], sizes = [1, 32], strides = [1, 1]} : vector<1x128xf32> to vector<1x32xf32>
    %13 = arith.addf %11, %12 : vector<1x32xf32>
    %14 = vector.extract_strided_slice %10 {offsets = [0, 64], sizes = [1, 32], strides = [1, 1]} : vector<1x128xf32> to vector<1x32xf32>
    %15 = arith.addf %13, %14 : vector<1x32xf32>
    %16 = vector.extract_strided_slice %10 {offsets = [0, 96], sizes = [1, 32], strides = [1, 1]} : vector<1x128xf32> to vector<1x32xf32>
    %17 = arith.addf %15, %16 : vector<1x32xf32>
    %cst_8 = arith.constant 4.000000e+00 : f32
    %18 = vector.broadcast %cst_8 : f32 to vector<1x32xf32>
    %19 = arith.divf %17, %18 : vector<1x32xf32>
    %20 = tpu.concatenate %19, %19, %19, %19 in 1 : vector<1x32xf32>, vector<1x32xf32>, vector<1x32xf32>, vector<1x32xf32> -> vector<1x128xf32>
    %21 = vector.broadcast %20 : vector<1x128xf32> to vector<64x128xf32>
    %22 = arith.subf %6, %21 : vector<64x128xf32>
    %23 = arith.mulf %22, %22 : vector<64x128xf32>
    %cst_9 = arith.constant dense<0.000000e+00> : vector<128xf32>
    %24 = vector.multi_reduction <add>, %23, %cst_9 [0] : vector<64x128xf32> to vector<128xf32>
    %25 = vector.shape_cast %24 : vector<128xf32> to vector<1x128xf32>
    %cst_10 = arith.constant 6.400000e+01 : f32
    %26 = vector.broadcast %cst_10 : f32 to vector<1x128xf32>
    %27 = arith.divf %25, %26 : vector<1x128xf32>
    %28 = vector.extract_strided_slice %27 {offsets = [0, 0], sizes = [1, 32], strides = [1, 1]} : vector<1x128xf32> to vector<1x32xf32>
    %29 = vector.extract_strided_slice %27 {offsets = [0, 32], sizes = [1, 32], strides = [1, 1]} : vector<1x128xf32> to vector<1x32xf32>
    %30 = arith.addf %28, %29 : vector<1x32xf32>
    %31 = vector.extract_strided_slice %27 {offsets = [0, 64], sizes = [1, 32], strides = [1, 1]} : vector<1x128xf32> to vector<1x32xf32>
    %32 = arith.addf %30, %31 : vector<1x32xf32>
    %33 = vector.extract_strided_slice %27 {offsets = [0, 96], sizes = [1, 32], strides = [1, 1]} : vector<1x128xf32> to vector<1x32xf32>
    %34 = arith.addf %32, %33 : vector<1x32xf32>
    %cst_11 = arith.constant 4.000000e+00 : f32
    %35 = vector.broadcast %cst_11 : f32 to vector<1x32xf32>
    %36 = arith.divf %34, %35 : vector<1x32xf32>
    %37 = tpu.concatenate %36, %36, %36, %36 in 1 : vector<1x32xf32>, vector<1x32xf32>, vector<1x32xf32>, vector<1x32xf32> -> vector<1x128xf32>
    %cst_12 = arith.constant 9.99999974E-6 : f32
    %38 = vector.broadcast %cst_12 : f32 to vector<1x128xf32>
    %39 = arith.addf %37, %38 : vector<1x128xf32>
    %40 = math.rsqrt %39 : vector<1x128xf32>
    %41 = vector.broadcast %40 : vector<1x128xf32> to vector<64x128xf32>
    %42 = arith.mulf %22, %41 : vector<64x128xf32>
    %cst_13 = arith.constant 0.000000e+00 : f32
    %43 = vector.broadcast %cst_13 : f32 to vector<64x128xf32>
    %44 = arith.maximumf %42, %43 : vector<64x128xf32>
    %c0_14 = arith.constant 0 : index
    %c0_15 = arith.constant 0 : index
    %c0_16 = arith.constant 0 : index
    %45 = vector.load %arg4[%c0_14, %c0_15, %c0_16] : memref<1x64x128xf32, #tpu.memory_space<vmem>>, vector<1x64x128xf32>
    %46 = vector.shape_cast %45 : vector<1x64x128xf32> to vector<64x128xf32>
    %47 = vector.shape_cast %44 : vector<64x128xf32> to vector<1x64x128xf32>
    tpu.vector_store %arg4[%c0_14, %c0_15, %c0_16], %47 {strides = array<i32>} : memref<1x64x128xf32, #tpu.memory_space<vmem>>, vector<1x64x128xf32>,
    return
  }
  func.func @transform_0(%arg0: i32) -> (i32, i32, i32) {
    %c0_i32 = arith.constant 0 : i32
    %c0_i32_0 = arith.constant 0 : i32
    %c0_i32_1 = arith.constant 0 : i32
    return %arg0, %c0_i32, %c0_i32_0 : i32, i32, i32
  }
  func.func @transform_1(%arg0: i32) -> (i32, i32) {
    %c0_i32 = arith.constant 0 : i32
    %c0_i32_0 = arith.constant 0 : i32
    %c0_i32_1 = arith.constant 0 : i32
    return %c0_i32, %c0_i32_0 : i32, i32
  }
  func.func @transform_2(%arg0: i32) -> (i32, i32) {
    %c0_i32 = arith.constant 0 : i32
    %c0_i32_0 = arith.constant 0 : i32
    %c0_i32_1 = arith.constant 0 : i32
    return %c0_i32, %c0_i32_0 : i32, i32
  }
  func.func @transform_3(%arg0: i32) -> (i32, i32, i32) {
    %c0_i32 = arith.constant 0 : i32
    %c0_i32_0 = arith.constant 0 : i32
    %c0_i32_1 = arith.constant 0 : i32
    return %arg0, %c0_i32, %c0_i32_0 : i32, i32, i32
  }
}

module attributes {stable_mosaic.version = 11 : i64} {
  func.func @_conv_add_tanh_kernel(%arg0: i32, %arg1: memref<8x1568xbf16, #tpu.memory_space<vmem>>, %arg2: memref<1568x512xbf16, #tpu.memory_space<vmem>>, %arg3: memref<8x1xf32, #tpu.memory_space<vmem>>, %arg4: memref<8x512xf32, #tpu.memory_space<vmem>>, %arg5: memref<8x512xf32, #tpu.memory_space<vmem>>) attributes {dimension_semantics = [#tpu.dimension_semantics<arbitrary>], iteration_bounds = array<i64: 1>, scalar_prefetch = 0 : i64, scratch_operands = 0 : i64, tpu.core_type = #tpu.core_type<tc>, window_params = [{pipeline_mode = #tpu.pipeline_mode<synchronous>, transform_indices = @transform_0, window_bounds = array<i64: 8, 1568>}, {pipeline_mode = #tpu.pipeline_mode<synchronous>, transform_indices = @transform_1, window_bounds = array<i64: 1568, 512>}, {pipeline_mode = #tpu.pipeline_mode<synchronous>, transform_indices = @transform_2, window_bounds = array<i64: 8, 1>}, {pipeline_mode = #tpu.pipeline_mode<synchronous>, transform_indices = @transform_3, window_bounds = array<i64: 8, 512>}, {pipeline_mode = #tpu.pipeline_mode<synchronous>, transform_indices = @transform_4, window_bounds = array<i64: 8, 512>}]} {
    %c0 = arith.constant 0 : index
    %c0_0 = arith.constant 0 : index
    %0 = vector.load %arg1[%c0, %c0_0] : memref<8x1568xbf16, #tpu.memory_space<vmem>>, vector<8x1568xbf16>
    %c0_1 = arith.constant 0 : index
    %c0_2 = arith.constant 0 : index
    %1 = vector.load %arg2[%c0_1, %c0_2] : memref<1568x512xbf16, #tpu.memory_space<vmem>>, vector<1568x512xbf16>
    %cst = arith.constant dense<0.000000e+00> : vector<8x512xf32>
    %2 = tpu.matmul %0, %1, %cst {dimension_numbers = #tpu.dot_dimension_numbers<[1], [0], [0], [1], [0, 0, 1, 1], [], []>} : vector<8x1568xbf16>, vector<1568x512xbf16>, vector<8x512xf32> -> vector<8x512xf32>
    %c0_3 = arith.constant 0 : index
    %c0_4 = arith.constant 0 : index
    %3 = vector.load %arg3[%c0_3, %c0_4] : memref<8x1xf32, #tpu.memory_space<vmem>>, vector<8x1xf32>
    %4 = vector.broadcast %3 : vector<8x1xf32> to vector<8x512xf32>
    %5 = arith.addf %2, %4 : vector<8x512xf32>
    %c0_5 = arith.constant 0 : index
    %c0_6 = arith.constant 0 : index
    %6 = vector.load %arg4[%c0_5, %c0_6] : memref<8x512xf32, #tpu.memory_space<vmem>>, vector<8x512xf32>
    %7 = arith.addf %5, %6 : vector<8x512xf32>
    %8 = math.tanh %7 : vector<8x512xf32>
    %c0_7 = arith.constant 0 : index
    %c0_8 = arith.constant 0 : index
    %9 = vector.load %arg5[%c0_7, %c0_8] : memref<8x512xf32, #tpu.memory_space<vmem>>, vector<8x512xf32>
    tpu.vector_store %arg5[%c0_7, %c0_8], %8 {strides = array<i32>} : memref<8x512xf32, #tpu.memory_space<vmem>>, vector<8x512xf32>,
    return
  }
  func.func @transform_0(%arg0: i32) -> (i32, i32) {
    %c0_i32 = arith.constant 0 : i32
    %c0_i32_0 = arith.constant 0 : i32
    %c0_i32_1 = arith.constant 0 : i32
    return %c0_i32, %c0_i32_0 : i32, i32
  }
  func.func @transform_1(%arg0: i32) -> (i32, i32) {
    %c0_i32 = arith.constant 0 : i32
    %c0_i32_0 = arith.constant 0 : i32
    %c0_i32_1 = arith.constant 0 : i32
    return %c0_i32, %c0_i32_0 : i32, i32
  }
  func.func @transform_2(%arg0: i32) -> (i32, i32) {
    %c0_i32 = arith.constant 0 : i32
    %c0_i32_0 = arith.constant 0 : i32
    %c0_i32_1 = arith.constant 0 : i32
    return %c0_i32, %c0_i32_0 : i32, i32
  }
  func.func @transform_3(%arg0: i32) -> (i32, i32) {
    %c0_i32 = arith.constant 0 : i32
    %c0_i32_0 = arith.constant 0 : i32
    %c0_i32_1 = arith.constant 0 : i32
    return %c0_i32, %c0_i32_0 : i32, i32
  }
  func.func @transform_4(%arg0: i32) -> (i32, i32) {
    %c0_i32 = arith.constant 0 : i32
    %c0_i32_0 = arith.constant 0 : i32
    %c0_i32_1 = arith.constant 0 : i32
    return %c0_i32, %c0_i32_0 : i32, i32
  }
}

</mosaic_0001>

<bundles_post_ra>
// kernel: generator_f2s.21
= control target key start
LH: loop header
LB: loop body
LE: loop exit
PB: predicated region body
PF: predicated region fallthrough
CT: control target
= control target key end

     0   :  { %s1869_s12 = smov 0   ;;  %s2701_s0 = inlined_call_operand.vmem [shape: bf16[2,256,392], index: 0, kind: input, shape index: {}]   ;;  %s2702_s1 = inlined_call_operand.vmem [shape: bf16[392,32], index: 1, kind: input, shape index: {}]   ;;  %s2703_s2 = inlined_call_operand.vmem [shape: f32[1,32], index: 2, kind: input, shape index: {}]   ;;  %s2704_s3 = inlined_call_operand.vmem [shape: f32[2,256,32], index: 3, kind: output, shape index: {}]  }
   0x1 LB: > { %s1477_s13 = sadd.s32 4294967295, %s1846_s12   ;;  %p1481_p0 = scmp.ge.s32.totalorder %s1846_s12, 1  ;;  %s1846_s12 = sphi %s1869_s12, %s13_s12  }
   0x2   : > { %p137_p1 = scmp.lt.s32.totalorder %s1846_s12, 3 }
   0x4   : > { %p138_p2 = pnand %p1481_p0, %p137_p1 }
   0x5   : > { %p161_p3 = scmp.lt.s32.totalorder (!%p138_p2), %s1477_s13, 1 }
   0x6   : > { %141 = sbr.rel (%p138_p2) target bundleno = 510 (0x1fe), region = 32 }
   0xb   : > { %v1717_v0 = vld [vmem:[%s2702_s1 + $0x78] sm:$0xff]   ;;  %v1848_v1 = vmov 0   ;;  %v1720_v4 = vld [vmem:[%s2702_s1 + $0x70] sm:$0xff]   ;;  %v1723_v7 = vld [vmem:[%s2702_s1 + $0x68] sm:$0xff]   ;;  %s2706_s13 = smov (!%p161_p3, %s1477_s13), 1  ;;  %vm743_vm0 = vcmask 64512  }
   0xc   : > { %957 = vmatprep.subr.bf16.mxu1 %v1848_v1  ;;  %v1718_v2 = vld [vmem:[%s2702_s1 + $0xb8] sm:$0xff]   ;;  %1596 = vmatprep.subr.bf16.mxu0 %v1717_v0  ;;  %v1721_v5 = vld [vmem:[%s2702_s1 + $0xb0] sm:$0xff]   ;;  %v1724_v8 = vld [vmem:[%s2702_s1 + $0xa8] sm:$0xff]   ;;  %s1594_s23 = sshll.u32 %s2706_s13, 9  ;;  %vm792_vm1 = vcmask 1043456   ;;  %vm1118_vm2 = vcmask 261120  }
   0xd   : > { %v1719_v3 = vld [vmem:[%s2702_s1 + $0x38] sm:$0xff]   ;;  %958 = vmatpush1.bf16.msra.mxu1 %v1718_v2  ;;  %v1722_v6 = vld [vmem:[%s2702_s1 + $0x30] sm:$0xff]   ;;  %v1725_v9 = vld [vmem:[%s2702_s1 + $0x28] sm:$0xff]   ;;  %s1950_s30 = scalar_lea.vmem %s2701_s0, %s1594_s23  ;;  %s1595_s20 = sshll.u32 %s2706_s13, 8 }
   0xe   : > { %1597 = vmatpush3.bf16.msra.mxu0 %v1719_v3  ;;  %959 = vmatprep.subr.bf16.mxu1 %v1848_v1  ;;  %v1726_v10 = vld [vmem:[%s2702_s1 + $0x60] sm:$0xff]   ;;  %v1729_v13 = vld [vmem:[%s2702_s1 + $0x58] sm:$0xff]   ;;  %v1732_v16 = vld [vmem:[%s2702_s1 + $0x50] sm:$0xff]   ;;  %s2610_s22 = scalar_lea.vmem %s2704_s3, %s1595_s20 }
   0xf   : > { %1598 = vmatprep.subr.bf16.mxu0 %v1720_v4  ;;  %v1727_v11 = vld [vmem:[%s2702_s1 + $0xa0] sm:$0xff]   ;;  %v1730_v14 = vld [vmem:[%s2702_s1 + $0x98] sm:$0xff]   ;;  %v1733_v17 = vld [vmem:[%s2702_s1 + $0x90] sm:$0xff]  }
  0x10   : > { %v1728_v12 = vld [vmem:[%s2702_s1 + $0x20] sm:$0xff]   ;;  %v1731_v15 = vld [vmem:[%s2702_s1 + $0x18] sm:$0xff]   ;;  %v1734_v18 = vld [vmem:[%s2702_s1 + $0x10] sm:$0xff]  }
  0x11   : > { %960 = vmatpush1.bf16.msra.mxu1 %v1721_v5  ;;  %v1735_v19 = vld [vmem:[%s2702_s1 + $0x48] sm:$0xff]   ;;  %v1738_v22 = vld [vmem:[%s2702_s1 + $0x40] sm:$0xff]  }
  0x12   : > { %1599 = vmatpush3.bf16.msra.mxu0 %v1722_v6  ;;  %961 = vmatprep.subr.bf16.mxu1 %v1848_v1  ;;  %v1736_v20 = vld [vmem:[%s2702_s1 + $0x88] sm:$0xff]   ;;  %v1743_v23 = vld [vmem:[%s1950_s30 + $0x4] ss:$16 sps:$4 sm:$0xff]   ;;  %v1744_v27 = vld [vmem:[%s2702_s1 + $0xc0] ss:$0 sps:$4 sm:$0xff]  }
  0x13   : > { %1600 = vmatprep.subr.bf16.mxu0 %v1723_v7  ;;  %v1737_v21 = vld [vmem:[%s2702_s1 + $0x8] sm:$0xff]   ;;  %v1739_v24 = vld [vmem:[%s2702_s1 + $0x80] sm:$0xff]   ;;  %828 = vmatprep.mubr.bf16.mxu0 %v1743_v23  ;;  %v794_v29 = vsel %vm792_vm1, %v1744_v27, 0 }
  0x14   : > { %v1747_v25 = vld [vmem:[%s1950_s30 + $0xc] ss:$16 sps:$4 sm:$0xff]   ;;  %v1740_v26 = vld [vmem:[%s2702_s1] sm:$0xff]   ;;  %v1745_v31 = vld [vmem:[%s1950_s30 + $0x8] ss:$16 sps:$4 sm:$0xff]  }
  0x15   : > { %962 = vmatpush1.bf16.msra.mxu1 %v1724_v8  ;;  %1576 = vmatprep.mubr.msk.bf16.mxu1 %vm743_vm0, %v1747_v25  ;;  %v1741_v28 = vld [vmem:[%s1950_s30] ss:$16 sps:$4 sm:$0xff]   ;;  %v1748_v30 = vld [vmem:[%s1950_s30 + $0x24] ss:$16 sps:$4 sm:$0xff]   ;;  %v1751_v32 = vld [vmem:[%s1950_s30 + $0x2c] ss:$16 sps:$4 sm:$0xff]  }
  0x16   : > { %1601 = vmatpush3.bf16.msra.mxu0 %v1725_v9  ;;  %963 = vmatprep.subr.bf16.mxu1 %v1848_v1  ;;  %v1750_v33 = vld [vmem:[%s1950_s30 + $0x20] ss:$16 sps:$4 sm:$0xff]   ;;  %v1754_v34 = vld [vmem:[%s1950_s30 + $0x44] ss:$16 sps:$4 sm:$0xff]   ;;  %v1753_v35 = vld [vmem:[%s1950_s30 + $0x28] ss:$16 sps:$4 sm:$0xff]  }
  0x17   : > { %1602 = vmatprep.subr.bf16.mxu0 %v1726_v10  ;;  %v1757_v36 = vld [vmem:[%s1950_s30 + $0x4c] ss:$16 sps:$4 sm:$0xff]   ;;  %v1756_v37 = vld [vmem:[%s1950_s30 + $0x40] ss:$16 sps:$4 sm:$0xff]   ;;  %v1760_v38 = vld [vmem:[%s1950_s30 + $0x64] ss:$16 sps:$4 sm:$0xff]  }
  0x18   : > { %v1759_v39 = vld [vmem:[%s1950_s30 + $0x48] ss:$16 sps:$4 sm:$0xff]   ;;  %v1763_v40 = vld [vmem:[%s1950_s30 + $0x6c] ss:$16 sps:$4 sm:$0xff]   ;;  %v1762_v41 = vld [vmem:[%s1950_s30 + $0x60] ss:$16 sps:$4 sm:$0xff]  }
  0x19   : > { %964 = vmatpush1.bf16.msra.mxu1 %v1727_v11  ;;  %v1766_v42 = vld [vmem:[%s1950_s30 + $0x84] ss:$16 sps:$4 sm:$0xff]   ;;  %v1765_v43 = vld [vmem:[%s1950_s30 + $0x68] ss:$16 sps:$4 sm:$0xff]   ;;  %v1769_v44 = vld [vmem:[%s1950_s30 + $0x8c] ss:$16 sps:$4 sm:$0xff]  }
  0x1a   : > { %1603 = vmatpush3.bf16.msra.mxu0 %v1728_v12  ;;  %965 = vmatprep.subr.bf16.mxu1 %v1848_v1  ;;  %v1768_v45 = vld [vmem:[%s1950_s30 + $0x80] ss:$16 sps:$4 sm:$0xff]   ;;  %v1772_v46 = vld [vmem:[%s1950_s30 + $0xa4] ss:$16 sps:$4 sm:$0xff]   ;;  %v1771_v47 = vld [vmem:[%s1950_s30 + $0x88] ss:$16 sps:$4 sm:$0xff]  }
  0x1b   : > { %1604 = vmatprep.subr.bf16.mxu0 %v1729_v13  ;;  %v1775_v48 = vld [vmem:[%s1950_s30 + $0xac] ss:$16 sps:$4 sm:$0xff]   ;;  %v1774_v49 = vld [vmem:[%s1950_s30 + $0xa0] ss:$16 sps:$4 sm:$0xff]   ;;  %v1778_v50 = vld [vmem:[%s1950_s30 + $0xc4] ss:$16 sps:$4 sm:$0xff]  }
  0x1c   : > { %v1777_v51 = vld [vmem:[%s1950_s30 + $0xa8] ss:$16 sps:$4 sm:$0xff]   ;;  %v1781_v52 = vld [vmem:[%s1950_s30 + $0xcc] ss:$16 sps:$4 sm:$0xff]   ;;  %v1780_v53 = vld [vmem:[%s1950_s30 + $0xc0] ss:$16 sps:$4 sm:$0xff]  }
  0x1d   : > { %966 = vmatpush1.bf16.msra.mxu1 %v1730_v14  ;;  %v1784_v54 = vld [vmem:[%s1950_s30 + $0xe4] ss:$16 sps:$4 sm:$0xff]   ;;  %v1783_v55 = vld [vmem:[%s1950_s30 + $0xc8] ss:$16 sps:$4 sm:$0xff]   ;;  %v1787_v56 = vld [vmem:[%s1950_s30 + $0xec] ss:$16 sps:$4 sm:$0xff]  }
  0x1e   : > { %1605 = vmatpush3.bf16.msra.mxu0 %v1731_v15  ;;  %967 = vmatprep.subr.bf16.mxu1 %v1848_v1  ;;  %v1786_v57 = vld [vmem:[%s1950_s30 + $0xe0] ss:$16 sps:$4 sm:$0xff]   ;;  %v1790_v58 = vld [vmem:[%s1950_s30 + $0x104] ss:$16 sps:$4 sm:$0xff]   ;;  %v1789_v59 = vld [vmem:[%s1950_s30 + $0xe8] ss:$16 sps:$4 sm:$0xff]  }
  0x1f   : > { %1606 = vmatprep.subr.bf16.mxu0 %v1732_v16  ;;  %v1793_v60 = vld [vmem:[%s1950_s30 + $0x10c] ss:$16 sps:$4 sm:$0xff]   ;;  %v1792_v61 = vld [vmem:[%s1950_s30 + $0x100] ss:$16 sps:$4 sm:$0xff]   ;;  %v1796_v62 = vld [vmem:[%s1950_s30 + $0x124] ss:$16 sps:$4 sm:$0xff]  }
  0x20   : > { %v1795_v63 = vld [vmem:[%s1950_s30 + $0x108] ss:$16 sps:$4 sm:$0xff]   ;;  %v1799_v0 = vld [vmem:[%s1950_s30 + $0x12c] ss:$16 sps:$4 sm:$0xff]   ;;  %v1802_v2 = vld [vmem:[%s1950_s30 + $0x144] ss:$16 sps:$4 sm:$0xff]  }
  0x21   : > { %968 = vmatpush1.bf16.msra.mxu1 %v1733_v17  ;;  %v1801_v3 = vld [vmem:[%s1950_s30 + $0x128] ss:$16 sps:$4 sm:$0xff]   ;;  %v1805_v4 = vld [vmem:[%s1950_s30 + $0x14c] ss:$16 sps:$4 sm:$0xff]   ;;  %v1804_v5 = vld [vmem:[%s1950_s30 + $0x140] ss:$16 sps:$4 sm:$0xff]  }
  0x22   : > { %1607 = vmatpush3.bf16.msra.mxu0 %v1734_v18  ;;  %969 = vmatprep.subr.bf16.mxu1 %v1848_v1  ;;  %v1808_v6 = vld [vmem:[%s1950_s30 + $0x164] ss:$16 sps:$4 sm:$0xff]   ;;  %v1807_v7 = vld [vmem:[%s1950_s30 + $0x148] ss:$16 sps:$4 sm:$0xff]   ;;  %v1811_v8 = vld [vmem:[%s1950_s30 + $0x16c] ss:$16 sps:$4 sm:$0xff]  }
  0x23   : > { %1608 = vmatprep.subr.bf16.mxu0 %v1735_v19  ;;  %v1810_v9 = vld [vmem:[%s1950_s30 + $0x160] ss:$16 sps:$4 sm:$0xff]   ;;  %v1814_v10 = vld [vmem:[%s1950_s30 + $0x184] ss:$16 sps:$4 sm:$0xff]   ;;  %v1813_v11 = vld [vmem:[%s1950_s30 + $0x168] ss:$16 sps:$4 sm:$0xff]  }
  0x24   : > { %v1817_v12 = vld [vmem:[%s1950_s30 + $0x18c] ss:$16 sps:$4 sm:$0xff]   ;;  %v1816_v13 = vld [vmem:[%s1950_s30 + $0x180] ss:$16 sps:$4 sm:$0xff]   ;;  %v1820_v14 = vld [vmem:[%s1950_s30 + $0x1a4] ss:$16 sps:$4 sm:$0xff]  }
  0x25   : > { %970 = vmatpush1.bf16.msra.mxu1 %v1736_v20  ;;  %v1819_v15 = vld [vmem:[%s1950_s30 + $0x188] ss:$16 sps:$4 sm:$0xff]   ;;  %v1823_v16 = vld [vmem:[%s1950_s30 + $0x1ac] ss:$16 sps:$4 sm:$0xff]   ;;  %v1822_v17 = vld [vmem:[%s1950_s30 + $0x1a0] ss:$16 sps:$4 sm:$0xff]  }
  0x26   : > { %1609 = vmatpush3.bf16.msra.mxu0 %v1737_v21  ;;  %971 = vmatprep.subr.bf16.mxu1 %v1848_v1  ;;  %v1826_v18 = vld [vmem:[%s1950_s30 + $0x1c4] ss:$16 sps:$4 sm:$0xff]   ;;  %v1825_v19 = vld [vmem:[%s1950_s30 + $0x1a8] ss:$16 sps:$4 sm:$0xff]   ;;  %v1829_v20 = vld [vmem:[%s1950_s30 + $0x1cc] ss:$16 sps:$4 sm:$0xff]  }
  0x27   : > { %1610 = vmatprep.subr.bf16.mxu0 %v1738_v22  ;;  %v1828_v21 = vld [vmem:[%s1950_s30 + $0x1c0] ss:$16 sps:$4 sm:$0xff]   ;;  %v1832_v22 = vld [vmem:[%s1950_s30 + $0x1e4] ss:$16 sps:$4 sm:$0xff]   ;;  %v1831_v23 = vld [vmem:[%s1950_s30 + $0x1c8] ss:$16 sps:$4 sm:$0xff]  }
  0x28   : > { %v1834_v25 = vld [vmem:[%s1950_s30 + $0x1e0] ss:$16 sps:$4 sm:$0xff]  }
  0x29   : > { %972 = vmatpush1.bf16.msra.mxu1 %v1739_v24  ;;  %v1835_v24 = vld [vmem:[%s1950_s30 + $0x1ec] ss:$16 sps:$4 sm:$0xff]  }
  0x2a   : > { %1611 = vmatpush3.bf16.msra.mxu0 %v1740_v26  ;;  %987 = vmatprep.subr.bf16.mxu1 %v1848_v1  ;;  %v1798_v1 = vld [vmem:[%s1950_s30 + $0x120] ss:$16 sps:$4 sm:$0xff]   ;;  %v1837_v26 = vld [vmem:[%s1950_s30 + $0x1e8] ss:$16 sps:$4 sm:$0xff]  }
  0x2d   : > { %829 = vmatmul.mubr.bf16.vlgmr.msra.gmra.mxu0 %v1741_v28  ;;  %988 = vmatpush2.bf16.msra.mxu1 %v794_v29  ;;  %v2056_v29 = vld [vmem:[%s2703_s2] ss:$0 sm:$0xff] }
  0x2e   : > { %836 = vmatprep.mubr.bf16.mxu0 %v1748_v30 }
  0x30   : > { %990 = vmatmul.mubr.bf16.vlgmr.msra.gmra.mxu1 %v1745_v31 }
  0x31   : > { %1577 = vmatprep.mubr.msk.bf16.mxu1 %vm743_vm0, %v1751_v32 }
  0x35   : > { %837 = vmatmul.mubr.bf16.gmra.mxu0 %v1750_v33 }
  0x36   : > { %844 = vmatprep.mubr.bf16.mxu0 %v1754_v34 }
  0x38   : > { %998 = vmatmul.mubr.bf16.gmra.mxu1 %v1753_v35 }
  0x39   : > { %1578 = vmatprep.mubr.msk.bf16.mxu1 %vm743_vm0, %v1757_v36 }
  0x3d   : > { %845 = vmatmul.mubr.bf16.gmra.mxu0 %v1756_v37 }
  0x3e   : > { %852 = vmatprep.mubr.bf16.mxu0 %v1760_v38 }
  0x40   : > { %1006 = vmatmul.mubr.bf16.gmra.mxu1 %v1759_v39 }
  0x41   : > { %1579 = vmatprep.mubr.msk.bf16.mxu1 %vm743_vm0, %v1763_v40 }
  0x45   : > { %853 = vmatmul.mubr.bf16.gmra.mxu0 %v1762_v41 }
  0x46   : > { %860 = vmatprep.mubr.bf16.mxu0 %v1766_v42 }
  0x48   : > { %1014 = vmatmul.mubr.bf16.gmra.mxu1 %v1765_v43 }
  0x49   : > { %1580 = vmatprep.mubr.msk.bf16.mxu1 %vm743_vm0, %v1769_v44 }
  0x4d   : > { %861 = vmatmul.mubr.bf16.gmra.mxu0 %v1768_v45 }
  0x4e   : > { %868 = vmatprep.mubr.bf16.mxu0 %v1772_v46 }
  0x50   : > { %1022 = vmatmul.mubr.bf16.gmra.mxu1 %v1771_v47 }
  0x51   : > { %1581 = vmatprep.mubr.msk.bf16.mxu1 %vm743_vm0, %v1775_v48 }
  0x55   : > { %869 = vmatmul.mubr.bf16.gmra.mxu0 %v1774_v49 }
  0x56   : > { %876 = vmatprep.mubr.bf16.mxu0 %v1778_v50 }
  0x58   : > { %1030 = vmatmul.mubr.bf16.gmra.mxu1 %v1777_v51 }
  0x59   : > { %1582 = vmatprep.mubr.msk.bf16.mxu1 %vm743_vm0, %v1781_v52 }
  0x5d   : > { %877 = vmatmul.mubr.bf16.gmra.mxu0 %v1780_v53 }
  0x5e   : > { %884 = vmatprep.mubr.bf16.mxu0 %v1784_v54 }
  0x60   : > { %1038 = vmatmul.mubr.bf16.gmra.mxu1 %v1783_v55 }
  0x61   : > { %1583 = vmatprep.mubr.msk.bf16.mxu1 %vm743_vm0, %v1787_v56 }
  0x65   : > { %885 = vmatmul.mubr.bf16.gmra.mxu0 %v1786_v57 }
  0x66   : > { %892 = vmatprep.mubr.bf16.mxu0 %v1790_v58 }
  0x68   : > { %1046 = vmatmul.mubr.bf16.gmra.mxu1 %v1789_v59 }
  0x69   : > { %1584 = vmatprep.mubr.msk.bf16.mxu1 %vm743_vm0, %v1793_v60 }
  0x6d   : > { %893 = vmatmul.mubr.bf16.gmra.mxu0 %v1792_v61 }
  0x6e   : > { %900 = vmatprep.mubr.bf16.mxu0 %v1796_v62 }
  0x70   : > { %1054 = vmatmul.mubr.bf16.gmra.mxu1 %v1795_v63 }
  0x71   : > { %1585 = vmatprep.mubr.msk.bf16.mxu1 %vm743_vm0, %v1799_v0 }
  0x75   : > { %901 = vmatmul.mubr.bf16.gmra.mxu0 %v1798_v1 }
  0x76   : > { %908 = vmatprep.mubr.bf16.mxu0 %v1802_v2 }
  0x78   : > { %1062 = vmatmul.mubr.bf16.gmra.mxu1 %v1801_v3 }
  0x79   : > { %1586 = vmatprep.mubr.msk.bf16.mxu1 %vm743_vm0, %v1805_v4 }
  0x7d   : > { %909 = vmatmul.mubr.bf16.gmra.mxu0 %v1804_v5 }
  0x7e   : > { %916 = vmatprep.mubr.bf16.mxu0 %v1808_v6 }
  0x80   : > { %1070 = vmatmul.mubr.bf16.gmra.mxu1 %v1807_v7 }
  0x81   : > { %1587 = vmatprep.mubr.msk.bf16.mxu1 %vm743_vm0, %v1811_v8 }
  0x85   : > { %917 = vmatmul.mubr.bf16.gmra.mxu0 %v1810_v9 }
  0x86   : > { %924 = vmatprep.mubr.bf16.mxu0 %v1814_v10 }
  0x88   : > { %1078 = vmatmul.mubr.bf16.gmra.mxu1 %v1813_v11 }
  0x89   : > { %1588 = vmatprep.mubr.msk.bf16.mxu1 %vm743_vm0, %v1817_v12 }
  0x8d   : > { %925 = vmatmul.mubr.bf16.gmra.mxu0 %v1816_v13 }
  0x8e   : > { %932 = vmatprep.mubr.bf16.mxu0 %v1820_v14 }
  0x90   : > { %1086 = vmatmul.mubr.bf16.gmra.mxu1 %v1819_v15 }
  0x91   : > { %1589 = vmatprep.mubr.msk.bf16.mxu1 %vm743_vm0, %v1823_v16 }
  0x95   : > { %933 = vmatmul.mubr.bf16.gmra.mxu0 %v1822_v17 }
  0x96   : > { %940 = vmatprep.mubr.bf16.mxu0 %v1826_v18 }
  0x98   : > { %1094 = vmatmul.mubr.bf16.gmra.mxu1 %v1825_v19 }
  0x99   : > { %1590 = vmatprep.mubr.msk.bf16.mxu1 %vm743_vm0, %v1829_v20 }
  0x9d   : > { %941 = vmatmul.mubr.bf16.gmra.mxu0 %v1828_v21 }
  0x9e   : > { %948 = vmatprep.mubr.bf16.mxu0 %v1832_v22 }
  0xa0   : > { %1102 = vmatmul.mubr.bf16.gmra.mxu1 %v1831_v23 }
  0xa1   : > { %1591 = vmatprep.mubr.msk.bf16.mxu1 %vm743_vm0, %v1835_v24 }
  0xa5   : > { %949 = vmatmul.mubr.bf16.gmra.mxu0 %v1834_v25 }
  0xa8   : > { %1110 = vmatmul.mubr.bf16.gmra.mxu1 %v1837_v26 }
  0xed   : > { %v1612_v27 = vpop.f32.mrf.mxu0 }
  0xef   : > { %v1613_v28 = vpop.f32.mrf.mxu0 }
  0xf0   : > { %v1614_v30 = vadd.f32 %v1613_v28, %v1612_v27  ;;  %v991_v31 = vpop.f32.mrf.mxu1 }
  0xf1   : > { %v1615_v32 = vpop.f32.mrf.mxu0 }
  0xf2   : > { %v831_v33 = vadd.f32 %v1614_v30, %v2056_v29  ;;  %v993_v34 = vpop.f32.mrf.mxu1 }
  0xf3   : > { %v1616_v35 = vpop.f32.mrf.mxu0 }
  0xf4   : > { %v2059_v36 = vadd.f32 %v991_v31, %v831_v33  ;;  %v2061_v37 = vpop.f32.mrf.mxu1  ;;  %v1617_v25 = vadd.f32 %v1616_v35, %v1615_v32 }
  0xf5   : > { %v1618_v38 = vpop.f32.mrf.mxu0 }
  0xf6   : > { %v996_v39 = vpop.f32.mrf.mxu1  ;;  %v834_v33 = vadd.f32 %v1617_v25, %v2056_v29 }
  0xf7   : > { %v1619_v40 = vpop.f32.mrf.mxu0 }
  0xf8   : > { %v2063_v41 = vpop.f32.mrf.mxu1  ;;  %v1620_v28 = vadd.f32 %v1619_v40, %v1618_v38  ;;  %v2126_v35 = vadd.f32 %v2061_v37, %v834_v33 }
  0xf9   : > { %v1621_v42 = vpop.f32.mrf.mxu0 }
  0xfa   : > { %v1001_v43 = vpop.f32.mrf.mxu1  ;;  %v1120_v37 = vsel %vm1118_vm2, %v2126_v35, 0.0 }
  0xfb   : > { %v1622_v44 = vpop.f32.mrf.mxu0 }
  0xfc   : > { %v2065_v45 = vpop.f32.mrf.mxu1  ;;  %v1623_v34 = vadd.f32 %v1622_v44, %v1621_v42 }
  0xfd   : > { %v1624_v46 = vpop.f32.mrf.mxu0 }
  0xfe   : > { %v1004_v47 = vpop.f32.mrf.mxu1  ;;  %v842_v38 = vadd.f32 %v1623_v34, %v2056_v29 }
  0xff   : > { %v1625_v48 = vpop.f32.mrf.mxu0  ;;  %v839_v47 = vadd.f32 %v1620_v28, %v2056_v29 }
 0x100   : > { %v2067_v49 = vpop.f32.mrf.mxu1 }
 0x101   : > { %v1627_v50 = vpop.f32.mrf.mxu0  ;;  %v2134_v42 = vadd.f32 %v2063_v41, %v839_v47  ;;  %v1119_v41 = vsel %vm1118_vm2, %v2059_v36, 0.0 }
 0x102   : > { %v1009_v51 = vpop.f32.mrf.mxu1  ;;  %v1121_v25 = vadd.f32 %v1120_v37, %v1119_v41 }
 0x103   : > { %v1628_v52 = vpop.f32.mrf.mxu0  ;;  %v1626_v51 = vadd.f32 %v1625_v48, %v1624_v46 }
 0x104   : > { %v2069_v53 = vpop.f32.mrf.mxu1  ;;  %v1629_v40 = vadd.f32 %v1628_v52, %v1627_v50 }
 0x105   : > { %v1630_v54 = vpop.f32.mrf.mxu0  ;;  %v847_v44 = vadd.f32 %v1626_v51, %v2056_v29 }
 0x106   : > { %v1012_v55 = vpop.f32.mrf.mxu1  ;;  %v850_v50 = vadd.f32 %v1629_v40, %v2056_v29 }
 0x107   : > { %v1631_v56 = vpop.f32.mrf.mxu0 }
 0x108   : > { %v2071_v57 = vpop.f32.mrf.mxu1  ;;  %v1632_v46 = vadd.f32 %v1631_v56, %v1630_v54  ;;  %v1122_v54 = vsel %vm1118_vm2, %v2134_v42, 0.0  ;;  %v2154_v56 = vadd.f32 %v2067_v49, %v847_v44 }
 0x109   : > { %v1633_v58 = vpop.f32.mrf.mxu0  ;;  %v1123_v34 = vadd.f32 %v1122_v54, %v1121_v25 }
 0x10a   : > { %v1017_v59 = vpop.f32.mrf.mxu1 }
 0x10b   : > { %v1634_v60 = vpop.f32.mrf.mxu0 }
 0x10c   : > { %v2073_v61 = vpop.f32.mrf.mxu1  ;;  %v1635_v52 = vadd.f32 %v1634_v60, %v1633_v58  ;;  %v2162_v60 = vadd.f32 %v2069_v53, %v850_v50 }
 0x10d   : > { %v1636_v62 = vpop.f32.mrf.mxu0 }
 0x10e   : > { %v1020_v63 = vpop.f32.mrf.mxu1 }
 0x10f   : > { %v1637_v0 = vpop.f32.mrf.mxu0 }
 0x110   : > { %v2075_v1 = vpop.f32.mrf.mxu1 }
 0x111   : > { %v2077_v2 = vpop.f32.mrf.mxu0 }
 0x112   : > { %v1025_v3 = vpop.f32.mrf.mxu1 }
 0x113   : > { %v2079_v4 = vpop.f32.mrf.mxu0 }
 0x114   : > { %v2081_v5 = vpop.f32.mrf.mxu1  ;;  %v1641_v33 = vadd.f32 %v2079_v4, %v2077_v2  ;;  %v1128_v2 = vsel %vm1118_vm2, %v2162_v60, 0.0 }
 0x115   : > { %v2083_v6 = vpop.f32.mrf.mxu0 }
 0x116   : > { %v1028_v7 = vpop.f32.mrf.mxu1  ;;  %v866_v44 = vadd.f32 %v1641_v33, %v2056_v29 }
 0x117   : > { %v2085_v8 = vpop.f32.mrf.mxu0  ;;  %v2142_v7 = vadd.f32 %v2065_v45, %v842_v38  ;;  %v1638_v45 = vadd.f32 %v1637_v0, %v1636_v62  ;;  %v1126_v62 = vsel %vm1118_vm2, %v2154_v56, 0.0 }
 0x118   : > { %v2087_v9 = vpop.f32.mrf.mxu1  ;;  %v1644_v53 = vadd.f32 %v2085_v8, %v2083_v6 }
 0x119   : > { %v2089_v10 = vpop.f32.mrf.mxu0  ;;  %v1124_v58 = vsel %vm1118_vm2, %v2142_v7, 0.0  ;;  %v863_v51 = vadd.f32 %v1638_v45, %v2056_v29 }
 0x11a   : > { %v1033_v11 = vpop.f32.mrf.mxu1  ;;  %v1125_v38 = vadd.f32 %v1124_v58, %v1123_v34  ;;  %v871_v50 = vadd.f32 %v1644_v53, %v2056_v29 }
 0x11b   : > { %v2091_v12 = vpop.f32.mrf.mxu0  ;;  %v2192_v8 = vadd.f32 %v2075_v1, %v863_v51 }
 0x11c   : > { %v2093_v13 = vpop.f32.mrf.mxu1 }
 0x11d   : > { %v2095_v14 = vpop.f32.mrf.mxu0 }
 0x11e   : > { %v1036_v15 = vpop.f32.mrf.mxu1 }
 0x11f   : > { %v2097_v16 = vpop.f32.mrf.mxu0 }
 0x120   : > { %v2099_v17 = vpop.f32.mrf.mxu1 }
 0x121   : > { %v2101_v18 = vpop.f32.mrf.mxu0 }
 0x122   : > { %v1041_v19 = vpop.f32.mrf.mxu1 }
 0x123   : > { %v2103_v20 = vpop.f32.mrf.mxu0  ;;  %v855_v19 = vadd.f32 %v1632_v46, %v2056_v29 }
 0x124   : > { %v2105_v21 = vpop.f32.mrf.mxu1  ;;  %v1653_v1 = vadd.f32 %v2103_v20, %v2101_v18 }
 0x125   : > { %v2107_v22 = vpop.f32.mrf.mxu0  ;;  %v2174_v0 = vadd.f32 %v2071_v57, %v855_v19  ;;  %v1647_v57 = vadd.f32 %v2091_v12, %v2089_v10  ;;  %v2200_v12 = vadd.f32 %v2081_v5, %v866_v44 }
 0x126   : > { %v1044_v23 = vpop.f32.mrf.mxu1 }
 0x127   : > { %v2109_v24 = vpop.f32.mrf.mxu0  ;;  %v1130_v6 = vsel %vm1118_vm2, %v2174_v0, 0.0  ;;  %v874_v19 = vadd.f32 %v1647_v57, %v2056_v29  ;;  %v1136_v18 = vsel %vm1118_vm2, %v2200_v12, 0.0 }
 0x128   : > { %v2111_v26 = vpop.f32.mrf.mxu1  ;;  %v1656_v5 = vadd.f32 %v2109_v24, %v2107_v22 }
 0x129   : > { %v2113_v27 = vpop.f32.mrf.mxu0  ;;  %v2218_v20 = vadd.f32 %v2093_v13, %v874_v19 }
 0x12a   : > { %v1049_v30 = vpop.f32.mrf.mxu1 }
 0x12b   : > { %v2115_v31 = vpop.f32.mrf.mxu0  ;;  %v858_v30 = vadd.f32 %v1635_v52, %v2056_v29 }
 0x12c   : > { %v2118_v39 = vpop.f32.mrf.mxu1 }
 0x12d   : > { %v2120_v43 = vpop.f32.mrf.mxu0  ;;  %v2182_v4 = vadd.f32 %v2073_v61, %v858_v30  ;;  %v1650_v61 = vadd.f32 %v2097_v16, %v2095_v14  ;;  %v1134_v14 = vsel %vm1118_vm2, %v2192_v8, 0.0  ;;  %v2210_v16 = vadd.f32 %v2087_v9, %v871_v50 }
 0x12e   : > { %v1052_v55 = vpop.f32.mrf.mxu1  ;;  %v1659_v9 = vadd.f32 %v2115_v31, %v2113_v27  ;;  %v1140_v27 = vsel %vm1118_vm2, %v2218_v20, 0.0 }
 0x12f   : > { %v2123_v32 = vpop.f32.mrf.mxu0  ;;  %v1132_v10 = vsel %vm1118_vm2, %v2182_v4, 0.0  ;;  %v879_v58 = vadd.f32 %v1650_v61, %v2056_v29  ;;  %v1138_v22 = vsel %vm1118_vm2, %v2210_v16, 0.0 }
 0x130   : > { %v2129_v59 = vpop.f32.mrf.mxu1  ;;  %v1662_v13 = vadd.f32 %v2123_v32, %v2120_v43 }
 0x131   : > { %v2131_v63 = vpop.f32.mrf.mxu0  ;;  %v2228_v24 = vadd.f32 %v2099_v17, %v879_v58 }
 0x132   : > { %v1057_v48 = vpop.f32.mrf.mxu1 }
 0x133   : > { %v2137_v3 = vpop.f32.mrf.mxu0  ;;  %v1127_v48 = vadd.f32 %v1126_v62, %v1125_v38  ;;  %v882_v62 = vadd.f32 %v1653_v1, %v2056_v29  ;;  %v887_v38 = vadd.f32 %v1656_v5, %v2056_v29  ;;  %v1142_v43 = vsel %vm1118_vm2, %v2228_v24, 0.0 }
 0x134   : > { %v2145_v11 = vpop.f32.mrf.mxu1  ;;  %v1665_v17 = vadd.f32 %v2137_v3, %v2131_v63 }
 0x135   : > { %v2149_v15 = vpop.f32.mrf.mxu0  ;;  %v1129_v41 = vadd.f32 %v1128_v2, %v1127_v48  ;;  %v2236_v31 = vadd.f32 %v2105_v21, %v882_v62  ;;  %v890_v48 = vadd.f32 %v1659_v9, %v2056_v29  ;;  %v2244_v32 = vadd.f32 %v2111_v26, %v887_v38 }
 0x136   : > { %v1060_v23 = vpop.f32.mrf.mxu1  ;;  %v898_v1 = vadd.f32 %v1665_v17, %v2056_v29 }
 0x137   : > { %v2157_v28 = vpop.f32.mrf.mxu0  ;;  %v1131_v23 = vadd.f32 %v1130_v6, %v1129_v41  ;;  %v1144_v63 = vsel %vm1118_vm2, %v2236_v31, 0.0  ;;  %v2252_v3 = vadd.f32 %v2118_v39, %v890_v48  ;;  %v1146_v5 = vsel %vm1118_vm2, %v2244_v32, 0.0 }
 0x138   : > { %v2167_v49 = vpop.f32.mrf.mxu1  ;;  %v1668_v21 = vadd.f32 %v2157_v28, %v2149_v15 }
 0x139   : > { %v2169_v47 = vpop.f32.mrf.mxu0  ;;  %v1133_v33 = vadd.f32 %v1132_v10, %v1131_v23  ;;  %v1148_v62 = vsel %vm1118_vm2, %v2252_v3, 0.0 }
 0x13a   : > { %v1065_v55 = vpop.f32.mrf.mxu1  ;;  %v903_v28 = vadd.f32 %v1668_v21, %v2056_v29 }
 0x13b   : > { %v1670_v40 = vpop.f32.mrf.mxu0  ;;  %v1135_v53 = vadd.f32 %v1134_v14, %v1133_v33 }
 0x13c   : > { %v2187_v46 = vpop.f32.mrf.mxu1  ;;  %v1671_v23 = vadd.f32 %v1670_v40, %v2169_v47  ;;  %v2265_v47 = vadd.f32 %v2145_v11, %v898_v1 }
 0x13d   : > { %v1672_v37 = vpop.f32.mrf.mxu0  ;;  %v1137_v44 = vadd.f32 %v1136_v18, %v1135_v53 }
 0x13e   : > { %v1068_v52 = vpop.f32.mrf.mxu1  ;;  %v906_v40 = vadd.f32 %v1671_v23, %v2056_v29  ;;  %v1152_v11 = vsel %vm1118_vm2, %v2265_v47, 0.0 }
 0x13f   : > { %v1673_v54 = vpop.f32.mrf.mxu0  ;;  %v1139_v50 = vadd.f32 %v1138_v22, %v1137_v44  ;;  %v895_v52 = vadd.f32 %v1662_v13, %v2056_v29 }
 0x140   : > { %v2205_v45 = vpop.f32.mrf.mxu1 }
 0x141   : > { %v1675_v25 = vpop.f32.mrf.mxu0  ;;  %v1141_v10 = vadd.f32 %v1140_v27, %v1139_v50  ;;  %v2259_v15 = vadd.f32 %v2129_v59, %v895_v52 }
 0x142   : > { %v1073_v30 = vpop.f32.mrf.mxu1 }
 0x143   : > { %v1676_v34 = vpop.f32.mrf.mxu0  ;;  %v1143_v14 = vadd.f32 %v1142_v43, %v1141_v10  ;;  %v1674_v30 = vadd.f32 %v1673_v54, %v1672_v37  ;;  %v1150_v59 = vsel %vm1118_vm2, %v2259_v15, 0.0  ;;  %v2271_v37 = vadd.f32 %v2167_v49, %v903_v28 }
 0x144   : > { %v2223_v51 = vpop.f32.mrf.mxu1  ;;  %v1677_v9 = vadd.f32 %v1676_v34, %v1675_v25  ;;  %v2277_v25 = vadd.f32 %v2187_v46, %v906_v40 }
 0x145   : > { %v1678_v55 = vpop.f32.mrf.mxu0  ;;  %v1145_v18 = vadd.f32 %v1144_v63, %v1143_v14  ;;  %v911_v54 = vadd.f32 %v1674_v30, %v2056_v29  ;;  %v1154_v49 = vsel %vm1118_vm2, %v2271_v37, 0.0 }
 0x146   : > { %v1076_v2 = vpop.f32.mrf.mxu1  ;;  %v914_v34 = vadd.f32 %v1677_v9, %v2056_v29  ;;  %v1156_v46 = vsel %vm1118_vm2, %v2277_v25, 0.0 }
 0x147   : > { %v1679_v57 = vpop.f32.mrf.mxu0  ;;  %v1147_v22 = vadd.f32 %v1146_v5, %v1145_v18 }
 0x148   : > { %v1079_v6 = vpop.f32.mrf.mxu1  ;;  %v1680_v13 = vadd.f32 %v1679_v57, %v1678_v55  ;;  %v2283_v55 = vadd.f32 %v2205_v45, %v911_v54 }
 0x149   : > { %v1681_v61 = vpop.f32.mrf.mxu0  ;;  %v1149_v44 = vadd.f32 %v1148_v62, %v1147_v22 }
 0x14a   : > { %v1081_v41 = vpop.f32.mrf.mxu1  ;;  %v919_v57 = vadd.f32 %v1680_v13, %v2056_v29  ;;  %v1158_v45 = vsel %vm1118_vm2, %v2283_v55, 0.0 }
 0x14b   : > { %v1682_v19 = vpop.f32.mrf.mxu0  ;;  %v1151_v50 = vadd.f32 %v1150_v59, %v1149_v44 }
 0x14c   : > { %v1082_v26 = vpop.f32.mrf.mxu1  ;;  %v1683_v48 = vadd.f32 %v1682_v19, %v1681_v61  ;;  %v2289_v61 = vadd.f32 %v2223_v51, %v914_v34  ;;  %v2294_v5 = vadd.f32 %v1079_v6, %v919_v57 }
 0x14d   : > { %v1684_v58 = vpop.f32.mrf.mxu0  ;;  %v1153_v41 = vadd.f32 %v1152_v11, %v1151_v50 }
 0x14e   : > { %v1084_v33 = vpop.f32.mrf.mxu1  ;;  %v922_v19 = vadd.f32 %v1683_v48, %v2056_v29  ;;  %v1160_v51 = vsel %vm1118_vm2, %v2289_v61, 0.0  ;;  %v1162_v6 = vsel %vm1118_vm2, %v2294_v5, 0.0 }
 0x14f   : > { %v1685_v39 = vpop.f32.mrf.mxu0  ;;  %v1155_v23 = vadd.f32 %v1154_v49, %v1153_v41 }
 0x150   : > { %v1087_v53 = vpop.f32.mrf.mxu1  ;;  %v1686_v52 = vadd.f32 %v1685_v39, %v1684_v58  ;;  %v2299_v39 = vadd.f32 %v1082_v26, %v922_v19 }
 0x151   : > { %v1687_v38 = vpop.f32.mrf.mxu0  ;;  %v1157_v33 = vadd.f32 %v1156_v46, %v1155_v23 }
 0x152   : > { %v1089_v2 = vpop.f32.mrf.mxu1  ;;  %v927_v58 = vadd.f32 %v1686_v52, %v2056_v29  ;;  %v1164_v26 = vsel %vm1118_vm2, %v2299_v39, 0.0 }
 0x153   : > { %v1688_v27 = vpop.f32.mrf.mxu0  ;;  %v1159_v22 = vadd.f32 %v1158_v45, %v1157_v33 }
 0x154   : > { %v1090_v17 = vpop.f32.mrf.mxu1  ;;  %v1689_v63 = vadd.f32 %v1688_v27, %v1687_v38  ;;  %v2304_v59 = vadd.f32 %v1087_v53, %v927_v58 }
 0x155   : > { %v1690_v43 = vpop.f32.mrf.mxu0  ;;  %v1161_v2 = vadd.f32 %v1160_v51, %v1159_v22 }
 0x156   : > { %v1092_v21 = vpop.f32.mrf.mxu1  ;;  %v930_v62 = vadd.f32 %v1689_v63, %v2056_v29  ;;  %v1166_v53 = vsel %vm1118_vm2, %v2304_v59, 0.0 }
 0x157   : > { %v1691_v10 = vpop.f32.mrf.mxu0  ;;  %v1163_v50 = vadd.f32 %v1162_v6, %v1161_v2 }
 0x158   : > { %v1095_v1 = vpop.f32.mrf.mxu1  ;;  %v1692_v28 = vadd.f32 %v1691_v10, %v1690_v43  ;;  %v2309_v27 = vadd.f32 %v1090_v17, %v930_v62 }
 0x159   : > { %v1693_v14 = vpop.f32.mrf.mxu0  ;;  %v1165_v21 = vadd.f32 %v1164_v26, %v1163_v50 }
 0x15a   : > { %v1097_v30 = vpop.f32.mrf.mxu1  ;;  %v935_v54 = vadd.f32 %v1692_v28, %v2056_v29  ;;  %v1168_v17 = vsel %vm1118_vm2, %v2309_v27, 0.0 }
 0x15b   : > { %v1694_v18 = vpop.f32.mrf.mxu0  ;;  %v1167_v63 = vadd.f32 %v1166_v53, %v1165_v21 }
 0x15c   : > { %v1695_v40 = vadd.f32 %v1694_v18, %v1693_v14  ;;  %v1098_v9 = vpop.f32.mrf.mxu1  ;;  %v2314_v49 = vadd.f32 %v1095_v1, %v935_v54 }
 0x15d   : > { %v1696_v38 = vpop.f32.mrf.mxu0  ;;  %v1169_v28 = vadd.f32 %v1168_v17, %v1167_v63 }
 0x15e   : > { %v1100_v13 = vpop.f32.mrf.mxu1  ;;  %v938_v11 = vadd.f32 %v1695_v40, %v2056_v29  ;;  %v1170_v14 = vsel %vm1118_vm2, %v2314_v49, 0.0 }
 0x15f   : > { %v1697_v44 = vpop.f32.mrf.mxu0  ;;  %v1171_v40 = vadd.f32 %v1170_v14, %v1169_v28 }
 0x160   : > { %v1698_v34 = vadd.f32 %v1697_v44, %v1696_v38  ;;  %v1103_v48 = vpop.f32.mrf.mxu1  ;;  %v2319_v10 = vadd.f32 %v1098_v9, %v938_v11 }
 0x161   : > { %v1699_v43 = vpop.f32.mrf.mxu0 }
 0x162   : > { %v943_v57 = vadd.f32 %v1698_v34, %v2056_v29  ;;  %v1105_v52 = vpop.f32.mrf.mxu1  ;;  %v1172_v33 = vsel %vm1118_vm2, %v2319_v10, 0.0 }
 0x163   : > { %v1700_v41 = vpop.f32.mrf.mxu0  ;;  %v1173_v54 = vadd.f32 %v1172_v33, %v1171_v40 }
 0x164   : > { %v1701_v46 = vadd.f32 %v1700_v41, %v1699_v43  ;;  %v1106_v19 = vpop.f32.mrf.mxu1  ;;  %v2323_v45 = vadd.f32 %v1103_v48, %v943_v57 }
 0x165   : > { %v1702_v23 = vpop.f32.mrf.mxu0 }
 0x166   : > { %v946_v1 = vadd.f32 %v1701_v46, %v2056_v29  ;;  %v1108_v58 = vpop.f32.mrf.mxu1  ;;  %v1174_v22 = vsel %vm1118_vm2, %v2323_v45, 0.0 }
 0x167   : > { %v1703_v30 = vpop.f32.mrf.mxu0  ;;  %v1175_v34 = vadd.f32 %v1174_v22, %v1173_v54 }
 0x168   : > { %v2328_v18 = vadd.f32 %v1106_v19, %v946_v1  ;;  %v1704_v51 = vadd.f32 %v1703_v30, %v1702_v23  ;;  %v1111_v62 = vpop.f32.mrf.mxu1 }
 0x169   : > { %v1705_v9 = vpop.f32.mrf.mxu0 }
 0x16a   : > { %v951_v38 = vadd.f32 %v1704_v51, %v2056_v29  ;;  %v1113_v6 = vpop.f32.mrf.mxu1  ;;  %v1176_v2 = vsel %vm1118_vm2, %v2328_v18, 0.0 }
 0x16b   : > { %v1706_v13 = vpop.f32.mrf.mxu0  ;;  %v1177_v53 = vadd.f32 %v1176_v2, %v1175_v34 }
 0x16c   : > { %v2335_v44 = vadd.f32 %v1111_v62, %v951_v38  ;;  %v1707_v26 = vadd.f32 %v1706_v13, %v1705_v9  ;;  %v1114_v11 = vpop.f32.mrf.mxu1 }
 0x16e   : > { %v1178_v48 = vsel %vm1118_vm2, %v2335_v44, 0.0  ;;  %v954_v50 = vadd.f32 %v1707_v26, %v2056_v29  ;;  %v1116_v43 = vpop.f32.mrf.mxu1 }
 0x16f   : > { %v1179_v52 = vadd.f32 %v1178_v48, %v1177_v53 }
 0x170   : > { %v2340_v57 = vadd.f32 %v1114_v11, %v954_v50 }
 0x172   : > { %v1180_v21 = vsel %vm1118_vm2, %v2340_v57, 0.0 }
 0x173   : > { %v1181_v41 = vadd.f32 %v1180_v21, %v1179_v52 }
 0x175   : > { %v1182_v17 = vrot.slane %v1181_v41, 4 }
 0x177   : > { %v1183_v46 = vadd.f32 %v1182_v17, %v1181_v41 }
 0x179   : > { %v1184_v19 = vrot.slane %v1183_v46, 2 }
 0x17b   : > { %v1185_v63 = vadd.f32 %v1184_v19, %v1183_v46 }
 0x17d   : > { %v1186_v23 = vrot.slane %v1185_v63, 1 }
 0x17f   : > { %v1187_v14 = vadd.f32 %v1186_v23, %v1185_v63 }
 0x181   : > { %v2344_v1 = vmul.f32 0.00390625, %v1187_v14 }
 0x183   : > { %v2348_v29 = vsub.f32 %v2059_v36, %v2344_v1  ;;  %v2352_v58 = vsub.f32 %v2126_v35, %v2344_v1  ;;  %v2356_v28 = vsub.f32 %v2134_v42, %v2344_v1  ;;  %v2360_v30 = vsub.f32 %v2142_v7, %v2344_v1 }
 0x184   : > { %v2368_v36 = vsub.f32 %v2154_v56, %v2344_v1  ;;  %v2374_v42 = vsub.f32 %v2162_v60, %v2344_v1  ;;  %v2382_v22 = vsub.f32 %v2174_v0, %v2344_v1  ;;  %v2389_v60 = vsub.f32 %v2182_v4, %v2344_v1 }
 0x185   : > { %v1222_v33 = vmul.f32 %v2348_v29, %v2348_v29  ;;  %v1223_v51 = vmul.f32 %v2352_v58, %v2352_v58  ;;  %v1224_v35 = vmul.f32 %v2356_v28, %v2356_v28  ;;  %v1225_v7 = vmul.f32 %v2360_v30, %v2360_v30 }
 0x186   : > { %v1226_v56 = vmul.f32 %v2368_v36, %v2368_v36  ;;  %v1227_v54 = vmul.f32 %v2374_v42, %v2374_v42  ;;  %v2396_v0 = vsub.f32 %v2192_v8, %v2344_v1  ;;  %v1228_v26 = vmul.f32 %v2382_v22, %v2382_v22 }
 0x187   : > { %v1254_v62 = vsel %vm1118_vm2, %v1222_v33, 0.0  ;;  %v1255_v40 = vsel %vm1118_vm2, %v1223_v51, 0.0  ;;  %v1257_v38 = vsel %vm1118_vm2, %v1224_v35, 0.0  ;;  %v1259_v13 = vsel %vm1118_vm2, %v1225_v7, 0.0 }
 0x188   : > { %v1256_v9 = vadd.f32 %v1255_v40, %v1254_v62  ;;  %v1261_v11 = vsel %vm1118_vm2, %v1226_v56, 0.0  ;;  %v2403_v4 = vsub.f32 %v2200_v12, %v2344_v1  ;;  %v1229_v48 = vmul.f32 %v2389_v60, %v2389_v60 }
 0x189   : > { %v1263_v50 = vsel %vm1118_vm2, %v1227_v54, 0.0  ;;  %v2410_v8 = vsub.f32 %v2210_v16, %v2344_v1  ;;  %v1230_v53 = vmul.f32 %v2396_v0, %v2396_v0  ;;  %v1265_v52 = vsel %vm1118_vm2, %v1228_v26, 0.0 }
 0x18a   : > { %v1258_v6 = vadd.f32 %v1257_v38, %v1256_v9  ;;  %v2417_v12 = vsub.f32 %v2218_v20, %v2344_v1  ;;  %v1231_v41 = vmul.f32 %v2403_v4, %v2403_v4  ;;  %v1267_v17 = vsel %vm1118_vm2, %v1229_v48, 0.0 }
 0x18b   : > { %v2424_v16 = vsub.f32 %v2228_v24, %v2344_v1  ;;  %v1232_v19 = vmul.f32 %v2410_v8, %v2410_v8  ;;  %v1269_v63 = vsel %vm1118_vm2, %v1230_v53, 0.0  ;;  %v2431_v20 = vsub.f32 %v2236_v31, %v2344_v1 }
 0x18c   : > { %v1260_v2 = vadd.f32 %v1259_v13, %v1258_v6  ;;  %v1233_v14 = vmul.f32 %v2417_v12, %v2417_v12  ;;  %v1271_v33 = vsel %vm1118_vm2, %v1231_v41, 0.0  ;;  %v2438_v24 = vsub.f32 %v2244_v32, %v2344_v1 }
 0x18d   : > { %v1234_v35 = vmul.f32 %v2424_v16, %v2424_v16  ;;  %v1273_v7 = vsel %vm1118_vm2, %v1232_v19, 0.0  ;;  %v2445_v31 = vsub.f32 %v2252_v3, %v2344_v1  ;;  %v1235_v40 = vmul.f32 %v2431_v20, %v2431_v20 }
 0x18e   : > { %v1262_v34 = vadd.f32 %v1261_v11, %v1260_v2  ;;  %v1275_v9 = vsel %vm1118_vm2, %v1233_v14, 0.0  ;;  %v2452_v32 = vsub.f32 %v2259_v15, %v2344_v1  ;;  %v1236_v38 = vmul.f32 %v2438_v24, %v2438_v24 }
 0x18f   : > { %v1277_v6 = vsel %vm1118_vm2, %v1234_v35, 0.0  ;;  %v2459_v3 = vsub.f32 %v2265_v47, %v2344_v1  ;;  %v1237_v13 = vmul.f32 %v2445_v31, %v2445_v31  ;;  %v1279_v2 = vsel %vm1118_vm2, %v1235_v40, 0.0 }
 0x190   : > { %v1264_v43 = vadd.f32 %v1263_v50, %v1262_v34  ;;  %v2466_v15 = vsub.f32 %v2271_v37, %v2344_v1  ;;  %v1238_v11 = vmul.f32 %v2452_v32, %v2452_v32  ;;  %v1281_v34 = vsel %vm1118_vm2, %v1236_v38, 0.0 }
 0x191   : > { %v2473_v47 = vsub.f32 %v2277_v25, %v2344_v1  ;;  %v1239_v50 = vmul.f32 %v2459_v3, %v2459_v3  ;;  %v2480_v37 = vsub.f32 %v2283_v55, %v2344_v1  ;;  %v2487_v25 = vsub.f32 %v2289_v61, %v2344_v1 }
 0x192   : > { %v1266_v21 = vadd.f32 %v1265_v52, %v1264_v43  ;;  %v1283_v43 = vsel %vm1118_vm2, %v1237_v13, 0.0  ;;  %v1240_v52 = vmul.f32 %v2466_v15, %v2466_v15  ;;  %v2494_v55 = vsub.f32 %v2294_v5, %v2344_v1 }
 0x193   : > { %v2501_v61 = vsub.f32 %v2299_v39, %v2344_v1  ;;  %v2508_v5 = vsub.f32 %v2304_v59, %v2344_v1  ;;  %v2515_v39 = vsub.f32 %v2309_v27, %v2344_v1  ;;  %v2522_v59 = vsub.f32 %v2314_v49, %v2344_v1 }
 0x194   : > { %v1268_v46 = vadd.f32 %v1267_v17, %v1266_v21  ;;  %v1285_v21 = vsel %vm1118_vm2, %v1238_v11, 0.0  ;;  %v1241_v17 = vmul.f32 %v2473_v47, %v2473_v47  ;;  %v2529_v27 = vsub.f32 %v2319_v10, %v2344_v1 }
 0x195   : > { %v2536_v49 = vsub.f32 %v2323_v45, %v2344_v1  ;;  %v2543_v10 = vsub.f32 %v2328_v18, %v2344_v1  ;;  %v1220_v45 = vsub.f32 %v2335_v44, %v2344_v1 }
 0x196   : > { %v1270_v23 = vadd.f32 %v1269_v63, %v1268_v46  ;;  %v1287_v46 = vsel %vm1118_vm2, %v1239_v50, 0.0  ;;  %v1242_v63 = vmul.f32 %v2480_v37, %v2480_v37 }
 0x197   : > { %v1251_v18 = vmul.f32 %v2543_v10, %v2543_v10 }
 0x198   : > { %v1272_v51 = vadd.f32 %v1271_v33, %v1270_v23  ;;  %v1289_v23 = vsel %vm1118_vm2, %v1240_v52, 0.0  ;;  %v1243_v33 = vmul.f32 %v2487_v25, %v2487_v25 }
 0x19a   : > { %v1274_v62 = vadd.f32 %v1273_v7, %v1272_v51  ;;  %v1291_v51 = vsel %vm1118_vm2, %v1241_v17, 0.0  ;;  %v1244_v7 = vmul.f32 %v2494_v55, %v2494_v55 }
 0x19c   : > { %v1276_v56 = vadd.f32 %v1275_v9, %v1274_v62  ;;  %v1293_v62 = vsel %vm1118_vm2, %v1242_v63, 0.0  ;;  %v1245_v9 = vmul.f32 %v2501_v61, %v2501_v61 }
 0x19e   : > { %v1278_v54 = vadd.f32 %v1277_v6, %v1276_v56  ;;  %v1295_v56 = vsel %vm1118_vm2, %v1243_v33, 0.0  ;;  %v1246_v6 = vmul.f32 %v2508_v5, %v2508_v5 }
 0x1a0   : > { %v1280_v26 = vadd.f32 %v1279_v2, %v1278_v54  ;;  %v1297_v54 = vsel %vm1118_vm2, %v1244_v7, 0.0  ;;  %v1247_v2 = vmul.f32 %v2515_v39, %v2515_v39 }
 0x1a2   : > { %v1282_v48 = vadd.f32 %v1281_v34, %v1280_v26  ;;  %v1299_v26 = vsel %vm1118_vm2, %v1245_v9, 0.0  ;;  %v1248_v34 = vmul.f32 %v2522_v59, %v2522_v59 }
 0x1a4   : > { %v1284_v53 = vadd.f32 %v1283_v43, %v1282_v48  ;;  %v1301_v48 = vsel %vm1118_vm2, %v1246_v6, 0.0  ;;  %v1249_v43 = vmul.f32 %v2529_v27, %v2529_v27 }
 0x1a6   : > { %v1286_v41 = vadd.f32 %v1285_v21, %v1284_v53  ;;  %v1303_v53 = vsel %vm1118_vm2, %v1247_v2, 0.0  ;;  %v1250_v21 = vmul.f32 %v2536_v49, %v2536_v49 }
 0x1a8   : > { %v1288_v19 = vadd.f32 %v1287_v46, %v1286_v41  ;;  %v1305_v41 = vsel %vm1118_vm2, %v1248_v34, 0.0  ;;  %v1221_v46 = vsub.f32 %v2340_v57, %v2344_v1 }
 0x1aa   : > { %v1290_v14 = vadd.f32 %v1289_v23, %v1288_v19  ;;  %v1307_v19 = vsel %vm1118_vm2, %v1249_v43, 0.0  ;;  %v1252_v23 = vmul.f32 %v1220_v45, %v1220_v45  ;;  %v1253_v44 = vmul.f32 %v1221_v46, %v1221_v46 }
 0x1ac   : > { %v1292_v35 = vadd.f32 %v1291_v51, %v1290_v14  ;;  %v1309_v14 = vsel %vm1118_vm2, %v1250_v21, 0.0  ;;  %v1311_v51 = vsel %vm1118_vm2, %v1251_v18, 0.0  ;;  %v1313_v7 = vsel %vm1118_vm2, %v1252_v23, 0.0 }
 0x1ae   : > { %v1294_v40 = vadd.f32 %v1293_v62, %v1292_v35 }
 0x1b0   : > { %v1296_v38 = vadd.f32 %v1295_v56, %v1294_v40  ;;  %v1315_v40 = vsel %vm1118_vm2, %v1253_v44, 0.0 }
 0x1b2   : > { %v1298_v13 = vadd.f32 %v1297_v54, %v1296_v38 }
 0x1b4   : > { %v1300_v11 = vadd.f32 %v1299_v26, %v1298_v13 }
 0x1b6   : > { %v1302_v50 = vadd.f32 %v1301_v48, %v1300_v11 }
 0x1b8   : > { %v1304_v52 = vadd.f32 %v1303_v53, %v1302_v50 }
 0x1ba   : > { %v1306_v17 = vadd.f32 %v1305_v41, %v1304_v52 }
 0x1bc   : > { %v1308_v63 = vadd.f32 %v1307_v19, %v1306_v17 }
 0x1be   : > { %v1310_v33 = vadd.f32 %v1309_v14, %v1308_v63 }
 0x1c0   : > { %v1312_v35 = vadd.f32 %v1311_v51, %v1310_v33 }
 0x1c2   : > { %v1314_v62 = vadd.f32 %v1313_v7, %v1312_v35 }
 0x1c4   : > { %v1316_v57 = vadd.f32 %v1315_v40, %v1314_v62 }
 0x1c6   : > { %v1317_v1 = vrot.slane %v1316_v57, 4 }
 0x1c8   : > { %v1318_v9 = vadd.f32 %v1317_v1, %v1316_v57 }
 0x1ca   : > { %v1319_v56 = vrot.slane %v1318_v9, 2 }
 0x1cc   : > { %v1320_v38 = vadd.f32 %v1319_v56, %v1318_v9 }
 0x1ce   : > { %v1321_v6 = vrot.slane %v1320_v38, 1 }
 0x1d0   : > { %v1322_v54 = vadd.f32 %v1321_v6, %v1320_v38 }
 0x1d2   : > { %v1323_v13 = vmul.f32 0.00390625, %v1322_v54 }
 0x1d4   : > { %v1324_v2 = vadd.f32 1e-05, %v1323_v13 }
 0x1d6   : > { %1838 = vrsqrt.f32 %v1324_v2 }
 0x1e3   : > { %v1839_v26 = vpop.eup %1838 }
 0x1e4   : > { %v1326_v11 = vmul.f32 %v1839_v26, %v2348_v29  ;;  %v1327_v34 = vmul.f32 %v1839_v26, %v2352_v58  ;;  %v1328_v48 = vmul.f32 %v1839_v26, %v2356_v28  ;;  %v1329_v50 = vmul.f32 %v1839_v26, %v2360_v30 }
 0x1e5   : > { %v1330_v43 = vmul.f32 %v1839_v26, %v2368_v36  ;;  %v1331_v53 = vmul.f32 %v1839_v26, %v2374_v42  ;;  %v1332_v52 = vmul.f32 %v1839_v26, %v2382_v22  ;;  %v1333_v21 = vmul.f32 %v1839_v26, %v2389_v60 }
 0x1e6   : > { %v1334_v41 = vmul.f32 %v1839_v26, %v2396_v0  ;;  %v1335_v17 = vmul.f32 %v1839_v26, %v2403_v4  ;;  %v1336_v29 = vmul.f32 %v1839_v26, %v2410_v8  ;;  %v1337_v58 = vmul.f32 %v1839_v26, %v2417_v12 }
 0x1e7   : > { %v1338_v28 = vmul.f32 %v1839_v26, %v2424_v16  ;;  %v1339_v30 = vmul.f32 %v1839_v26, %v2431_v20  ;;  %v1340_v36 = vmul.f32 %v1839_v26, %v2438_v24  ;;  %v1341_v42 = vmul.f32 %v1839_v26, %v2445_v31 }
 0x1e8   : > { %v1342_v22 = vmul.f32 %v1839_v26, %v2452_v32  ;;  %v1343_v60 = vmul.f32 %v1839_v26, %v2459_v3  ;;  %v1344_v0 = vmul.f32 %v1839_v26, %v2466_v15  ;;  %v1345_v4 = vmul.f32 %v1839_v26, %v2473_v47 }
 0x1e9   : > { %v2584_v8 = vmul.f32 %v1839_v26, %v2480_v37  ;;  %v2587_v12 = vmul.f32 %v1839_v26, %v2487_v25  ;;  %v2590_v16 = vmul.f32 %v1839_v26, %v2494_v55  ;;  %v2593_v20 = vmul.f32 %v1839_v26, %v2501_v61 }
 0x1ea   : > { %v2596_v24 = vmul.f32 %v1839_v26, %v2508_v5  ;;  %v2599_v31 = vmul.f32 %v1839_v26, %v2515_v39  ;;  %v2602_v32 = vmul.f32 %v1839_v26, %v2522_v59  ;;  %v2605_v3 = vmul.f32 %v1839_v26, %v2529_v27 }
 0x1eb   : > { %v2613_v15 = vmul.f32 %v1839_v26, %v2536_v49  ;;  %v2616_v47 = vmul.f32 %v1839_v26, %v2543_v10  ;;  %v2618_v37 = vmul.f32 %v1839_v26, %v1220_v45  ;;  %v2620_v25 = vmul.f32 %v1839_v26, %v1221_v46 }
 0x1ec   : > { %v1358_v55 = vmax.f32 %v1326_v11, 0.0  ;;  %v1359_v61 = vmax.f32 %v1327_v34, 0.0  ;;  %v1360_v5 = vmax.f32 %v1328_v48, 0.0  ;;  %v1361_v39 = vmax.f32 %v1329_v50, 0.0 }
 0x1ed   : > { %v1362_v59 = vmax.f32 %v1330_v43, 0.0  ;;  %v1363_v27 = vmax.f32 %v1331_v53, 0.0  ;;  %v1364_v49 = vmax.f32 %v1332_v52, 0.0  ;;  %v1365_v18 = vmax.f32 %v1333_v21, 0.0 }
 0x1ee   : > { %v1366_v10 = vmax.f32 %v1334_v41, 0.0  ;;  %v1367_v19 = vmax.f32 %v1335_v17, 0.0  ;;  %v1368_v45 = vmax.f32 %v1336_v29, 0.0  ;;  %v1369_v63 = vmax.f32 %v1337_v58, 0.0  ;;  %1390 = vst.msk [vmem:[%s2610_s22] sm:$0xff] %vm1118_vm2, %v1358_v55  ;;  %1391 = vst.msk [vmem:[%s2610_s22 + $0x8] sm:$0xff] %vm1118_vm2, %v1359_v61 }
 0x1ef   : > { %1392 = vst.msk [vmem:[%s2610_s22 + $0x10] sm:$0xff] %vm1118_vm2, %v1360_v5  ;;  %1393 = vst.msk [vmem:[%s2610_s22 + $0x18] sm:$0xff] %vm1118_vm2, %v1361_v39  ;;  %v1370_v46 = vmax.f32 %v1338_v28, 0.0  ;;  %v1371_v23 = vmax.f32 %v1339_v30, 0.0  ;;  %v1372_v14 = vmax.f32 %v1340_v36, 0.0  ;;  %v1373_v33 = vmax.f32 %v1341_v42, 0.0 }
 0x1f0   : > { %1394 = vst.msk [vmem:[%s2610_s22 + $0x20] sm:$0xff] %vm1118_vm2, %v1362_v59  ;;  %1395 = vst.msk [vmem:[%s2610_s22 + $0x28] sm:$0xff] %vm1118_vm2, %v1363_v27  ;;  %v1374_v44 = vmax.f32 %v1342_v22, 0.0  ;;  %v1375_v51 = vmax.f32 %v1343_v60, 0.0  ;;  %v1376_v35 = vmax.f32 %v1344_v0, 0.0  ;;  %v1377_v7 = vmax.f32 %v1345_v4, 0.0 }
 0x1f1   : > { %1396 = vst.msk [vmem:[%s2610_s22 + $0x30] sm:$0xff] %vm1118_vm2, %v1364_v49  ;;  %1397 = vst.msk [vmem:[%s2610_s22 + $0x38] sm:$0xff] %vm1118_vm2, %v1365_v18  ;;  %v1378_v62 = vmax.f32 %v2584_v8, 0.0  ;;  %v1379_v40 = vmax.f32 %v2587_v12, 0.0  ;;  %v1380_v57 = vmax.f32 %v2590_v16, 0.0  ;;  %v1381_v1 = vmax.f32 %v2593_v20, 0.0 }
 0x1f2   : > { %1398 = vst.msk [vmem:[%s2610_s22 + $0x40] sm:$0xff] %vm1118_vm2, %v1366_v10  ;;  %1399 = vst.msk [vmem:[%s2610_s22 + $0x48] sm:$0xff] %vm1118_vm2, %v1367_v19  ;;  %v1382_v9 = vmax.f32 %v2596_v24, 0.0  ;;  %v1383_v56 = vmax.f32 %v2599_v31, 0.0  ;;  %v1384_v38 = vmax.f32 %v2602_v32, 0.0  ;;  %v1385_v6 = vmax.f32 %v2605_v3, 0.0 }
 0x1f3   : > { %1400 = vst.msk [vmem:[%s2610_s22 + $0x50] sm:$0xff] %vm1118_vm2, %v1368_v45  ;;  %1401 = vst.msk [vmem:[%s2610_s22 + $0x58] sm:$0xff] %vm1118_vm2, %v1369_v63  ;;  %v1386_v54 = vmax.f32 %v2613_v15, 0.0  ;;  %v1387_v13 = vmax.f32 %v2616_v47, 0.0  ;;  %v1388_v2 = vmax.f32 %v2618_v37, 0.0  ;;  %v1389_v26 = vmax.f32 %v2620_v25, 0.0 }
 0x1f4   : > { %1402 = vst.msk [vmem:[%s2610_s22 + $0x60] sm:$0xff] %vm1118_vm2, %v1370_v46  ;;  %1403 = vst.msk [vmem:[%s2610_s22 + $0x68] sm:$0xff] %vm1118_vm2, %v1371_v23 }
 0x1f5   : > { %1404 = vst.msk [vmem:[%s2610_s22 + $0x70] sm:$0xff] %vm1118_vm2, %v1372_v14  ;;  %1405 = vst.msk [vmem:[%s2610_s22 + $0x78] sm:$0xff] %vm1118_vm2, %v1373_v33 }
 0x1f6   : > { %1406 = vst.msk [vmem:[%s2610_s22 + $0x80] sm:$0xff] %vm1118_vm2, %v1374_v44  ;;  %1407 = vst.msk [vmem:[%s2610_s22 + $0x88] sm:$0xff] %vm1118_vm2, %v1375_v51 }
 0x1f7   : > { %1408 = vst.msk [vmem:[%s2610_s22 + $0x90] sm:$0xff] %vm1118_vm2, %v1376_v35  ;;  %1409 = vst.msk [vmem:[%s2610_s22 + $0x98] sm:$0xff] %vm1118_vm2, %v1377_v7 }
 0x1f8   : > { %1410 = vst.msk [vmem:[%s2610_s22 + $0xa0] sm:$0xff] %vm1118_vm2, %v1378_v62  ;;  %1411 = vst.msk [vmem:[%s2610_s22 + $0xa8] sm:$0xff] %vm1118_vm2, %v1379_v40 }
 0x1f9   : > { %1412 = vst.msk [vmem:[%s2610_s22 + $0xb0] sm:$0xff] %vm1118_vm2, %v1380_v57  ;;  %1413 = vst.msk [vmem:[%s2610_s22 + $0xb8] sm:$0xff] %vm1118_vm2, %v1381_v1 }
 0x1fa   : > { %1414 = vst.msk [vmem:[%s2610_s22 + $0xc0] sm:$0xff] %vm1118_vm2, %v1382_v9  ;;  %1415 = vst.msk [vmem:[%s2610_s22 + $0xc8] sm:$0xff] %vm1118_vm2, %v1383_v56 }
 0x1fb   : > { %1416 = vst.msk [vmem:[%s2610_s22 + $0xd0] sm:$0xff] %vm1118_vm2, %v1384_v38  ;;  %1417 = vst.msk [vmem:[%s2610_s22 + $0xd8] sm:$0xff] %vm1118_vm2, %v1385_v6 }
 0x1fc   : > { %1418 = vst.msk [vmem:[%s2610_s22 + $0xe0] sm:$0xff] %vm1118_vm2, %v1386_v54  ;;  %1419 = vst.msk [vmem:[%s2610_s22 + $0xe8] sm:$0xff] %vm1118_vm2, %v1387_v13 }
 0x1fd   : > { %1420 = vst.msk [vmem:[%s2610_s22 + $0xf0] sm:$0xff] %vm1118_vm2, %v1388_v2  ;;  %1421 = vst.msk [vmem:[%s2610_s22 + $0xf8] sm:$0xff] %vm1118_vm2, %v1389_v26 }
 0x1fe PF: > { %s13_s12 = sadd.s32 1, %s1846_s12  }
 0x1ff   : > { %p10_p4 = scmp.ge.s32.totalorder %s13_s12, 4  }
 0x201   :  { %12 = sbr.rel (!%p10_p4) target bundleno = 1 (0x1), region = 62 }

// kernel: generator_f2s.22
= control target key start
LH: loop header
LB: loop body
LE: loop exit
PB: predicated region body
PF: predicated region fallthrough
CT: control target
= control target key end

     0   :  { %s878_s12 = smov 0   ;;  %s998_s0 = inlined_call_operand.vmem [shape: bf16[2,64,288], index: 0, kind: input, shape index: {}]   ;;  %s999_s1 = inlined_call_operand.vmem [shape: bf16[288,64], index: 1, kind: input, shape index: {}]   ;;  %s1000_s2 = inlined_call_operand.vmem [shape: f32[1,64], index: 2, kind: input, shape index: {}]   ;;  %s1001_s3 = inlined_call_operand.vmem [shape: f32[2,64,64], index: 3, kind: output, shape index: {}]  }
   0x1 LB: > { %s685_s13 = sadd.s32 4294967295, %s856_s12   ;;  %p689_p0 = scmp.ge.s32.totalorder %s856_s12, 1  ;;  %s856_s12 = sphi %s878_s12, %s13_s12  }
   0x2   : > { %p137_p1 = scmp.lt.s32.totalorder %s856_s12, 3 }
   0x4   : > { %p138_p2 = pnand %p689_p0, %p137_p1 }
   0x5   : > { %p161_p3 = scmp.lt.s32.totalorder (!%p138_p2), %s685_s13, 1 }
   0x6   : > { %141 = sbr.rel (%p138_p2) target bundleno = 343 (0x157), region = 32 }
   0xb   : > { %v814_v0 = vld [vmem:[%s999_s1 + $0x78] sm:$0xff]   ;;  %v816_v2 = vld [vmem:[%s999_s1 + $0x70] sm:$0xff]   ;;  %v818_v4 = vld [vmem:[%s999_s1 + $0x68] sm:$0xff]   ;;  %s1003_s13 = smov (!%p161_p3, %s685_s13), 1  ;;  %vm399_vm0 = vcmask 261120   ;;  %vm542_vm1 = vcmask 523264  }
   0xc   : > { %v815_v1 = vld [vmem:[%s999_s1 + $0x38] sm:$0xff]   ;;  %731 = vmatprep.subr.bf16.mxu0 %v814_v0  ;;  %789 = vmatprep.subr.bf16.mxu1 %v814_v0  ;;  %v817_v3 = vld [vmem:[%s999_s1 + $0x30] sm:$0xff]   ;;  %v819_v5 = vld [vmem:[%s999_s1 + $0x28] sm:$0xff]   ;;  %s805_s28 = smul.u32 96, %s1003_s13  ;;  %s730_s4 = sshll.u32 %s1003_s13, 6 }
   0xd   : > { %732 = vmatpush3.bf16.msra.mxu0 %v815_v1  ;;  %797 = vmatpush3.bf16.msra.mxu1 %v815_v1  ;;  %v820_v6 = vld [vmem:[%s999_s1 + $0x60] sm:$0xff]   ;;  %v822_v8 = vld [vmem:[%s999_s1 + $0x58] sm:$0xff]   ;;  %v824_v10 = vld [vmem:[%s999_s1 + $0x50] sm:$0xff]   ;;  %s170_s7 = scalar_lea.vmem %s1001_s3, %s730_s4 }
   0xe   : > { %733 = vmatprep.subr.bf16.mxu0 %v816_v2  ;;  %790 = vmatprep.subr.bf16.mxu1 %v816_v2  ;;  %v821_v7 = vld [vmem:[%s999_s1 + $0x20] sm:$0xff]   ;;  %s919_s8 = scalar_lea.vmem %s998_s0, %s805_s28  ;;  %v823_v9 = vld [vmem:[%s999_s1 + $0x18] sm:$0xff]   ;;  %v825_v13 = vld [vmem:[%s999_s1 + $0x10] sm:$0xff]  }
   0xf   : > { %v832_v11 = vld [vmem:[%s919_s8 + $0x4] ss:$12 sps:$4 sm:$0xff]   ;;  %v835_v12 = vld [vmem:[%s919_s8 + $0x4c] ss:$12 sps:$4 sm:$0xff]   ;;  %v833_v20 = vld [vmem:[%s919_s8 + $0x48] ss:$12 sps:$4 sm:$0xff]  }
  0x10   : > { %v826_v14 = vld [vmem:[%s999_s1 + $0x48] sm:$0xff]   ;;  %444 = vmatprep.mubr.bf16.mxu0 %v832_v11  ;;  %468 = vmatprep.mubr.bf16.mxu1 %v835_v12  ;;  %v828_v16 = vld [vmem:[%s999_s1 + $0x40] sm:$0xff]   ;;  %v846_v28 = vld [vmem:[%s919_s8 + $0x30] ss:$12 sps:$4 sm:$0xff]  }
  0x11   : > { %734 = vmatpush3.bf16.msra.mxu0 %v817_v3  ;;  %798 = vmatpush3.bf16.msra.mxu1 %v817_v3  ;;  %v827_v15 = vld [vmem:[%s999_s1 + $0x8] sm:$0xff]   ;;  %v829_v17 = vld [vmem:[%s999_s1] sm:$0xff]   ;;  %v847_v29 = vld [vmem:[%s919_s8 + $0x50] ss:$12 sps:$4 sm:$0xff]  }
  0x12   : > { %735 = vmatprep.subr.bf16.mxu0 %v818_v4  ;;  %791 = vmatprep.subr.bf16.mxu1 %v818_v4  ;;  %v836_v18 = vld [vmem:[%s999_s1 + $0x88] sm:$0xff]   ;;  %v837_v22 = vld [vmem:[%s999_s1 + $0x80] sm:$0xff]  }
  0x13   : > { %v830_v19 = vld [vmem:[%s919_s8] ss:$12 sps:$4 sm:$0xff]   ;;  %v838_v21 = vld [vmem:[%s919_s8 + $0x1c] ss:$12 sps:$4 sm:$0xff]   ;;  %v841_v24 = vld [vmem:[%s919_s8 + $0x18] ss:$12 sps:$4 sm:$0xff]  }
  0x14   : > { %v840_v23 = vld [vmem:[%s919_s8 + $0x8] ss:$12 sps:$4 sm:$0xff]   ;;  %v842_v25 = vld [vmem:[%s919_s8 + $0x20] ss:$12 sps:$4 sm:$0xff]   ;;  %v845_v27 = vld [vmem:[%s919_s8 + $0x38] ss:$12 sps:$4 sm:$0xff]  }
  0x15   : > { %736 = vmatpush3.bf16.msra.mxu0 %v819_v5  ;;  %799 = vmatpush3.bf16.msra.mxu1 %v819_v5  ;;  %v843_v26 = vld [vmem:[%s919_s8 + $0x34] ss:$12 sps:$4 sm:$0xff]  }
  0x16   : > { %737 = vmatprep.subr.bf16.mxu0 %v820_v6  ;;  %792 = vmatprep.subr.bf16.mxu1 %v820_v6  ;;  %v693_v41 = vld [vmem:[%s1000_s2] ss:$0 sm:$0xff] }
  0x19   : > { %738 = vmatpush3.bf16.msra.mxu0 %v821_v7  ;;  %800 = vmatpush3.bf16.msra.mxu1 %v821_v7 }
  0x1a   : > { %739 = vmatprep.subr.bf16.mxu0 %v822_v8  ;;  %793 = vmatprep.subr.bf16.mxu1 %v822_v8 }
  0x1d   : > { %740 = vmatpush3.bf16.msra.mxu0 %v823_v9  ;;  %801 = vmatpush3.bf16.msra.mxu1 %v823_v9 }
  0x1e   : > { %741 = vmatprep.subr.bf16.mxu0 %v824_v10  ;;  %794 = vmatprep.subr.bf16.mxu1 %v824_v10 }
  0x21   : > { %742 = vmatpush3.bf16.msra.mxu0 %v825_v13  ;;  %802 = vmatpush3.bf16.msra.mxu1 %v825_v13 }
  0x22   : > { %743 = vmatprep.subr.bf16.mxu0 %v826_v14  ;;  %795 = vmatprep.subr.bf16.mxu1 %v826_v14 }
  0x25   : > { %744 = vmatpush3.bf16.msra.mxu0 %v827_v15  ;;  %803 = vmatpush3.bf16.msra.mxu1 %v827_v15 }
  0x26   : > { %745 = vmatprep.subr.bf16.mxu0 %v828_v16  ;;  %796 = vmatprep.subr.bf16.mxu1 %v828_v16 }
  0x29   : > { %746 = vmatpush3.bf16.msra.mxu0 %v829_v17  ;;  %804 = vmatpush3.bf16.msra.mxu1 %v829_v17 }
  0x2a   : > { %777 = vmatprep.subr.bf16.mxu1 %v836_v18 }
  0x2c   : > { %445 = vmatmul.mubr.bf16.vlgmr.msra.gmra.mxu0 %v830_v19  ;;  %469 = vmatmul.mubr.bf16.vlgmr.msra.gmra.mxu1 %v833_v20 }
  0x2d   : > { %778 = vmatpush3.bf16.msra.mxu1 %v836_v18  ;;  %452 = vmatprep.mubr.bf16.mxu0 %v838_v21 }
  0x2e   : > { %779 = vmatprep.subr.bf16.mxu1 %v837_v22  ;;  %781 = vmatprep.mubr.msk.bf16.mxu1 %vm399_vm0, %v840_v23 }
  0x31   : > { %780 = vmatpush3.bf16.msra.mxu1 %v837_v22 }
  0x34   : > { %453 = vmatmul.mubr.bf16.gmra.mxu0 %v841_v24  ;;  %782 = vmatmul.mubr.msk.bf16.vlgmr.msra.gmra.mxu1 %vm399_vm0, %v842_v25 }
  0x35   : > { %460 = vmatprep.mubr.bf16.mxu0 %v843_v26  ;;  %785 = vmatprep.mubr.msk.bf16.mxu1 %vm399_vm0, %v845_v27 }
  0x3c   : > { %461 = vmatmul.mubr.bf16.gmra.mxu0 %v846_v28  ;;  %786 = vmatmul.mubr.msk.bf16.gmra.mxu1 %vm399_vm0, %v847_v29 }
  0xec   : > { %v747_v30 = vpop.f32.mrf.mxu0  ;;  %v765_v31 = vpop.f32.mrf.mxu1 }
  0xee   : > { %v748_v32 = vpop.f32.mrf.mxu0  ;;  %v766_v33 = vpop.f32.mrf.mxu1 }
  0xef   : > { %v749_v38 = vadd.f32 %v748_v32, %v747_v30  ;;  %v767_v4 = vadd.f32 %v766_v33, %v765_v31 }
  0xf0   : > { %v750_v34 = vpop.f32.mrf.mxu0  ;;  %v768_v35 = vpop.f32.mrf.mxu1 }
  0xf1   : > { %v447_v46 = vadd.f32 %v749_v38, %v693_v41  ;;  %v471_v14 = vadd.f32 %v767_v4, %v693_v41 }
  0xf2   : > { %v751_v36 = vpop.f32.mrf.mxu0  ;;  %v769_v37 = vpop.f32.mrf.mxu1 }
  0xf3   : > { %v752_v42 = vadd.f32 %v751_v36, %v750_v34  ;;  %v770_v10 = vadd.f32 %v769_v37, %v768_v35 }
  0xf4   : > { %v753_v39 = vpop.f32.mrf.mxu0  ;;  %v783_v40 = vpop.f32.mrf.mxu1 }
  0xf5   : > { %v450_v51 = vadd.f32 %v752_v42, %v693_v41  ;;  %v474_v20 = vadd.f32 %v770_v10, %v693_v41 }
  0xf6   : > { %v754_v43 = vpop.f32.mrf.mxu0  ;;  %v511_v44 = vpop.f32.mrf.mxu1 }
  0xf7   : > { %v755_v45 = vadd.f32 %v754_v43, %v753_v39  ;;  %v512_v50 = vadd.f32 %v511_v44, %v447_v46 }
  0xf8   : > { %v756_v47 = vpop.f32.mrf.mxu0  ;;  %v784_v48 = vpop.f32.mrf.mxu1 }
  0xf9   : > { %v455_v49 = vadd.f32 %v755_v45, %v693_v41  ;;  %v543_v59 = vsel %vm542_vm1, %v512_v50, 0.0 }
  0xfa   : > { %v757_v52 = vpop.f32.mrf.mxu0  ;;  %v514_v53 = vpop.f32.mrf.mxu1 }
  0xfb   : > { %v758_v54 = vadd.f32 %v757_v52, %v756_v47  ;;  %v515_v55 = vadd.f32 %v514_v53, %v450_v51  ;;  %v520_v58 = vadd.f32 %v783_v40, %v455_v49 }
  0xfc   : > { %v759_v56 = vpop.f32.mrf.mxu0  ;;  %v787_v57 = vpop.f32.mrf.mxu1 }
  0xfd   : > { %v458_v60 = vadd.f32 %v758_v54, %v693_v41  ;;  %v544_v61 = vsel %vm542_vm1, %v515_v55, 0.0  ;;  %v546_v5 = vsel %vm542_vm1, %v520_v58, 0.0  ;;  %v536_v19 = vadd.f32 %v787_v57, %v471_v14 }
  0xfe   : > { %v545_v62 = vadd.f32 %v544_v61, %v543_v59  ;;  %v760_v63 = vpop.f32.mrf.mxu0  ;;  %v527_v0 = vpop.f32.mrf.mxu1 }
  0xff   : > { %v523_v1 = vadd.f32 %v784_v48, %v458_v60  ;;  %v761_v2 = vadd.f32 %v760_v63, %v759_v56  ;;  %v554_v26 = vsel %vm542_vm1, %v536_v19, 0.0 }
 0x100   : > { %v762_v3 = vpop.f32.mrf.mxu0  ;;  %v547_v7 = vadd.f32 %v546_v5, %v545_v62  ;;  %v788_v8 = vpop.f32.mrf.mxu1 }
 0x101   : > { %v463_v6 = vadd.f32 %v761_v2, %v693_v41  ;;  %v548_v12 = vsel %vm542_vm1, %v523_v1, 0.0  ;;  %v539_v23 = vadd.f32 %v788_v8, %v474_v20 }
 0x102   : > { %v763_v9 = vpop.f32.mrf.mxu0  ;;  %v549_v17 = vadd.f32 %v548_v12, %v547_v7  ;;  %v530_v18 = vpop.f32.mrf.mxu1 }
 0x103   : > { %v528_v11 = vadd.f32 %v527_v0, %v463_v6  ;;  %v764_v13 = vadd.f32 %v763_v9, %v762_v3  ;;  %v556_v28 = vsel %vm542_vm1, %v539_v23, 0.0 }
 0x105   : > { %v550_v15 = vsel %vm542_vm1, %v528_v11, 0.0  ;;  %v466_v16 = vadd.f32 %v764_v13, %v693_v41 }
 0x106   : > { %v551_v22 = vadd.f32 %v550_v15, %v549_v17 }
 0x107   : > { %v531_v21 = vadd.f32 %v530_v18, %v466_v16 }
 0x109   : > { %v552_v24 = vsel %vm542_vm1, %v531_v21, 0.0 }
 0x10a   : > { %v553_v25 = vadd.f32 %v552_v24, %v551_v22 }
 0x10c   : > { %v555_v27 = vadd.f32 %v554_v26, %v553_v25 }
 0x10e   : > { %v557_v29 = vadd.f32 %v556_v28, %v555_v27 }
 0x110   : > { %v558_v30 = vrot.slane %v557_v29, 4 }
 0x112   : > { %v559_v31 = vadd.f32 %v558_v30, %v557_v29 }
 0x114   : > { %v560_v32 = vrot.slane %v559_v31, 2 }
 0x116   : > { %v561_v33 = vadd.f32 %v560_v32, %v559_v31 }
 0x118   : > { %v562_v34 = vrot.slane %v561_v33, 1 }
 0x11a   : > { %v563_v35 = vadd.f32 %v562_v34, %v561_v33 }
 0x11c   : > { %v565_v36 = vmul.f32 0.015625, %v563_v35 }
 0x11e   : > { %v566_v37 = vsub.f32 %v512_v50, %v565_v36  ;;  %v567_v38 = vsub.f32 %v515_v55, %v565_v36  ;;  %v568_v39 = vsub.f32 %v520_v58, %v565_v36  ;;  %v569_v40 = vsub.f32 %v523_v1, %v565_v36 }
 0x11f   : > { %v570_v41 = vsub.f32 %v528_v11, %v565_v36  ;;  %v571_v45 = vsub.f32 %v531_v21, %v565_v36  ;;  %v572_v51 = vsub.f32 %v536_v19, %v565_v36  ;;  %v573_v50 = vsub.f32 %v539_v23, %v565_v36 }
 0x120   : > { %v574_v42 = vmul.f32 %v566_v37, %v566_v37  ;;  %v575_v43 = vmul.f32 %v567_v38, %v567_v38  ;;  %v576_v44 = vmul.f32 %v568_v39, %v568_v39  ;;  %v577_v46 = vmul.f32 %v569_v40, %v569_v40 }
 0x121   : > { %v578_v52 = vmul.f32 %v570_v41, %v570_v41  ;;  %v579_v55 = vmul.f32 %v571_v45, %v571_v45  ;;  %v580_v58 = vmul.f32 %v572_v51, %v572_v51  ;;  %v581_v61 = vmul.f32 %v573_v50, %v573_v50 }
 0x122   : > { %v582_v47 = vsel %vm542_vm1, %v574_v42, 0.0  ;;  %v583_v48 = vsel %vm542_vm1, %v575_v43, 0.0  ;;  %v585_v53 = vsel %vm542_vm1, %v576_v44, 0.0  ;;  %v587_v56 = vsel %vm542_vm1, %v577_v46, 0.0 }
 0x123   : > { %v584_v49 = vadd.f32 %v583_v48, %v582_v47  ;;  %v589_v59 = vsel %vm542_vm1, %v578_v52, 0.0  ;;  %v591_v62 = vsel %vm542_vm1, %v579_v55, 0.0  ;;  %v593_v0 = vsel %vm542_vm1, %v580_v58, 0.0 }
 0x124   : > { %v595_v2 = vsel %vm542_vm1, %v581_v61, 0.0 }
 0x125   : > { %v586_v54 = vadd.f32 %v585_v53, %v584_v49 }
 0x127   : > { %v588_v57 = vadd.f32 %v587_v56, %v586_v54 }
 0x129   : > { %v590_v60 = vadd.f32 %v589_v59, %v588_v57 }
 0x12b   : > { %v592_v63 = vadd.f32 %v591_v62, %v590_v60 }
 0x12d   : > { %v594_v1 = vadd.f32 %v593_v0, %v592_v63 }
 0x12f   : > { %v596_v3 = vadd.f32 %v595_v2, %v594_v1 }
 0x131   : > { %v597_v4 = vrot.slane %v596_v3, 4 }
 0x133   : > { %v598_v5 = vadd.f32 %v597_v4, %v596_v3 }
 0x135   : > { %v599_v6 = vrot.slane %v598_v5, 2 }
 0x137   : > { %v600_v7 = vadd.f32 %v599_v6, %v598_v5 }
 0x139   : > { %v601_v8 = vrot.slane %v600_v7, 1 }
 0x13b   : > { %v602_v9 = vadd.f32 %v601_v8, %v600_v7 }
 0x13d   : > { %v603_v10 = vmul.f32 0.015625, %v602_v9 }
 0x13f   : > { %v604_v11 = vadd.f32 1e-05, %v603_v10 }
 0x141   : > { %848 = vrsqrt.f32 %v604_v11 }
 0x14e   : > { %v849_v12 = vpop.eup %848 }
 0x14f   : > { %v606_v13 = vmul.f32 %v849_v12, %v566_v37  ;;  %v607_v14 = vmul.f32 %v849_v12, %v567_v38  ;;  %v608_v15 = vmul.f32 %v849_v12, %v568_v39  ;;  %v609_v16 = vmul.f32 %v849_v12, %v569_v40 }
 0x150   : > { %v610_v17 = vmul.f32 %v849_v12, %v570_v41  ;;  %v611_v18 = vmul.f32 %v849_v12, %v571_v45  ;;  %v612_v19 = vmul.f32 %v849_v12, %v572_v51  ;;  %v613_v20 = vmul.f32 %v849_v12, %v573_v50 }
 0x151   : > { %v614_v21 = vmax.f32 %v606_v13, 0.0  ;;  %v615_v22 = vmax.f32 %v607_v14, 0.0  ;;  %v616_v23 = vmax.f32 %v608_v15, 0.0  ;;  %v617_v24 = vmax.f32 %v609_v16, 0.0 }
 0x152   : > { %v618_v25 = vmax.f32 %v610_v17, 0.0  ;;  %v619_v26 = vmax.f32 %v611_v18, 0.0  ;;  %v620_v27 = vmax.f32 %v612_v19, 0.0  ;;  %v621_v28 = vmax.f32 %v613_v20, 0.0 }
 0x153   : > { %622 = vst.msk [vmem:[%s170_s7] sm:$0xff] %vm542_vm1, %v614_v21  ;;  %623 = vst.msk [vmem:[%s170_s7 + $0x8] sm:$0xff] %vm542_vm1, %v615_v22 }
 0x154   : > { %624 = vst.msk [vmem:[%s170_s7 + $0x10] sm:$0xff] %vm542_vm1, %v616_v23  ;;  %625 = vst.msk [vmem:[%s170_s7 + $0x18] sm:$0xff] %vm542_vm1, %v617_v24 }
 0x155   : > { %626 = vst.msk [vmem:[%s170_s7 + $0x20] sm:$0xff] %vm542_vm1, %v618_v25  ;;  %627 = vst.msk [vmem:[%s170_s7 + $0x28] sm:$0xff] %vm542_vm1, %v619_v26 }
 0x156   : > { %628 = vst.msk [vmem:[%s170_s7 + $0x30] sm:$0xff] %vm542_vm1, %v620_v27  ;;  %629 = vst.msk [vmem:[%s170_s7 + $0x38] sm:$0xff] %vm542_vm1, %v621_v28 }
 0x157 PF: > { %s13_s12 = sadd.s32 1, %s856_s12  }
 0x158   : > { %p10_p4 = scmp.ge.s32.totalorder %s13_s12, 4  }
 0x15a   :  { %12 = sbr.rel (!%p10_p4) target bundleno = 1 (0x1), region = 62 }

// kernel: generator_f2s.23
= control target key start
LH: loop header
LB: loop body
LE: loop exit
PB: predicated region body
PF: predicated region fallthrough
CT: control target
= control target key end

     0   :  { %s910_s12 = smov 0   ;;  %s1053_s0 = inlined_call_operand.vmem [shape: bf16[2,16,576], index: 0, kind: input, shape index: {}]   ;;  %s1054_s1 = inlined_call_operand.vmem [shape: bf16[576,128], index: 1, kind: input, shape index: {}]   ;;  %s1055_s2 = inlined_call_operand.vmem [shape: f32[1,128], index: 2, kind: input, shape index: {}]   ;;  %s1056_s3 = inlined_call_operand.vmem [shape: f32[2,16,128], index: 3, kind: output, shape index: {}]  }
   0x1 LB: > { %s709_s13 = sadd.s32 4294967295, %s886_s12   ;;  %p713_p0 = scmp.ge.s32.totalorder %s886_s12, 1  ;;  %s886_s12 = sphi %s910_s12, %s13_s12  }
   0x2   : > { %p137_p1 = scmp.lt.s32.totalorder %s886_s12, 3 }
   0x4   : > { %p138_p2 = pnand %p713_p0, %p137_p1 }
   0x5   : > { %p161_p3 = scmp.lt.s32.totalorder (!%p138_p2), %s709_s13, 1 }
   0x6   : > { %141 = sbr.rel (%p138_p2) target bundleno = 316 (0x13c), region = 32 }
   0xb   : > { %v835_v0 = vld [vmem:[%s1054_s1 + $0x78] sm:$0xff]   ;;  %v839_v4 = vld [vmem:[%s1054_s1 + $0x70] sm:$0xff]   ;;  %v843_v8 = vld [vmem:[%s1054_s1 + $0x68] sm:$0xff]   ;;  %s1058_s13 = smov (!%p161_p3, %s709_s13), 1  ;;  %v888_v33 = vmov 0.0   ;;  %vm889_vm0 = vmmov 0  }
   0xc   : > { %v836_v1 = vld [vmem:[%s1054_s1 + $0x38] sm:$0xff]   ;;  %763 = vmatprep.subr.bf16.mxu0 %v835_v0  ;;  %v840_v5 = vld [vmem:[%s1054_s1 + $0x30] sm:$0xff]   ;;  %v844_v9 = vld [vmem:[%s1054_s1 + $0x28] sm:$0xff]   ;;  %s824_s14 = smul.u32 40, %s1058_s13  ;;  %vm498_vm1 = vcmask 523264   ;;  %s762_s17 = sshll.u32 %s1058_s13, 4 }
   0xd   : > { %v837_v2 = vld [vmem:[%s1054_s1 + $0xf8] sm:$0xff]   ;;  %764 = vmatpush3.bf16.msra.mxu0 %v836_v1  ;;  %v841_v6 = vld [vmem:[%s1054_s1 + $0xf0] sm:$0xff]   ;;  %v845_v10 = vld [vmem:[%s1054_s1 + $0xe8] sm:$0xff]   ;;  %s170_s20 = scalar_lea.vmem %s1056_s3, %s762_s17 }
   0xe   : > { %v838_v3 = vld [vmem:[%s1054_s1 + $0xb8] sm:$0xff]   ;;  %785 = vmatprep.subr.bf16.mxu1 %v837_v2  ;;  %765 = vmatprep.subr.bf16.mxu0 %v839_v4  ;;  %v842_v7 = vld [vmem:[%s1054_s1 + $0xb0] sm:$0xff]   ;;  %v846_v11 = vld [vmem:[%s1054_s1 + $0xa8] sm:$0xff]   ;;  %s1015_s25 = scalar_lea.vmem %s1053_s0, %s824_s14 }
   0xf   : > { %786 = vmatpush3.bf16.msra.mxu1 %v838_v3  ;;  %v847_v12 = vld [vmem:[%s1054_s1 + $0x60] sm:$0xff]   ;;  %v851_v16 = vld [vmem:[%s1054_s1 + $0x58] sm:$0xff]   ;;  %v855_v20 = vld [vmem:[%s1054_s1 + $0x50] sm:$0xff]  }
  0x10   : > { %787 = vmatprep.subr.bf16.mxu1 %v841_v6  ;;  %v848_v13 = vld [vmem:[%s1054_s1 + $0x20] sm:$0xff]   ;;  %v852_v17 = vld [vmem:[%s1054_s1 + $0x18] sm:$0xff]   ;;  %v856_v21 = vld [vmem:[%s1054_s1 + $0x10] sm:$0xff]  }
  0x11   : > { %766 = vmatpush3.bf16.msra.mxu0 %v840_v5  ;;  %v849_v14 = vld [vmem:[%s1054_s1 + $0xe0] sm:$0xff]   ;;  %v853_v18 = vld [vmem:[%s1054_s1 + $0xd8] sm:$0xff]   ;;  %v857_v22 = vld [vmem:[%s1054_s1 + $0xd0] sm:$0xff]  }
  0x12   : > { %767 = vmatprep.subr.bf16.mxu0 %v843_v8  ;;  %v850_v15 = vld [vmem:[%s1054_s1 + $0xa0] sm:$0xff]   ;;  %v854_v19 = vld [vmem:[%s1054_s1 + $0x98] sm:$0xff]   ;;  %v858_v23 = vld [vmem:[%s1054_s1 + $0x90] sm:$0xff]  }
  0x13   : > { %788 = vmatpush3.bf16.msra.mxu1 %v842_v7  ;;  %v859_v24 = vld [vmem:[%s1054_s1 + $0x48] sm:$0xff]   ;;  %v863_v28 = vld [vmem:[%s1054_s1 + $0x40] sm:$0xff]   ;;  %v873_v37 = vld [vmem:[%s1054_s1 + $0x118] sm:$0xff]  }
  0x14   : > { %789 = vmatprep.subr.bf16.mxu1 %v845_v10  ;;  %v860_v25 = vld [vmem:[%s1054_s1 + $0x8] sm:$0xff]   ;;  %v864_v29 = vld [vmem:[%s1054_s1] sm:$0xff]   ;;  %v874_v38 = vld [vmem:[%s1054_s1 + $0x110] sm:$0xff]  }
  0x15   : > { %768 = vmatpush3.bf16.msra.mxu0 %v844_v9  ;;  %v861_v26 = vld [vmem:[%s1054_s1 + $0xc8] sm:$0xff]   ;;  %v865_v30 = vld [vmem:[%s1054_s1 + $0xc0] sm:$0xff]  }
  0x16   : > { %769 = vmatprep.subr.bf16.mxu0 %v847_v12  ;;  %v862_v27 = vld [vmem:[%s1054_s1 + $0x88] sm:$0xff]   ;;  %v866_v31 = vld [vmem:[%s1015_s25] ss:$20 sps:$4 sm:$0xff]   ;;  %v868_v32 = vld [vmem:[%s1015_s25 + $0x4] ss:$20 sps:$4 sm:$0xff]  }
  0x17   : > { %790 = vmatpush3.bf16.msra.mxu1 %v846_v11  ;;  %v869_v34 = vld [vmem:[%s1054_s1 + $0x80] sm:$0xff]   ;;  %534 = vmatprep.mubr.bf16.mxu0 %v868_v32  ;;  %v870_v35 = vld [vmem:[%s1015_s25 + $0x8] ss:$20 sps:$4 sm:$0xff]  }
  0x18   : > { %791 = vmatprep.subr.bf16.mxu1 %v849_v14  ;;  %v872_v36 = vld [vmem:[%s1015_s25 + $0xc] ss:$20 sps:$4 sm:$0xff]   ;;  %v877_v41 = vld [vmem:[%s1015_s25 + $0x10] ss:$20 sps:$4 sm:$0xff]  }
  0x19   : > { %770 = vmatpush3.bf16.msra.mxu0 %v848_v13  ;;  %575 = vmatprep.mubr.bf16.mxu1 %v872_v36  ;;  %v875_v39 = vld [vmem:[%s1054_s1 + $0x108] sm:$0xff]   ;;  %v876_v40 = vld [vmem:[%s1054_s1 + $0x100] sm:$0xff]  }
  0x1a   : > { %771 = vmatprep.subr.bf16.mxu0 %v851_v16  ;;  %v717_v51 = vld [vmem:[%s1055_s2] ss:$0 sm:$0xff] }
  0x1b   : > { %792 = vmatpush3.bf16.msra.mxu1 %v850_v15 }
  0x1c   : > { %793 = vmatprep.subr.bf16.mxu1 %v853_v18 }
  0x1d   : > { %772 = vmatpush3.bf16.msra.mxu0 %v852_v17 }
  0x1e   : > { %773 = vmatprep.subr.bf16.mxu0 %v855_v20 }
  0x1f   : > { %794 = vmatpush3.bf16.msra.mxu1 %v854_v19 }
  0x20   : > { %795 = vmatprep.subr.bf16.mxu1 %v857_v22 }
  0x21   : > { %774 = vmatpush3.bf16.msra.mxu0 %v856_v21 }
  0x22   : > { %775 = vmatprep.subr.bf16.mxu0 %v859_v24 }
  0x23   : > { %796 = vmatpush3.bf16.msra.mxu1 %v858_v23 }
  0x24   : > { %797 = vmatprep.subr.bf16.mxu1 %v861_v26 }
  0x25   : > { %776 = vmatpush3.bf16.msra.mxu0 %v860_v25 }
  0x26   : > { %777 = vmatprep.subr.bf16.mxu0 %v863_v28 }
  0x27   : > { %798 = vmatpush3.bf16.msra.mxu1 %v862_v27 }
  0x28   : > { %799 = vmatprep.subr.bf16.mxu1 %v865_v30 }
  0x29   : > { %778 = vmatpush3.bf16.msra.mxu0 %v864_v29 }
  0x2a   : > { %812 = vmatprep.subr.bf16.mxu0 %v888_v33 }
  0x2b   : > { %800 = vmatpush3.bf16.msra.mxu1 %v869_v34 }
  0x2c   : > { %535 = vmatmul.mubr.bf16.vlgmr.msra.gmra.mxu0 %v866_v31 }
  0x2d   : > { %820 = vmatprep.mubr.msk.bf16.mxu0 %vm889_vm0, %v888_v33  ;;  %813 = vmatpush3.bf16.msra.mxu0 %v873_v37 }
  0x2e   : > { %576 = vmatmul.mubr.bf16.vlgmr.msra.gmra.mxu1 %v870_v35  ;;  %814 = vmatprep.subr.bf16.mxu0 %v888_v33 }
  0x31   : > { %815 = vmatpush3.bf16.msra.mxu0 %v874_v38 }
  0x32   : > { %816 = vmatprep.subr.bf16.mxu0 %v888_v33 }
  0x35   : > { %817 = vmatpush3.bf16.msra.mxu0 %v875_v39 }
  0x36   : > { %818 = vmatprep.subr.bf16.mxu0 %v888_v33 }
  0x39   : > { %819 = vmatpush3.bf16.msra.mxu0 %v876_v40 }
  0x3c   : > { %821 = vmatmul.mubr.msk.bf16.vlgmr.msra.gmra.mxu0 %vm498_vm1, %v877_v41 }
  0xec   : > { %v779_v42 = vpop.f32.mrf.mxu0 }
  0xee   : > { %v780_v43 = vpop.f32.mrf.mxu0  ;;  %v801_v44 = vpop.f32.mrf.mxu1 }
  0xef   : > { %v781_v49 = vadd.f32 %v780_v43, %v779_v42 }
  0xf0   : > { %v782_v45 = vpop.f32.mrf.mxu0  ;;  %v802_v46 = vpop.f32.mrf.mxu1 }
  0xf1   : > { %v537_v53 = vadd.f32 %v781_v49, %v717_v51  ;;  %v803_v54 = vadd.f32 %v802_v46, %v801_v44 }
  0xf2   : > { %v783_v47 = vpop.f32.mrf.mxu0  ;;  %v804_v48 = vpop.f32.mrf.mxu1 }
  0xf3   : > { %v784_v50 = vadd.f32 %v783_v47, %v782_v45  ;;  %v578_v59 = vadd.f32 %v803_v54, %v537_v53 }
  0xf4   : > { %v805_v52 = vpop.f32.mrf.mxu1 }
  0xf5   : > { %v540_v55 = vadd.f32 %v784_v50, %v717_v51  ;;  %v806_v56 = vadd.f32 %v805_v52, %v804_v48 }
  0xf7   : > { %v581_v60 = vadd.f32 %v806_v56, %v540_v55 }
  0xfc   : > { %v618_v57 = vpop.f32.mrf.mxu0 }
  0xfd   : > { %v619_v62 = vadd.f32 %v618_v57, %v578_v59 }
  0xfe   : > { %v822_v58 = vpop.f32.mrf.mxu0 }
 0x100   : > { %v621_v61 = vpop.f32.mrf.mxu0 }
 0x101   : > { %v622_v63 = vadd.f32 %v621_v61, %v581_v60 }
 0x102   : > { %v823_v0 = vpop.f32.mrf.mxu0 }
 0x103   : > { %v625_v1 = vadd.f32 %v622_v63, %v619_v62 }
 0x105   : > { %v626_v2 = vrot.slane %v625_v1, 4 }
 0x107   : > { %v627_v3 = vadd.f32 %v626_v2, %v625_v1 }
 0x109   : > { %v628_v4 = vrot.slane %v627_v3, 2 }
 0x10b   : > { %v629_v5 = vadd.f32 %v628_v4, %v627_v3 }
 0x10d   : > { %v630_v6 = vrot.slane %v629_v5, 1 }
 0x10f   : > { %v631_v7 = vadd.f32 %v630_v6, %v629_v5 }
 0x111   : > { %v633_v8 = vmul.f32 0.0625, %v631_v7 }
 0x113   : > { %v634_v9 = vsub.f32 %v619_v62, %v633_v8  ;;  %v635_v10 = vsub.f32 %v622_v63, %v633_v8 }
 0x115   : > { %v636_v11 = vmul.f32 %v634_v9, %v634_v9  ;;  %v637_v12 = vmul.f32 %v635_v10, %v635_v10 }
 0x117   : > { %v638_v13 = vadd.f32 %v637_v12, %v636_v11 }
 0x119   : > { %v639_v14 = vrot.slane %v638_v13, 4 }
 0x11b   : > { %v640_v15 = vadd.f32 %v639_v14, %v638_v13 }
 0x11d   : > { %v641_v16 = vrot.slane %v640_v15, 2 }
 0x11f   : > { %v642_v17 = vadd.f32 %v641_v16, %v640_v15 }
 0x121   : > { %v643_v18 = vrot.slane %v642_v17, 1 }
 0x123   : > { %v644_v19 = vadd.f32 %v643_v18, %v642_v17 }
 0x125   : > { %v645_v20 = vmul.f32 0.0625, %v644_v19 }
 0x127   : > { %v646_v21 = vadd.f32 1e-05, %v645_v20 }
 0x129   : > { %878 = vrsqrt.f32 %v646_v21 }
 0x136   : > { %v879_v22 = vpop.eup %878 }
 0x137   : > { %v648_v23 = vmul.f32 %v879_v22, %v634_v9  ;;  %v649_v24 = vmul.f32 %v879_v22, %v635_v10 }
 0x139   : > { %v650_v25 = vmax.f32 %v648_v23, 0.0  ;;  %v651_v26 = vmax.f32 %v649_v24, 0.0 }
 0x13b   : > { %652 = vst [vmem:[%s170_s20] sm:$0xff] %v650_v25  ;;  %653 = vst [vmem:[%s170_s20 + $0x8] sm:$0xff] %v651_v26 }
 0x13c PF: > { %s13_s12 = sadd.s32 1, %s886_s12  }
 0x13d   : > { %p10_p4 = scmp.ge.s32.totalorder %s13_s12, 4  }
 0x13f   :  { %12 = sbr.rel (!%p10_p4) target bundleno = 1 (0x1), region = 62 }

// kernel: generator_f2s.24
= control target key start
LH: loop header
LB: loop body
LE: loop exit
PB: predicated region body
PF: predicated region fallthrough
CT: control target
= control target key end

     0   :  { %s3315_s24 = smov 0   ;;  %s3317_s25 = smov 0   ;;  %s3702_s0 = inlined_call_operand.vmem [shape: f32[2,16,128], index: 0, kind: input, shape index: {}]   ;;  %s3703_s1 = inlined_call_operand.vmem [shape: f32[6,16,128], index: 1, kind: input, shape index: {}]   ;;  %s3704_s2 = inlined_call_operand.vmem [shape: bf16[144,16], index: 2, kind: input, shape index: {}]   ;;  %s3705_s3 = inlined_call_operand.vmem [shape: bf16[9,1152,128], index: 3, kind: input, shape index: {}]   ;;  %s3706_s4 = inlined_call_operand.vmem [shape: f32[9,1,128], index: 4, kind: input, shape index: {}]   ;;  %s3707_s5 = inlined_call_operand.vmem [shape: bf16[9,1152,128], index: 5, kind: input, shape index: {}]   ;;  %s3708_s6 = inlined_call_operand.vmem [shape: f32[9,1,128], index: 6, kind: input, shape index: {}]   ;;  %s3709_s7 = inlined_call_operand.vmem [shape: f32[2,16,128], index: 7, kind: output, shape index: {}]  }
   0x1   :  { %3710 = sst [smem:[#allocation4_spill]] %s3702_s0  ;;  %s3319_s26 = smov 0  }
   0x2   :  { %3711 = sst [smem:[#allocation5_spill]] %s3709_s7  ;;  %s3321_s27 = smov 0  }
   0x3   :  { %s3323_s28 = smov 0  }
   0x4 LB: > { %s26_s29 = sadd.s32 1, %s3263_s26  ;;  %s29_s30 = sadd.s32 1, %s3267_s27  ;;  %s3271_s28 = sphi %s3323_s28, %s17_s28   ;;  %s3267_s27 = sphi %s3321_s27, %s3719_s27   ;;  %s3263_s26 = sphi %s3319_s26, %s3718_s26   ;;  %s3259_s25 = sphi %s3317_s25, %s3717_s25   ;;  %s3255_s24 = sphi %s3315_s24, %s3716_s24  }
   0x5   : > { %p27_p0 = scmp.ge.s32.totalorder %s26_s29, 9  ;;  %p2504_p1 = scmp.ge.s32.totalorder %s3271_s28, 1 }
   0x6   : > { %p297_p2 = scmp.lt.s32.totalorder %s3271_s28, 19 }
   0x7   : > { %s3721_s29 = smov (%p27_p0, %s26_s29), 0  ;;  %s3723_s30 = smov (!%p27_p0, %s29_s30), %s3267_s27 }
   0x8   : > { %p298_p3 = pnand %p2504_p1, %p297_p2  ;;  %p31_p4 = scmp.ge.s32.totalorder %s3723_s30, 2 }
   0x9   : > { %p351_p5 = scmp.lt.s32.totalorder (!%p298_p3), %s3259_s25, 1  ;;  %s356_s8 = smul.u32 (!%p298_p3), 3, %s3259_s25 }
   0xa   : > { %s3725_s30 = smov (%p31_p4, %s3723_s30), 0  ;;  %301 = sbr.rel (%p298_p3) target bundleno = 1114 (0x45a), region = 48 }
   0xb   : > { %3712 = sst [smem:[#allocation3_spill]] %s3725_s30  ;;  %p385_p6 = scmp.eq.s32.totalorder (!%p298_p3), %s3255_s24, 0 }
   0xc   : > { %p357_p7 = scmp.lt.s32.totalorder (!%p298_p3), %s356_s8, 5  ;;  %p363_p8 = scmp.lt.s32.totalorder (!%p298_p3), %s3255_s24, 8 }
   0xd   : > { %s3713_s0 = sld [smem:[#allocation4_spill]] (!%p298_p3)  ;;  %p2513_p9 = scmp.ne.s32.totalorder (!%p298_p3), %s3255_s24, 0 }
   0xe   : > { %s3714_s7 = sld [smem:[#allocation5_spill]] (!%p298_p3) }
   0xf   : > { %s3727_s25 = smov (!%p351_p5, %s3259_s25), 1  ;;  %s3729_s8 = smov (!%p357_p7, %s356_s8), 5 }
  0x10   : > { %s2694_s9 = sshll.u32 %s3727_s25, 4  ;;  %s2695_s17 = sshll.u32 %s3729_s8, 4 }
  0x11   : > { %s3358_s16 = scalar_select %p363_p8, %s3255_s24, 8 }
  0x12   : > { %s361_s20 = scalar_lea.vmem %s3703_s1, %s2695_s17  ;;  %388 = sbr.rel (%p2513_p9) target bundleno = 25 (0x19), region = 52 }
  0x13   : > { %s355_s12 = scalar_lea.vmem %s3713_s0, %s2694_s9  ;;  %s3027_s21 = smul.u32 576, %s3358_s16 }
  0x14   : > { %s3355_s15 = scalar_lea.vmem %s3714_s7, %s2694_s9  ;;  %s370_s25 = scalar_lea.vmem %s3706_s4, %s3358_s16 }
  0x15   : > { %s378_s9 = scalar_lea.vmem %s3708_s6, %s3358_s16  ;;  %s3375_s0 = scalar_lea.vmem %s3705_s3, %s3027_s21 }
  0x16   : > { %s3380_s30 = scalar_lea.vmem %s3707_s5, %s3027_s21 }
  0x17   : > { %v389_v0 = vld [vmem:[%s355_s12] sm:$0xff]  ;;  %v390_v1 = vld [vmem:[%s355_s12 + $0x8] sm:$0xff] }
  0x18   : > { %391 = vst [vmem:[#allocation2] sm:$0xff] %v389_v0  ;;  %392 = vst [vmem:[#allocation2 + $0x8] sm:$0xff] %v390_v1 }
  0x19 PF: > { %p397_p10 = scmp.eq.s32.totalorder %s3255_s24, 1  ;;  %p414_p11 = scmp.lt.s32.totalorder %s3255_s24, 3  ;;  %v3273_v2 = vmov 0.0   ;;  %v395_v3 = vld [vmem:[%s361_s20] sm:$0xff]  ;;  %v2514_v4 = vld [vmem:[%s361_s20 + $0x10] sm:$0xff]  ;;  %v2515_v5 = vld [vmem:[%s361_s20 + $0x18] sm:$0xff] }
  0x1a   : > { %2911 = vmatprep.subr.bf16.mxu0 %v3273_v2  ;;  %s409_s7 = scalar_select %p385_p6, 1, 0  ;;  %vm3274_vm0 = vmmov 0   ;;  %v2516_v7 = vld [vmem:[%s361_s20 + $0x20] sm:$0xff]  ;;  %v2517_v8 = vld [vmem:[%s361_s20 + $0x28] sm:$0xff]  ;;  %v3079_v24 = vld [vmem:[%s3375_s0 + $0x78] sm:$0xff]  }
  0x1b   : > { %s404_s17 = scalar_select %p397_p10, 1, 0  ;;  %2913 = vmatprep.mubr.msk.bf16.mxu0 %vm3274_vm0, %v3273_v2  ;;  %v396_v10 = vld [vmem:[%s361_s20 + $0x8] sm:$0xff]  ;;  %v3070_v23 = vld [vmem:[%s3704_s2] sm:$0xff]   ;;  %vm486_vm4 = vcmask 130048   ;;  %v3080_v25 = vld [vmem:[%s3375_s0 + $0x38] sm:$0xff]   ;;  %2707 = vmatprep.subr.bf16.mxu1 %v3079_v24 }
  0x1c   : > { %v410_v9 = vstv %s409_s7  ;;  %s417_s12 = scalar_select %p414_p11, 1, 0  ;;  %v3081_v26 = vld [vmem:[%s3375_s0 + $0x178] sm:$0xff]   ;;  %2708 = vmatpush3.bf16.msra.mxu1 %v3080_v25  ;;  %v3082_v27 = vld [vmem:[%s3375_s0 + $0x70] sm:$0xff]   ;;  %v3071_v30 = vld [vmem:[%s3704_s2 + $0x8] sm:$0xff]  }
  0x1d   : > { %v405_v11 = vstv %s404_s17  ;;  %vm411_vm1 = vcmp.eq.s32.totalorder %v410_v9, 1  ;;  %v3083_v28 = vld [vmem:[%s3375_s0 + $0x138] sm:$0xff]   ;;  %2709 = vmatprep.subr.bf16.mxu1 %v3082_v27  ;;  %v3084_v29 = vld [vmem:[%s3375_s0 + $0x30] sm:$0xff]   ;;  %v3085_v31 = vld [vmem:[%s3375_s0 + $0x68] sm:$0xff]   ;;  %p2691_p12 = scmp.ne.s32.totalorder %s3255_s24, 8 }
  0x1e   : > { %vm406_vm2 = vcmp.eq.s32.totalorder %v405_v11, 1  ;;  %v418_v13 = vstv %s417_s12  ;;  %v3086_v32 = vld [vmem:[%s3375_s0 + $0x28] sm:$0xff]   ;;  %v3087_v33 = vld [vmem:[%s3375_s0 + $0x60] sm:$0xff]   ;;  %v3088_v34 = vld [vmem:[%s3375_s0 + $0x170] sm:$0xff]  }
  0x1f   : > { %v393_v6 = vld [vmem:[#allocation2] sm:$0xff]  ;;  %v394_v12 = vld [vmem:[#allocation2 + $0x8] sm:$0xff]  ;;  %v407_v14 = vsel %vm406_vm2, %v2514_v4, %v2516_v7  ;;  %v408_v15 = vsel %vm406_vm2, %v2515_v5, %v2517_v8  ;;  %vm419_vm3 = vcmp.eq.s32.totalorder %v418_v13, 1  ;;  %v3090_v36 = vld [vmem:[%s3375_s0 + $0x130] sm:$0xff]  }
  0x20   : > { %v412_v16 = vsel %vm411_vm1, %v395_v3, %v407_v14  ;;  %v413_v17 = vsel %vm411_vm1, %v396_v10, %v408_v15  ;;  %2710 = vmatpush3.bf16.msra.mxu1 %v3084_v29  ;;  %v3089_v35 = vld [vmem:[%s3375_s0 + $0x20] sm:$0xff]   ;;  %v3091_v37 = vld [vmem:[%s3375_s0 + $0x58] sm:$0xff]   ;;  %v3072_v38 = vld [vmem:[%s3704_s2 + $0x10] sm:$0xff]  }
  0x21   : > { %v415_v18 = vmul.f32 %v412_v16, %v393_v6  ;;  %v416_v19 = vmul.f32 %v413_v17, %v394_v12  ;;  %2711 = vmatprep.subr.bf16.mxu1 %v3085_v31  ;;  %v3073_v39 = vld [vmem:[%s3704_s2 + $0x18] sm:$0xff]   ;;  %v3432_v40 = vld [vmem:[%s3704_s2 + $0x20] sm:$0xff]   ;;  %v3441_v41 = vld [vmem:[%s3704_s2 + $0x28] sm:$0xff]  }
  0x22   : > { %v3450_v42 = vld [vmem:[%s3704_s2 + $0x30] sm:$0xff]   ;;  %v3459_v43 = vld [vmem:[%s3704_s2 + $0x38] sm:$0xff]   ;;  %v3468_v44 = vld [vmem:[%s3704_s2 + $0x40] sm:$0xff]  }
  0x23   : > { %v420_v20 = vsel %vm419_vm3, %v415_v18, %v393_v6  ;;  %v421_v21 = vsel %vm419_vm3, %v416_v19, %v394_v12  ;;  %v3092_v45 = vld [vmem:[%s3375_s0 + $0x18] sm:$0xff]   ;;  %v3093_v46 = vld [vmem:[%s3375_s0 + $0x50] sm:$0xff]   ;;  %v3095_v48 = vld [vmem:[%s3375_s0 + $0x168] sm:$0xff]  }
  0x24   : > { %v422_v22 = vpack.c.bf16 %v421_v21, %v420_v20  ;;  %2712 = vmatpush3.bf16.msra.mxu1 %v3086_v32  ;;  %v3094_v47 = vld [vmem:[%s3375_s0 + $0x10] sm:$0xff]   ;;  %v3096_v49 = vld [vmem:[%s3375_s0 + $0x128] sm:$0xff]   ;;  %v3099_v52 = vld [vmem:[%s3375_s0 + $0x40] sm:$0xff]  }
  0x25   : > { %2713 = vmatprep.subr.bf16.mxu1 %v3087_v33  ;;  %v3097_v50 = vld [vmem:[%s3375_s0 + $0x48] sm:$0xff]   ;;  %v3100_v53 = vld [vmem:[%s3375_s0] sm:$0xff]   ;;  %v3103_v55 = vld [vmem:[%s3375_s0 + $0xf8] sm:$0xff]  }
  0x26   : > { %2912 = vmatpush3.bf16.msra.mxu0 %v422_v22  ;;  %v3098_v51 = vld [vmem:[%s3375_s0 + $0x8] sm:$0xff]   ;;  %v3101_v54 = vld [vmem:[%s3375_s0 + $0x160] sm:$0xff]   ;;  %v3107_v57 = vld [vmem:[%s3375_s0 + $0x158] sm:$0xff]  }
  0x27   : > { %2751 = vmatprep.subr.bf16.mxu0 %v3081_v26  ;;  %v3102_v56 = vld [vmem:[%s3375_s0 + $0x120] sm:$0xff]   ;;  %v3109_v58 = vld [vmem:[%s3375_s0 + $0x118] sm:$0xff]   ;;  %v3114_v59 = vld [vmem:[%s3375_s0 + $0x150] sm:$0xff]  }
  0x28   : > { %2714 = vmatpush3.bf16.msra.mxu1 %v3089_v35  ;;  %v3116_v60 = vld [vmem:[%s3375_s0 + $0x110] sm:$0xff]   ;;  %v3120_v61 = vld [vmem:[%s3375_s0 + $0x148] sm:$0xff]   ;;  %v3124_v63 = vld [vmem:[%s3375_s0 + $0x140] sm:$0xff]  }
  0x29   : > { %2914 = vmatmul.mubr.msk.bf16.vlgmr.msra.gmra.mxu0 %vm486_vm4, %v3070_v23  ;;  %2715 = vmatprep.subr.bf16.mxu1 %v3091_v37  ;;  %v3122_v62 = vld [vmem:[%s3375_s0 + $0x108] sm:$0xff]   ;;  %v3126_v0 = vld [vmem:[%s3375_s0 + $0x100] sm:$0xff]   ;;  %v3104_v10 = vld [vmem:[%s3375_s0 + $0xb8] sm:$0xff]  }
  0x2a   : > { %2917 = vmatprep.mubr.msk.bf16.mxu0 %vm3274_vm0, %v3273_v2  ;;  %2752 = vmatpush3.bf16.msra.mxu0 %v3083_v28  ;;  %v3105_v13 = vld [vmem:[%s3375_s0 + $0xf0] sm:$0xff]   ;;  %v3108_v17 = vld [vmem:[%s3375_s0 + $0xe8] sm:$0xff]   ;;  %v3111_v21 = vld [vmem:[%s3375_s0 + $0xe0] sm:$0xff]  }
  0x2b   : > { %2753 = vmatprep.subr.bf16.mxu0 %v3088_v34  ;;  %v3106_v15 = vld [vmem:[%s3375_s0 + $0xb0] sm:$0xff]   ;;  %v3110_v19 = vld [vmem:[%s3375_s0 + $0xa8] sm:$0xff]   ;;  %v3112_v23 = vld [vmem:[%s3375_s0 + $0xa0] sm:$0xff]  }
  0x2c   : > { %2716 = vmatpush3.bf16.msra.mxu1 %v3092_v45  ;;  %v3113_v25 = vld [vmem:[%s3375_s0 + $0xd8] sm:$0xff]   ;;  %v3118_v32 = vld [vmem:[%s3375_s0 + $0x90] sm:$0xff]   ;;  %v3119_v34 = vld [vmem:[%s3375_s0 + $0xc8] sm:$0xff]  }
  0x2d   : > { %2717 = vmatprep.subr.bf16.mxu1 %v3093_v46  ;;  %v3115_v28 = vld [vmem:[%s3375_s0 + $0x98] sm:$0xff]   ;;  %v3125_v45 = vld [vmem:[%s3375_s0 + $0x80] sm:$0xff]  }
  0x2e   : > { %2754 = vmatpush3.bf16.msra.mxu0 %v3090_v36  ;;  %v3121_v36 = vld [vmem:[%s3375_s0 + $0x88] sm:$0xff]  }
  0x2f   : > { %2755 = vmatprep.subr.bf16.mxu0 %v3095_v48 }
  0x30   : > { %2718 = vmatpush3.bf16.msra.mxu1 %v3094_v47  ;;  %v3127_v47 = vld [vmem:[%s3375_s0 + $0x1f8] sm:$0xff]  }
  0x31   : > { %2918 = vmatmul.mubr.msk.bf16.gmra.mxu0 %vm486_vm4, %v3071_v30  ;;  %2719 = vmatprep.subr.bf16.mxu1 %v3097_v50  ;;  %v3117_v30 = vld [vmem:[%s3375_s0 + $0xd0] sm:$0xff]   ;;  %v3128_v50 = vld [vmem:[%s3375_s0 + $0x1b8] sm:$0xff]  }
  0x32   : > { %2921 = vmatprep.mubr.msk.bf16.mxu0 %vm3274_vm0, %v3273_v2  ;;  %2756 = vmatpush3.bf16.msra.mxu0 %v3096_v49 }
  0x33   : > { %2757 = vmatprep.subr.bf16.mxu0 %v3101_v54 }
  0x34   : > { %2720 = vmatpush3.bf16.msra.mxu1 %v3098_v51  ;;  %v3129_v51 = vld [vmem:[%s3375_s0 + $0x238] sm:$0xff]  }
  0x35   : > { %2721 = vmatprep.subr.bf16.mxu1 %v3099_v52 }
  0x36   : > { %2758 = vmatpush3.bf16.msra.mxu0 %v3102_v56 }
  0x37   : > { %2759 = vmatprep.subr.bf16.mxu0 %v3107_v57  ;;  %v3131_v57 = vld [vmem:[%s3375_s0 + $0x1b0] sm:$0xff]  }
  0x38   : > { %2722 = vmatpush3.bf16.msra.mxu1 %v3100_v53 }
  0x39   : > { %2922 = vmatmul.mubr.msk.bf16.gmra.mxu0 %vm486_vm4, %v3072_v38  ;;  %2729 = vmatprep.subr.bf16.mxu1 %v3103_v55  ;;  %v3123_v38 = vld [vmem:[%s3375_s0 + $0xc0] sm:$0xff]   ;;  %v3130_v55 = vld [vmem:[%s3375_s0 + $0x1f0] sm:$0xff]  }
  0x3a   : > { %2925 = vmatprep.mubr.msk.bf16.mxu0 %vm3274_vm0, %v3273_v2  ;;  %2760 = vmatpush3.bf16.msra.mxu0 %v3109_v58  ;;  %v3132_v58 = vld [vmem:[%s3375_s0 + $0x230] sm:$0xff]  }
  0x3b   : > { %2761 = vmatprep.subr.bf16.mxu0 %v3114_v59  ;;  %v3133_v59 = vld [vmem:[%s3375_s0 + $0x1e8] sm:$0xff]  }
  0x3e   : > { %2762 = vmatpush3.bf16.msra.mxu0 %v3116_v60 }
  0x3f   : > { %2763 = vmatprep.subr.bf16.mxu0 %v3120_v61 }
  0x41   : > { %2926 = vmatmul.mubr.msk.bf16.gmra.mxu0 %vm486_vm4, %v3073_v39 }
  0x42   : > { %2929 = vmatprep.mubr.msk.bf16.mxu0 %vm3274_vm0, %v3273_v2  ;;  %2764 = vmatpush3.bf16.msra.mxu0 %v3122_v62  ;;  %v3134_v62 = vld [vmem:[%s3375_s0 + $0x1a8] sm:$0xff]  }
  0x43   : > { %2765 = vmatprep.subr.bf16.mxu0 %v3124_v63  ;;  %v3135_v63 = vld [vmem:[%s3375_s0 + $0x228] sm:$0xff]  }
  0x46   : > { %2766 = vmatpush3.bf16.msra.mxu0 %v3126_v0  ;;  %v3136_v0 = vld [vmem:[%s3375_s0 + $0x1e0] sm:$0xff]  }
  0x47   : > { %2949 = vmatprep.subr.bf16.mxu0 %v3273_v2 }
  0x49   : > { %2930 = vmatmul.mubr.msk.bf16.gmra.mxu0 %vm486_vm4, %v3432_v40 }
  0x4a   : > { %2933 = vmatprep.mubr.msk.bf16.mxu0 %vm3274_vm0, %v3273_v2 }
  0x51   : > { %2934 = vmatmul.mubr.msk.bf16.gmra.mxu0 %vm486_vm4, %v3441_v41 }
  0x52   : > { %2937 = vmatprep.mubr.msk.bf16.mxu0 %vm3274_vm0, %v3273_v2 }
  0x59   : > { %2938 = vmatmul.mubr.msk.bf16.gmra.mxu0 %vm486_vm4, %v3450_v42 }
  0x5a   : > { %2941 = vmatprep.mubr.msk.bf16.mxu0 %vm3274_vm0, %v3273_v2 }
  0x61   : > { %2942 = vmatmul.mubr.msk.bf16.gmra.mxu0 %vm486_vm4, %v3459_v43 }
  0x62   : > { %2945 = vmatprep.mubr.msk.bf16.mxu0 %vm3274_vm0, %v3273_v2 }
  0x69   : > { %2946 = vmatmul.mubr.msk.bf16.gmra.mxu0 %vm486_vm4, %v3468_v44 }
  0xe9   : > { %v548_v1 = vpop.f32.mrf.mxu0 }
  0xeb   : > { %v2915_v3 = vpop.f32.mrf.mxu0 }
  0xed   : > { %v551_v4 = vpop.f32.mrf.mxu0 }
  0xee   : > { %v619_v11 = vpack.c.bf16 %v551_v4, %v548_v1  ;;  %v3137_v4 = vld [vmem:[%s3375_s0 + $0x1a0] sm:$0xff]  }
  0xef   : > { %v2916_v5 = vpop.f32.mrf.mxu0 }
  0xf0   : > { %v3138_v5 = vld [vmem:[%s3375_s0 + $0x220] sm:$0xff]  }
  0xf1   : > { %v556_v6 = vpop.f32.mrf.mxu0 }
  0xf3   : > { %v2919_v7 = vpop.f32.mrf.mxu0 }
  0xf5   : > { %v559_v8 = vpop.f32.mrf.mxu0 }
  0xf6   : > { %v620_v9 = vpack.c.bf16 %v559_v8, %v556_v6  ;;  %v3139_v6 = vld [vmem:[%s3375_s0 + $0x1d8] sm:$0xff]  }
  0xf7   : > { %v2920_v12 = vpop.f32.mrf.mxu0 }
  0xf8   : > { %1243 = vmatprep.mubr.bf16.mxu1 %v620_v9  ;;  %v3140_v9 = vld [vmem:[%s3375_s0 + $0x198] sm:$0xff]   ;;  %v3142_v12 = vld [vmem:[%s3375_s0 + $0x1d0] sm:$0xff]  }
  0xf9   : > { %v564_v14 = vpop.f32.mrf.mxu0  ;;  %1244 = vmatmul.mubr.bf16.vlgmr.msra.gmra.mxu1 %v619_v11 }
  0xfa   : > { %2730 = vmatpush3.bf16.msra.mxu1 %v3104_v10  ;;  %v3141_v10 = vld [vmem:[%s3375_s0 + $0x218] sm:$0xff]  }
  0xfb   : > { %v2923_v16 = vpop.f32.mrf.mxu0  ;;  %2731 = vmatprep.subr.bf16.mxu1 %v3105_v13 }
  0xfc   : > { %v3144_v16 = vld [vmem:[%s3375_s0 + $0x210] sm:$0xff]  }
  0xfd   : > { %v567_v18 = vpop.f32.mrf.mxu0 }
  0xfe   : > { %2732 = vmatpush3.bf16.msra.mxu1 %v3106_v15  ;;  %v621_v52 = vpack.c.bf16 %v567_v18, %v564_v14  ;;  %v3143_v15 = vld [vmem:[%s3375_s0 + $0x190] sm:$0xff]  }
  0xff   : > { %v2924_v20 = vpop.f32.mrf.mxu0  ;;  %2733 = vmatprep.subr.bf16.mxu1 %v3108_v17  ;;  %v3145_v17 = vld [vmem:[%s3375_s0 + $0x1c8] sm:$0xff]  }
 0x100   : > { %v3146_v20 = vld [vmem:[%s3375_s0 + $0x188] sm:$0xff]  }
 0x101   : > { %v572_v22 = vpop.f32.mrf.mxu0 }
 0x102   : > { %2734 = vmatpush3.bf16.msra.mxu1 %v3110_v19 }
 0x103   : > { %v2927_v24 = vpop.f32.mrf.mxu0  ;;  %2735 = vmatprep.subr.bf16.mxu1 %v3111_v21  ;;  %v3147_v21 = vld [vmem:[%s3375_s0 + $0x208] sm:$0xff]  }
 0x104   : > { %v3149_v24 = vld [vmem:[%s3375_s0 + $0x180] sm:$0xff]  }
 0x105   : > { %v575_v26 = vpop.f32.mrf.mxu0 }
 0x106   : > { %v622_v27 = vpack.c.bf16 %v575_v26, %v572_v22  ;;  %2736 = vmatpush3.bf16.msra.mxu1 %v3112_v23  ;;  %v3148_v22 = vld [vmem:[%s3375_s0 + $0x1c0] sm:$0xff]  }
 0x107   : > { %v2928_v29 = vpop.f32.mrf.mxu0  ;;  %2737 = vmatprep.subr.bf16.mxu1 %v3113_v25  ;;  %v3150_v25 = vld [vmem:[%s3375_s0 + $0x200] sm:$0xff]  }
 0x108   : > { %1284 = vmatprep.mubr.bf16.mxu1 %v622_v27 }
 0x109   : > { %v580_v31 = vpop.f32.mrf.mxu0 }
 0x10a   : > { %2738 = vmatpush3.bf16.msra.mxu1 %v3115_v28 }
 0x10b   : > { %v2931_v33 = vpop.f32.mrf.mxu0  ;;  %2739 = vmatprep.subr.bf16.mxu1 %v3117_v30 }
 0x10d   : > { %v583_v35 = vpop.f32.mrf.mxu0 }
 0x10e   : > { %2740 = vmatpush3.bf16.msra.mxu1 %v3118_v32  ;;  %v623_v53 = vpack.c.bf16 %v583_v35, %v580_v31 }
 0x10f   : > { %v2932_v37 = vpop.f32.mrf.mxu0  ;;  %2741 = vmatprep.subr.bf16.mxu1 %v3119_v34 }
 0x111   : > { %v588_v39 = vpop.f32.mrf.mxu0 }
 0x112   : > { %2742 = vmatpush3.bf16.msra.mxu1 %v3121_v36 }
 0x113   : > { %v2935_v46 = vpop.f32.mrf.mxu0  ;;  %2743 = vmatprep.subr.bf16.mxu1 %v3123_v38 }
 0x115   : > { %v591_v48 = vpop.f32.mrf.mxu0 }
 0x116   : > { %v624_v49 = vpack.c.bf16 %v591_v48, %v588_v39  ;;  %2744 = vmatpush3.bf16.msra.mxu1 %v3125_v45  ;;  %v2536_v39 = vld [vmem:[%s370_s25] ss:$0 sm:$0xff] }
 0x117   : > { %v2936_v54 = vpop.f32.mrf.mxu0  ;;  %2773 = vmatprep.subr.bf16.mxu1 %v3127_v47 }
 0x118   : > { %1325 = vmatprep.mubr.bf16.mxu0 %v624_v49 }
 0x119   : > { %1285 = vmatmul.mubr.bf16.vlgmr.msra.gmra.mxu1 %v621_v52  ;;  %1326 = vmatmul.mubr.bf16.vlgmr.msra.gmra.mxu0 %v623_v53  ;;  %v3512_v56 = vpop.f32.mrf.mxu0 }
 0x11a   : > { %2774 = vmatpush3.bf16.msra.mxu1 %v3128_v50  ;;  %2950 = vmatpush3.bf16.msra.mxu0 %v3129_v51 }
 0x11b   : > { %2775 = vmatprep.subr.bf16.mxu1 %v3130_v55  ;;  %2951 = vmatprep.subr.bf16.mxu0 %v3273_v2  ;;  %v2939_v60 = vpop.f32.mrf.mxu0 }
 0x11c   : > { %2965 = vmatprep.mubr.msk.bf16.mxu0 %vm3274_vm0, %v3273_v2 }
 0x11d   : > { %v599_v61 = vpop.f32.mrf.mxu0 }
 0x11e   : > { %2776 = vmatpush3.bf16.msra.mxu1 %v3131_v57  ;;  %2952 = vmatpush3.bf16.msra.mxu0 %v3132_v58  ;;  %v625_v27 = vpack.c.bf16 %v599_v61, %v3512_v56 }
 0x11f   : > { %2777 = vmatprep.subr.bf16.mxu1 %v3133_v59  ;;  %2953 = vmatprep.subr.bf16.mxu0 %v3273_v2  ;;  %v2940_v1 = vpop.f32.mrf.mxu0 }
 0x121   : > { %v604_v3 = vpop.f32.mrf.mxu0 }
 0x122   : > { %2778 = vmatpush3.bf16.msra.mxu1 %v3134_v62  ;;  %2954 = vmatpush3.bf16.msra.mxu0 %v3135_v63 }
 0x123   : > { %2779 = vmatprep.subr.bf16.mxu1 %v3136_v0  ;;  %2955 = vmatprep.subr.bf16.mxu0 %v3273_v2  ;;  %v2943_v7 = vpop.f32.mrf.mxu0 }
 0x124   : > { %v3151_v7 = vld [vmem:[%s3380_s30 + $0x78] sm:$0xff]  }
 0x125   : > { %v607_v8 = vpop.f32.mrf.mxu0 }
 0x126   : > { %2780 = vmatpush3.bf16.msra.mxu1 %v3137_v4  ;;  %2956 = vmatpush3.bf16.msra.mxu0 %v3138_v5  ;;  %v626_v11 = vpack.c.bf16 %v607_v8, %v604_v3  ;;  %v3152_v8 = vld [vmem:[%s3380_s30 + $0x38] sm:$0xff]  }
 0x127   : > { %2781 = vmatprep.subr.bf16.mxu1 %v3139_v6  ;;  %2957 = vmatprep.subr.bf16.mxu0 %v3273_v2  ;;  %v2944_v13 = vpop.f32.mrf.mxu0 }
 0x128   : > { %1366 = vmatprep.mubr.bf16.mxu1 %v626_v11  ;;  %v3154_v11 = vld [vmem:[%s3380_s30 + $0x70] sm:$0xff]  }
 0x129   : > { %v612_v14 = vpop.f32.mrf.mxu0  ;;  %v3156_v13 = vld [vmem:[%s3380_s30 + $0x30] sm:$0xff]  }
 0x12a   : > { %2782 = vmatpush3.bf16.msra.mxu1 %v3140_v9  ;;  %2958 = vmatpush3.bf16.msra.mxu0 %v3141_v10 }
 0x12b   : > { %2783 = vmatprep.subr.bf16.mxu1 %v3142_v12  ;;  %2959 = vmatprep.subr.bf16.mxu0 %v3273_v2  ;;  %v2947_v18 = vpop.f32.mrf.mxu0 }
 0x12c   : > { %v3159_v18 = vld [vmem:[%s3380_s30 + $0x60] sm:$0xff]  }
 0x12d   : > { %v615_v19 = vpop.f32.mrf.mxu0 }
 0x12e   : > { %2784 = vmatpush3.bf16.msra.mxu1 %v3143_v15  ;;  %2960 = vmatpush3.bf16.msra.mxu0 %v3144_v16  ;;  %v627_v26 = vpack.c.bf16 %v615_v19, %v612_v14  ;;  %v3157_v14 = vld [vmem:[%s3380_s30 + $0x68] sm:$0xff]  }
 0x12f   : > { %2785 = vmatprep.subr.bf16.mxu1 %v3145_v17  ;;  %2961 = vmatprep.subr.bf16.mxu0 %v3273_v2  ;;  %v2948_v23 = vpop.f32.mrf.mxu0  ;;  %v3158_v17 = vld [vmem:[%s3380_s30 + $0x28] sm:$0xff]  }
 0x132   : > { %2786 = vmatpush3.bf16.msra.mxu1 %v3146_v20  ;;  %2962 = vmatpush3.bf16.msra.mxu0 %v3147_v21  ;;  %v3161_v21 = vld [vmem:[%s3380_s30 + $0x20] sm:$0xff]  }
 0x133   : > { %2787 = vmatprep.subr.bf16.mxu1 %v3148_v22  ;;  %2963 = vmatprep.subr.bf16.mxu0 %v3273_v2  ;;  %v3163_v22 = vld [vmem:[%s3380_s30 + $0x58] sm:$0xff]  }
 0x136   : > { %2788 = vmatpush3.bf16.msra.mxu1 %v3149_v24  ;;  %2964 = vmatpush3.bf16.msra.mxu0 %v3150_v25 }
 0x137   : > { %2969 = vmatprep.subr.bf16.mxu1 %v3273_v2  ;;  %2814 = vmatprep.subr.bf16.mxu0 %v3151_v7  ;;  %v3194_v7 = vld [vmem:[%s3380_s30 + $0x108] sm:$0xff]  }
 0x139   : > { %1367 = vmatmul.mubr.bf16.vlgmr.msra.gmra.mxu1 %v625_v27  ;;  %2966 = vmatmul.mubr.bf16.vlgmr.msra.gmra.mxu0 %v627_v26 }
 0x13a   : > { %2971 = vmatprep.mubr.msk.bf16.mxu1 %vm3274_vm0, %v3273_v2  ;;  %2815 = vmatpush3.bf16.msra.mxu0 %v3152_v8  ;;  %v3197_v8 = vld [vmem:[%s3380_s30 + $0x140] sm:$0xff]  }
 0x13b   : > { %2816 = vmatprep.subr.bf16.mxu0 %v3154_v11 }
 0x13e   : > { %2817 = vmatpush3.bf16.msra.mxu0 %v3156_v13 }
 0x13f   : > { %2818 = vmatprep.subr.bf16.mxu0 %v3157_v14 }
 0x142   : > { %2819 = vmatpush3.bf16.msra.mxu0 %v3158_v17 }
 0x143   : > { %2820 = vmatprep.subr.bf16.mxu0 %v3159_v18  ;;  %v3176_v18 = vld [vmem:[%s3380_s30 + $0xb8] sm:$0xff]  }
 0x146   : > { %2821 = vmatpush3.bf16.msra.mxu0 %v3161_v21  ;;  %v3177_v21 = vld [vmem:[%s3380_s30 + $0xf0] sm:$0xff]  }
 0x147   : > { %2822 = vmatprep.subr.bf16.mxu0 %v3163_v22 }
 0x1b9   : > { %v2723_v28 = vpop.f32.mrf.mxu1 }
 0x1bb   : > { %v2724_v29 = vpop.f32.mrf.mxu1 }
 0x1bc   : > { %v2725_v38 = vadd.f32 %v2724_v29, %v2723_v28 }
 0x1bd   : > { %v2726_v30 = vpop.f32.mrf.mxu1 }
 0x1be   : > { %v1246_v49 = vadd.f32 %v2725_v38, %v2536_v39 }
 0x1bf   : > { %v2727_v31 = vpop.f32.mrf.mxu1 }
 0x1c0   : > { %v2728_v46 = vadd.f32 %v2727_v31, %v2726_v30 }
 0x1c2   : > { %v1249_v53 = vadd.f32 %v2728_v46, %v2536_v39 }
 0x1d9   : > { %v2745_v32 = vpop.f32.mrf.mxu1  ;;  %v2767_v33 = vpop.f32.mrf.mxu0 }
 0x1db   : > { %v2746_v34 = vpop.f32.mrf.mxu1  ;;  %v2768_v35 = vpop.f32.mrf.mxu0 }
 0x1dc   : > { %v2747_v47 = vadd.f32 %v2746_v34, %v2745_v32  ;;  %v2769_v55 = vadd.f32 %v2768_v35, %v2767_v33 }
 0x1dd   : > { %v2748_v36 = vpop.f32.mrf.mxu1  ;;  %v2770_v37 = vpop.f32.mrf.mxu0 }
 0x1de   : > { %v1287_v54 = vadd.f32 %v2747_v47, %v1246_v49  ;;  %v3153_v49 = vld [vmem:[%s3380_s30 + $0x178] sm:$0xff]  }
 0x1df   : > { %v2749_v45 = vpop.f32.mrf.mxu1  ;;  %v2771_v48 = vpop.f32.mrf.mxu0 }
 0x1e0   : > { %v2750_v50 = vadd.f32 %v2749_v45, %v2748_v36  ;;  %v2772_v59 = vadd.f32 %v2771_v48, %v2770_v37  ;;  %v1328_v63 = vadd.f32 %v2769_v55, %v1287_v54  ;;  %v3162_v54 = vld [vmem:[%s3380_s30 + $0x130] sm:$0xff]   ;;  %v3228_v55 = vld [vmem:[%s3704_s2 + $0x8] sm:$0xff]  }
 0x1e2   : > { %v1290_v58 = vadd.f32 %v2750_v50, %v1249_v53  ;;  %v3227_v53 = vld [vmem:[%s3704_s2] sm:$0xff]  }
 0x1e4   : > { %v1331_v3 = vadd.f32 %v2772_v59, %v1290_v58  ;;  %v3166_v58 = vld [vmem:[%s3380_s30 + $0x10] sm:$0xff]   ;;  %v3168_v59 = vld [vmem:[%s3380_s30 + $0x128] sm:$0xff]  }
 0x1f9   : > { %v2789_v51 = vpop.f32.mrf.mxu1  ;;  %v1409_v52 = vpop.f32.mrf.mxu0 }
 0x1fb   : > { %v2790_v56 = vpop.f32.mrf.mxu1  ;;  %v2967_v57 = vpop.f32.mrf.mxu0 }
 0x1fc   : > { %v2791_v60 = vadd.f32 %v2790_v56, %v2789_v51  ;;  %v3155_v51 = vld [vmem:[%s3380_s30 + $0x138] sm:$0xff]   ;;  %v3229_v56 = vld [vmem:[%s3704_s2 + $0x10] sm:$0xff]  }
 0x1fd   : > { %v2792_v61 = vpop.f32.mrf.mxu1  ;;  %v1412_v62 = vpop.f32.mrf.mxu0  ;;  %v3230_v57 = vld [vmem:[%s3704_s2 + $0x18] sm:$0xff]  }
 0x1fe   : > { %v1369_v4 = vadd.f32 %v2791_v60, %v1328_v63  ;;  %v3170_v60 = vld [vmem:[%s3380_s30 + $0x8] sm:$0xff]   ;;  %v3175_v63 = vld [vmem:[%s3380_s30 + $0xf8] sm:$0xff]  }
 0x1ff   : > { %v2793_v0 = vpop.f32.mrf.mxu1  ;;  %v2968_v1 = vpop.f32.mrf.mxu0 }
 0x200   : > { %v2794_v5 = vadd.f32 %v2793_v0, %v2792_v61  ;;  %v1410_v9 = vadd.f32 %v1409_v52, %v1369_v4  ;;  %v3160_v52 = vld [vmem:[%s3380_s30 + $0x170] sm:$0xff]   ;;  %v3172_v61 = vld [vmem:[%s3380_s30] sm:$0xff]   ;;  %v3179_v1 = vld [vmem:[%s3380_s30 + $0x158] sm:$0xff]  }
 0x201   : > { %v3174_v0 = vld [vmem:[%s3380_s30 + $0x120] sm:$0xff]   ;;  %v3186_v4 = vld [vmem:[%s3380_s30 + $0x150] sm:$0xff]  }
 0x202   : > { %v1372_v6 = vadd.f32 %v2794_v5, %v1331_v3  ;;  %v3181_v3 = vld [vmem:[%s3380_s30 + $0x118] sm:$0xff]   ;;  %v3188_v5 = vld [vmem:[%s3380_s30 + $0x110] sm:$0xff]  }
 0x204   : > { %v1413_v10 = vadd.f32 %v1412_v62, %v1372_v6  ;;  %v3173_v62 = vld [vmem:[%s3380_s30 + $0x160] sm:$0xff]   ;;  %v3193_v6 = vld [vmem:[%s3380_s30 + $0x148] sm:$0xff]  }
 0x206   : > { %v1416_v12 = vadd.f32 %v1413_v10, %v1410_v9 }
 0x208   : > { %v1417_v15 = vrot.slane %v1416_v12, 4 }
 0x20a   : > { %v1418_v16 = vadd.f32 %v1417_v15, %v1416_v12 }
 0x20c   : > { %v1419_v19 = vrot.slane %v1418_v16, 2 }
 0x20e   : > { %v1420_v20 = vadd.f32 %v1419_v19, %v1418_v16 }
 0x210   : > { %v1421_v23 = vrot.slane %v1420_v20, 1 }
 0x212   : > { %v1422_v24 = vadd.f32 %v1421_v23, %v1420_v20  ;;  %v3178_v23 = vld [vmem:[%s3380_s30 + $0xb0] sm:$0xff]  }
 0x214   : > { %v1424_v25 = vmul.f32 0.0625, %v1422_v24 }
 0x216   : > { %v1425_v26 = vsub.f32 %v1410_v9, %v1424_v25  ;;  %v1426_v27 = vsub.f32 %v1413_v10, %v1424_v25  ;;  %v3198_v9 = vld [vmem:[%s3380_s30 + $0x100] sm:$0xff]   ;;  %v3180_v25 = vld [vmem:[%s3380_s30 + $0xe8] sm:$0xff]  }
 0x218   : > { %v1427_v28 = vmul.f32 %v1425_v26, %v1425_v26  ;;  %v1428_v29 = vmul.f32 %v1426_v27, %v1426_v27 }
 0x21a   : > { %v1429_v30 = vadd.f32 %v1428_v29, %v1427_v28  ;;  %v3183_v29 = vld [vmem:[%s3380_s30 + $0xe0] sm:$0xff]  }
 0x21c   : > { %v1430_v31 = vrot.slane %v1429_v30, 4 }
 0x21e   : > { %v1431_v32 = vadd.f32 %v1430_v31, %v1429_v30  ;;  %v3184_v31 = vld [vmem:[%s3380_s30 + $0xa0] sm:$0xff]  }
 0x220   : > { %v1432_v33 = vrot.slane %v1431_v32, 2 }
 0x222   : > { %v1433_v34 = vadd.f32 %v1432_v33, %v1431_v32  ;;  %v3185_v33 = vld [vmem:[%s3380_s30 + $0xd8] sm:$0xff]  }
 0x224   : > { %v1434_v35 = vrot.slane %v1433_v34, 1 }
 0x226   : > { %v1435_v36 = vadd.f32 %v1434_v35, %v1433_v34 }
 0x228   : > { %v1436_v37 = vmul.f32 0.0625, %v1435_v36  ;;  %v3187_v36 = vld [vmem:[%s3380_s30 + $0x98] sm:$0xff]  }
 0x22a   : > { %v1437_v38 = vadd.f32 1e-05, %v1436_v37 }
 0x22c   : > { %3223 = vrsqrt.f32 %v1437_v38  ;;  %v3189_v38 = vld [vmem:[%s3380_s30 + $0xd0] sm:$0xff]  }
 0x239   : > { %v3224_v39 = vpop.eup %3223 }
 0x23a   : > { %v1440_v45 = vmul.f32 %v3224_v39, %v1426_v27  ;;  %v1439_v46 = vmul.f32 %v3224_v39, %v1425_v26  ;;  %v3182_v27 = vld [vmem:[%s3380_s30 + $0xa8] sm:$0xff]  }
 0x23c   : > { %v1442_v47 = vmax.f32 %v1440_v45, 0.0  ;;  %v1441_v48 = vmax.f32 %v1439_v46, 0.0  ;;  %v3190_v45 = vld [vmem:[%s3380_s30 + $0x90] sm:$0xff]  }
 0x23e   : > { %v1443_v50 = vpack.c.bf16 %v1442_v47, %v1441_v48  ;;  %v3191_v47 = vld [vmem:[%s3380_s30 + $0xc8] sm:$0xff]  }
 0x240   : > { %2970 = vmatpush3.bf16.msra.mxu1 %v1443_v50 }
 0x241   : > { %2858 = vmatprep.subr.bf16.mxu1 %v3153_v49  ;;  %v3192_v49 = vld [vmem:[%s3380_s30 + $0x88] sm:$0xff]  }
 0x243   : > { %2972 = vmatmul.mubr.msk.bf16.vlgmr.msra.gmra.mxu1 %vm486_vm4, %v3227_v53  ;;  %v3196_v53 = vld [vmem:[%s3380_s30 + $0x80] sm:$0xff]  }
 0x244   : > { %2975 = vmatprep.mubr.msk.bf16.mxu1 %vm3274_vm0, %v3273_v2  ;;  %2859 = vmatpush3.bf16.msra.mxu1 %v3155_v51  ;;  %v3195_v51 = vld [vmem:[%s3380_s30 + $0xc0] sm:$0xff]  }
 0x245   : > { %2860 = vmatprep.subr.bf16.mxu1 %v3160_v52 }
 0x248   : > { %2861 = vmatpush3.bf16.msra.mxu1 %v3162_v54 }
 0x24b   : > { %2976 = vmatmul.mubr.msk.bf16.gmra.mxu1 %vm486_vm4, %v3228_v55  ;;  %v3199_v55 = vld [vmem:[%s3380_s30 + $0x1f8] sm:$0xff]  }
 0x24c   : > { %2979 = vmatprep.mubr.msk.bf16.mxu1 %vm3274_vm0, %v3273_v2 }
 0x253   : > { %2980 = vmatmul.mubr.msk.bf16.gmra.mxu1 %vm486_vm4, %v3229_v56 }
 0x254   : > { %2983 = vmatprep.mubr.msk.bf16.mxu1 %vm3274_vm0, %v3273_v2 }
 0x25b   : > { %2984 = vmatmul.mubr.msk.bf16.gmra.mxu1 %vm486_vm4, %v3230_v57 }
 0x25c   : > { %2987 = vmatprep.mubr.msk.bf16.mxu1 %vm3274_vm0, %v3273_v2 }
 0x263   : > { %2988 = vmatmul.mubr.msk.bf16.gmra.mxu1 %vm486_vm4, %v3432_v40  ;;  %v3164_v40 = vld [vmem:[%s3380_s30 + $0x18] sm:$0xff]  }
 0x264   : > { %2991 = vmatprep.mubr.msk.bf16.mxu1 %vm3274_vm0, %v3273_v2  ;;  %2823 = vmatpush3.bf16.msra.mxu0 %v3164_v40  ;;  %v3200_v40 = vld [vmem:[%s3380_s30 + $0x1b8] sm:$0xff]  }
 0x26b   : > { %2992 = vmatmul.mubr.msk.bf16.gmra.mxu1 %vm486_vm4, %v3441_v41  ;;  %v3165_v41 = vld [vmem:[%s3380_s30 + $0x50] sm:$0xff]  }
 0x26c   : > { %2995 = vmatprep.mubr.msk.bf16.mxu1 %vm3274_vm0, %v3273_v2  ;;  %2824 = vmatprep.subr.bf16.mxu0 %v3165_v41  ;;  %v3201_v41 = vld [vmem:[%s3380_s30 + $0x238] sm:$0xff]  }
 0x26d   : > { %2825 = vmatpush3.bf16.msra.mxu0 %v3166_v58 }
 0x273   : > { %2996 = vmatmul.mubr.msk.bf16.gmra.mxu1 %vm486_vm4, %v3450_v42  ;;  %v3167_v42 = vld [vmem:[%s3380_s30 + $0x168] sm:$0xff]  }
 0x274   : > { %2999 = vmatprep.mubr.msk.bf16.mxu1 %vm3274_vm0, %v3273_v2  ;;  %2862 = vmatprep.subr.bf16.mxu1 %v3167_v42 }
 0x275   : > { %2863 = vmatpush3.bf16.msra.mxu1 %v3168_v59 }
 0x276   : > { %2864 = vmatprep.subr.bf16.mxu1 %v3173_v62  ;;  %v3205_v62 = vld [vmem:[%s3380_s30 + $0x1e8] sm:$0xff]  }
 0x279   : > { %2865 = vmatpush3.bf16.msra.mxu1 %v3174_v0 }
 0x27a   : > { %2866 = vmatprep.subr.bf16.mxu1 %v3179_v1  ;;  %v3206_v1 = vld [vmem:[%s3380_s30 + $0x1a8] sm:$0xff]  }
 0x27b   : > { %3000 = vmatmul.mubr.msk.bf16.gmra.mxu1 %vm486_vm4, %v3459_v43  ;;  %v3169_v43 = vld [vmem:[%s3380_s30 + $0x48] sm:$0xff]  }
 0x27c   : > { %3003 = vmatprep.mubr.msk.bf16.mxu1 %vm3274_vm0, %v3273_v2  ;;  %2826 = vmatprep.subr.bf16.mxu0 %v3169_v43  ;;  %v3202_v43 = vld [vmem:[%s3380_s30 + $0x1f0] sm:$0xff]  }
 0x27d   : > { %2827 = vmatpush3.bf16.msra.mxu0 %v3170_v60  ;;  %2867 = vmatpush3.bf16.msra.mxu1 %v3181_v3  ;;  %v3207_v3 = vld [vmem:[%s3380_s30 + $0x228] sm:$0xff]  }
 0x27e   : > { %2868 = vmatprep.subr.bf16.mxu1 %v3186_v4  ;;  %v3208_v4 = vld [vmem:[%s3380_s30 + $0x1e0] sm:$0xff]  }
 0x281   : > { %2869 = vmatpush3.bf16.msra.mxu1 %v3188_v5 }
 0x282   : > { %2870 = vmatprep.subr.bf16.mxu1 %v3193_v6 }
 0x283   : > { %3004 = vmatmul.mubr.msk.bf16.gmra.mxu1 %vm486_vm4, %v3468_v44  ;;  %v3171_v44 = vld [vmem:[%s3380_s30 + $0x40] sm:$0xff]  }
 0x284   : > { %2828 = vmatprep.subr.bf16.mxu0 %v3171_v44  ;;  %v3203_v44 = vld [vmem:[%s3380_s30 + $0x1b0] sm:$0xff]  }
 0x285   : > { %2829 = vmatpush3.bf16.msra.mxu0 %v3172_v61  ;;  %2871 = vmatpush3.bf16.msra.mxu1 %v3194_v7  ;;  %v3204_v61 = vld [vmem:[%s3380_s30 + $0x230] sm:$0xff]   ;;  %v3209_v7 = vld [vmem:[%s3380_s30 + $0x1a0] sm:$0xff]  }
 0x286   : > { %2836 = vmatprep.subr.bf16.mxu0 %v3175_v63  ;;  %2872 = vmatprep.subr.bf16.mxu1 %v3197_v8  ;;  %v3210_v8 = vld [vmem:[%s3380_s30 + $0x220] sm:$0xff]  }
 0x289   : > { %2873 = vmatpush3.bf16.msra.mxu1 %v3198_v9  ;;  %v3211_v9 = vld [vmem:[%s3380_s30 + $0x1d8] sm:$0xff]  }
 0x28a   : > { %3007 = vmatprep.subr.bf16.mxu1 %v3273_v2 }
 0x303   : > { %v1478_v10 = vpop.f32.mrf.mxu1 }
 0x305   : > { %v2973_v11 = vpop.f32.mrf.mxu1 }
 0x307   : > { %v1481_v12 = vpop.f32.mrf.mxu1 }
 0x308   : > { %v1549_v19 = vpack.c.bf16 %v1481_v12, %v1478_v10  ;;  %v3212_v12 = vld [vmem:[%s3380_s30 + $0x198] sm:$0xff]  }
 0x309   : > { %v2974_v13 = vpop.f32.mrf.mxu1 }
 0x30a   : > { %v3213_v13 = vld [vmem:[%s3380_s30 + $0x218] sm:$0xff]  }
 0x30b   : > { %v1486_v14 = vpop.f32.mrf.mxu1 }
 0x30d   : > { %v2977_v15 = vpop.f32.mrf.mxu1 }
 0x30e   : > { %v3214_v15 = vld [vmem:[%s3380_s30 + $0x1d0] sm:$0xff]  }
 0x30f   : > { %v1489_v16 = vpop.f32.mrf.mxu1 }
 0x310   : > { %v1550_v17 = vpack.c.bf16 %v1489_v16, %v1486_v14 }
 0x311   : > { %v2978_v20 = vpop.f32.mrf.mxu1 }
 0x312   : > { %2173 = vmatprep.mubr.bf16.mxu0 %v1550_v17  ;;  %v3217_v20 = vld [vmem:[%s3380_s30 + $0x1c8] sm:$0xff]  }
 0x313   : > { %v1494_v22 = vpop.f32.mrf.mxu1  ;;  %2174 = vmatmul.mubr.bf16.vlgmr.msra.gmra.mxu0 %v1549_v19  ;;  %v3216_v19 = vld [vmem:[%s3380_s30 + $0x210] sm:$0xff]  }
 0x314   : > { %2837 = vmatpush3.bf16.msra.mxu0 %v3176_v18  ;;  %v3215_v18 = vld [vmem:[%s3380_s30 + $0x190] sm:$0xff]  }
 0x315   : > { %v2981_v24 = vpop.f32.mrf.mxu1  ;;  %2838 = vmatprep.subr.bf16.mxu0 %v3177_v21 }
 0x316   : > { %v3219_v24 = vld [vmem:[%s3380_s30 + $0x208] sm:$0xff]  }
 0x317   : > { %v1497_v26 = vpop.f32.mrf.mxu1 }
 0x318   : > { %2839 = vmatpush3.bf16.msra.mxu0 %v3178_v23  ;;  %v1551_v58 = vpack.c.bf16 %v1497_v26, %v1494_v22  ;;  %v3218_v23 = vld [vmem:[%s3380_s30 + $0x188] sm:$0xff]  }
 0x319   : > { %v2982_v28 = vpop.f32.mrf.mxu1  ;;  %2840 = vmatprep.subr.bf16.mxu0 %v3180_v25  ;;  %v3220_v25 = vld [vmem:[%s3380_s30 + $0x1c0] sm:$0xff]  }
 0x31a   : > { %v3222_v28 = vld [vmem:[%s3380_s30 + $0x200] sm:$0xff]  }
 0x31b   : > { %v1502_v30 = vpop.f32.mrf.mxu1 }
 0x31c   : > { %2841 = vmatpush3.bf16.msra.mxu0 %v3182_v27  ;;  %v3221_v27 = vld [vmem:[%s3380_s30 + $0x180] sm:$0xff]  }
 0x31d   : > { %v2985_v32 = vpop.f32.mrf.mxu1  ;;  %2842 = vmatprep.subr.bf16.mxu0 %v3183_v29 }
 0x31f   : > { %v1505_v34 = vpop.f32.mrf.mxu1 }
 0x320   : > { %v1552_v35 = vpack.c.bf16 %v1505_v34, %v1502_v30  ;;  %2843 = vmatpush3.bf16.msra.mxu0 %v3184_v31 }
 0x321   : > { %v2986_v37 = vpop.f32.mrf.mxu1  ;;  %2844 = vmatprep.subr.bf16.mxu0 %v3185_v33 }
 0x322   : > { %2214 = vmatprep.mubr.bf16.mxu0 %v1552_v35 }
 0x323   : > { %v1510_v39 = vpop.f32.mrf.mxu1 }
 0x324   : > { %2845 = vmatpush3.bf16.msra.mxu0 %v3187_v36 }
 0x325   : > { %v2989_v46 = vpop.f32.mrf.mxu1  ;;  %2846 = vmatprep.subr.bf16.mxu0 %v3189_v38 }
 0x327   : > { %v1513_v48 = vpop.f32.mrf.mxu1 }
 0x328   : > { %2847 = vmatpush3.bf16.msra.mxu0 %v3190_v45  ;;  %v1553_v42 = vpack.c.bf16 %v1513_v48, %v1510_v39 }
 0x329   : > { %v2990_v50 = vpop.f32.mrf.mxu1  ;;  %2848 = vmatprep.subr.bf16.mxu0 %v3191_v47 }
 0x32b   : > { %v1518_v52 = vpop.f32.mrf.mxu1 }
 0x32c   : > { %2849 = vmatpush3.bf16.msra.mxu0 %v3192_v49 }
 0x32d   : > { %v2993_v54 = vpop.f32.mrf.mxu1  ;;  %2850 = vmatprep.subr.bf16.mxu0 %v3195_v51 }
 0x32f   : > { %v1521_v56 = vpop.f32.mrf.mxu1 }
 0x330   : > { %v1554_v57 = vpack.c.bf16 %v1521_v56, %v1518_v52  ;;  %2851 = vmatpush3.bf16.msra.mxu0 %v3196_v53 }
 0x331   : > { %2880 = vmatprep.subr.bf16.mxu0 %v3199_v55  ;;  %v2994_v59 = vpop.f32.mrf.mxu1 }
 0x332   : > { %2255 = vmatprep.mubr.bf16.mxu1 %v1554_v57 }
 0x333   : > { %2215 = vmatmul.mubr.bf16.vlgmr.msra.gmra.mxu0 %v1551_v58  ;;  %2256 = vmatmul.mubr.bf16.vlgmr.msra.gmra.mxu1 %v1553_v42  ;;  %v3647_v60 = vpop.f32.mrf.mxu1 }
 0x334   : > { %2881 = vmatpush3.bf16.msra.mxu0 %v3200_v40  ;;  %3008 = vmatpush3.bf16.msra.mxu1 %v3201_v41 }
 0x335   : > { %2882 = vmatprep.subr.bf16.mxu0 %v3202_v43  ;;  %3009 = vmatprep.subr.bf16.mxu1 %v3273_v2  ;;  %v2997_v63 = vpop.f32.mrf.mxu1 }
 0x336   : > { %3023 = vmatprep.mubr.msk.bf16.mxu1 %vm3274_vm0, %v3273_v2 }
 0x337   : > { %v1529_v0 = vpop.f32.mrf.mxu1 }
 0x338   : > { %2883 = vmatpush3.bf16.msra.mxu0 %v3203_v44  ;;  %3010 = vmatpush3.bf16.msra.mxu1 %v3204_v61  ;;  %v1555_v30 = vpack.c.bf16 %v1529_v0, %v3647_v60 }
 0x339   : > { %2884 = vmatprep.subr.bf16.mxu0 %v3205_v62  ;;  %3011 = vmatprep.subr.bf16.mxu1 %v3273_v2  ;;  %v2998_v5 = vpop.f32.mrf.mxu1 }
 0x33b   : > { %v1534_v6 = vpop.f32.mrf.mxu1 }
 0x33c   : > { %2885 = vmatpush3.bf16.msra.mxu0 %v3206_v1  ;;  %3012 = vmatpush3.bf16.msra.mxu1 %v3207_v3 }
 0x33d   : > { %2886 = vmatprep.subr.bf16.mxu0 %v3208_v4  ;;  %3013 = vmatprep.subr.bf16.mxu1 %v3273_v2  ;;  %v3001_v10 = vpop.f32.mrf.mxu1 }
 0x33f   : > { %v1537_v11 = vpop.f32.mrf.mxu1 }
 0x340   : > { %2887 = vmatpush3.bf16.msra.mxu0 %v3209_v7  ;;  %3014 = vmatpush3.bf16.msra.mxu1 %v3210_v8  ;;  %v1556_v14 = vpack.c.bf16 %v1537_v11, %v1534_v6 }
 0x341   : > { %2888 = vmatprep.subr.bf16.mxu0 %v3211_v9  ;;  %3015 = vmatprep.subr.bf16.mxu1 %v3273_v2  ;;  %v3002_v16 = vpop.f32.mrf.mxu1 }
 0x342   : > { %2296 = vmatprep.mubr.bf16.mxu0 %v1556_v14 }
 0x343   : > { %v1542_v17 = vpop.f32.mrf.mxu1 }
 0x344   : > { %2889 = vmatpush3.bf16.msra.mxu0 %v3212_v12  ;;  %3016 = vmatpush3.bf16.msra.mxu1 %v3213_v13 }
 0x345   : > { %2890 = vmatprep.subr.bf16.mxu0 %v3214_v15  ;;  %3017 = vmatprep.subr.bf16.mxu1 %v3273_v2  ;;  %v3005_v21 = vpop.f32.mrf.mxu1 }
 0x347   : > { %v1545_v22 = vpop.f32.mrf.mxu1 }
 0x348   : > { %2891 = vmatpush3.bf16.msra.mxu0 %v3215_v18  ;;  %3018 = vmatpush3.bf16.msra.mxu1 %v3216_v19  ;;  %v1557_v29 = vpack.c.bf16 %v1545_v22, %v1542_v17 }
 0x349   : > { %2892 = vmatprep.subr.bf16.mxu0 %v3217_v20  ;;  %3019 = vmatprep.subr.bf16.mxu1 %v3273_v2  ;;  %v3006_v26 = vpop.f32.mrf.mxu1 }
 0x34c   : > { %2893 = vmatpush3.bf16.msra.mxu0 %v3218_v23  ;;  %3020 = vmatpush3.bf16.msra.mxu1 %v3219_v24 }
 0x34d   : > { %2894 = vmatprep.subr.bf16.mxu0 %v3220_v25  ;;  %3021 = vmatprep.subr.bf16.mxu1 %v3273_v2  ;;  %v2618_v2 = vld [vmem:[%s378_s9] ss:$0 sm:$0xff] }
 0x350   : > { %2895 = vmatpush3.bf16.msra.mxu0 %v3221_v27  ;;  %3022 = vmatpush3.bf16.msra.mxu1 %v3222_v28 }
 0x353   : > { %2297 = vmatmul.mubr.bf16.vlgmr.msra.gmra.mxu0 %v1555_v30  ;;  %3024 = vmatmul.mubr.bf16.vlgmr.msra.gmra.mxu1 %v1557_v29  ;;  %v3231_v30 = vld [vmem:[#allocation2] sm:$0xff] }
 0x3d3   : > { %v2830_v31 = vpop.f32.mrf.mxu0 }
 0x3d5   : > { %v2831_v32 = vpop.f32.mrf.mxu0 }
 0x3d6   : > { %v2832_v46 = vadd.f32 %v2831_v32, %v2830_v31  ;;  %v3232_v32 = vld [vmem:[#allocation2 + $0x8] sm:$0xff] }
 0x3d7   : > { %v2833_v33 = vpop.f32.mrf.mxu0 }
 0x3d8   : > { %v2176_v51 = vadd.f32 %v2832_v46, %v2618_v2 }
 0x3d9   : > { %v2834_v34 = vpop.f32.mrf.mxu0 }
 0x3da   : > { %v2835_v48 = vadd.f32 %v2834_v34, %v2833_v33 }
 0x3dc   : > { %v2179_v55 = vadd.f32 %v2835_v48, %v2618_v2 }
 0x3f3   : > { %v2852_v35 = vpop.f32.mrf.mxu0  ;;  %v2874_v36 = vpop.f32.mrf.mxu1 }
 0x3f5   : > { %v2853_v37 = vpop.f32.mrf.mxu0  ;;  %v2875_v38 = vpop.f32.mrf.mxu1 }
 0x3f6   : > { %v2854_v49 = vadd.f32 %v2853_v37, %v2852_v35  ;;  %v2876_v57 = vadd.f32 %v2875_v38, %v2874_v36 }
 0x3f7   : > { %v2855_v39 = vpop.f32.mrf.mxu0  ;;  %v2877_v45 = vpop.f32.mrf.mxu1 }
 0x3f8   : > { %v2217_v56 = vadd.f32 %v2854_v49, %v2176_v51 }
 0x3f9   : > { %v2856_v47 = vpop.f32.mrf.mxu0  ;;  %v2878_v50 = vpop.f32.mrf.mxu1 }
 0x3fa   : > { %v2857_v52 = vadd.f32 %v2856_v47, %v2855_v39  ;;  %v2879_v42 = vadd.f32 %v2878_v50, %v2877_v45  ;;  %v2258_v44 = vadd.f32 %v2876_v57, %v2217_v56 }
 0x3fc   : > { %v2220_v58 = vadd.f32 %v2857_v52, %v2179_v55 }
 0x3fe   : > { %v2261_v63 = vadd.f32 %v2879_v42, %v2220_v58 }
 0x413   : > { %v2896_v53 = vpop.f32.mrf.mxu0  ;;  %v2339_v54 = vpop.f32.mrf.mxu1 }
 0x415   : > { %v2897_v40 = vpop.f32.mrf.mxu0  ;;  %v3025_v41 = vpop.f32.mrf.mxu1 }
 0x416   : > { %v2898_v59 = vadd.f32 %v2897_v40, %v2896_v53 }
 0x417   : > { %v2899_v43 = vpop.f32.mrf.mxu0  ;;  %v2342_v60 = vpop.f32.mrf.mxu1 }
 0x418   : > { %v2299_v0 = vadd.f32 %v2898_v59, %v2258_v44 }
 0x419   : > { %v2900_v61 = vpop.f32.mrf.mxu0  ;;  %v3026_v62 = vpop.f32.mrf.mxu1 }
 0x41a   : > { %v2901_v1 = vadd.f32 %v2900_v61, %v2899_v43  ;;  %v2340_v4 = vadd.f32 %v2339_v54, %v2299_v0 }
 0x41c   : > { %v2302_v3 = vadd.f32 %v2901_v1, %v2261_v63 }
 0x41e   : > { %v2343_v5 = vadd.f32 %v2342_v60, %v2302_v3 }
 0x420   : > { %v2346_v6 = vadd.f32 %v2343_v5, %v2340_v4 }
 0x422   : > { %v2347_v7 = vrot.slane %v2346_v6, 4 }
 0x424   : > { %v2348_v8 = vadd.f32 %v2347_v7, %v2346_v6 }
 0x426   : > { %v2349_v9 = vrot.slane %v2348_v8, 2 }
 0x428   : > { %v2350_v10 = vadd.f32 %v2349_v9, %v2348_v8 }
 0x42a   : > { %v2351_v11 = vrot.slane %v2350_v10, 1 }
 0x42c   : > { %v2352_v12 = vadd.f32 %v2351_v11, %v2350_v10 }
 0x42e   : > { %v2353_v13 = vmul.f32 0.0625, %v2352_v12 }
 0x430   : > { %v2354_v14 = vsub.f32 %v2340_v4, %v2353_v13  ;;  %v2355_v15 = vsub.f32 %v2343_v5, %v2353_v13 }
 0x432   : > { %v2356_v16 = vmul.f32 %v2354_v14, %v2354_v14  ;;  %v2357_v17 = vmul.f32 %v2355_v15, %v2355_v15 }
 0x434   : > { %v2358_v18 = vadd.f32 %v2357_v17, %v2356_v16 }
 0x436   : > { %v2359_v19 = vrot.slane %v2358_v18, 4 }
 0x438   : > { %v2360_v20 = vadd.f32 %v2359_v19, %v2358_v18 }
 0x43a   : > { %v2361_v21 = vrot.slane %v2360_v20, 2 }
 0x43c   : > { %v2362_v22 = vadd.f32 %v2361_v21, %v2360_v20 }
 0x43e   : > { %v2363_v23 = vrot.slane %v2362_v22, 1 }
 0x440   : > { %v2364_v24 = vadd.f32 %v2363_v23, %v2362_v22 }
 0x442   : > { %v2365_v25 = vmul.f32 0.0625, %v2364_v24 }
 0x444   : > { %v2366_v26 = vadd.f32 1e-05, %v2365_v25 }
 0x446   : > { %3225 = vrsqrt.f32 %v2366_v26 }
 0x453   : > { %v3226_v27 = vpop.eup %3225 }
 0x454   : > { %v2368_v28 = vmul.f32 %v3226_v27, %v2354_v14  ;;  %v2369_v29 = vmul.f32 %v3226_v27, %v2355_v15  ;;  %2377 = sbr.rel (%p2691_p12) target bundleno = 1114 (0x45a), region = 56 }
 0x456   : > { %v2370_v31 = vadd.f32 %v3231_v30, %v2368_v28  ;;  %v2371_v33 = vadd.f32 %v3232_v32, %v2369_v29 }
 0x458   : > { %2372 = vst [vmem:[#allocation2] sm:$0xff] %v2370_v31  ;;  %2373 = vst [vmem:[#allocation2 + $0x8] sm:$0xff] %v2371_v33 }
 0x459   : > { %2378 = vst [vmem:[%s3355_s15] sm:$0xff] %v2370_v31  ;;  %2379 = vst [vmem:[%s3355_s15 + $0x8] sm:$0xff] %v2371_v33 }
 0x45a PF: > { %s17_s28 = sadd.s32 1, %s3271_s28   ;;  %s3715_s16 = sld [smem:[#allocation3_spill]] }
 0x45b   : > { %p14_p13 = scmp.ge.s32.totalorder %s17_s28, 20   ;;  %s3716_s24 = smov %s3263_s26 }
 0x45c   : > { %s3717_s25 = smov %s3267_s27  ;;  %s3718_s26 = smov %s3721_s29 }
 0x45d   :  { %16 = sbr.rel (!%p14_p13) target bundleno = 4 (0x4), region = 103 }
 0x460   : > { %s3719_s27 = smov %s3715_s16 }

// kernel: generator_f2s.17
= control target key start
LH: loop header
LB: loop body
LE: loop exit
PB: predicated region body
PF: predicated region fallthrough
CT: control target
= control target key end

     0   :  { %s3387_s27 = smov 0   ;;  %s3389_s28 = smov 0   ;;  %s3782_s0 = inlined_call_operand.vmem [shape: f32[2,16,128], index: 0, kind: input, shape index: {}]   ;;  %s3783_s1 = inlined_call_operand.vmem [shape: bf16[144,16], index: 1, kind: input, shape index: {}]   ;;  %s3784_s2 = inlined_call_operand.vmem [shape: bf16[9,1152,128], index: 2, kind: input, shape index: {}]   ;;  %s3785_s3 = inlined_call_operand.vmem [shape: f32[9,1,128], index: 3, kind: input, shape index: {}]   ;;  %s3786_s4 = inlined_call_operand.vmem [shape: bf16[9,1152,128], index: 4, kind: input, shape index: {}]   ;;  %s3787_s5 = inlined_call_operand.vmem [shape: f32[9,1,128], index: 5, kind: input, shape index: {}]   ;;  %s3788_s6 = inlined_call_operand.vmem [shape: f32[2,16,128], index: 6, kind: output, shape index: {0}]   ;;  %s3789_s7 = inlined_call_operand.vmem [shape: f32[2,16,128], index: 7, kind: output, shape index: {1}]   ;;  %s3790_s8 = inlined_call_operand.vmem [shape: f32[2,16,128], index: 8, kind: output, shape index: {2}]  }
   0x1   :  { %3791 = sst [smem:[#allocation5_spill]] %s3782_s0  ;;  %s3391_s29 = smov 0  }
   0x2   :  { %s3393_s30 = smov 0   ;;  %s3395_s9 = smov 0  }
   0x3 LB: > { %s28_s10 = sadd.s32 1, %s3330_s29  ;;  %s31_s11 = sadd.s32 1, %s3334_s30  ;;  %s3338_s9 = sphi %s3395_s9, %s19_s9   ;;  %s3334_s30 = sphi %s3393_s30, %s3801_s30   ;;  %s3330_s29 = sphi %s3391_s29, %s3800_s29   ;;  %s3326_s28 = sphi %s3389_s28, %s3799_s28   ;;  %s3322_s27 = sphi %s3387_s27, %s3798_s27  }
   0x4   : > { %p29_p0 = scmp.ge.s32.totalorder %s28_s10, 9  ;;  %p2569_p1 = scmp.ge.s32.totalorder %s3338_s9, 1 }
   0x5   : > { %p315_p2 = scmp.lt.s32.totalorder %s3338_s9, 19 }
   0x6   : > { %s3803_s10 = smov (%p29_p0, %s28_s10), 0  ;;  %s3805_s11 = smov (!%p29_p0, %s31_s11), %s3334_s30 }
   0x7   : > { %3792 = sst [smem:[#allocation3_spill]] %s3803_s10  ;;  %p316_p3 = pnand %p2569_p1, %p315_p2 }
   0x8   : > { %p33_p4 = scmp.ge.s32.totalorder %s3805_s11, 2  ;;  %p375_p5 = scmp.lt.s32.totalorder (!%p316_p3), %s3326_s28, 1 }
   0x9   : > { %319 = sbr.rel (%p316_p3) target bundleno = 1124 (0x464), region = 44  ;;  %p380_p6 = scmp.lt.s32.totalorder (!%p316_p3), %s3322_s27, 8 }
   0xa   : > { %s3807_s11 = smov (%p33_p4, %s3805_s11), 0  ;;  %s3794_s0 = sld [smem:[#allocation5_spill]] (!%p316_p3) }
   0xb   : > { %3793 = sst [smem:[#allocation4_spill]] %s3807_s11  ;;  %p2580_p7 = scmp.ne.s32.totalorder (!%p316_p3), %s3322_s27, 0 }
   0xe   : > { %s3809_s28 = smov (!%p375_p5, %s3326_s28), 1 }
   0xf   : > { %s3421_s12 = scalar_select %p380_p6, %s3322_s27, 8 }
  0x10   : > { %s2759_s13 = sshll.u32 %s3809_s28, 4  ;;  %415 = sbr.rel (%p2580_p7) target bundleno = 23 (0x17), region = 48 }
  0x11   : > { %s379_s16 = scalar_lea.vmem %s3794_s0, %s2759_s13  ;;  %s3093_s17 = smul.u32 576, %s3421_s12 }
  0x12   : > { %s387_s20 = scalar_lea.vmem %s3785_s3, %s3421_s12  ;;  %s3448_s0 = scalar_lea.vmem %s3788_s6, %s2759_s13 }
  0x13   : > { %s3438_s26 = scalar_lea.vmem %s3784_s2, %s3093_s17  ;;  %s3443_s10 = scalar_lea.vmem %s3786_s4, %s3093_s17 }
  0x14   : > { %s3453_s21 = scalar_lea.vmem %s3789_s7, %s2759_s13  ;;  %s3458_s24 = scalar_lea.vmem %s3790_s8, %s2759_s13 }
  0x15   : > { %v416_v0 = vld [vmem:[%s379_s16] sm:$0xff]  ;;  %v417_v1 = vld [vmem:[%s379_s16 + $0x8] sm:$0xff] }
  0x16   : > { %418 = vst [vmem:[#allocation2] sm:$0xff] %v416_v0  ;;  %419 = vst [vmem:[#allocation2 + $0x8] sm:$0xff] %v417_v1 }
  0x17 PF: > { %v3340_v4 = vmov 0.0   ;;  %vm3341_vm0 = vmmov 0   ;;  %v3136_v6 = vld [vmem:[%s3783_s1] sm:$0xff]   ;;  %vm486_vm1 = vcmask 130048   ;;  %v3137_v7 = vld [vmem:[%s3783_s1 + $0x8] sm:$0xff]   ;;  %v3145_v8 = vld [vmem:[%s3438_s26 + $0x78] sm:$0xff]   ;;  %s3795_s25 = scalar_lea.vmem %s3787_s5, %s3421_s12 }
  0x18   : > { %2977 = vmatprep.subr.bf16.mxu0 %v3340_v4  ;;  %2979 = vmatprep.mubr.msk.bf16.mxu0 %vm3341_vm0, %v3340_v4  ;;  %v3146_v9 = vld [vmem:[%s3438_s26 + $0x38] sm:$0xff]   ;;  %v3148_v11 = vld [vmem:[%s3438_s26 + $0x70] sm:$0xff]   ;;  %v3151_v15 = vld [vmem:[%s3438_s26 + $0x68] sm:$0xff]  }
  0x19   : > { %2773 = vmatprep.subr.bf16.mxu1 %v3145_v8  ;;  %v3147_v10 = vld [vmem:[%s3438_s26 + $0x178] sm:$0xff]   ;;  %v3150_v13 = vld [vmem:[%s3438_s26 + $0x30] sm:$0xff]   ;;  %v3152_v16 = vld [vmem:[%s3438_s26 + $0x28] sm:$0xff]  }
  0x1a   : > { %2774 = vmatpush3.bf16.msra.mxu1 %v3146_v9  ;;  %v3149_v12 = vld [vmem:[%s3438_s26 + $0x138] sm:$0xff]   ;;  %v3138_v14 = vld [vmem:[%s3783_s1 + $0x10] sm:$0xff]   ;;  %v3153_v17 = vld [vmem:[%s3438_s26 + $0x60] sm:$0xff]  }
  0x1b   : > { %2775 = vmatprep.subr.bf16.mxu1 %v3148_v11  ;;  %v3154_v18 = vld [vmem:[%s3438_s26 + $0x170] sm:$0xff]   ;;  %v3155_v19 = vld [vmem:[%s3438_s26 + $0x20] sm:$0xff]   ;;  %v3157_v21 = vld [vmem:[%s3438_s26 + $0x58] sm:$0xff]  }
  0x1c   : > { %v3156_v20 = vld [vmem:[%s3438_s26 + $0x130] sm:$0xff]   ;;  %v3139_v22 = vld [vmem:[%s3783_s1 + $0x18] sm:$0xff]   ;;  %v3140_v23 = vld [vmem:[%s3783_s1 + $0x20] sm:$0xff]  }
  0x1d   : > { %v420_v2 = vld [vmem:[#allocation2] sm:$0xff]  ;;  %v421_v3 = vld [vmem:[#allocation2 + $0x8] sm:$0xff]  ;;  %v3521_v25 = vld [vmem:[%s3783_s1 + $0x30] sm:$0xff]  }
  0x1e   : > { %v422_v5 = vpack.c.bf16 %v421_v3, %v420_v2  ;;  %2776 = vmatpush3.bf16.msra.mxu1 %v3150_v13  ;;  %v3512_v24 = vld [vmem:[%s3783_s1 + $0x28] sm:$0xff]   ;;  %v3530_v26 = vld [vmem:[%s3783_s1 + $0x38] sm:$0xff]   ;;  %v3539_v27 = vld [vmem:[%s3783_s1 + $0x40] sm:$0xff]  }
  0x1f   : > { %2777 = vmatprep.subr.bf16.mxu1 %v3151_v15  ;;  %v3158_v28 = vld [vmem:[%s3438_s26 + $0x18] sm:$0xff]   ;;  %v3159_v29 = vld [vmem:[%s3438_s26 + $0x50] sm:$0xff]   ;;  %v3161_v31 = vld [vmem:[%s3438_s26 + $0x168] sm:$0xff]  }
  0x20   : > { %2978 = vmatpush3.bf16.msra.mxu0 %v422_v5  ;;  %v3160_v30 = vld [vmem:[%s3438_s26 + $0x10] sm:$0xff]   ;;  %v3162_v32 = vld [vmem:[%s3438_s26 + $0x128] sm:$0xff]   ;;  %v3165_v35 = vld [vmem:[%s3438_s26 + $0x40] sm:$0xff]  }
  0x21   : > { %2817 = vmatprep.subr.bf16.mxu0 %v3147_v10  ;;  %v3163_v33 = vld [vmem:[%s3438_s26 + $0x48] sm:$0xff]   ;;  %v3166_v36 = vld [vmem:[%s3438_s26] sm:$0xff]   ;;  %v3169_v38 = vld [vmem:[%s3438_s26 + $0xf8] sm:$0xff]  }
  0x22   : > { %2778 = vmatpush3.bf16.msra.mxu1 %v3152_v16  ;;  %v3164_v34 = vld [vmem:[%s3438_s26 + $0x8] sm:$0xff]   ;;  %v3167_v37 = vld [vmem:[%s3438_s26 + $0x160] sm:$0xff]   ;;  %v3173_v40 = vld [vmem:[%s3438_s26 + $0x158] sm:$0xff]  }
  0x23   : > { %2980 = vmatmul.mubr.msk.bf16.vlgmr.msra.gmra.mxu0 %vm486_vm1, %v3136_v6  ;;  %2779 = vmatprep.subr.bf16.mxu1 %v3153_v17  ;;  %v3168_v39 = vld [vmem:[%s3438_s26 + $0x120] sm:$0xff]   ;;  %v3175_v41 = vld [vmem:[%s3438_s26 + $0x118] sm:$0xff]   ;;  %v3180_v42 = vld [vmem:[%s3438_s26 + $0x150] sm:$0xff]  }
  0x24   : > { %2983 = vmatprep.mubr.msk.bf16.mxu0 %vm3341_vm0, %v3340_v4  ;;  %2818 = vmatpush3.bf16.msra.mxu0 %v3149_v12  ;;  %v3182_v43 = vld [vmem:[%s3438_s26 + $0x110] sm:$0xff]   ;;  %v3186_v44 = vld [vmem:[%s3438_s26 + $0x148] sm:$0xff]   ;;  %v3190_v46 = vld [vmem:[%s3438_s26 + $0x140] sm:$0xff]  }
  0x25   : > { %2819 = vmatprep.subr.bf16.mxu0 %v3154_v18  ;;  %v3188_v45 = vld [vmem:[%s3438_s26 + $0x108] sm:$0xff]   ;;  %v3192_v47 = vld [vmem:[%s3438_s26 + $0x100] sm:$0xff]   ;;  %v3170_v56 = vld [vmem:[%s3438_s26 + $0xb8] sm:$0xff]  }
  0x26   : > { %2780 = vmatpush3.bf16.msra.mxu1 %v3155_v19  ;;  %v3171_v59 = vld [vmem:[%s3438_s26 + $0xf0] sm:$0xff]   ;;  %v3174_v63 = vld [vmem:[%s3438_s26 + $0xe8] sm:$0xff]   ;;  %v3177_v3 = vld [vmem:[%s3438_s26 + $0xe0] sm:$0xff]  }
  0x27   : > { %2781 = vmatprep.subr.bf16.mxu1 %v3157_v21  ;;  %v3172_v61 = vld [vmem:[%s3438_s26 + $0xb0] sm:$0xff]   ;;  %v3176_v1 = vld [vmem:[%s3438_s26 + $0xa8] sm:$0xff]   ;;  %v3178_v6 = vld [vmem:[%s3438_s26 + $0xa0] sm:$0xff]  }
  0x28   : > { %2820 = vmatpush3.bf16.msra.mxu0 %v3156_v20  ;;  %v3179_v8 = vld [vmem:[%s3438_s26 + $0xd8] sm:$0xff]   ;;  %v3183_v13 = vld [vmem:[%s3438_s26 + $0xd0] sm:$0xff]   ;;  %v3185_v17 = vld [vmem:[%s3438_s26 + $0xc8] sm:$0xff]  }
  0x29   : > { %2821 = vmatprep.subr.bf16.mxu0 %v3161_v31  ;;  %v3181_v11 = vld [vmem:[%s3438_s26 + $0x98] sm:$0xff]   ;;  %v3184_v15 = vld [vmem:[%s3438_s26 + $0x90] sm:$0xff]   ;;  %v3187_v19 = vld [vmem:[%s3438_s26 + $0x88] sm:$0xff]  }
  0x2a   : > { %2782 = vmatpush3.bf16.msra.mxu1 %v3158_v28  ;;  %v3189_v21 = vld [vmem:[%s3438_s26 + $0xc0] sm:$0xff]  }
  0x2b   : > { %2984 = vmatmul.mubr.msk.bf16.gmra.mxu0 %vm486_vm1, %v3137_v7  ;;  %2783 = vmatprep.subr.bf16.mxu1 %v3159_v29  ;;  %v3193_v29 = vld [vmem:[%s3438_s26 + $0x1f8] sm:$0xff]  }
  0x2c   : > { %2987 = vmatprep.mubr.msk.bf16.mxu0 %vm3341_vm0, %v3340_v4  ;;  %2822 = vmatpush3.bf16.msra.mxu0 %v3162_v32  ;;  %v3194_v32 = vld [vmem:[%s3438_s26 + $0x1b8] sm:$0xff]  }
  0x2d   : > { %2823 = vmatprep.subr.bf16.mxu0 %v3167_v37  ;;  %v3196_v37 = vld [vmem:[%s3438_s26 + $0x1f0] sm:$0xff]  }
  0x2e   : > { %2784 = vmatpush3.bf16.msra.mxu1 %v3160_v30 }
  0x2f   : > { %2785 = vmatprep.subr.bf16.mxu1 %v3163_v33  ;;  %v3195_v33 = vld [vmem:[%s3438_s26 + $0x238] sm:$0xff]  }
  0x30   : > { %2824 = vmatpush3.bf16.msra.mxu0 %v3168_v39  ;;  %v3197_v39 = vld [vmem:[%s3438_s26 + $0x1b0] sm:$0xff]  }
  0x31   : > { %2825 = vmatprep.subr.bf16.mxu0 %v3173_v40  ;;  %v3198_v40 = vld [vmem:[%s3438_s26 + $0x230] sm:$0xff]  }
  0x32   : > { %2786 = vmatpush3.bf16.msra.mxu1 %v3164_v34 }
  0x33   : > { %2988 = vmatmul.mubr.msk.bf16.gmra.mxu0 %vm486_vm1, %v3138_v14  ;;  %2787 = vmatprep.subr.bf16.mxu1 %v3165_v35 }
  0x34   : > { %2991 = vmatprep.mubr.msk.bf16.mxu0 %vm3341_vm0, %v3340_v4  ;;  %2826 = vmatpush3.bf16.msra.mxu0 %v3175_v41  ;;  %v3199_v41 = vld [vmem:[%s3438_s26 + $0x1e8] sm:$0xff]  }
  0x35   : > { %2827 = vmatprep.subr.bf16.mxu0 %v3180_v42 }
  0x36   : > { %2788 = vmatpush3.bf16.msra.mxu1 %v3166_v36 }
  0x37   : > { %2795 = vmatprep.subr.bf16.mxu1 %v3169_v38 }
  0x38   : > { %2828 = vmatpush3.bf16.msra.mxu0 %v3182_v43 }
  0x39   : > { %2829 = vmatprep.subr.bf16.mxu0 %v3186_v44  ;;  %v3200_v44 = vld [vmem:[%s3438_s26 + $0x1a8] sm:$0xff]  }
  0x3b   : > { %2992 = vmatmul.mubr.msk.bf16.gmra.mxu0 %vm486_vm1, %v3139_v22 }
  0x3c   : > { %2995 = vmatprep.mubr.msk.bf16.mxu0 %vm3341_vm0, %v3340_v4  ;;  %2830 = vmatpush3.bf16.msra.mxu0 %v3188_v45  ;;  %v3201_v45 = vld [vmem:[%s3438_s26 + $0x228] sm:$0xff]  }
  0x3d   : > { %2831 = vmatprep.subr.bf16.mxu0 %v3190_v46  ;;  %v3202_v46 = vld [vmem:[%s3438_s26 + $0x1e0] sm:$0xff]  }
  0x40   : > { %2832 = vmatpush3.bf16.msra.mxu0 %v3192_v47 }
  0x41   : > { %3015 = vmatprep.subr.bf16.mxu0 %v3340_v4 }
  0x43   : > { %2996 = vmatmul.mubr.msk.bf16.gmra.mxu0 %vm486_vm1, %v3140_v23  ;;  %v3191_v23 = vld [vmem:[%s3438_s26 + $0x80] sm:$0xff]  }
  0x44   : > { %2999 = vmatprep.mubr.msk.bf16.mxu0 %vm3341_vm0, %v3340_v4 }
  0x4b   : > { %3000 = vmatmul.mubr.msk.bf16.gmra.mxu0 %vm486_vm1, %v3512_v24 }
  0x4c   : > { %3003 = vmatprep.mubr.msk.bf16.mxu0 %vm3341_vm0, %v3340_v4 }
  0x53   : > { %3004 = vmatmul.mubr.msk.bf16.gmra.mxu0 %vm486_vm1, %v3521_v25 }
  0x54   : > { %3007 = vmatprep.mubr.msk.bf16.mxu0 %vm3341_vm0, %v3340_v4 }
  0x5b   : > { %3008 = vmatmul.mubr.msk.bf16.gmra.mxu0 %vm486_vm1, %v3530_v26 }
  0x5c   : > { %3011 = vmatprep.mubr.msk.bf16.mxu0 %vm3341_vm0, %v3340_v4 }
  0x63   : > { %3012 = vmatmul.mubr.msk.bf16.gmra.mxu0 %vm486_vm1, %v3539_v27 }
  0xe3   : > { %v548_v48 = vpop.f32.mrf.mxu0 }
  0xe5   : > { %v2981_v49 = vpop.f32.mrf.mxu0 }
  0xe6   : > { %v3203_v49 = vld [vmem:[%s3438_s26 + $0x1a0] sm:$0xff]  }
  0xe7   : > { %v551_v50 = vpop.f32.mrf.mxu0 }
  0xe8   : > { %v619_v57 = vpack.c.bf16 %v551_v50, %v548_v48  ;;  %v3204_v50 = vld [vmem:[%s3438_s26 + $0x220] sm:$0xff]  }
  0xe9   : > { %v2982_v51 = vpop.f32.mrf.mxu0 }
  0xea   : > { %v3205_v51 = vld [vmem:[%s3438_s26 + $0x1d8] sm:$0xff]  }
  0xeb   : > { %v556_v52 = vpop.f32.mrf.mxu0 }
  0xed   : > { %v2985_v53 = vpop.f32.mrf.mxu0 }
  0xef   : > { %v559_v54 = vpop.f32.mrf.mxu0 }
  0xf0   : > { %v620_v55 = vpack.c.bf16 %v559_v54, %v556_v52  ;;  %v3206_v54 = vld [vmem:[%s3438_s26 + $0x198] sm:$0xff]  }
  0xf1   : > { %v2986_v58 = vpop.f32.mrf.mxu0 }
  0xf2   : > { %1243 = vmatprep.mubr.bf16.mxu1 %v620_v55  ;;  %v3207_v55 = vld [vmem:[%s3438_s26 + $0x218] sm:$0xff]  }
  0xf3   : > { %v564_v60 = vpop.f32.mrf.mxu0  ;;  %1244 = vmatmul.mubr.bf16.vlgmr.msra.gmra.mxu1 %v619_v57  ;;  %v3208_v57 = vld [vmem:[%s3438_s26 + $0x1d0] sm:$0xff]  }
  0xf4   : > { %2796 = vmatpush3.bf16.msra.mxu1 %v3170_v56 }
  0xf5   : > { %v2989_v62 = vpop.f32.mrf.mxu0  ;;  %2797 = vmatprep.subr.bf16.mxu1 %v3171_v59 }
  0xf6   : > { %v3211_v62 = vld [vmem:[%s3438_s26 + $0x1c8] sm:$0xff]  }
  0xf7   : > { %v567_v0 = vpop.f32.mrf.mxu0 }
  0xf8   : > { %2798 = vmatpush3.bf16.msra.mxu1 %v3172_v61  ;;  %v621_v34 = vpack.c.bf16 %v567_v0, %v564_v60  ;;  %v3209_v60 = vld [vmem:[%s3438_s26 + $0x190] sm:$0xff]  }
  0xf9   : > { %v2990_v2 = vpop.f32.mrf.mxu0  ;;  %2799 = vmatprep.subr.bf16.mxu1 %v3174_v63  ;;  %v3210_v61 = vld [vmem:[%s3438_s26 + $0x210] sm:$0xff]  }
  0xfa   : > { %v3213_v2 = vld [vmem:[%s3438_s26 + $0x208] sm:$0xff]  }
  0xfb   : > { %v572_v5 = vpop.f32.mrf.mxu0 }
  0xfc   : > { %2800 = vmatpush3.bf16.msra.mxu1 %v3176_v1  ;;  %v3212_v1 = vld [vmem:[%s3438_s26 + $0x188] sm:$0xff]  }
  0xfd   : > { %v2993_v7 = vpop.f32.mrf.mxu0  ;;  %2801 = vmatprep.subr.bf16.mxu1 %v3177_v3  ;;  %v3214_v3 = vld [vmem:[%s3438_s26 + $0x1c0] sm:$0xff]  }
  0xfe   : > { %v3216_v7 = vld [vmem:[%s3438_s26 + $0x200] sm:$0xff]  }
  0xff   : > { %v575_v9 = vpop.f32.mrf.mxu0 }
 0x100   : > { %v622_v10 = vpack.c.bf16 %v575_v9, %v572_v5  ;;  %2802 = vmatpush3.bf16.msra.mxu1 %v3178_v6  ;;  %v3215_v6 = vld [vmem:[%s3438_s26 + $0x180] sm:$0xff]  }
 0x101   : > { %v2994_v12 = vpop.f32.mrf.mxu0  ;;  %2803 = vmatprep.subr.bf16.mxu1 %v3179_v8 }
 0x102   : > { %1284 = vmatprep.mubr.bf16.mxu1 %v622_v10 }
 0x103   : > { %v580_v14 = vpop.f32.mrf.mxu0 }
 0x104   : > { %2804 = vmatpush3.bf16.msra.mxu1 %v3181_v11 }
 0x105   : > { %v2997_v16 = vpop.f32.mrf.mxu0  ;;  %2805 = vmatprep.subr.bf16.mxu1 %v3183_v13 }
 0x107   : > { %v583_v18 = vpop.f32.mrf.mxu0 }
 0x108   : > { %2806 = vmatpush3.bf16.msra.mxu1 %v3184_v15  ;;  %v623_v35 = vpack.c.bf16 %v583_v18, %v580_v14 }
 0x109   : > { %v2998_v20 = vpop.f32.mrf.mxu0  ;;  %2807 = vmatprep.subr.bf16.mxu1 %v3185_v17 }
 0x10b   : > { %v588_v22 = vpop.f32.mrf.mxu0 }
 0x10c   : > { %2808 = vmatpush3.bf16.msra.mxu1 %v3187_v19 }
 0x10d   : > { %v3001_v28 = vpop.f32.mrf.mxu0  ;;  %2809 = vmatprep.subr.bf16.mxu1 %v3189_v21  ;;  %v2599_v21 = vld [vmem:[%s387_s20] ss:$0 sm:$0xff] }
 0x10f   : > { %v591_v30 = vpop.f32.mrf.mxu0 }
 0x110   : > { %v624_v31 = vpack.c.bf16 %v591_v30, %v588_v22  ;;  %2810 = vmatpush3.bf16.msra.mxu1 %v3191_v23 }
 0x111   : > { %v3002_v36 = vpop.f32.mrf.mxu0  ;;  %2839 = vmatprep.subr.bf16.mxu1 %v3193_v29 }
 0x112   : > { %1325 = vmatprep.mubr.bf16.mxu0 %v624_v31 }
 0x113   : > { %1285 = vmatmul.mubr.bf16.vlgmr.msra.gmra.mxu1 %v621_v34  ;;  %1326 = vmatmul.mubr.bf16.vlgmr.msra.gmra.mxu0 %v623_v35  ;;  %v3583_v38 = vpop.f32.mrf.mxu0 }
 0x114   : > { %2840 = vmatpush3.bf16.msra.mxu1 %v3194_v32  ;;  %3016 = vmatpush3.bf16.msra.mxu0 %v3195_v33 }
 0x115   : > { %2841 = vmatprep.subr.bf16.mxu1 %v3196_v37  ;;  %3017 = vmatprep.subr.bf16.mxu0 %v3340_v4  ;;  %v3005_v42 = vpop.f32.mrf.mxu0 }
 0x116   : > { %3031 = vmatprep.mubr.msk.bf16.mxu0 %vm3341_vm0, %v3340_v4 }
 0x117   : > { %v599_v43 = vpop.f32.mrf.mxu0 }
 0x118   : > { %2842 = vmatpush3.bf16.msra.mxu1 %v3197_v39  ;;  %3018 = vmatpush3.bf16.msra.mxu0 %v3198_v40  ;;  %v625_v9 = vpack.c.bf16 %v599_v43, %v3583_v38 }
 0x119   : > { %2843 = vmatprep.subr.bf16.mxu1 %v3199_v41  ;;  %3019 = vmatprep.subr.bf16.mxu0 %v3340_v4  ;;  %v3006_v47 = vpop.f32.mrf.mxu0 }
 0x11b   : > { %v604_v48 = vpop.f32.mrf.mxu0 }
 0x11c   : > { %2844 = vmatpush3.bf16.msra.mxu1 %v3200_v44  ;;  %3020 = vmatpush3.bf16.msra.mxu0 %v3201_v45 }
 0x11d   : > { %2845 = vmatprep.subr.bf16.mxu1 %v3202_v46  ;;  %3021 = vmatprep.subr.bf16.mxu0 %v3340_v4  ;;  %v3009_v52 = vpop.f32.mrf.mxu0 }
 0x11e   : > { %v3218_v52 = vld [vmem:[%s3443_s10 + $0x38] sm:$0xff]  }
 0x11f   : > { %v607_v53 = vpop.f32.mrf.mxu0 }
 0x120   : > { %2846 = vmatpush3.bf16.msra.mxu1 %v3203_v49  ;;  %3022 = vmatpush3.bf16.msra.mxu0 %v3204_v50  ;;  %v626_v56 = vpack.c.bf16 %v607_v53, %v604_v48 }
 0x121   : > { %2847 = vmatprep.subr.bf16.mxu1 %v3205_v51  ;;  %3023 = vmatprep.subr.bf16.mxu0 %v3340_v4  ;;  %v3010_v58 = vpop.f32.mrf.mxu0  ;;  %v3217_v51 = vld [vmem:[%s3443_s10 + $0x78] sm:$0xff]  }
 0x122   : > { %1366 = vmatprep.mubr.bf16.mxu1 %v626_v56  ;;  %v3223_v58 = vld [vmem:[%s3443_s10 + $0x68] sm:$0xff]  }
 0x123   : > { %v612_v59 = vpop.f32.mrf.mxu0 }
 0x124   : > { %2848 = vmatpush3.bf16.msra.mxu1 %v3206_v54  ;;  %3024 = vmatpush3.bf16.msra.mxu0 %v3207_v55  ;;  %v3220_v55 = vld [vmem:[%s3443_s10 + $0x70] sm:$0xff]  }
 0x125   : > { %2849 = vmatprep.subr.bf16.mxu1 %v3208_v57  ;;  %3025 = vmatprep.subr.bf16.mxu0 %v3340_v4  ;;  %v3013_v63 = vpop.f32.mrf.mxu0  ;;  %v3222_v57 = vld [vmem:[%s3443_s10 + $0x30] sm:$0xff]  }
 0x127   : > { %v615_v0 = vpop.f32.mrf.mxu0 }
 0x128   : > { %2850 = vmatpush3.bf16.msra.mxu1 %v3209_v60  ;;  %3026 = vmatpush3.bf16.msra.mxu0 %v3210_v61  ;;  %v627_v8 = vpack.c.bf16 %v615_v0, %v612_v59  ;;  %v3224_v61 = vld [vmem:[%s3443_s10 + $0x28] sm:$0xff]  }
 0x129   : > { %2851 = vmatprep.subr.bf16.mxu1 %v3211_v62  ;;  %3027 = vmatprep.subr.bf16.mxu0 %v3340_v4  ;;  %v3014_v5 = vpop.f32.mrf.mxu0  ;;  %v3225_v62 = vld [vmem:[%s3443_s10 + $0x60] sm:$0xff]  }
 0x12c   : > { %2852 = vmatpush3.bf16.msra.mxu1 %v3212_v1  ;;  %3028 = vmatpush3.bf16.msra.mxu0 %v3213_v2  ;;  %v3227_v1 = vld [vmem:[%s3443_s10 + $0x20] sm:$0xff]   ;;  %v3229_v2 = vld [vmem:[%s3443_s10 + $0x58] sm:$0xff]  }
 0x12d   : > { %2853 = vmatprep.subr.bf16.mxu1 %v3214_v3  ;;  %3029 = vmatprep.subr.bf16.mxu0 %v3340_v4 }
 0x130   : > { %2854 = vmatpush3.bf16.msra.mxu1 %v3215_v6  ;;  %3030 = vmatpush3.bf16.msra.mxu0 %v3216_v7 }
 0x131   : > { %3035 = vmatprep.subr.bf16.mxu1 %v3340_v4  ;;  %2880 = vmatprep.subr.bf16.mxu0 %v3217_v51  ;;  %v3259_v51 = vld [vmem:[%s3443_s10 + $0x148] sm:$0xff]  }
 0x133   : > { %1367 = vmatmul.mubr.bf16.vlgmr.msra.gmra.mxu1 %v625_v9  ;;  %3032 = vmatmul.mubr.bf16.vlgmr.msra.gmra.mxu0 %v627_v8 }
 0x134   : > { %3037 = vmatprep.mubr.msk.bf16.mxu1 %vm3341_vm0, %v3340_v4  ;;  %2881 = vmatpush3.bf16.msra.mxu0 %v3218_v52  ;;  %v3260_v52 = vld [vmem:[%s3443_s10 + $0x108] sm:$0xff]  }
 0x135   : > { %2882 = vmatprep.subr.bf16.mxu0 %v3220_v55 }
 0x138   : > { %2883 = vmatpush3.bf16.msra.mxu0 %v3222_v57 }
 0x139   : > { %2884 = vmatprep.subr.bf16.mxu0 %v3223_v58 }
 0x13c   : > { %2885 = vmatpush3.bf16.msra.mxu0 %v3224_v61 }
 0x13d   : > { %2886 = vmatprep.subr.bf16.mxu0 %v3225_v62 }
 0x140   : > { %2887 = vmatpush3.bf16.msra.mxu0 %v3227_v1 }
 0x141   : > { %2888 = vmatprep.subr.bf16.mxu0 %v3229_v2  ;;  %v3243_v2 = vld [vmem:[%s3443_s10 + $0xf0] sm:$0xff]  }
 0x1b3   : > { %v2789_v10 = vpop.f32.mrf.mxu1 }
 0x1b5   : > { %v2790_v11 = vpop.f32.mrf.mxu1 }
 0x1b6   : > { %v2791_v20 = vadd.f32 %v2790_v11, %v2789_v10 }
 0x1b7   : > { %v2792_v12 = vpop.f32.mrf.mxu1 }
 0x1b8   : > { %v1246_v30 = vadd.f32 %v2791_v20, %v2599_v21 }
 0x1b9   : > { %v2793_v13 = vpop.f32.mrf.mxu1 }
 0x1ba   : > { %v2794_v23 = vadd.f32 %v2793_v13, %v2792_v12 }
 0x1bc   : > { %v1249_v34 = vadd.f32 %v2794_v23, %v2599_v21 }
 0x1d3   : > { %v2811_v14 = vpop.f32.mrf.mxu1  ;;  %v2833_v15 = vpop.f32.mrf.mxu0 }
 0x1d5   : > { %v2812_v16 = vpop.f32.mrf.mxu1  ;;  %v2834_v17 = vpop.f32.mrf.mxu0 }
 0x1d6   : > { %v2813_v28 = vadd.f32 %v2812_v16, %v2811_v14  ;;  %v2835_v36 = vadd.f32 %v2834_v17, %v2833_v15 }
 0x1d7   : > { %v2814_v18 = vpop.f32.mrf.mxu1  ;;  %v2836_v19 = vpop.f32.mrf.mxu0 }
 0x1d8   : > { %v1287_v35 = vadd.f32 %v2813_v28, %v1246_v30 }
 0x1d9   : > { %v2815_v22 = vpop.f32.mrf.mxu1  ;;  %v2837_v29 = vpop.f32.mrf.mxu0 }
 0x1da   : > { %v2816_v31 = vadd.f32 %v2815_v22, %v2814_v18  ;;  %v2838_v40 = vadd.f32 %v2837_v29, %v2836_v19  ;;  %v1328_v44 = vadd.f32 %v2835_v36, %v1287_v35  ;;  %v3219_v29 = vld [vmem:[%s3443_s10 + $0x178] sm:$0xff]   ;;  %v3294_v35 = vld [vmem:[%s3783_s1 + $0x8] sm:$0xff]   ;;  %v3295_v36 = vld [vmem:[%s3783_s1 + $0x10] sm:$0xff]  }
 0x1dc   : > { %v1290_v39 = vadd.f32 %v2816_v31, %v1249_v34  ;;  %v3221_v31 = vld [vmem:[%s3443_s10 + $0x138] sm:$0xff]   ;;  %v3228_v34 = vld [vmem:[%s3443_s10 + $0x130] sm:$0xff]  }
 0x1de   : > { %v1331_v47 = vadd.f32 %v2838_v40, %v1290_v39  ;;  %v3230_v39 = vld [vmem:[%s3443_s10 + $0x18] sm:$0xff]   ;;  %v3232_v40 = vld [vmem:[%s3443_s10 + $0x10] sm:$0xff]  }
 0x1df   : > { %2889 = vmatpush3.bf16.msra.mxu0 %v3230_v39  ;;  %v3266_v39 = vld [vmem:[%s3443_s10 + $0x1b8] sm:$0xff]  }
 0x1f3   : > { %v2855_v32 = vpop.f32.mrf.mxu1  ;;  %v1409_v33 = vpop.f32.mrf.mxu0 }
 0x1f5   : > { %v2856_v37 = vpop.f32.mrf.mxu1  ;;  %v3033_v38 = vpop.f32.mrf.mxu0 }
 0x1f6   : > { %v2857_v41 = vadd.f32 %v2856_v37, %v2855_v32  ;;  %v3226_v32 = vld [vmem:[%s3443_s10 + $0x170] sm:$0xff]   ;;  %v3296_v37 = vld [vmem:[%s3783_s1 + $0x18] sm:$0xff]   ;;  %v3297_v38 = vld [vmem:[%s3783_s1 + $0x20] sm:$0xff]  }
 0x1f7   : > { %v2858_v42 = vpop.f32.mrf.mxu1  ;;  %v1412_v43 = vpop.f32.mrf.mxu0 }
 0x1f8   : > { %v1369_v48 = vadd.f32 %v2857_v41, %v1328_v44  ;;  %v3234_v41 = vld [vmem:[%s3443_s10 + $0x128] sm:$0xff]   ;;  %v3239_v44 = vld [vmem:[%s3443_s10 + $0x160] sm:$0xff]  }
 0x1f9   : > { %v2859_v45 = vpop.f32.mrf.mxu1  ;;  %v3034_v46 = vpop.f32.mrf.mxu0 }
 0x1fa   : > { %v2860_v49 = vadd.f32 %v2859_v45, %v2858_v42  ;;  %v1410_v53 = vadd.f32 %v1409_v33, %v1369_v48  ;;  %v3293_v33 = vld [vmem:[%s3783_s1] sm:$0xff]   ;;  %v3236_v42 = vld [vmem:[%s3443_s10 + $0x8] sm:$0xff]   ;;  %v3241_v45 = vld [vmem:[%s3443_s10 + $0xf8] sm:$0xff]  }
 0x1fb   : > { %v3240_v46 = vld [vmem:[%s3443_s10 + $0x120] sm:$0xff]   ;;  %v3247_v48 = vld [vmem:[%s3443_s10 + $0x118] sm:$0xff]  }
 0x1fc   : > { %v1372_v50 = vadd.f32 %v2860_v49, %v1331_v47  ;;  %v3245_v47 = vld [vmem:[%s3443_s10 + $0x158] sm:$0xff]   ;;  %v3252_v49 = vld [vmem:[%s3443_s10 + $0x150] sm:$0xff]  }
 0x1fe   : > { %v1413_v54 = vadd.f32 %v1412_v43, %v1372_v50  ;;  %v3238_v43 = vld [vmem:[%s3443_s10] sm:$0xff]   ;;  %v3254_v50 = vld [vmem:[%s3443_s10 + $0x110] sm:$0xff]  }
 0x200   : > { %v1416_v56 = vadd.f32 %v1413_v54, %v1410_v53 }
 0x202   : > { %v1417_v59 = vrot.slane %v1416_v56, 4 }
 0x204   : > { %v1418_v60 = vadd.f32 %v1417_v59, %v1416_v56 }
 0x206   : > { %v1419_v63 = vrot.slane %v1418_v60, 2 }
 0x208   : > { %v1420_v0 = vadd.f32 %v1419_v63, %v1418_v60  ;;  %v3242_v63 = vld [vmem:[%s3443_s10 + $0xb8] sm:$0xff]  }
 0x20a   : > { %v1421_v3 = vrot.slane %v1420_v0, 1 }
 0x20c   : > { %v1422_v5 = vadd.f32 %v1421_v3, %v1420_v0 }
 0x20e   : > { %v1424_v6 = vmul.f32 0.0625, %v1422_v5  ;;  %v3244_v5 = vld [vmem:[%s3443_s10 + $0xb0] sm:$0xff]  }
 0x210   : > { %v1425_v7 = vsub.f32 %v1410_v53, %v1424_v6  ;;  %v1426_v8 = vsub.f32 %v1413_v54, %v1424_v6  ;;  %v3263_v53 = vld [vmem:[%s3443_s10 + $0x140] sm:$0xff]  }
 0x211   : > { %v3264_v54 = vld [vmem:[%s3443_s10 + $0x100] sm:$0xff]  }
 0x212   : > { %v1427_v9 = vmul.f32 %v1425_v7, %v1425_v7  ;;  %v1428_v10 = vmul.f32 %v1426_v8, %v1426_v8 }
 0x214   : > { %v1429_v11 = vadd.f32 %v1428_v10, %v1427_v9  ;;  %v3248_v9 = vld [vmem:[%s3443_s10 + $0xa8] sm:$0xff]  }
 0x216   : > { %v1430_v12 = vrot.slane %v1429_v11, 4 }
 0x218   : > { %v1431_v13 = vadd.f32 %v1430_v12, %v1429_v11  ;;  %v3249_v11 = vld [vmem:[%s3443_s10 + $0xe0] sm:$0xff]  }
 0x21a   : > { %v1432_v14 = vrot.slane %v1431_v13, 2 }
 0x21c   : > { %v1433_v15 = vadd.f32 %v1432_v14, %v1431_v13  ;;  %v3250_v13 = vld [vmem:[%s3443_s10 + $0xa0] sm:$0xff]  }
 0x21e   : > { %v1434_v16 = vrot.slane %v1433_v15, 1 }
 0x220   : > { %v1435_v17 = vadd.f32 %v1434_v16, %v1433_v15  ;;  %v3251_v15 = vld [vmem:[%s3443_s10 + $0xd8] sm:$0xff]  }
 0x222   : > { %v1436_v18 = vmul.f32 0.0625, %v1435_v17 }
 0x224   : > { %v1437_v19 = vadd.f32 1e-05, %v1436_v18  ;;  %v3253_v18 = vld [vmem:[%s3443_s10 + $0x98] sm:$0xff]  }
 0x226   : > { %3289 = vrsqrt.f32 %v1437_v19 }
 0x233   : > { %v3290_v20 = vpop.eup %3289 }
 0x234   : > { %v1440_v21 = vmul.f32 %v3290_v20, %v1426_v8  ;;  %v1439_v22 = vmul.f32 %v3290_v20, %v1425_v7  ;;  %v3246_v7 = vld [vmem:[%s3443_s10 + $0xe8] sm:$0xff]   ;;  %v3255_v20 = vld [vmem:[%s3443_s10 + $0xd0] sm:$0xff]  }
 0x236   : > { %v1442_v23 = vmax.f32 %v1440_v21, 0.0  ;;  %v1441_v28 = vmax.f32 %v1439_v22, 0.0  ;;  %v3256_v22 = vld [vmem:[%s3443_s10 + $0x90] sm:$0xff]  }
 0x238   : > { %v1443_v30 = vpack.c.bf16 %v1442_v23, %v1441_v28  ;;  %v3257_v28 = vld [vmem:[%s3443_s10 + $0xc8] sm:$0xff]  }
 0x23a   : > { %3036 = vmatpush3.bf16.msra.mxu1 %v1443_v30  ;;  %v3258_v30 = vld [vmem:[%s3443_s10 + $0x88] sm:$0xff]  }
 0x23b   : > { %2924 = vmatprep.subr.bf16.mxu1 %v3219_v29 }
 0x23d   : > { %3038 = vmatmul.mubr.msk.bf16.vlgmr.msra.gmra.mxu1 %vm486_vm1, %v3293_v33 }
 0x23e   : > { %3041 = vmatprep.mubr.msk.bf16.mxu1 %vm3341_vm0, %v3340_v4  ;;  %2925 = vmatpush3.bf16.msra.mxu1 %v3221_v31 }
 0x23f   : > { %2926 = vmatprep.subr.bf16.mxu1 %v3226_v32  ;;  %v3261_v32 = vld [vmem:[%s3443_s10 + $0xc0] sm:$0xff]  }
 0x242   : > { %2927 = vmatpush3.bf16.msra.mxu1 %v3228_v34  ;;  %v3262_v34 = vld [vmem:[%s3443_s10 + $0x80] sm:$0xff]  }
 0x245   : > { %3042 = vmatmul.mubr.msk.bf16.gmra.mxu1 %vm486_vm1, %v3294_v35 }
 0x246   : > { %3045 = vmatprep.mubr.msk.bf16.mxu1 %vm3341_vm0, %v3340_v4 }
 0x24d   : > { %3046 = vmatmul.mubr.msk.bf16.gmra.mxu1 %vm486_vm1, %v3295_v36  ;;  %v3265_v36 = vld [vmem:[%s3443_s10 + $0x1f8] sm:$0xff]  }
 0x24e   : > { %3049 = vmatprep.mubr.msk.bf16.mxu1 %vm3341_vm0, %v3340_v4 }
 0x255   : > { %3050 = vmatmul.mubr.msk.bf16.gmra.mxu1 %vm486_vm1, %v3296_v37 }
 0x256   : > { %3053 = vmatprep.mubr.msk.bf16.mxu1 %vm3341_vm0, %v3340_v4 }
 0x25d   : > { %3054 = vmatmul.mubr.msk.bf16.gmra.mxu1 %vm486_vm1, %v3297_v38 }
 0x25e   : > { %3057 = vmatprep.mubr.msk.bf16.mxu1 %vm3341_vm0, %v3340_v4 }
 0x265   : > { %3058 = vmatmul.mubr.msk.bf16.gmra.mxu1 %vm486_vm1, %v3512_v24  ;;  %v3231_v24 = vld [vmem:[%s3443_s10 + $0x50] sm:$0xff]  }
 0x266   : > { %3061 = vmatprep.mubr.msk.bf16.mxu1 %vm3341_vm0, %v3340_v4  ;;  %2890 = vmatprep.subr.bf16.mxu0 %v3231_v24  ;;  %v3267_v24 = vld [vmem:[%s3443_s10 + $0x238] sm:$0xff]  }
 0x267   : > { %2891 = vmatpush3.bf16.msra.mxu0 %v3232_v40 }
 0x26d   : > { %3062 = vmatmul.mubr.msk.bf16.gmra.mxu1 %vm486_vm1, %v3521_v25  ;;  %v3233_v25 = vld [vmem:[%s3443_s10 + $0x168] sm:$0xff]  }
 0x26e   : > { %3065 = vmatprep.mubr.msk.bf16.mxu1 %vm3341_vm0, %v3340_v4  ;;  %2928 = vmatprep.subr.bf16.mxu1 %v3233_v25 }
 0x26f   : > { %2929 = vmatpush3.bf16.msra.mxu1 %v3234_v41 }
 0x270   : > { %2930 = vmatprep.subr.bf16.mxu1 %v3239_v44  ;;  %v3271_v44 = vld [vmem:[%s3443_s10 + $0x1e8] sm:$0xff]  }
 0x273   : > { %2931 = vmatpush3.bf16.msra.mxu1 %v3240_v46 }
 0x274   : > { %2932 = vmatprep.subr.bf16.mxu1 %v3245_v47  ;;  %v3272_v47 = vld [vmem:[%s3443_s10 + $0x1a8] sm:$0xff]  }
 0x275   : > { %3066 = vmatmul.mubr.msk.bf16.gmra.mxu1 %vm486_vm1, %v3530_v26  ;;  %v3235_v26 = vld [vmem:[%s3443_s10 + $0x48] sm:$0xff]  }
 0x276   : > { %3069 = vmatprep.mubr.msk.bf16.mxu1 %vm3341_vm0, %v3340_v4  ;;  %2892 = vmatprep.subr.bf16.mxu0 %v3235_v26  ;;  %v3268_v26 = vld [vmem:[%s3443_s10 + $0x1f0] sm:$0xff]  }
 0x277   : > { %2893 = vmatpush3.bf16.msra.mxu0 %v3236_v42  ;;  %2933 = vmatpush3.bf16.msra.mxu1 %v3247_v48  ;;  %v3273_v48 = vld [vmem:[%s3443_s10 + $0x228] sm:$0xff]  }
 0x278   : > { %2934 = vmatprep.subr.bf16.mxu1 %v3252_v49  ;;  %v3274_v49 = vld [vmem:[%s3443_s10 + $0x1e0] sm:$0xff]  }
 0x27b   : > { %2935 = vmatpush3.bf16.msra.mxu1 %v3254_v50 }
 0x27c   : > { %2936 = vmatprep.subr.bf16.mxu1 %v3259_v51 }
 0x27d   : > { %3070 = vmatmul.mubr.msk.bf16.gmra.mxu1 %vm486_vm1, %v3539_v27  ;;  %v3237_v27 = vld [vmem:[%s3443_s10 + $0x40] sm:$0xff]  }
 0x27e   : > { %2894 = vmatprep.subr.bf16.mxu0 %v3237_v27  ;;  %v3269_v27 = vld [vmem:[%s3443_s10 + $0x1b0] sm:$0xff]  }
 0x27f   : > { %2895 = vmatpush3.bf16.msra.mxu0 %v3238_v43  ;;  %2937 = vmatpush3.bf16.msra.mxu1 %v3260_v52  ;;  %v3270_v43 = vld [vmem:[%s3443_s10 + $0x230] sm:$0xff]   ;;  %v3275_v52 = vld [vmem:[%s3443_s10 + $0x1a0] sm:$0xff]  }
 0x280   : > { %2902 = vmatprep.subr.bf16.mxu0 %v3241_v45  ;;  %2938 = vmatprep.subr.bf16.mxu1 %v3263_v53  ;;  %v3276_v53 = vld [vmem:[%s3443_s10 + $0x220] sm:$0xff]  }
 0x283   : > { %2939 = vmatpush3.bf16.msra.mxu1 %v3264_v54  ;;  %v3277_v54 = vld [vmem:[%s3443_s10 + $0x1d8] sm:$0xff]  }
 0x284   : > { %3073 = vmatprep.subr.bf16.mxu1 %v3340_v4 }
 0x2fd   : > { %v1478_v55 = vpop.f32.mrf.mxu1 }
 0x2ff   : > { %v3039_v56 = vpop.f32.mrf.mxu1 }
 0x301   : > { %v1481_v57 = vpop.f32.mrf.mxu1 }
 0x302   : > { %v1549_v0 = vpack.c.bf16 %v1481_v57, %v1478_v55  ;;  %v3278_v57 = vld [vmem:[%s3443_s10 + $0x198] sm:$0xff]  }
 0x303   : > { %v3040_v58 = vpop.f32.mrf.mxu1 }
 0x304   : > { %v3279_v58 = vld [vmem:[%s3443_s10 + $0x218] sm:$0xff]  }
 0x305   : > { %v1486_v59 = vpop.f32.mrf.mxu1 }
 0x307   : > { %v3043_v60 = vpop.f32.mrf.mxu1 }
 0x308   : > { %v3280_v60 = vld [vmem:[%s3443_s10 + $0x1d0] sm:$0xff]  }
 0x309   : > { %v1489_v61 = vpop.f32.mrf.mxu1 }
 0x30a   : > { %v1550_v62 = vpack.c.bf16 %v1489_v61, %v1486_v59 }
 0x30b   : > { %v3044_v1 = vpop.f32.mrf.mxu1 }
 0x30c   : > { %2173 = vmatprep.mubr.bf16.mxu0 %v1550_v62  ;;  %v3283_v1 = vld [vmem:[%s3443_s10 + $0x1c8] sm:$0xff]  }
 0x30d   : > { %v1494_v3 = vpop.f32.mrf.mxu1  ;;  %2174 = vmatmul.mubr.bf16.vlgmr.msra.gmra.mxu0 %v1549_v0  ;;  %v3282_v0 = vld [vmem:[%s3443_s10 + $0x210] sm:$0xff]  }
 0x30e   : > { %2903 = vmatpush3.bf16.msra.mxu0 %v3242_v63  ;;  %v3281_v63 = vld [vmem:[%s3443_s10 + $0x190] sm:$0xff]  }
 0x30f   : > { %v3047_v6 = vpop.f32.mrf.mxu1  ;;  %2904 = vmatprep.subr.bf16.mxu0 %v3243_v2 }
 0x310   : > { %v3285_v6 = vld [vmem:[%s3443_s10 + $0x208] sm:$0xff]  }
 0x311   : > { %v1497_v8 = vpop.f32.mrf.mxu1 }
 0x312   : > { %2905 = vmatpush3.bf16.msra.mxu0 %v3244_v5  ;;  %v1551_v40 = vpack.c.bf16 %v1497_v8, %v1494_v3  ;;  %v3284_v5 = vld [vmem:[%s3443_s10 + $0x188] sm:$0xff]  }
 0x313   : > { %v3048_v10 = vpop.f32.mrf.mxu1  ;;  %2906 = vmatprep.subr.bf16.mxu0 %v3246_v7  ;;  %v3286_v7 = vld [vmem:[%s3443_s10 + $0x1c0] sm:$0xff]  }
 0x314   : > { %v3288_v10 = vld [vmem:[%s3443_s10 + $0x200] sm:$0xff]  }
 0x315   : > { %v1502_v12 = vpop.f32.mrf.mxu1 }
 0x316   : > { %2907 = vmatpush3.bf16.msra.mxu0 %v3248_v9  ;;  %v3287_v9 = vld [vmem:[%s3443_s10 + $0x180] sm:$0xff]  }
 0x317   : > { %v3051_v14 = vpop.f32.mrf.mxu1  ;;  %2908 = vmatprep.subr.bf16.mxu0 %v3249_v11 }
 0x319   : > { %v1505_v16 = vpop.f32.mrf.mxu1 }
 0x31a   : > { %v1552_v17 = vpack.c.bf16 %v1505_v16, %v1502_v12  ;;  %2909 = vmatpush3.bf16.msra.mxu0 %v3250_v13 }
 0x31b   : > { %v3052_v19 = vpop.f32.mrf.mxu1  ;;  %2910 = vmatprep.subr.bf16.mxu0 %v3251_v15 }
 0x31c   : > { %2214 = vmatprep.mubr.bf16.mxu0 %v1552_v17 }
 0x31d   : > { %v1510_v21 = vpop.f32.mrf.mxu1 }
 0x31e   : > { %2911 = vmatpush3.bf16.msra.mxu0 %v3253_v18 }
 0x31f   : > { %v3055_v23 = vpop.f32.mrf.mxu1  ;;  %2912 = vmatprep.subr.bf16.mxu0 %v3255_v20 }
 0x321   : > { %v1513_v29 = vpop.f32.mrf.mxu1 }
 0x322   : > { %2913 = vmatpush3.bf16.msra.mxu0 %v3256_v22  ;;  %v1553_v25 = vpack.c.bf16 %v1513_v29, %v1510_v21 }
 0x323   : > { %v3056_v31 = vpop.f32.mrf.mxu1  ;;  %2914 = vmatprep.subr.bf16.mxu0 %v3257_v28 }
 0x325   : > { %v1518_v33 = vpop.f32.mrf.mxu1 }
 0x326   : > { %2915 = vmatpush3.bf16.msra.mxu0 %v3258_v30 }
 0x327   : > { %v3059_v35 = vpop.f32.mrf.mxu1  ;;  %2916 = vmatprep.subr.bf16.mxu0 %v3261_v32 }
 0x329   : > { %v1521_v37 = vpop.f32.mrf.mxu1 }
 0x32a   : > { %v1554_v38 = vpack.c.bf16 %v1521_v37, %v1518_v33  ;;  %2917 = vmatpush3.bf16.msra.mxu0 %v3262_v34 }
 0x32b   : > { %2946 = vmatprep.subr.bf16.mxu0 %v3265_v36  ;;  %v3060_v41 = vpop.f32.mrf.mxu1 }
 0x32c   : > { %2255 = vmatprep.mubr.bf16.mxu1 %v1554_v38 }
 0x32d   : > { %2215 = vmatmul.mubr.bf16.vlgmr.msra.gmra.mxu0 %v1551_v40  ;;  %2256 = vmatmul.mubr.bf16.vlgmr.msra.gmra.mxu1 %v1553_v25  ;;  %v3720_v42 = vpop.f32.mrf.mxu1 }
 0x32e   : > { %2947 = vmatpush3.bf16.msra.mxu0 %v3266_v39  ;;  %3074 = vmatpush3.bf16.msra.mxu1 %v3267_v24 }
 0x32f   : > { %2948 = vmatprep.subr.bf16.mxu0 %v3268_v26  ;;  %3075 = vmatprep.subr.bf16.mxu1 %v3340_v4  ;;  %v3063_v45 = vpop.f32.mrf.mxu1 }
 0x330   : > { %3089 = vmatprep.mubr.msk.bf16.mxu1 %vm3341_vm0, %v3340_v4 }
 0x331   : > { %v1529_v46 = vpop.f32.mrf.mxu1 }
 0x332   : > { %2949 = vmatpush3.bf16.msra.mxu0 %v3269_v27  ;;  %3076 = vmatpush3.bf16.msra.mxu1 %v3270_v43  ;;  %v1555_v12 = vpack.c.bf16 %v1529_v46, %v3720_v42 }
 0x333   : > { %2950 = vmatprep.subr.bf16.mxu0 %v3271_v44  ;;  %3077 = vmatprep.subr.bf16.mxu1 %v3340_v4  ;;  %v3064_v50 = vpop.f32.mrf.mxu1 }
 0x335   : > { %v1534_v51 = vpop.f32.mrf.mxu1 }
 0x336   : > { %2951 = vmatpush3.bf16.msra.mxu0 %v3272_v47  ;;  %3078 = vmatpush3.bf16.msra.mxu1 %v3273_v48 }
 0x337   : > { %2952 = vmatprep.subr.bf16.mxu0 %v3274_v49  ;;  %3079 = vmatprep.subr.bf16.mxu1 %v3340_v4  ;;  %v3067_v55 = vpop.f32.mrf.mxu1 }
 0x339   : > { %v1537_v56 = vpop.f32.mrf.mxu1 }
 0x33a   : > { %2953 = vmatpush3.bf16.msra.mxu0 %v3275_v52  ;;  %3080 = vmatpush3.bf16.msra.mxu1 %v3276_v53  ;;  %v1556_v59 = vpack.c.bf16 %v1537_v56, %v1534_v51 }
 0x33b   : > { %2954 = vmatprep.subr.bf16.mxu0 %v3277_v54  ;;  %3081 = vmatprep.subr.bf16.mxu1 %v3340_v4  ;;  %v3068_v61 = vpop.f32.mrf.mxu1 }
 0x33c   : > { %2296 = vmatprep.mubr.bf16.mxu0 %v1556_v59 }
 0x33d   : > { %v1542_v62 = vpop.f32.mrf.mxu1 }
 0x33e   : > { %2955 = vmatpush3.bf16.msra.mxu0 %v3278_v57  ;;  %3082 = vmatpush3.bf16.msra.mxu1 %v3279_v58 }
 0x33f   : > { %2956 = vmatprep.subr.bf16.mxu0 %v3280_v60  ;;  %3083 = vmatprep.subr.bf16.mxu1 %v3340_v4  ;;  %v3071_v2 = vpop.f32.mrf.mxu1 }
 0x341   : > { %v1545_v3 = vpop.f32.mrf.mxu1 }
 0x342   : > { %2957 = vmatpush3.bf16.msra.mxu0 %v3281_v63  ;;  %3084 = vmatpush3.bf16.msra.mxu1 %v3282_v0  ;;  %v1557_v11 = vpack.c.bf16 %v1545_v3, %v1542_v62 }
 0x343   : > { %2958 = vmatprep.subr.bf16.mxu0 %v3283_v1  ;;  %3085 = vmatprep.subr.bf16.mxu1 %v3340_v4  ;;  %v3072_v8 = vpop.f32.mrf.mxu1 }
 0x346   : > { %2959 = vmatpush3.bf16.msra.mxu0 %v3284_v5  ;;  %3086 = vmatpush3.bf16.msra.mxu1 %v3285_v6 }
 0x347   : > { %2960 = vmatprep.subr.bf16.mxu0 %v3286_v7  ;;  %3087 = vmatprep.subr.bf16.mxu1 %v3340_v4  ;;  %v2681_v4 = vld [vmem:[%s3795_s25] ss:$0 sm:$0xff] }
 0x34a   : > { %2961 = vmatpush3.bf16.msra.mxu0 %v3287_v9  ;;  %3088 = vmatpush3.bf16.msra.mxu1 %v3288_v10 }
 0x34d   : > { %2297 = vmatmul.mubr.bf16.vlgmr.msra.gmra.mxu0 %v1555_v12  ;;  %3090 = vmatmul.mubr.bf16.vlgmr.msra.gmra.mxu1 %v1557_v11  ;;  %v3298_v12 = vld [vmem:[#allocation2] sm:$0xff] }
 0x3cd   : > { %v2896_v13 = vpop.f32.mrf.mxu0 }
 0x3cf   : > { %v2897_v14 = vpop.f32.mrf.mxu0 }
 0x3d0   : > { %v2898_v23 = vadd.f32 %v2897_v14, %v2896_v13  ;;  %v3299_v14 = vld [vmem:[#allocation2 + $0x8] sm:$0xff] }
 0x3d1   : > { %v2899_v15 = vpop.f32.mrf.mxu0 }
 0x3d2   : > { %v2176_v32 = vadd.f32 %v2898_v23, %v2681_v4 }
 0x3d3   : > { %v2900_v16 = vpop.f32.mrf.mxu0 }
 0x3d4   : > { %v2901_v29 = vadd.f32 %v2900_v16, %v2899_v15 }
 0x3d6   : > { %v2179_v36 = vadd.f32 %v2901_v29, %v2681_v4 }
 0x3ed   : > { %v2918_v17 = vpop.f32.mrf.mxu0  ;;  %v2940_v18 = vpop.f32.mrf.mxu1 }
 0x3ef   : > { %v2919_v19 = vpop.f32.mrf.mxu0  ;;  %v2941_v20 = vpop.f32.mrf.mxu1 }
 0x3f0   : > { %v2920_v30 = vadd.f32 %v2919_v19, %v2918_v17  ;;  %v2942_v38 = vadd.f32 %v2941_v20, %v2940_v18 }
 0x3f1   : > { %v2921_v21 = vpop.f32.mrf.mxu0  ;;  %v2943_v22 = vpop.f32.mrf.mxu1 }
 0x3f2   : > { %v2217_v37 = vadd.f32 %v2920_v30, %v2176_v32 }
 0x3f3   : > { %v2922_v28 = vpop.f32.mrf.mxu0  ;;  %v2944_v31 = vpop.f32.mrf.mxu1 }
 0x3f4   : > { %v2923_v33 = vadd.f32 %v2922_v28, %v2921_v21  ;;  %v2945_v25 = vadd.f32 %v2944_v31, %v2943_v22  ;;  %v2258_v27 = vadd.f32 %v2942_v38, %v2217_v37 }
 0x3f6   : > { %v2220_v40 = vadd.f32 %v2923_v33, %v2179_v36 }
 0x3f8   : > { %v2261_v45 = vadd.f32 %v2945_v25, %v2220_v40 }
 0x40d   : > { %v2962_v34 = vpop.f32.mrf.mxu0  ;;  %v2339_v35 = vpop.f32.mrf.mxu1 }
 0x40f   : > { %v2963_v39 = vpop.f32.mrf.mxu0  ;;  %v3091_v24 = vpop.f32.mrf.mxu1 }
 0x410   : > { %v2964_v41 = vadd.f32 %v2963_v39, %v2962_v34 }
 0x411   : > { %v2965_v26 = vpop.f32.mrf.mxu0  ;;  %v2342_v42 = vpop.f32.mrf.mxu1 }
 0x412   : > { %v2299_v46 = vadd.f32 %v2964_v41, %v2258_v27 }
 0x413   : > { %v2966_v43 = vpop.f32.mrf.mxu0  ;;  %v3092_v44 = vpop.f32.mrf.mxu1 }
 0x414   : > { %v2967_v47 = vadd.f32 %v2966_v43, %v2965_v26  ;;  %v2340_v49 = vadd.f32 %v2339_v35, %v2299_v46 }
 0x416   : > { %v2302_v48 = vadd.f32 %v2967_v47, %v2261_v45 }
 0x418   : > { %v2343_v50 = vadd.f32 %v2342_v42, %v2302_v48 }
 0x41a   : > { %v2346_v51 = vadd.f32 %v2343_v50, %v2340_v49 }
 0x41c   : > { %v2347_v52 = vrot.slane %v2346_v51, 4 }
 0x41e   : > { %v2348_v53 = vadd.f32 %v2347_v52, %v2346_v51 }
 0x420   : > { %v2349_v54 = vrot.slane %v2348_v53, 2 }
 0x422   : > { %v2350_v55 = vadd.f32 %v2349_v54, %v2348_v53 }
 0x424   : > { %v2351_v56 = vrot.slane %v2350_v55, 1 }
 0x426   : > { %v2352_v57 = vadd.f32 %v2351_v56, %v2350_v55 }
 0x428   : > { %v2353_v58 = vmul.f32 0.0625, %v2352_v57 }
 0x42a   : > { %v2354_v59 = vsub.f32 %v2340_v49, %v2353_v58  ;;  %v2355_v60 = vsub.f32 %v2343_v50, %v2353_v58 }
 0x42c   : > { %v2356_v61 = vmul.f32 %v2354_v59, %v2354_v59  ;;  %v2357_v62 = vmul.f32 %v2355_v60, %v2355_v60 }
 0x42e   : > { %v2358_v63 = vadd.f32 %v2357_v62, %v2356_v61 }
 0x430   : > { %v2359_v0 = vrot.slane %v2358_v63, 4 }
 0x432   : > { %v2360_v1 = vadd.f32 %v2359_v0, %v2358_v63 }
 0x434   : > { %v2361_v2 = vrot.slane %v2360_v1, 2 }
 0x436   : > { %v2362_v3 = vadd.f32 %v2361_v2, %v2360_v1 }
 0x438   : > { %v2363_v5 = vrot.slane %v2362_v3, 1 }
 0x43a   : > { %v2364_v6 = vadd.f32 %v2363_v5, %v2362_v3 }
 0x43c   : > { %v2365_v7 = vmul.f32 0.0625, %v2364_v6 }
 0x43e   : > { %v2366_v8 = vadd.f32 1e-05, %v2365_v7 }
 0x440   : > { %3291 = vrsqrt.f32 %v2366_v8 }
 0x44d   : > { %v3292_v9 = vpop.eup %3291 }
 0x44e   : > { %v2368_v10 = vmul.f32 %v3292_v9, %v2354_v59  ;;  %v2369_v11 = vmul.f32 %v3292_v9, %v2355_v60  ;;  %2376 = sbr.rel (%p2580_p7) target bundleno = 1108 (0x454), region = 52 }
 0x450   : > { %v2370_v13 = vadd.f32 %v3298_v12, %v2368_v10  ;;  %v2371_v15 = vadd.f32 %v3299_v14, %v2369_v11 }
 0x452   : > { %2372 = vst [vmem:[#allocation2] sm:$0xff] %v2370_v13  ;;  %2373 = vst [vmem:[#allocation2 + $0x8] sm:$0xff] %v2371_v15 }
 0x453   : > { %2377 = vst [vmem:[%s3453_s21] sm:$0xff] %v2370_v13  ;;  %2378 = vst [vmem:[%s3453_s21 + $0x8] sm:$0xff] %v2371_v15 }
 0x454 PF: > { %p2755_p8 = scmp.ne.s32.totalorder %s3322_s27, 1 }
 0x456   : > { %2382 = sbr.rel (%p2755_p8) target bundleno = 1116 (0x45c), region = 56 }
 0x45b   : > { %2383 = vst [vmem:[%s3458_s24] sm:$0xff] %v2370_v13  ;;  %2384 = vst [vmem:[%s3458_s24 + $0x8] sm:$0xff] %v2371_v15 }
 0x45c PF: > { %p2756_p9 = scmp.ne.s32.totalorder %s3322_s27, 8 }
 0x45e   : > { %2388 = sbr.rel (%p2756_p9) target bundleno = 1124 (0x464), region = 60 }
 0x463   : > { %2389 = vst [vmem:[%s3448_s0] sm:$0xff] %v2370_v13  ;;  %2390 = vst [vmem:[%s3448_s0 + $0x8] sm:$0xff] %v2371_v15 }
 0x464 PF: > { %s19_s9 = sadd.s32 1, %s3338_s9   ;;  %s3796_s12 = sld [smem:[#allocation3_spill]] }
 0x465   : > { %p16_p10 = scmp.ge.s32.totalorder %s19_s9, 20   ;;  %s3797_s21 = sld [smem:[#allocation4_spill]] }
 0x466   : > { %s3798_s27 = smov %s3330_s29  ;;  %s3799_s28 = smov %s3334_s30 }
 0x467   :  { %18 = sbr.rel (!%p16_p10) target bundleno = 3 (0x3), region = 126 }
 0x46a   : > { %s3800_s29 = smov %s3796_s12 }
 0x46b   : > { %s3801_s30 = smov %s3797_s21 }

// kernel: generator_f2s.25
= control target key start
LH: loop header
LB: loop body
LE: loop exit
PB: predicated region body
PF: predicated region fallthrough
CT: control target
= control target key end

     0   :  { %s1054_s12 = smov 0   ;;  %s1296_s0 = inlined_call_operand.vmem [shape: bf16[2,16,512], index: 0, kind: input, shape index: {}]   ;;  %s1297_s1 = inlined_call_operand.vmem [shape: bf16[512,256], index: 1, kind: input, shape index: {}]   ;;  %s1298_s2 = inlined_call_operand.vmem [shape: f32[1,256], index: 2, kind: input, shape index: {}]   ;;  %s1299_s3 = inlined_call_operand.vmem [shape: f32[2,16,256], index: 3, kind: output, shape index: {}]  }
   0x1 LB: > { %s831_s13 = sadd.s32 4294967295, %s1031_s12   ;;  %p835_p0 = scmp.ge.s32.totalorder %s1031_s12, 1  ;;  %s1031_s12 = sphi %s1054_s12, %s13_s12  }
   0x2   : > { %p137_p1 = scmp.lt.s32.totalorder %s1031_s12, 3 }
   0x4   : > { %p138_p2 = pnand %p835_p0, %p137_p1 }
   0x5   : > { %p161_p3 = scmp.lt.s32.totalorder (!%p138_p2), %s831_s13, 1 }
   0x6   : > { %141 = sbr.rel (%p138_p2) target bundleno = 817 (0x331), region = 32 }
   0xb   : > { %v921_v0 = vld [vmem:[%s1297_s1 + $0x74] ss:$8 sps:$4 sm:$0xff]   ;;  %v925_v2 = vld [vmem:[%s1297_s1 + $0x70] ss:$8 sps:$4 sm:$0xff]   ;;  %v927_v4 = vld [vmem:[%s1297_s1 + $0x64] ss:$8 sps:$4 sm:$0xff]  }
   0xc   : > { %v923_v1 = vld [vmem:[%s1297_s1 + $0x174] ss:$8 sps:$4 sm:$0xff]   ;;  %591 = vmatprep.subr.bf16.mxu0 %v921_v0  ;;  %v926_v3 = vld [vmem:[%s1297_s1 + $0x170] ss:$8 sps:$4 sm:$0xff]   ;;  %v929_v5 = vld [vmem:[%s1297_s1 + $0x164] ss:$8 sps:$4 sm:$0xff]  }
   0xd   : > { %634 = vmatprep.subr.bf16.mxu1 %v923_v1  ;;  %592 = vmatpush1.bf16.msra.mxu0 %v925_v2  ;;  %v931_v6 = vld [vmem:[%s1297_s1 + $0x60] ss:$8 sps:$4 sm:$0xff]   ;;  %v933_v8 = vld [vmem:[%s1297_s1 + $0x54] ss:$8 sps:$4 sm:$0xff]   ;;  %v937_v10 = vld [vmem:[%s1297_s1 + $0x50] ss:$8 sps:$4 sm:$0xff]  }
   0xe   : > { %635 = vmatpush1.bf16.msra.mxu1 %v926_v3  ;;  %593 = vmatprep.subr.bf16.mxu0 %v927_v4  ;;  %v932_v7 = vld [vmem:[%s1297_s1 + $0x160] ss:$8 sps:$4 sm:$0xff]   ;;  %v935_v9 = vld [vmem:[%s1297_s1 + $0x154] ss:$8 sps:$4 sm:$0xff]   ;;  %v938_v11 = vld [vmem:[%s1297_s1 + $0x150] ss:$8 sps:$4 sm:$0xff]   ;;  %v241_v4 = vlaneseq }
   0xf   : > { %636 = vmatprep.subr.bf16.mxu1 %v929_v5  ;;  %v939_v12 = vld [vmem:[%s1297_s1 + $0x44] ss:$8 sps:$4 sm:$0xff]   ;;  %v943_v14 = vld [vmem:[%s1297_s1 + $0x40] ss:$8 sps:$4 sm:$0xff]   ;;  %v945_v16 = vld [vmem:[%s1297_s1 + $0x34] ss:$8 sps:$4 sm:$0xff]  }
  0x10   : > { %v941_v13 = vld [vmem:[%s1297_s1 + $0x144] ss:$8 sps:$4 sm:$0xff]   ;;  %v944_v15 = vld [vmem:[%s1297_s1 + $0x140] ss:$8 sps:$4 sm:$0xff]   ;;  %v947_v17 = vld [vmem:[%s1297_s1 + $0x134] ss:$8 sps:$4 sm:$0xff]  }
  0x11   : > { %594 = vmatpush1.bf16.msra.mxu0 %v931_v6  ;;  %v949_v18 = vld [vmem:[%s1297_s1 + $0x30] ss:$8 sps:$4 sm:$0xff]   ;;  %v951_v20 = vld [vmem:[%s1297_s1 + $0x24] ss:$8 sps:$4 sm:$0xff]   ;;  %v955_v22 = vld [vmem:[%s1297_s1 + $0x20] ss:$8 sps:$4 sm:$0xff]  }
  0x12   : > { %637 = vmatpush1.bf16.msra.mxu1 %v932_v7  ;;  %595 = vmatprep.subr.bf16.mxu0 %v933_v8  ;;  %v950_v19 = vld [vmem:[%s1297_s1 + $0x130] ss:$8 sps:$4 sm:$0xff]   ;;  %v953_v21 = vld [vmem:[%s1297_s1 + $0x124] ss:$8 sps:$4 sm:$0xff]   ;;  %v956_v23 = vld [vmem:[%s1297_s1 + $0x120] ss:$8 sps:$4 sm:$0xff]  }
  0x13   : > { %638 = vmatprep.subr.bf16.mxu1 %v935_v9  ;;  %v957_v24 = vld [vmem:[%s1297_s1 + $0x14] ss:$8 sps:$4 sm:$0xff]   ;;  %v961_v26 = vld [vmem:[%s1297_s1 + $0x10] ss:$8 sps:$4 sm:$0xff]   ;;  %v963_v28 = vld [vmem:[%s1297_s1 + $0x4] ss:$8 sps:$4 sm:$0xff]  }
  0x14   : > { %v959_v25 = vld [vmem:[%s1297_s1 + $0x114] ss:$8 sps:$4 sm:$0xff]   ;;  %v962_v27 = vld [vmem:[%s1297_s1 + $0x110] ss:$8 sps:$4 sm:$0xff]   ;;  %v965_v29 = vld [vmem:[%s1297_s1 + $0x104] ss:$8 sps:$4 sm:$0xff]  }
  0x15   : > { %596 = vmatpush1.bf16.msra.mxu0 %v937_v10  ;;  %v967_v30 = vld [vmem:[%s1297_s1] ss:$8 sps:$4 sm:$0xff]   ;;  %v969_v32 = vld [vmem:[%s1297_s1 + $0xf4] ss:$8 sps:$4 sm:$0xff]   ;;  %v973_v34 = vld [vmem:[%s1297_s1 + $0xf0] ss:$8 sps:$4 sm:$0xff]  }
  0x16   : > { %639 = vmatpush1.bf16.msra.mxu1 %v938_v11  ;;  %597 = vmatprep.subr.bf16.mxu0 %v939_v12  ;;  %v968_v31 = vld [vmem:[%s1297_s1 + $0x100] ss:$8 sps:$4 sm:$0xff]   ;;  %v971_v33 = vld [vmem:[%s1297_s1 + $0x1f4] ss:$8 sps:$4 sm:$0xff]   ;;  %v974_v35 = vld [vmem:[%s1297_s1 + $0x1f0] ss:$8 sps:$4 sm:$0xff]  }
  0x17   : > { %640 = vmatprep.subr.bf16.mxu1 %v941_v13  ;;  %v975_v36 = vld [vmem:[%s1297_s1 + $0xe4] ss:$8 sps:$4 sm:$0xff]   ;;  %s1301_s13 = smov (!%p161_p3, %s831_s13), 1  ;;  %v979_v38 = vld [vmem:[%s1297_s1 + $0xe0] ss:$8 sps:$4 sm:$0xff]   ;;  %v242_v5 = vshrl.u32 %v241_v4, 7 }
  0x18   : > { %v977_v37 = vld [vmem:[%s1297_s1 + $0x1e4] ss:$8 sps:$4 sm:$0xff]   ;;  %v980_v39 = vld [vmem:[%s1297_s1 + $0x1e0] ss:$8 sps:$4 sm:$0xff]   ;;  %v981_v40 = vld [vmem:[%s1297_s1 + $0xd4] ss:$8 sps:$4 sm:$0xff]  }
  0x19   : > { %598 = vmatpush1.bf16.msra.mxu0 %v943_v14  ;;  %v983_v41 = vld [vmem:[%s1297_s1 + $0x1d4] ss:$8 sps:$4 sm:$0xff]   ;;  %s910_s23 = sshll.u32 %s1301_s13, 5  ;;  %v985_v42 = vld [vmem:[%s1297_s1 + $0xd0] ss:$8 sps:$4 sm:$0xff]   ;;  %v1272_v6 = vsub.s32 0, %v242_v5 }
  0x1a   : > { %641 = vmatpush1.bf16.msra.mxu1 %v944_v15  ;;  %599 = vmatprep.subr.bf16.mxu0 %v945_v16  ;;  %v986_v43 = vld [vmem:[%s1297_s1 + $0x1d0] ss:$8 sps:$4 sm:$0xff]   ;;  %v987_v44 = vld [vmem:[%s1297_s1 + $0xc4] ss:$8 sps:$4 sm:$0xff]   ;;  %s1209_s5 = scalar_lea.vmem %s1296_s0, %s910_s23  ;;  %v991_v46 = vld [vmem:[%s1297_s1 + $0xc0] ss:$8 sps:$4 sm:$0xff]   ;;  %s170_s28 = scalar_lea.vmem %s1299_s3, %s910_s23 }
  0x1b   : > { %642 = vmatprep.subr.bf16.mxu1 %v947_v17  ;;  %v989_v45 = vld [vmem:[%s1297_s1 + $0x1c4] ss:$8 sps:$4 sm:$0xff]   ;;  %v992_v48 = vld [vmem:[%s1297_s1 + $0x1c0] ss:$8 sps:$4 sm:$0xff]   ;;  %v993_v49 = vld [vmem:[%s1297_s1 + $0xb4] ss:$8 sps:$4 sm:$0xff]  }
  0x1c   : > { %v1019_v47 = vld [vmem:[%s1209_s5 + $0x4] ss:$16 sps:$4 sm:$0xff]   ;;  %v1022_v51 = vld [vmem:[%s1209_s5 + $0xc] ss:$16 sps:$4 sm:$0xff]   ;;  %v997_v52 = vld [vmem:[%s1297_s1 + $0xb0] ss:$8 sps:$4 sm:$0xff]  }
  0x1d   : > { %600 = vmatpush1.bf16.msra.mxu0 %v949_v18  ;;  %v995_v50 = vld [vmem:[%s1297_s1 + $0x1b4] ss:$8 sps:$4 sm:$0xff]   ;;  %623 = vmatprep.mubr.bf16.mxu0 %v1019_v47  ;;  %v998_v53 = vld [vmem:[%s1297_s1 + $0x1b0] ss:$8 sps:$4 sm:$0xff]   ;;  %v999_v54 = vld [vmem:[%s1297_s1 + $0xa4] ss:$8 sps:$4 sm:$0xff]  }
  0x1e   : > { %643 = vmatpush1.bf16.msra.mxu1 %v950_v19  ;;  %601 = vmatprep.subr.bf16.mxu0 %v951_v20  ;;  %v1001_v55 = vld [vmem:[%s1297_s1 + $0x1a4] ss:$8 sps:$4 sm:$0xff]   ;;  %v1003_v56 = vld [vmem:[%s1297_s1 + $0xa0] ss:$8 sps:$4 sm:$0xff]   ;;  %v1005_v58 = vld [vmem:[%s1297_s1 + $0x94] ss:$8 sps:$4 sm:$0xff]  }
  0x1f   : > { %644 = vmatprep.subr.bf16.mxu1 %v953_v21  ;;  %666 = vmatprep.mubr.bf16.mxu1 %v1022_v51  ;;  %v1004_v57 = vld [vmem:[%s1297_s1 + $0x1a0] ss:$8 sps:$4 sm:$0xff]   ;;  %v1007_v59 = vld [vmem:[%s1297_s1 + $0x194] ss:$8 sps:$4 sm:$0xff]   ;;  %v1009_v60 = vld [vmem:[%s1297_s1 + $0x90] ss:$8 sps:$4 sm:$0xff]  }
  0x20   : > { %v1010_v61 = vld [vmem:[%s1297_s1 + $0x190] ss:$8 sps:$4 sm:$0xff]   ;;  %v1011_v62 = vld [vmem:[%s1297_s1 + $0x84] ss:$8 sps:$4 sm:$0xff]   ;;  %v1015_v0 = vld [vmem:[%s1297_s1 + $0x80] ss:$8 sps:$4 sm:$0xff]  }
  0x21   : > { %602 = vmatpush1.bf16.msra.mxu0 %v955_v22  ;;  %v1013_v63 = vld [vmem:[%s1297_s1 + $0x184] ss:$8 sps:$4 sm:$0xff]   ;;  %v1016_v1 = vld [vmem:[%s1297_s1 + $0x180] ss:$8 sps:$4 sm:$0xff]   ;;  %v247_v8 = vsub.s32 1, %v242_v5  ;;  %vm711_vm0 = vcmask 523264  }
  0x22   : > { %645 = vmatpush1.bf16.msra.mxu1 %v956_v23  ;;  %603 = vmatprep.subr.bf16.mxu0 %v957_v24  ;;  %v1017_v2 = vld [vmem:[%s1209_s5] ss:$16 sps:$4 sm:$0xff]   ;;  %v1020_v3 = vld [vmem:[%s1209_s5 + $0x8] ss:$16 sps:$4 sm:$0xff]   ;;  %s1033_s5 = smov 64  }
  0x23   : > { %646 = vmatprep.subr.bf16.mxu1 %v959_v25  ;;  %v239_v7 = vld [vmem:[%s1298_s2] sm:$0x3] }
  0x24   : > { %v244_v9 = vrot.slane %v239_v7, %v1272_v6  ;;  %v248_v12 = vrot.slane %v239_v7, %v247_v8 }
  0x25   : > { %604 = vmatpush1.bf16.msra.mxu0 %v961_v26 }
  0x26   : > { %647 = vmatpush1.bf16.msra.mxu1 %v962_v27  ;;  %605 = vmatprep.subr.bf16.mxu0 %v963_v28 }
  0x27   : > { %648 = vmatprep.subr.bf16.mxu1 %v965_v29 }
  0x29   : > { %606 = vmatpush1.bf16.msra.mxu0 %v967_v30 }
  0x2a   : > { %649 = vmatpush1.bf16.msra.mxu1 %v968_v31  ;;  %607 = vmatprep.subr.bf16.mxu0 %v969_v32 }
  0x2b   : > { %650 = vmatprep.subr.bf16.mxu1 %v971_v33 }
  0x2d   : > { %608 = vmatpush2.bf16.msra.mxu0 %v973_v34 }
  0x2e   : > { %651 = vmatpush2.bf16.msra.mxu1 %v974_v35  ;;  %609 = vmatprep.subr.bf16.mxu0 %v975_v36 }
  0x2f   : > { %652 = vmatprep.subr.bf16.mxu1 %v977_v37 }
  0x31   : > { %610 = vmatpush2.bf16.msra.mxu0 %v979_v38 }
  0x32   : > { %653 = vmatpush2.bf16.msra.mxu1 %v980_v39  ;;  %611 = vmatprep.subr.bf16.mxu0 %v981_v40 }
  0x33   : > { %654 = vmatprep.subr.bf16.mxu1 %v983_v41 }
  0x35   : > { %612 = vmatpush2.bf16.msra.mxu0 %v985_v42 }
  0x36   : > { %655 = vmatpush2.bf16.msra.mxu1 %v986_v43  ;;  %613 = vmatprep.subr.bf16.mxu0 %v987_v44 }
  0x37   : > { %656 = vmatprep.subr.bf16.mxu1 %v989_v45 }
  0x39   : > { %614 = vmatpush2.bf16.msra.mxu0 %v991_v46 }
  0x3a   : > { %657 = vmatpush2.bf16.msra.mxu1 %v992_v48  ;;  %615 = vmatprep.subr.bf16.mxu0 %v993_v49 }
  0x3b   : > { %658 = vmatprep.subr.bf16.mxu1 %v995_v50 }
  0x3d   : > { %616 = vmatpush2.bf16.msra.mxu0 %v997_v52 }
  0x3e   : > { %659 = vmatpush2.bf16.msra.mxu1 %v998_v53  ;;  %617 = vmatprep.subr.bf16.mxu0 %v999_v54 }
  0x3f   : > { %660 = vmatprep.subr.bf16.mxu1 %v1001_v55 }
  0x41   : > { %618 = vmatpush2.bf16.msra.mxu0 %v1003_v56 }
  0x42   : > { %661 = vmatpush2.bf16.msra.mxu1 %v1004_v57  ;;  %619 = vmatprep.subr.bf16.mxu0 %v1005_v58 }
  0x43   : > { %662 = vmatprep.subr.bf16.mxu1 %v1007_v59 }
  0x45   : > { %620 = vmatpush2.bf16.msra.mxu0 %v1009_v60 }
  0x46   : > { %663 = vmatpush2.bf16.msra.mxu1 %v1010_v61  ;;  %621 = vmatprep.subr.bf16.mxu0 %v1011_v62 }
  0x47   : > { %664 = vmatprep.subr.bf16.mxu1 %v1013_v63 }
  0x49   : > { %622 = vmatpush2.bf16.msra.mxu0 %v1015_v0 }
  0x4a   : > { %665 = vmatpush2.bf16.msra.mxu1 %v1016_v1 }
  0x4c   : > { %624 = vmatmul.mubr.bf16.vlgmr.msra.gmra.mxu0 %v1017_v2 }
  0x4d   : > { %667 = vmatmul.mubr.bf16.vlgmr.msra.gmra.mxu1 %v1020_v3 }
 0x10c   : > { %v625_v10 = vpop.f32.mrf.mxu0 }
 0x10d   : > { %v668_v11 = vpop.f32.mrf.mxu1  ;;  %v626_v15 = vadd.f32 %v625_v10, %v244_v9 }
 0x10e   : > { %v627_v13 = vpop.f32.mrf.mxu0 }
 0x10f   : > { %v670_v14 = vpop.f32.mrf.mxu1  ;;  %v628_v18 = vadd.f32 %v627_v13, %v248_v12  ;;  %v669_v21 = vadd.f32 %v668_v11, %v626_v15 }
 0x110   : > { %v629_v16 = vpop.f32.mrf.mxu0 }
 0x111   : > { %v672_v17 = vpop.f32.mrf.mxu1  ;;  %v630_v19 = vadd.f32 %v629_v16, %v244_v9  ;;  %v671_v25 = vadd.f32 %v670_v14, %v628_v18 }
 0x112   : > { %v631_v20 = vpop.f32.mrf.mxu0 }
 0x113   : > { %v673_v22 = vadd.f32 %v672_v17, %v630_v19  ;;  %v632_v23 = vadd.f32 %v631_v20, %v248_v12  ;;  %v674_v24 = vpop.f32.mrf.mxu1 }
 0x115   : > { %v677_v26 = vadd.f32 %v673_v22, %v669_v21  ;;  %v675_v27 = vadd.f32 %v674_v24, %v632_v23 }
 0x117   : > { %v678_v28 = vrot.slane %v677_v26, 4  ;;  %v684_v29 = vadd.f32 %v675_v27, %v671_v25 }
 0x119   : > { %v679_v30 = vadd.f32 %v678_v28, %v677_v26  ;;  %v685_v31 = vrot.slane %v684_v29, 4 }
 0x11b   : > { %v686_v32 = vadd.f32 %v685_v31, %v684_v29  ;;  %v680_v33 = vrot.slane %v679_v30, 2 }
 0x11d   : > { %v687_v34 = vrot.slane %v686_v32, 2  ;;  %v681_v35 = vadd.f32 %v680_v33, %v679_v30 }
 0x11f   : > { %v682_v36 = vrot.slane %v681_v35, 1  ;;  %v688_v37 = vadd.f32 %v687_v34, %v686_v32 }
 0x121   : > { %v683_v38 = vadd.f32 %v682_v36, %v681_v35  ;;  %v689_v39 = vrot.slane %v688_v37, 1 }
 0x123   : > { %v692_v40 = vmul.f32 0.0625, %v683_v38  ;;  %v690_v41 = vadd.f32 %v689_v39, %v688_v37 }
 0x125   : > { %695 = vrot.lane.b32.xlu0 %v692_v40, %s1033_s5  ;;  %v693_v42 = vmul.f32 0.0625, %v690_v41 }
 0x129   : > { %701 = vrot.lane.b32.xlu0 %v693_v42, %s1033_s5 }
 0x197   : > { %v696_v43 = vpop.permute.xlu0 %695 }
 0x198   : > { %v698_v44 = vadd.f32 %v696_v43, %v692_v40 }
 0x19a   : > { %v699_v45 = vadd.f32 %v698_v44, %v693_v42 }
 0x19b   : > { %v702_v46 = vpop.permute.xlu0 %701 }
 0x19c   : > { %v704_v47 = vadd.f32 %v702_v46, %v699_v45 }
 0x19e   : > { %v706_v48 = vmul.f32 0.25, %v704_v47 }
 0x1a0   : > { %708 = vrot.lane.b32.xlu1 %v706_v48, %s1033_s5 }
 0x212   : > { %v709_v49 = vpop.permute.xlu1 %708 }
 0x213   : > { %v712_v50 = vsel %vm711_vm0, %v706_v48, %v709_v49 }
 0x214   : > { %v716_v51 = vrot.slane %v712_v50, %v1272_v6 }
 0x216   : > { %v717_v52 = vsub.f32 %v669_v21, %v716_v51  ;;  %v718_v53 = vsub.f32 %v671_v25, %v716_v51  ;;  %v719_v54 = vsub.f32 %v673_v22, %v716_v51  ;;  %v720_v55 = vsub.f32 %v675_v27, %v716_v51 }
 0x218   : > { %v722_v56 = vmul.f32 %v718_v53, %v718_v53  ;;  %v724_v57 = vmul.f32 %v720_v55, %v720_v55  ;;  %v721_v58 = vmul.f32 %v717_v52, %v717_v52  ;;  %v723_v59 = vmul.f32 %v719_v54, %v719_v54 }
 0x21a   : > { %v732_v60 = vadd.f32 %v724_v57, %v722_v56  ;;  %v725_v61 = vadd.f32 %v723_v59, %v721_v58 }
 0x21c   : > { %v733_v62 = vrot.slane %v732_v60, 4  ;;  %v726_v63 = vrot.slane %v725_v61, 4 }
 0x21e   : > { %v734_v0 = vadd.f32 %v733_v62, %v732_v60  ;;  %v727_v1 = vadd.f32 %v726_v63, %v725_v61 }
 0x220   : > { %v735_v2 = vrot.slane %v734_v0, 2  ;;  %v728_v3 = vrot.slane %v727_v1, 2 }
 0x222   : > { %v736_v4 = vadd.f32 %v735_v2, %v734_v0  ;;  %v729_v5 = vadd.f32 %v728_v3, %v727_v1 }
 0x224   : > { %v737_v7 = vrot.slane %v736_v4, 1  ;;  %v730_v8 = vrot.slane %v729_v5, 1 }
 0x226   : > { %v738_v9 = vadd.f32 %v737_v7, %v736_v4  ;;  %v731_v10 = vadd.f32 %v730_v8, %v729_v5 }
 0x228   : > { %v740_v11 = vmul.f32 0.0625, %v738_v9  ;;  %v739_v12 = vmul.f32 0.0625, %v731_v10 }
 0x22a   : > { %748 = vrot.lane.b32.xlu0 %v740_v11, %s1033_s5  ;;  %742 = vrot.lane.b32.xlu1 %v739_v12, %s1033_s5 }
 0x29c   : > { %v743_v13 = vpop.permute.xlu1 %742  ;;  %v749_v16 = vpop.permute.xlu0 %748 }
 0x29d   : > { %v745_v14 = vadd.f32 %v743_v13, %v739_v12 }
 0x29f   : > { %v746_v15 = vadd.f32 %v745_v14, %v740_v11 }
 0x2a1   : > { %v751_v17 = vadd.f32 %v749_v16, %v746_v15 }
 0x2a3   : > { %v752_v18 = vmul.f32 0.25, %v751_v17 }
 0x2a5   : > { %754 = vrot.lane.b32.xlu1 %v752_v18, %s1033_s5 }
 0x317   : > { %v755_v19 = vpop.permute.xlu1 %754 }
 0x318   : > { %v757_v20 = vsel %vm711_vm0, %v752_v18, %v755_v19 }
 0x319   : > { %v758_v21 = vadd.f32 1e-05, %v757_v20 }
 0x31b   : > { %1023 = vrsqrt.f32 %v758_v21 }
 0x328   : > { %v1024_v22 = vpop.eup %1023 }
 0x329   : > { %v763_v23 = vrot.slane %v1024_v22, %v1272_v6 }
 0x32b   : > { %v764_v24 = vmul.f32 %v763_v23, %v717_v52  ;;  %v765_v25 = vmul.f32 %v763_v23, %v718_v53  ;;  %v766_v26 = vmul.f32 %v763_v23, %v719_v54  ;;  %v767_v27 = vmul.f32 %v763_v23, %v720_v55 }
 0x32d   : > { %v768_v28 = vmax.f32 %v764_v24, 0.0  ;;  %v769_v29 = vmax.f32 %v765_v25, 0.0  ;;  %v770_v30 = vmax.f32 %v766_v26, 0.0  ;;  %v771_v31 = vmax.f32 %v767_v27, 0.0 }
 0x32f   : > { %772 = vst [vmem:[%s170_s28] sm:$0xff] %v768_v28  ;;  %773 = vst [vmem:[%s170_s28 + $0x8] sm:$0xff] %v769_v29 }
 0x330   : > { %774 = vst [vmem:[%s170_s28 + $0x10] sm:$0xff] %v770_v30  ;;  %775 = vst [vmem:[%s170_s28 + $0x18] sm:$0xff] %v771_v31 }
 0x331 PF: > { %s13_s12 = sadd.s32 1, %s1031_s12  }
 0x332   : > { %p10_p4 = scmp.ge.s32.totalorder %s13_s12, 4  }
 0x334   :  { %12 = sbr.rel (!%p10_p4) target bundleno = 1 (0x1), region = 62 }

// kernel: generator_f2s.26
= control target key start
LH: loop header
LB: loop body
LE: loop exit
PB: predicated region body
PF: predicated region fallthrough
CT: control target
= control target key end

     0   :  { %s778_s12 = smov 0   ;;  %s884_s0 = inlined_call_operand.vmem [shape: bf16[2,64,256], index: 0, kind: input, shape index: {}]   ;;  %s885_s1 = inlined_call_operand.vmem [shape: bf16[256,128], index: 1, kind: input, shape index: {}]   ;;  %s886_s2 = inlined_call_operand.vmem [shape: f32[1,128], index: 2, kind: input, shape index: {}]   ;;  %s887_s3 = inlined_call_operand.vmem [shape: f32[2,64,128], index: 3, kind: output, shape index: {}]  }
   0x1 LB: > { %s612_s13 = sadd.s32 4294967295, %s753_s12   ;;  %p616_p0 = scmp.ge.s32.totalorder %s753_s12, 1  ;;  %s753_s12 = sphi %s778_s12, %s13_s12  }
   0x2   : > { %p137_p1 = scmp.lt.s32.totalorder %s753_s12, 3 }
   0x4   : > { %p138_p2 = pnand %p616_p0, %p137_p1 }
   0x5   : > { %p161_p3 = scmp.lt.s32.totalorder (!%p138_p2), %s612_s13, 1  ;;  %s755_s27 = smov (!%p138_p2), 32  }
   0x6   : > { %141 = sbr.rel (%p138_p2) target bundleno = 827 (0x33b), region = 32  ;;  %s756_s28 = smov (!%p138_p2), 96  }
   0x7   : > { %s757_s29 = smov (!%p138_p2), 64  }
   0xb   : > { %v717_v0 = vld [vmem:[%s885_s1 + $0x78] sm:$0xff]   ;;  %v719_v2 = vld [vmem:[%s885_s1 + $0x70] sm:$0xff]   ;;  %v721_v4 = vld [vmem:[%s885_s1 + $0x68] sm:$0xff]   ;;  %s889_s13 = smov (!%p161_p3, %s612_s13), 1  ;;  %vm460_vm0 = vcmask 261120   ;;  %vm462_vm1 = vcmask 523264  }
   0xc   : > { %v718_v1 = vld [vmem:[%s885_s1 + $0x38] sm:$0xff]   ;;  %650 = vmatprep.subr.bf16.mxu0 %v717_v0  ;;  %690 = vmatprep.subr.bf16.mxu1 %v717_v0  ;;  %v720_v3 = vld [vmem:[%s885_s1 + $0x30] sm:$0xff]   ;;  %v722_v5 = vld [vmem:[%s885_s1 + $0x28] sm:$0xff]   ;;  %s648_s30 = sshll.u32 %s889_s13, 6  ;;  %vm464_vm2 = vcmask 785408  }
   0xd   : > { %651 = vmatpush3.bf16.msra.mxu0 %v718_v1  ;;  %698 = vmatpush3.bf16.msra.mxu1 %v718_v1  ;;  %v723_v6 = vld [vmem:[%s885_s1 + $0x60] sm:$0xff]   ;;  %v725_v8 = vld [vmem:[%s885_s1 + $0x58] sm:$0xff]   ;;  %s821_s8 = scalar_lea.vmem %s884_s0, %s648_s30  ;;  %v727_v10 = vld [vmem:[%s885_s1 + $0x50] sm:$0xff]   ;;  %s170_s6 = scalar_lea.vmem %s887_s3, %s648_s30 }
   0xe   : > { %652 = vmatprep.subr.bf16.mxu0 %v719_v2  ;;  %691 = vmatprep.subr.bf16.mxu1 %v719_v2  ;;  %v724_v7 = vld [vmem:[%s885_s1 + $0x20] sm:$0xff]   ;;  %v726_v9 = vld [vmem:[%s885_s1 + $0x18] sm:$0xff]   ;;  %v728_v13 = vld [vmem:[%s885_s1 + $0x10] sm:$0xff]  }
   0xf   : > { %v735_v11 = vld [vmem:[%s821_s8 + $0x4] ss:$8 sps:$4 sm:$0xff]   ;;  %v733_v18 = vld [vmem:[%s821_s8] ss:$8 sps:$4 sm:$0xff]   ;;  %v739_v20 = vld [vmem:[%s821_s8 + $0x14] ss:$8 sps:$4 sm:$0xff]  }
  0x10   : > { %v738_v12 = vld [vmem:[%s821_s8 + $0x24] ss:$8 sps:$4 sm:$0xff]   ;;  %387 = vmatprep.mubr.bf16.mxu0 %v735_v11  ;;  %v736_v19 = vld [vmem:[%s821_s8 + $0x20] ss:$8 sps:$4 sm:$0xff]   ;;  %v742_v21 = vld [vmem:[%s821_s8 + $0x34] ss:$8 sps:$4 sm:$0xff]  }
  0x11   : > { %653 = vmatpush3.bf16.msra.mxu0 %v720_v3  ;;  %699 = vmatpush3.bf16.msra.mxu1 %v720_v3  ;;  %v729_v14 = vld [vmem:[%s885_s1 + $0x48] sm:$0xff]   ;;  %v731_v16 = vld [vmem:[%s885_s1 + $0x40] sm:$0xff]   ;;  %v741_v22 = vld [vmem:[%s821_s8 + $0x10] ss:$8 sps:$4 sm:$0xff]  }
  0x12   : > { %654 = vmatprep.subr.bf16.mxu0 %v721_v4  ;;  %692 = vmatprep.subr.bf16.mxu1 %v721_v4  ;;  %v730_v15 = vld [vmem:[%s885_s1 + $0x8] sm:$0xff]   ;;  %v732_v17 = vld [vmem:[%s885_s1] sm:$0xff]   ;;  %v744_v23 = vld [vmem:[%s821_s8 + $0x30] ss:$8 sps:$4 sm:$0xff]  }
  0x13   : > { %403 = vmatprep.mubr.bf16.mxu1 %v738_v12  ;;  %v621_v36 = vld [vmem:[%s886_s2] ss:$0 sm:$0xff] }
  0x15   : > { %655 = vmatpush3.bf16.msra.mxu0 %v722_v5  ;;  %700 = vmatpush3.bf16.msra.mxu1 %v722_v5 }
  0x16   : > { %656 = vmatprep.subr.bf16.mxu0 %v723_v6  ;;  %693 = vmatprep.subr.bf16.mxu1 %v723_v6 }
  0x19   : > { %657 = vmatpush3.bf16.msra.mxu0 %v724_v7  ;;  %701 = vmatpush3.bf16.msra.mxu1 %v724_v7 }
  0x1a   : > { %658 = vmatprep.subr.bf16.mxu0 %v725_v8  ;;  %694 = vmatprep.subr.bf16.mxu1 %v725_v8 }
  0x1d   : > { %659 = vmatpush3.bf16.msra.mxu0 %v726_v9  ;;  %702 = vmatpush3.bf16.msra.mxu1 %v726_v9 }
  0x1e   : > { %660 = vmatprep.subr.bf16.mxu0 %v727_v10  ;;  %695 = vmatprep.subr.bf16.mxu1 %v727_v10 }
  0x21   : > { %661 = vmatpush3.bf16.msra.mxu0 %v728_v13  ;;  %703 = vmatpush3.bf16.msra.mxu1 %v728_v13 }
  0x22   : > { %662 = vmatprep.subr.bf16.mxu0 %v729_v14  ;;  %696 = vmatprep.subr.bf16.mxu1 %v729_v14  ;;  %v466_v14 = vlaneseq }
  0x25   : > { %663 = vmatpush3.bf16.msra.mxu0 %v730_v15  ;;  %704 = vmatpush3.bf16.msra.mxu1 %v730_v15  ;;  %v861_v15 = vshrl.u32 %v466_v14, 7 }
  0x26   : > { %664 = vmatprep.subr.bf16.mxu0 %v731_v16  ;;  %697 = vmatprep.subr.bf16.mxu1 %v731_v16 }
  0x29   : > { %665 = vmatpush3.bf16.msra.mxu0 %v732_v17  ;;  %705 = vmatpush3.bf16.msra.mxu1 %v732_v17 }
  0x2c   : > { %388 = vmatmul.mubr.bf16.vlgmr.msra.gmra.mxu0 %v733_v18  ;;  %404 = vmatmul.mubr.bf16.vlgmr.msra.gmra.mxu1 %v736_v19  ;;  %v468_v19 = vsub.s32 0, %v861_v15 }
  0x2d   : > { %395 = vmatprep.mubr.bf16.mxu0 %v739_v20  ;;  %411 = vmatprep.mubr.bf16.mxu1 %v742_v21 }
  0x34   : > { %396 = vmatmul.mubr.bf16.gmra.mxu0 %v741_v22  ;;  %412 = vmatmul.mubr.bf16.gmra.mxu1 %v744_v23 }
  0xec   : > { %v666_v24 = vpop.f32.mrf.mxu0  ;;  %v678_v25 = vpop.f32.mrf.mxu1 }
  0xee   : > { %v667_v26 = vpop.f32.mrf.mxu0  ;;  %v679_v27 = vpop.f32.mrf.mxu1 }
  0xef   : > { %v668_v35 = vadd.f32 %v667_v26, %v666_v24  ;;  %v680_v46 = vadd.f32 %v679_v27, %v678_v25 }
  0xf0   : > { %v669_v28 = vpop.f32.mrf.mxu0  ;;  %v681_v29 = vpop.f32.mrf.mxu1 }
  0xf1   : > { %v390_v42 = vadd.f32 %v668_v35, %v621_v36  ;;  %v406_v53 = vadd.f32 %v680_v46, %v621_v36 }
  0xf2   : > { %v670_v30 = vpop.f32.mrf.mxu0  ;;  %v682_v31 = vpop.f32.mrf.mxu1 }
  0xf3   : > { %v671_v32 = vadd.f32 %v670_v30, %v669_v28  ;;  %v683_v49 = vadd.f32 %v682_v31, %v681_v29 }
  0xf4   : > { %v672_v33 = vpop.f32.mrf.mxu0  ;;  %v684_v34 = vpop.f32.mrf.mxu1 }
  0xf5   : > { %v393_v39 = vadd.f32 %v671_v32, %v621_v36  ;;  %v409_v56 = vadd.f32 %v683_v49, %v621_v36 }
  0xf6   : > { %v673_v37 = vpop.f32.mrf.mxu0  ;;  %v685_v38 = vpop.f32.mrf.mxu1 }
  0xf7   : > { %v674_v40 = vadd.f32 %v673_v37, %v672_v33  ;;  %v420_v47 = vadd.f32 %v393_v39, %v390_v42  ;;  %v686_v54 = vadd.f32 %v685_v38, %v684_v34 }
  0xf8   : > { %v675_v41 = vpop.f32.mrf.mxu0  ;;  %v687_v45 = vpop.f32.mrf.mxu1 }
  0xf9   : > { %v398_v43 = vadd.f32 %v674_v40, %v621_v36  ;;  %v414_v59 = vadd.f32 %v686_v54, %v621_v36 }
  0xfa   : > { %v676_v44 = vpop.f32.mrf.mxu0  ;;  %v688_v52 = vpop.f32.mrf.mxu1 }
  0xfb   : > { %v677_v48 = vadd.f32 %v676_v44, %v675_v41  ;;  %v421_v50 = vadd.f32 %v420_v47, %v398_v43  ;;  %v689_v58 = vadd.f32 %v688_v52, %v687_v45 }
  0xfd   : > { %v401_v51 = vadd.f32 %v677_v48, %v621_v36  ;;  %v417_v61 = vadd.f32 %v689_v58, %v621_v36 }
  0xff   : > { %v422_v55 = vadd.f32 %v421_v50, %v401_v51 }
 0x101   : > { %v423_v57 = vadd.f32 %v422_v55, %v406_v53 }
 0x103   : > { %v424_v60 = vadd.f32 %v423_v57, %v409_v56 }
 0x105   : > { %v425_v62 = vadd.f32 %v424_v60, %v414_v59 }
 0x107   : > { %v426_v63 = vadd.f32 %v425_v62, %v417_v61 }
 0x109   : > { %v427_v0 = vrot.slane %v426_v63, 4 }
 0x10b   : > { %v428_v1 = vadd.f32 %v427_v0, %v426_v63 }
 0x10d   : > { %v429_v2 = vrot.slane %v428_v1, 2 }
 0x10f   : > { %v430_v3 = vadd.f32 %v429_v2, %v428_v1 }
 0x111   : > { %v431_v4 = vrot.slane %v430_v3, 1 }
 0x113   : > { %v432_v5 = vadd.f32 %v431_v4, %v430_v3 }
 0x115   : > { %v434_v6 = vmul.f32 0.015625, %v432_v5 }
 0x117   : > { %444 = vrot.lane.b32.xlu1 %v434_v6, %s755_s27  ;;  %436 = vrot.lane.b32.xlu0 %v434_v6, %s756_s28 }
 0x11b   : > { %440 = vrot.lane.b32.xlu0 %v434_v6, %s757_s29 }
 0x189   : > { %v437_v7 = vpop.permute.xlu0 %436  ;;  %v445_v11 = vpop.permute.xlu1 %444 }
 0x18a   : > { %v439_v8 = vadd.f32 %v437_v7, %v434_v6 }
 0x18d   : > { %v441_v9 = vpop.permute.xlu0 %440 }
 0x18e   : > { %v443_v10 = vadd.f32 %v441_v9, %v439_v8 }
 0x190   : > { %v447_v12 = vadd.f32 %v445_v11, %v443_v10 }
 0x192   : > { %v449_v13 = vmul.f32 0.25, %v447_v12 }
 0x194   : > { %454 = vrot.lane.b32.xlu0 %v449_v13, %s757_s29  ;;  %451 = vrot.lane.b32.xlu1 %v449_v13, %s755_s27 }
 0x198   : > { %457 = vrot.lane.b32.xlu1 %v449_v13, %s756_s28 }
 0x206   : > { %v452_v16 = vpop.permute.xlu1 %451  ;;  %v455_v17 = vpop.permute.xlu0 %454 }
 0x207   : > { %v461_v18 = vsel %vm460_vm0, %v449_v13, %v452_v16 }
 0x208   : > { %v463_v20 = vsel %vm462_vm1, %v461_v18, %v455_v17 }
 0x20a   : > { %v458_v21 = vpop.permute.xlu1 %457 }
 0x20b   : > { %v465_v22 = vsel %vm464_vm2, %v463_v20, %v458_v21 }
 0x20c   : > { %v469_v23 = vrot.slane %v465_v22, %v468_v19 }
 0x20e   : > { %v470_v24 = vsub.f32 %v390_v42, %v469_v23  ;;  %v471_v25 = vsub.f32 %v393_v39, %v469_v23  ;;  %v472_v26 = vsub.f32 %v398_v43, %v469_v23  ;;  %v473_v27 = vsub.f32 %v401_v51, %v469_v23 }
 0x20f   : > { %v474_v30 = vsub.f32 %v406_v53, %v469_v23  ;;  %v475_v33 = vsub.f32 %v409_v56, %v469_v23  ;;  %v476_v36 = vsub.f32 %v414_v59, %v469_v23  ;;  %v477_v40 = vsub.f32 %v417_v61, %v469_v23 }
 0x210   : > { %v478_v28 = vmul.f32 %v470_v24, %v470_v24  ;;  %v479_v29 = vmul.f32 %v471_v25, %v471_v25  ;;  %v480_v31 = vmul.f32 %v472_v26, %v472_v26  ;;  %v481_v34 = vmul.f32 %v473_v27, %v473_v27 }
 0x211   : > { %v482_v37 = vmul.f32 %v474_v30, %v474_v30  ;;  %v483_v41 = vmul.f32 %v475_v33, %v475_v33  ;;  %v484_v45 = vmul.f32 %v476_v36, %v476_v36  ;;  %v485_v42 = vmul.f32 %v477_v40, %v477_v40 }
 0x212   : > { %v486_v32 = vadd.f32 %v479_v29, %v478_v28 }
 0x214   : > { %v487_v35 = vadd.f32 %v486_v32, %v480_v31 }
 0x216   : > { %v488_v38 = vadd.f32 %v487_v35, %v481_v34 }
 0x218   : > { %v489_v44 = vadd.f32 %v488_v38, %v482_v37 }
 0x21a   : > { %v490_v46 = vadd.f32 %v489_v44, %v483_v41 }
 0x21c   : > { %v491_v39 = vadd.f32 %v490_v46, %v484_v45 }
 0x21e   : > { %v492_v43 = vadd.f32 %v491_v39, %v485_v42 }
 0x220   : > { %v493_v47 = vrot.slane %v492_v43, 4 }
 0x222   : > { %v494_v48 = vadd.f32 %v493_v47, %v492_v43 }
 0x224   : > { %v495_v49 = vrot.slane %v494_v48, 2 }
 0x226   : > { %v496_v50 = vadd.f32 %v495_v49, %v494_v48 }
 0x228   : > { %v497_v51 = vrot.slane %v496_v50, 1 }
 0x22a   : > { %v498_v52 = vadd.f32 %v497_v51, %v496_v50 }
 0x22c   : > { %v499_v53 = vmul.f32 0.015625, %v498_v52 }
 0x22e   : > { %505 = vrot.lane.b32.xlu1 %v499_v53, %s757_s29  ;;  %501 = vrot.lane.b32.xlu0 %v499_v53, %s756_s28 }
 0x232   : > { %509 = vrot.lane.b32.xlu0 %v499_v53, %s755_s27 }
 0x2a0   : > { %v502_v54 = vpop.permute.xlu0 %501  ;;  %v506_v56 = vpop.permute.xlu1 %505 }
 0x2a1   : > { %v504_v55 = vadd.f32 %v502_v54, %v499_v53 }
 0x2a3   : > { %v508_v57 = vadd.f32 %v506_v56, %v504_v55 }
 0x2a4   : > { %v510_v58 = vpop.permute.xlu0 %509 }
 0x2a5   : > { %v512_v59 = vadd.f32 %v510_v58, %v508_v57 }
 0x2a7   : > { %v513_v60 = vmul.f32 0.25, %v512_v59 }
 0x2a9   : > { %518 = vrot.lane.b32.xlu0 %v513_v60, %s757_s29  ;;  %515 = vrot.lane.b32.xlu1 %v513_v60, %s755_s27 }
 0x2ad   : > { %521 = vrot.lane.b32.xlu1 %v513_v60, %s756_s28 }
 0x31b   : > { %v516_v61 = vpop.permute.xlu1 %515  ;;  %v519_v62 = vpop.permute.xlu0 %518 }
 0x31c   : > { %v524_v63 = vsel %vm460_vm0, %v513_v60, %v516_v61 }
 0x31d   : > { %v525_v0 = vsel %vm462_vm1, %v524_v63, %v519_v62 }
 0x31f   : > { %v522_v1 = vpop.permute.xlu1 %521 }
 0x320   : > { %v526_v2 = vsel %vm464_vm2, %v525_v0, %v522_v1 }
 0x321   : > { %v527_v3 = vadd.f32 1e-05, %v526_v2 }
 0x323   : > { %745 = vrsqrt.f32 %v527_v3 }
 0x330   : > { %v746_v4 = vpop.eup %745 }
 0x331   : > { %v532_v5 = vrot.slane %v746_v4, %v468_v19 }
 0x333   : > { %v533_v6 = vmul.f32 %v532_v5, %v470_v24  ;;  %v534_v7 = vmul.f32 %v532_v5, %v471_v25  ;;  %v535_v8 = vmul.f32 %v532_v5, %v472_v26  ;;  %v536_v9 = vmul.f32 %v532_v5, %v473_v27 }
 0x334   : > { %v537_v10 = vmul.f32 %v532_v5, %v474_v30  ;;  %v538_v11 = vmul.f32 %v532_v5, %v475_v33  ;;  %v539_v12 = vmul.f32 %v532_v5, %v476_v36  ;;  %v540_v13 = vmul.f32 %v532_v5, %v477_v40 }
 0x335   : > { %v541_v14 = vmax.f32 %v533_v6, 0.0  ;;  %v542_v15 = vmax.f32 %v534_v7, 0.0  ;;  %v543_v16 = vmax.f32 %v535_v8, 0.0  ;;  %v544_v17 = vmax.f32 %v536_v9, 0.0 }
 0x336   : > { %v545_v18 = vmax.f32 %v537_v10, 0.0  ;;  %v546_v20 = vmax.f32 %v538_v11, 0.0  ;;  %v547_v19 = vmax.f32 %v539_v12, 0.0  ;;  %v548_v21 = vmax.f32 %v540_v13, 0.0 }
 0x337   : > { %549 = vst [vmem:[%s170_s6] sm:$0xff] %v541_v14  ;;  %550 = vst [vmem:[%s170_s6 + $0x8] sm:$0xff] %v542_v15 }
 0x338   : > { %551 = vst [vmem:[%s170_s6 + $0x10] sm:$0xff] %v543_v16  ;;  %552 = vst [vmem:[%s170_s6 + $0x18] sm:$0xff] %v544_v17 }
 0x339   : > { %553 = vst [vmem:[%s170_s6 + $0x20] sm:$0xff] %v545_v18  ;;  %554 = vst [vmem:[%s170_s6 + $0x28] sm:$0xff] %v546_v20 }
 0x33a   : > { %555 = vst [vmem:[%s170_s6 + $0x30] sm:$0xff] %v547_v19  ;;  %556 = vst [vmem:[%s170_s6 + $0x38] sm:$0xff] %v548_v21 }
 0x33b PF: > { %s13_s12 = sadd.s32 1, %s753_s12  }
 0x33c   : > { %p10_p4 = scmp.ge.s32.totalorder %s13_s12, 4  }
 0x33e   :  { %12 = sbr.rel (!%p10_p4) target bundleno = 1 (0x1), region = 62 }

// kernel: generator_f2s.27
= control target key start
LH: loop header
LB: loop body
LE: loop exit
PB: predicated region body
PF: predicated region fallthrough
CT: control target
= control target key end

     0   :  { %v4045_v8 = vmov 0   ;;  %vm2428_vm0 = vcmask 261120   ;;  %s5393_s1 = inlined_call_operand.vmem [shape: bf16[1568,512], index: 1, kind: input, shape index: {}]   ;;  %s5394_s0 = inlined_call_operand.vmem [shape: bf16[8,1568], index: 0, kind: input, shape index: {}]   ;;  %s5395_s2 = inlined_call_operand.vmem [shape: f32[8,1], index: 2, kind: input, shape index: {}]   ;;  %s5396_s3 = inlined_call_operand.vmem [shape: f32[8,512], index: 3, kind: input, shape index: {}]   ;;  %s5397_s4 = inlined_call_operand.vmem [shape: f32[8,512], index: 4, kind: output, shape index: {}]  }
   0x1   :  { %v3435_v0 = vld [vmem:[%s5393_s1 + $0xe4] ss:$16 sps:$4 sm:$0xff]   ;;  %v3439_v2 = vld [vmem:[%s5393_s1 + $0xe0] ss:$16 sps:$4 sm:$0xff]   ;;  %3434 = vset.pattern.permute.xlu0 %v4045_v8  ;;  %v19_v49 = vld [vmem:[%s5394_s0 + $0x8] sm:$0xff] }
   0x2   :  { %v3437_v1 = vld [vmem:[%s5393_s1 + $0x2e4] ss:$16 sps:$4 sm:$0xff]   ;;  %2432 = vmatprep.subr.bf16.mxu0 %v3435_v0  ;;  %v3440_v3 = vld [vmem:[%s5393_s1 + $0x2e0] ss:$16 sps:$4 sm:$0xff]   ;;  %v4224_v52 = vcombine.high %v19_v49, %v19_v49 }
   0x3   :  { %2473 = vmatprep.subr.bf16.mxu1 %v3437_v1  ;;  %v3441_v4 = vld [vmem:[%s5393_s1 + $0xc4] ss:$16 sps:$4 sm:$0xff]   ;;  %2433 = vmatpush1.bf16.msra.mxu0 %v3439_v2  ;;  %v3445_v6 = vld [vmem:[%s5393_s1 + $0xc0] ss:$16 sps:$4 sm:$0xff]  }
   0x4   :  { %2474 = vmatpush1.bf16.msra.mxu1 %v3440_v3  ;;  %v3443_v5 = vld [vmem:[%s5393_s1 + $0x2c4] ss:$16 sps:$4 sm:$0xff]   ;;  %2434 = vmatprep.subr.bf16.mxu0 %v3441_v4  ;;  %v3446_v7 = vld [vmem:[%s5393_s1 + $0x2c0] ss:$16 sps:$4 sm:$0xff]  }
   0x5   :  { %2475 = vmatprep.subr.bf16.mxu1 %v3443_v5  ;;  %v3447_v9 = vld [vmem:[%s5393_s1 + $0xa4] ss:$16 sps:$4 sm:$0xff]   ;;  %v3451_v11 = vld [vmem:[%s5393_s1 + $0xa0] ss:$16 sps:$4 sm:$0xff]   ;;  %2505 = vmatprep.mubr.bf16.mxu1 %v4224_v52 }
   0x6   :  { %v3449_v10 = vld [vmem:[%s5393_s1 + $0x2a4] ss:$16 sps:$4 sm:$0xff]   ;;  %v3452_v12 = vld [vmem:[%s5393_s1 + $0x2a0] ss:$16 sps:$4 sm:$0xff]  }
   0x7   :  { %2435 = vmatpush1.bf16.msra.mxu0 %v3445_v6  ;;  %v3453_v13 = vld [vmem:[%s5393_s1 + $0x84] ss:$16 sps:$4 sm:$0xff]   ;;  %v3457_v15 = vld [vmem:[%s5393_s1 + $0x80] ss:$16 sps:$4 sm:$0xff]  }
   0x8   :  { %2476 = vmatpush1.bf16.msra.mxu1 %v3446_v7  ;;  %2436 = vmatprep.subr.bf16.mxu0 %v3447_v9  ;;  %v3455_v14 = vld [vmem:[%s5393_s1 + $0x284] ss:$16 sps:$4 sm:$0xff]   ;;  %v3458_v16 = vld [vmem:[%s5393_s1 + $0x280] ss:$16 sps:$4 sm:$0xff]   ;;  %v4284_v9 = vcombine.low %v19_v49, %v19_v49 }
   0x9   :  { %2477 = vmatprep.subr.bf16.mxu1 %v3449_v10  ;;  %v3459_v17 = vld [vmem:[%s5393_s1 + $0x64] ss:$16 sps:$4 sm:$0xff]   ;;  %v3463_v19 = vld [vmem:[%s5393_s1 + $0x60] ss:$16 sps:$4 sm:$0xff]  }
   0xa   :  { %v3461_v18 = vld [vmem:[%s5393_s1 + $0x264] ss:$16 sps:$4 sm:$0xff]   ;;  %v3464_v20 = vld [vmem:[%s5393_s1 + $0x260] ss:$16 sps:$4 sm:$0xff]  }
   0xb   :  { %2437 = vmatpush1.bf16.msra.mxu0 %v3451_v11  ;;  %v3465_v21 = vld [vmem:[%s5393_s1 + $0x44] ss:$16 sps:$4 sm:$0xff]   ;;  %v3469_v23 = vld [vmem:[%s5393_s1 + $0x40] ss:$16 sps:$4 sm:$0xff]  }
   0xc   :  { %2478 = vmatpush1.bf16.msra.mxu1 %v3452_v12  ;;  %2438 = vmatprep.subr.bf16.mxu0 %v3453_v13  ;;  %v3467_v22 = vld [vmem:[%s5393_s1 + $0x244] ss:$16 sps:$4 sm:$0xff]   ;;  %v3470_v24 = vld [vmem:[%s5393_s1 + $0x240] ss:$16 sps:$4 sm:$0xff]  }
   0xd   :  { %2479 = vmatprep.subr.bf16.mxu1 %v3455_v14  ;;  %v3471_v25 = vld [vmem:[%s5393_s1 + $0x24] ss:$16 sps:$4 sm:$0xff]   ;;  %v3475_v27 = vld [vmem:[%s5393_s1 + $0x20] ss:$16 sps:$4 sm:$0xff]  }
   0xe   :  { %v3473_v26 = vld [vmem:[%s5393_s1 + $0x224] ss:$16 sps:$4 sm:$0xff]   ;;  %v3476_v28 = vld [vmem:[%s5393_s1 + $0x220] ss:$16 sps:$4 sm:$0xff]  }
   0xf   :  { %2439 = vmatpush1.bf16.msra.mxu0 %v3457_v15  ;;  %v3477_v29 = vld [vmem:[%s5393_s1 + $0x4] ss:$16 sps:$4 sm:$0xff]   ;;  %v3481_v31 = vld [vmem:[%s5393_s1] ss:$16 sps:$4 sm:$0xff]  }
  0x10   :  { %2480 = vmatpush1.bf16.msra.mxu1 %v3458_v16  ;;  %2440 = vmatprep.subr.bf16.mxu0 %v3459_v17  ;;  %v3479_v30 = vld [vmem:[%s5393_s1 + $0x204] ss:$16 sps:$4 sm:$0xff]   ;;  %v3482_v32 = vld [vmem:[%s5393_s1 + $0x200] ss:$16 sps:$4 sm:$0xff]  }
  0x11   :  { %2481 = vmatprep.subr.bf16.mxu1 %v3461_v18  ;;  %v3483_v33 = vld [vmem:[%s5393_s1 + $0x1e4] ss:$16 sps:$4 sm:$0xff]   ;;  %v3487_v35 = vld [vmem:[%s5393_s1 + $0x1e0] ss:$16 sps:$4 sm:$0xff]  }
  0x12   :  { %v3485_v34 = vld [vmem:[%s5393_s1 + $0x3e4] ss:$16 sps:$4 sm:$0xff]   ;;  %v3488_v36 = vld [vmem:[%s5393_s1 + $0x3e0] ss:$16 sps:$4 sm:$0xff]  }
  0x13   :  { %2441 = vmatpush1.bf16.msra.mxu0 %v3463_v19  ;;  %v3489_v37 = vld [vmem:[%s5393_s1 + $0x1c4] ss:$16 sps:$4 sm:$0xff]   ;;  %v3493_v39 = vld [vmem:[%s5393_s1 + $0x1c0] ss:$16 sps:$4 sm:$0xff]  }
  0x14   :  { %2482 = vmatpush1.bf16.msra.mxu1 %v3464_v20  ;;  %2442 = vmatprep.subr.bf16.mxu0 %v3465_v21  ;;  %v3491_v38 = vld [vmem:[%s5393_s1 + $0x3c4] ss:$16 sps:$4 sm:$0xff]   ;;  %v3494_v40 = vld [vmem:[%s5393_s1 + $0x3c0] ss:$16 sps:$4 sm:$0xff]  }
  0x15   :  { %2483 = vmatprep.subr.bf16.mxu1 %v3467_v22  ;;  %v3495_v41 = vld [vmem:[%s5393_s1 + $0x1a4] ss:$16 sps:$4 sm:$0xff]   ;;  %v3499_v43 = vld [vmem:[%s5393_s1 + $0x1a0] ss:$16 sps:$4 sm:$0xff]  }
  0x16   :  { %v3497_v42 = vld [vmem:[%s5393_s1 + $0x3a4] ss:$16 sps:$4 sm:$0xff]   ;;  %v3500_v44 = vld [vmem:[%s5393_s1 + $0x3a0] ss:$16 sps:$4 sm:$0xff]  }
  0x17   :  { %2443 = vmatpush1.bf16.msra.mxu0 %v3469_v23  ;;  %v3501_v45 = vld [vmem:[%s5393_s1 + $0x184] ss:$16 sps:$4 sm:$0xff]   ;;  %v3505_v50 = vld [vmem:[%s5393_s1 + $0x180] ss:$16 sps:$4 sm:$0xff]  }
  0x18   :  { %2484 = vmatpush1.bf16.msra.mxu1 %v3470_v24  ;;  %2444 = vmatprep.subr.bf16.mxu0 %v3471_v25  ;;  %v3503_v46 = vld [vmem:[%s5393_s1 + $0x384] ss:$16 sps:$4 sm:$0xff]   ;;  %v3506_v51 = vld [vmem:[%s5393_s1 + $0x380] ss:$16 sps:$4 sm:$0xff]  }
  0x19   :  { %2485 = vmatprep.subr.bf16.mxu1 %v3473_v26  ;;  %v18_v47 = vld [vmem:[%s5394_s0] sm:$0xff] }
  0x1a   :  { %v4213_v48 = vcombine.high %v18_v47, %v18_v47  ;;  %v3507_v53 = vld [vmem:[%s5393_s1 + $0x164] ss:$16 sps:$4 sm:$0xff]   ;;  %v3511_v55 = vld [vmem:[%s5393_s1 + $0x160] ss:$16 sps:$4 sm:$0xff]   ;;  %v4282_v7 = vcombine.low %v18_v47, %v18_v47 }
  0x1b   :  { %2445 = vmatpush1.bf16.msra.mxu0 %v3475_v27  ;;  %v3509_v54 = vld [vmem:[%s5393_s1 + $0x364] ss:$16 sps:$4 sm:$0xff]   ;;  %v3512_v56 = vld [vmem:[%s5393_s1 + $0x360] ss:$16 sps:$4 sm:$0xff]  }
  0x1c   :  { %2486 = vmatpush1.bf16.msra.mxu1 %v3476_v28  ;;  %2446 = vmatprep.subr.bf16.mxu0 %v3477_v29  ;;  %v3513_v57 = vld [vmem:[%s5393_s1 + $0x144] ss:$16 sps:$4 sm:$0xff]   ;;  %v3517_v59 = vld [vmem:[%s5393_s1 + $0x140] ss:$16 sps:$4 sm:$0xff]  }
  0x1d   :  { %2487 = vmatprep.subr.bf16.mxu1 %v3479_v30  ;;  %2464 = vmatprep.mubr.bf16.mxu0 %v4213_v48  ;;  %v3515_v58 = vld [vmem:[%s5393_s1 + $0x344] ss:$16 sps:$4 sm:$0xff]   ;;  %v3518_v60 = vld [vmem:[%s5393_s1 + $0x340] ss:$16 sps:$4 sm:$0xff]  }
  0x1e   :  { %v3519_v61 = vld [vmem:[%s5393_s1 + $0x124] ss:$16 sps:$4 sm:$0xff]   ;;  %v3523_v63 = vld [vmem:[%s5393_s1 + $0x120] ss:$16 sps:$4 sm:$0xff]  }
  0x1f   :  { %2447 = vmatpush1.bf16.msra.mxu0 %v3481_v31  ;;  %v3521_v62 = vld [vmem:[%s5393_s1 + $0x324] ss:$16 sps:$4 sm:$0xff]   ;;  %v3524_v0 = vld [vmem:[%s5393_s1 + $0x320] ss:$16 sps:$4 sm:$0xff]  }
  0x20   :  { %2488 = vmatpush1.bf16.msra.mxu1 %v3482_v32  ;;  %2448 = vmatprep.subr.bf16.mxu0 %v3483_v33  ;;  %v3525_v1 = vld [vmem:[%s5393_s1 + $0x104] ss:$16 sps:$4 sm:$0xff]   ;;  %v3529_v3 = vld [vmem:[%s5393_s1 + $0x100] ss:$16 sps:$4 sm:$0xff]  }
  0x21   :  { %2489 = vmatprep.subr.bf16.mxu1 %v3485_v34  ;;  %v3527_v2 = vld [vmem:[%s5393_s1 + $0x304] ss:$16 sps:$4 sm:$0xff]   ;;  %v3530_v4 = vld [vmem:[%s5393_s1 + $0x300] ss:$16 sps:$4 sm:$0xff]  }
  0x22   :  { %v3537_v5 = vld [vmem:[%s5393_s1 + $0x4e4] ss:$16 sps:$4 sm:$0xff]   ;;  %v3535_v10 = vld [vmem:[%s5393_s1 + $0x4e0] ss:$16 sps:$4 sm:$0xff]  }
  0x23   :  { %2449 = vmatpush2.bf16.msra.mxu0 %v3487_v35  ;;  %v3540_v6 = vld [vmem:[%s5393_s1 + $0x6e4] ss:$16 sps:$4 sm:$0xff]   ;;  %v3538_v11 = vld [vmem:[%s5393_s1 + $0x6e0] ss:$16 sps:$4 sm:$0xff]   ;;  %v4368_v35 = vld [vmem:[%s5394_s0 + $0x18] sm:$0xff] }
  0x24   :  { %2490 = vmatpush2.bf16.msra.mxu1 %v3488_v36  ;;  %2450 = vmatprep.subr.bf16.mxu0 %v3489_v37  ;;  %v3543_v12 = vld [vmem:[%s5393_s1 + $0x4c4] ss:$16 sps:$4 sm:$0xff]   ;;  %v3541_v14 = vld [vmem:[%s5393_s1 + $0x4c0] ss:$16 sps:$4 sm:$0xff]  }
  0x25   :  { %2491 = vmatprep.subr.bf16.mxu1 %v3491_v38  ;;  %v3546_v13 = vld [vmem:[%s5393_s1 + $0x6c4] ss:$16 sps:$4 sm:$0xff]   ;;  %v3544_v15 = vld [vmem:[%s5393_s1 + $0x6c0] ss:$16 sps:$4 sm:$0xff]  }
  0x26   :  { %v3549_v16 = vld [vmem:[%s5393_s1 + $0x4a4] ss:$16 sps:$4 sm:$0xff]   ;;  %v3547_v18 = vld [vmem:[%s5393_s1 + $0x4a0] ss:$16 sps:$4 sm:$0xff]  }
  0x27   :  { %2451 = vmatpush2.bf16.msra.mxu0 %v3493_v39  ;;  %v3552_v17 = vld [vmem:[%s5393_s1 + $0x6a4] ss:$16 sps:$4 sm:$0xff]   ;;  %v3550_v19 = vld [vmem:[%s5393_s1 + $0x6a0] ss:$16 sps:$4 sm:$0xff]   ;;  %v4382_v39 = vcombine.high %v4368_v35, %v4368_v35 }
  0x28   :  { %2492 = vmatpush2.bf16.msra.mxu1 %v3494_v40  ;;  %2452 = vmatprep.subr.bf16.mxu0 %v3495_v41  ;;  %v3555_v20 = vld [vmem:[%s5393_s1 + $0x484] ss:$16 sps:$4 sm:$0xff]   ;;  %v3553_v22 = vld [vmem:[%s5393_s1 + $0x480] ss:$16 sps:$4 sm:$0xff]  }
  0x29   :  { %2493 = vmatprep.subr.bf16.mxu1 %v3497_v42  ;;  %v3558_v21 = vld [vmem:[%s5393_s1 + $0x684] ss:$16 sps:$4 sm:$0xff]   ;;  %v3556_v23 = vld [vmem:[%s5393_s1 + $0x680] ss:$16 sps:$4 sm:$0xff]  }
  0x2a   :  { %v3561_v24 = vld [vmem:[%s5393_s1 + $0x464] ss:$16 sps:$4 sm:$0xff]   ;;  %v3559_v26 = vld [vmem:[%s5393_s1 + $0x460] ss:$16 sps:$4 sm:$0xff]  }
  0x2b   :  { %2453 = vmatpush2.bf16.msra.mxu0 %v3499_v43  ;;  %v3564_v25 = vld [vmem:[%s5393_s1 + $0x664] ss:$16 sps:$4 sm:$0xff]   ;;  %v3562_v27 = vld [vmem:[%s5393_s1 + $0x660] ss:$16 sps:$4 sm:$0xff]  }
  0x2c   :  { %2494 = vmatpush2.bf16.msra.mxu1 %v3500_v44  ;;  %2454 = vmatprep.subr.bf16.mxu0 %v3501_v45  ;;  %v3567_v28 = vld [vmem:[%s5393_s1 + $0x444] ss:$16 sps:$4 sm:$0xff]   ;;  %v3565_v30 = vld [vmem:[%s5393_s1 + $0x440] ss:$16 sps:$4 sm:$0xff]  }
  0x2d   :  { %2495 = vmatprep.subr.bf16.mxu1 %v3503_v46  ;;  %v3570_v29 = vld [vmem:[%s5393_s1 + $0x644] ss:$16 sps:$4 sm:$0xff]   ;;  %v3568_v31 = vld [vmem:[%s5393_s1 + $0x640] ss:$16 sps:$4 sm:$0xff]  }
  0x2e   :  { %v3573_v32 = vld [vmem:[%s5393_s1 + $0x424] ss:$16 sps:$4 sm:$0xff]   ;;  %v3571_v36 = vld [vmem:[%s5393_s1 + $0x420] ss:$16 sps:$4 sm:$0xff]  }
  0x2f   :  { %2455 = vmatpush2.bf16.msra.mxu0 %v3505_v50  ;;  %v3576_v33 = vld [vmem:[%s5393_s1 + $0x624] ss:$16 sps:$4 sm:$0xff]   ;;  %v3574_v37 = vld [vmem:[%s5393_s1 + $0x620] ss:$16 sps:$4 sm:$0xff]  }
  0x30   :  { %2496 = vmatpush2.bf16.msra.mxu1 %v3506_v51  ;;  %2456 = vmatprep.subr.bf16.mxu0 %v3507_v53  ;;  %v4363_v34 = vld [vmem:[%s5394_s0 + $0x10] sm:$0xff]  ;;  %v417_v44 = vld [vmem:[%s5395_s2] sm:$0xff] }
  0x31   :  { %2497 = vmatprep.subr.bf16.mxu1 %v3509_v54  ;;  %v4378_v38 = vcombine.high %v4363_v34, %v4363_v34  ;;  %v3579_v40 = vld [vmem:[%s5393_s1 + $0x404] ss:$16 sps:$4 sm:$0xff]   ;;  %v3577_v42 = vld [vmem:[%s5393_s1 + $0x400] ss:$16 sps:$4 sm:$0xff]   ;;  %420 = vperm.xlu0 %3434, %v417_v44  }
  0x32   :  { %v3582_v41 = vld [vmem:[%s5393_s1 + $0x604] ss:$16 sps:$4 sm:$0xff]   ;;  %v3580_v43 = vld [vmem:[%s5393_s1 + $0x600] ss:$16 sps:$4 sm:$0xff]  }
  0x33   :  { %2457 = vmatpush2.bf16.msra.mxu0 %v3511_v55  ;;  %v3585_v45 = vld [vmem:[%s5393_s1 + $0x5e4] ss:$16 sps:$4 sm:$0xff]   ;;  %v3583_v47 = vld [vmem:[%s5393_s1 + $0x5e0] ss:$16 sps:$4 sm:$0xff]  }
  0x34   :  { %2498 = vmatpush2.bf16.msra.mxu1 %v3512_v56  ;;  %2458 = vmatprep.subr.bf16.mxu0 %v3513_v57  ;;  %v3588_v46 = vld [vmem:[%s5393_s1 + $0x7e4] ss:$16 sps:$4 sm:$0xff]   ;;  %v3586_v49 = vld [vmem:[%s5393_s1 + $0x7e0] ss:$16 sps:$4 sm:$0xff]  }
  0x35   :  { %2499 = vmatprep.subr.bf16.mxu1 %v3515_v58  ;;  %v3591_v50 = vld [vmem:[%s5393_s1 + $0x5c4] ss:$16 sps:$4 sm:$0xff]   ;;  %v3589_v53 = vld [vmem:[%s5393_s1 + $0x5c0] ss:$16 sps:$4 sm:$0xff]  }
  0x36   :  { %v3594_v51 = vld [vmem:[%s5393_s1 + $0x7c4] ss:$16 sps:$4 sm:$0xff]   ;;  %v3592_v54 = vld [vmem:[%s5393_s1 + $0x7c0] ss:$16 sps:$4 sm:$0xff]  }
  0x37   :  { %2459 = vmatpush2.bf16.msra.mxu0 %v3517_v59  ;;  %v3597_v55 = vld [vmem:[%s5393_s1 + $0x5a4] ss:$16 sps:$4 sm:$0xff]   ;;  %v3595_v57 = vld [vmem:[%s5393_s1 + $0x5a0] ss:$16 sps:$4 sm:$0xff]  }
  0x38   :  { %2500 = vmatpush2.bf16.msra.mxu1 %v3518_v60  ;;  %2460 = vmatprep.subr.bf16.mxu0 %v3519_v61  ;;  %v3600_v56 = vld [vmem:[%s5393_s1 + $0x7a4] ss:$16 sps:$4 sm:$0xff]   ;;  %v3598_v58 = vld [vmem:[%s5393_s1 + $0x7a0] ss:$16 sps:$4 sm:$0xff]  }
  0x39   :  { %2501 = vmatprep.subr.bf16.mxu1 %v3521_v62  ;;  %v3603_v59 = vld [vmem:[%s5393_s1 + $0x584] ss:$16 sps:$4 sm:$0xff]   ;;  %v3601_v61 = vld [vmem:[%s5393_s1 + $0x580] ss:$16 sps:$4 sm:$0xff]  }
  0x3a   :  { %v3606_v60 = vld [vmem:[%s5393_s1 + $0x784] ss:$16 sps:$4 sm:$0xff]   ;;  %v3604_v62 = vld [vmem:[%s5393_s1 + $0x780] ss:$16 sps:$4 sm:$0xff]  }
  0x3b   :  { %2461 = vmatpush2.bf16.msra.mxu0 %v3523_v63  ;;  %v3609_v63 = vld [vmem:[%s5393_s1 + $0x564] ss:$16 sps:$4 sm:$0xff]   ;;  %v3659_v44 = vld [vmem:[%s5393_s1 + $0x860] ss:$16 sps:$4 sm:$0xff]  }
  0x3c   :  { %2502 = vmatpush2.bf16.msra.mxu1 %v3524_v0  ;;  %2462 = vmatprep.subr.bf16.mxu0 %v3525_v1  ;;  %v3612_v0 = vld [vmem:[%s5393_s1 + $0x764] ss:$16 sps:$4 sm:$0xff]   ;;  %v3607_v1 = vld [vmem:[%s5393_s1 + $0x560] ss:$16 sps:$4 sm:$0xff]  }
  0x3d   :  { %2503 = vmatprep.subr.bf16.mxu1 %v3527_v2  ;;  %v3610_v2 = vld [vmem:[%s5393_s1 + $0x760] ss:$16 sps:$4 sm:$0xff]  }
  0x3f   :  { %2463 = vmatpush2.bf16.msra.mxu0 %v3529_v3  ;;  %v3615_v3 = vld [vmem:[%s5393_s1 + $0x544] ss:$16 sps:$4 sm:$0xff]  }
  0x40   :  { %2504 = vmatpush2.bf16.msra.mxu1 %v3530_v4  ;;  %2514 = vmatprep.subr.bf16.mxu0 %v3537_v5  ;;  %v3618_v4 = vld [vmem:[%s5393_s1 + $0x744] ss:$16 sps:$4 sm:$0xff]   ;;  %v3613_v5 = vld [vmem:[%s5393_s1 + $0x540] ss:$16 sps:$4 sm:$0xff]  }
  0x41   :  { %2555 = vmatprep.subr.bf16.mxu1 %v3540_v6  ;;  %v3616_v6 = vld [vmem:[%s5393_s1 + $0x740] ss:$16 sps:$4 sm:$0xff]  }
  0x42   :  { %2465 = vmatmul.mubr.bf16.vlgmr.msra.gmra.mxu0 %v4282_v7 }
  0x43   :  { %2506 = vmatmul.mubr.bf16.vlgmr.msra.gmra.mxu1 %v4284_v9  ;;  %2515 = vmatpush1.bf16.msra.mxu0 %v3535_v10  ;;  %v3621_v10 = vld [vmem:[%s5393_s1 + $0x524] ss:$16 sps:$4 sm:$0xff]  }
  0x44   :  { %2556 = vmatpush1.bf16.msra.mxu1 %v3538_v11  ;;  %2516 = vmatprep.subr.bf16.mxu0 %v3543_v12  ;;  %v3624_v11 = vld [vmem:[%s5393_s1 + $0x724] ss:$16 sps:$4 sm:$0xff]   ;;  %v3619_v12 = vld [vmem:[%s5393_s1 + $0x520] ss:$16 sps:$4 sm:$0xff]  }
  0x45   :  { %2557 = vmatprep.subr.bf16.mxu1 %v3546_v13  ;;  %2546 = vmatprep.mubr.bf16.mxu0 %v4378_v38  ;;  %v3622_v13 = vld [vmem:[%s5393_s1 + $0x720] ss:$16 sps:$4 sm:$0xff]  }
  0x46   :  { %2587 = vmatprep.mubr.bf16.mxu1 %v4382_v39 }
  0x47   :  { %2517 = vmatpush1.bf16.msra.mxu0 %v3541_v14  ;;  %v3627_v14 = vld [vmem:[%s5393_s1 + $0x504] ss:$16 sps:$4 sm:$0xff]  }
  0x48   :  { %2558 = vmatpush1.bf16.msra.mxu1 %v3544_v15  ;;  %2518 = vmatprep.subr.bf16.mxu0 %v3549_v16  ;;  %v3630_v15 = vld [vmem:[%s5393_s1 + $0x704] ss:$16 sps:$4 sm:$0xff]   ;;  %v3625_v16 = vld [vmem:[%s5393_s1 + $0x500] ss:$16 sps:$4 sm:$0xff]  }
  0x49   :  { %2559 = vmatprep.subr.bf16.mxu1 %v3552_v17  ;;  %v3628_v17 = vld [vmem:[%s5393_s1 + $0x700] ss:$16 sps:$4 sm:$0xff]  }
  0x4b   :  { %2519 = vmatpush1.bf16.msra.mxu0 %v3547_v18  ;;  %v3637_v18 = vld [vmem:[%s5393_s1 + $0x8e4] ss:$16 sps:$4 sm:$0xff]  }
  0x4c   :  { %2560 = vmatpush1.bf16.msra.mxu1 %v3550_v19  ;;  %2520 = vmatprep.subr.bf16.mxu0 %v3555_v20  ;;  %v3640_v19 = vld [vmem:[%s5393_s1 + $0xae4] ss:$16 sps:$4 sm:$0xff]   ;;  %v4505_v20 = vcombine.low %v4363_v34, %v4363_v34  ;;  %v3647_v34 = vld [vmem:[%s5393_s1 + $0x8a0] ss:$16 sps:$4 sm:$0xff]  }
  0x4d   :  { %2561 = vmatprep.subr.bf16.mxu1 %v3558_v21  ;;  %v4509_v21 = vcombine.low %v4368_v35, %v4368_v35  ;;  %v3650_v35 = vld [vmem:[%s5393_s1 + $0xaa0] ss:$16 sps:$4 sm:$0xff]  }
  0x4f   :  { %2521 = vmatpush1.bf16.msra.mxu0 %v3553_v22  ;;  %v3635_v22 = vld [vmem:[%s5393_s1 + $0x8e0] ss:$16 sps:$4 sm:$0xff]  }
  0x50   :  { %2562 = vmatpush1.bf16.msra.mxu1 %v3556_v23  ;;  %2522 = vmatprep.subr.bf16.mxu0 %v3561_v24  ;;  %v3638_v23 = vld [vmem:[%s5393_s1 + $0xae0] ss:$16 sps:$4 sm:$0xff]   ;;  %v3643_v24 = vld [vmem:[%s5393_s1 + $0x8c4] ss:$16 sps:$4 sm:$0xff]  }
  0x51   :  { %2563 = vmatprep.subr.bf16.mxu1 %v3564_v25  ;;  %v3646_v25 = vld [vmem:[%s5393_s1 + $0xac4] ss:$16 sps:$4 sm:$0xff]  }
  0x53   :  { %2523 = vmatpush1.bf16.msra.mxu0 %v3559_v26  ;;  %v4526_v26 = vld [vmem:[%s5394_s0 + $0x20] sm:$0xff] }
  0x54   :  { %2564 = vmatpush1.bf16.msra.mxu1 %v3562_v27  ;;  %2524 = vmatprep.subr.bf16.mxu0 %v3567_v28  ;;  %v4530_v27 = vcombine.high %v4526_v26, %v4526_v26  ;;  %v4535_v28 = vld [vmem:[%s5394_s0 + $0x28] sm:$0xff] }
  0x55   :  { %2565 = vmatprep.subr.bf16.mxu1 %v3570_v29  ;;  %v3641_v29 = vld [vmem:[%s5393_s1 + $0x8c0] ss:$16 sps:$4 sm:$0xff]  }
  0x57   :  { %2525 = vmatpush1.bf16.msra.mxu0 %v3565_v30  ;;  %v4544_v30 = vcombine.high %v4535_v28, %v4535_v28 }
  0x58   :  { %2566 = vmatpush1.bf16.msra.mxu1 %v3568_v31  ;;  %2526 = vmatprep.subr.bf16.mxu0 %v3573_v32  ;;  %v3644_v31 = vld [vmem:[%s5393_s1 + $0xac0] ss:$16 sps:$4 sm:$0xff]   ;;  %v3649_v32 = vld [vmem:[%s5393_s1 + $0x8a4] ss:$16 sps:$4 sm:$0xff]  }
  0x59   :  { %2567 = vmatprep.subr.bf16.mxu1 %v3576_v33  ;;  %v3652_v33 = vld [vmem:[%s5393_s1 + $0xaa4] ss:$16 sps:$4 sm:$0xff]  }
  0x5b   :  { %2527 = vmatpush1.bf16.msra.mxu0 %v3571_v36  ;;  %v3655_v36 = vld [vmem:[%s5393_s1 + $0x884] ss:$16 sps:$4 sm:$0xff]  }
  0x5c   :  { %2568 = vmatpush1.bf16.msra.mxu1 %v3574_v37  ;;  %2528 = vmatprep.subr.bf16.mxu0 %v3579_v40  ;;  %v3658_v37 = vld [vmem:[%s5393_s1 + $0xa84] ss:$16 sps:$4 sm:$0xff]   ;;  %v3653_v40 = vld [vmem:[%s5393_s1 + $0x880] ss:$16 sps:$4 sm:$0xff]  }
  0x5d   :  { %2569 = vmatprep.subr.bf16.mxu1 %v3582_v41  ;;  %v3656_v41 = vld [vmem:[%s5393_s1 + $0xa80] ss:$16 sps:$4 sm:$0xff]  }
  0x5f   :  { %2529 = vmatpush1.bf16.msra.mxu0 %v3577_v42  ;;  %v3661_v42 = vld [vmem:[%s5393_s1 + $0x864] ss:$16 sps:$4 sm:$0xff]  }
  0x60   :  { %2570 = vmatpush1.bf16.msra.mxu1 %v3580_v43  ;;  %2530 = vmatprep.subr.bf16.mxu0 %v3585_v45  ;;  %v3664_v43 = vld [vmem:[%s5393_s1 + $0xa64] ss:$16 sps:$4 sm:$0xff]   ;;  %v3662_v45 = vld [vmem:[%s5393_s1 + $0xa60] ss:$16 sps:$4 sm:$0xff]  }
  0x61   :  { %2571 = vmatprep.subr.bf16.mxu1 %v3588_v46  ;;  %v3667_v46 = vld [vmem:[%s5393_s1 + $0x844] ss:$16 sps:$4 sm:$0xff]  }
  0x63   :  { %2531 = vmatpush2.bf16.msra.mxu0 %v3583_v47  ;;  %v3670_v47 = vld [vmem:[%s5393_s1 + $0xa44] ss:$16 sps:$4 sm:$0xff]  }
  0x64   :  { %2572 = vmatpush2.bf16.msra.mxu1 %v3586_v49  ;;  %2532 = vmatprep.subr.bf16.mxu0 %v3591_v50  ;;  %v3665_v49 = vld [vmem:[%s5393_s1 + $0x840] ss:$16 sps:$4 sm:$0xff]  }
  0x65   :  { %2573 = vmatprep.subr.bf16.mxu1 %v3594_v51  ;;  %v3668_v50 = vld [vmem:[%s5393_s1 + $0xa40] ss:$16 sps:$4 sm:$0xff]   ;;  %v3673_v51 = vld [vmem:[%s5393_s1 + $0x824] ss:$16 sps:$4 sm:$0xff]  }
  0x67   :  { %2533 = vmatpush2.bf16.msra.mxu0 %v3589_v53  ;;  %v3676_v53 = vld [vmem:[%s5393_s1 + $0xa24] ss:$16 sps:$4 sm:$0xff]  }
  0x68   :  { %2574 = vmatpush2.bf16.msra.mxu1 %v3592_v54  ;;  %2534 = vmatprep.subr.bf16.mxu0 %v3597_v55  ;;  %v3671_v54 = vld [vmem:[%s5393_s1 + $0x820] ss:$16 sps:$4 sm:$0xff]  }
  0x69   :  { %2575 = vmatprep.subr.bf16.mxu1 %v3600_v56  ;;  %v3674_v55 = vld [vmem:[%s5393_s1 + $0xa20] ss:$16 sps:$4 sm:$0xff]   ;;  %v3679_v56 = vld [vmem:[%s5393_s1 + $0x804] ss:$16 sps:$4 sm:$0xff]  }
  0x6b   :  { %2535 = vmatpush2.bf16.msra.mxu0 %v3595_v57  ;;  %v3682_v57 = vld [vmem:[%s5393_s1 + $0xa04] ss:$16 sps:$4 sm:$0xff]  }
  0x6c   :  { %2576 = vmatpush2.bf16.msra.mxu1 %v3598_v58  ;;  %2536 = vmatprep.subr.bf16.mxu0 %v3603_v59  ;;  %v3677_v58 = vld [vmem:[%s5393_s1 + $0x800] ss:$16 sps:$4 sm:$0xff]  }
  0x6d   :  { %2577 = vmatprep.subr.bf16.mxu1 %v3606_v60  ;;  %v3680_v59 = vld [vmem:[%s5393_s1 + $0xa00] ss:$16 sps:$4 sm:$0xff]   ;;  %v3685_v60 = vld [vmem:[%s5393_s1 + $0x9e4] ss:$16 sps:$4 sm:$0xff]  }
  0x6f   :  { %2537 = vmatpush2.bf16.msra.mxu0 %v3601_v61  ;;  %v3688_v61 = vld [vmem:[%s5393_s1 + $0xbe4] ss:$16 sps:$4 sm:$0xff]  }
  0x70   :  { %2578 = vmatpush2.bf16.msra.mxu1 %v3604_v62  ;;  %2538 = vmatprep.subr.bf16.mxu0 %v3609_v63  ;;  %v3683_v62 = vld [vmem:[%s5393_s1 + $0x9e0] ss:$16 sps:$4 sm:$0xff]  }
  0x71   :  { %2579 = vmatprep.subr.bf16.mxu1 %v3612_v0  ;;  %v3686_v63 = vld [vmem:[%s5393_s1 + $0xbe0] ss:$16 sps:$4 sm:$0xff]   ;;  %v3691_v0 = vld [vmem:[%s5393_s1 + $0x9c4] ss:$16 sps:$4 sm:$0xff]  }
  0x73   :  { %2539 = vmatpush2.bf16.msra.mxu0 %v3607_v1  ;;  %v3694_v1 = vld [vmem:[%s5393_s1 + $0xbc4] ss:$16 sps:$4 sm:$0xff]  }
  0x74   :  { %2580 = vmatpush2.bf16.msra.mxu1 %v3610_v2  ;;  %2540 = vmatprep.subr.bf16.mxu0 %v3615_v3  ;;  %v3689_v2 = vld [vmem:[%s5393_s1 + $0x9c0] ss:$16 sps:$4 sm:$0xff]  }
  0x75   :  { %2581 = vmatprep.subr.bf16.mxu1 %v3618_v4  ;;  %v3692_v3 = vld [vmem:[%s5393_s1 + $0xbc0] ss:$16 sps:$4 sm:$0xff]   ;;  %v3697_v4 = vld [vmem:[%s5393_s1 + $0x9a4] ss:$16 sps:$4 sm:$0xff]  }
  0x77   :  { %2541 = vmatpush2.bf16.msra.mxu0 %v3613_v5  ;;  %v3700_v5 = vld [vmem:[%s5393_s1 + $0xba4] ss:$16 sps:$4 sm:$0xff]  }
  0x78   :  { %2582 = vmatpush2.bf16.msra.mxu1 %v3616_v6  ;;  %2542 = vmatprep.subr.bf16.mxu0 %v3621_v10  ;;  %v3695_v6 = vld [vmem:[%s5393_s1 + $0x9a0] ss:$16 sps:$4 sm:$0xff]  }
  0x79   :  { %2583 = vmatprep.subr.bf16.mxu1 %v3624_v11  ;;  %v3698_v10 = vld [vmem:[%s5393_s1 + $0xba0] ss:$16 sps:$4 sm:$0xff]   ;;  %v3703_v11 = vld [vmem:[%s5393_s1 + $0x984] ss:$16 sps:$4 sm:$0xff]  }
  0x7b   :  { %2543 = vmatpush2.bf16.msra.mxu0 %v3619_v12  ;;  %v3706_v12 = vld [vmem:[%s5393_s1 + $0xb84] ss:$16 sps:$4 sm:$0xff]  }
  0x7c   :  { %2584 = vmatpush2.bf16.msra.mxu1 %v3622_v13  ;;  %2544 = vmatprep.subr.bf16.mxu0 %v3627_v14  ;;  %v3701_v13 = vld [vmem:[%s5393_s1 + $0x980] ss:$16 sps:$4 sm:$0xff]  }
  0x7d   :  { %2585 = vmatprep.subr.bf16.mxu1 %v3630_v15  ;;  %v3704_v14 = vld [vmem:[%s5393_s1 + $0xb80] ss:$16 sps:$4 sm:$0xff]   ;;  %v3709_v15 = vld [vmem:[%s5393_s1 + $0x964] ss:$16 sps:$4 sm:$0xff]  }
  0x7f   :  { %2545 = vmatpush2.bf16.msra.mxu0 %v3625_v16  ;;  %v3712_v16 = vld [vmem:[%s5393_s1 + $0xb64] ss:$16 sps:$4 sm:$0xff]  }
  0x80   :  { %2586 = vmatpush2.bf16.msra.mxu1 %v3628_v17  ;;  %2596 = vmatprep.subr.bf16.mxu0 %v3637_v18  ;;  %v3707_v17 = vld [vmem:[%s5393_s1 + $0x960] ss:$16 sps:$4 sm:$0xff]  }
  0x81   :  { %2637 = vmatprep.subr.bf16.mxu1 %v3640_v19  ;;  %v3710_v18 = vld [vmem:[%s5393_s1 + $0xb60] ss:$16 sps:$4 sm:$0xff]   ;;  %v3715_v19 = vld [vmem:[%s5393_s1 + $0x944] ss:$16 sps:$4 sm:$0xff]  }
  0x82   :  { %2547 = vmatmul.mubr.bf16.vlgmr.msra.gmra.mxu0 %v4505_v20 }
  0x83   :  { %2588 = vmatmul.mubr.bf16.vlgmr.msra.gmra.mxu1 %v4509_v21  ;;  %2597 = vmatpush1.bf16.msra.mxu0 %v3635_v22  ;;  %v3718_v22 = vld [vmem:[%s5393_s1 + $0xb44] ss:$16 sps:$4 sm:$0xff]  }
  0x84   :  { %2638 = vmatpush1.bf16.msra.mxu1 %v3638_v23  ;;  %2598 = vmatprep.subr.bf16.mxu0 %v3643_v24  ;;  %v3713_v23 = vld [vmem:[%s5393_s1 + $0x940] ss:$16 sps:$4 sm:$0xff]  }
  0x85   :  { %2639 = vmatprep.subr.bf16.mxu1 %v3646_v25  ;;  %2628 = vmatprep.mubr.bf16.mxu0 %v4530_v27  ;;  %v3716_v24 = vld [vmem:[%s5393_s1 + $0xb40] ss:$16 sps:$4 sm:$0xff]   ;;  %v3721_v25 = vld [vmem:[%s5393_s1 + $0x924] ss:$16 sps:$4 sm:$0xff]  }
  0x86   :  { %2669 = vmatprep.mubr.bf16.mxu1 %v4544_v30 }
  0x87   :  { %2599 = vmatpush1.bf16.msra.mxu0 %v3641_v29  ;;  %v3724_v29 = vld [vmem:[%s5393_s1 + $0xb24] ss:$16 sps:$4 sm:$0xff]  }
  0x88   :  { %2640 = vmatpush1.bf16.msra.mxu1 %v3644_v31  ;;  %2600 = vmatprep.subr.bf16.mxu0 %v3649_v32  ;;  %v3719_v31 = vld [vmem:[%s5393_s1 + $0x920] ss:$16 sps:$4 sm:$0xff]  }
  0x89   :  { %2641 = vmatprep.subr.bf16.mxu1 %v3652_v33  ;;  %v3722_v32 = vld [vmem:[%s5393_s1 + $0xb20] ss:$16 sps:$4 sm:$0xff]   ;;  %v3727_v33 = vld [vmem:[%s5393_s1 + $0x904] ss:$16 sps:$4 sm:$0xff]  }
  0x8b   :  { %2601 = vmatpush1.bf16.msra.mxu0 %v3647_v34  ;;  %v3730_v34 = vld [vmem:[%s5393_s1 + $0xb04] ss:$16 sps:$4 sm:$0xff]  }
  0x8c   :  { %2642 = vmatpush1.bf16.msra.mxu1 %v3650_v35  ;;  %2602 = vmatprep.subr.bf16.mxu0 %v3655_v36  ;;  %v3725_v35 = vld [vmem:[%s5393_s1 + $0x900] ss:$16 sps:$4 sm:$0xff]  }
  0x8d   :  { %2643 = vmatprep.subr.bf16.mxu1 %v3658_v37  ;;  %v3728_v36 = vld [vmem:[%s5393_s1 + $0xb00] ss:$16 sps:$4 sm:$0xff]   ;;  %v3737_v37 = vld [vmem:[%s5393_s1 + $0xc24] ss:$16 sps:$4 sm:$0xff]  }
  0x8f   :  { %2603 = vmatpush1.bf16.msra.mxu0 %v3653_v40  ;;  %v3740_v40 = vld [vmem:[%s5393_s1 + $0xec] ss:$16 sps:$4 sm:$0xff]  }
  0x90   :  { %2644 = vmatpush1.bf16.msra.mxu1 %v3656_v41  ;;  %2604 = vmatprep.subr.bf16.mxu0 %v3661_v42  ;;  %v4727_v41 = vcombine.low %v4526_v26, %v4526_v26  ;;  %v4731_v42 = vcombine.low %v4535_v28, %v4535_v28  ;;  %v3743_v26 = vld [vmem:[%s5393_s1 + $0xc04] ss:$16 sps:$4 sm:$0xff]   ;;  %v3746_v28 = vld [vmem:[%s5393_s1 + $0xcc] ss:$16 sps:$4 sm:$0xff]  }
  0x91   :  { %2645 = vmatprep.subr.bf16.mxu1 %v3664_v43  ;;  %v3735_v43 = vld [vmem:[%s5393_s1 + $0xc20] ss:$16 sps:$4 sm:$0xff]  }
  0x93   :  { %2605 = vmatpush1.bf16.msra.mxu0 %v3659_v44  ;;  %v3738_v44 = vld [vmem:[%s5393_s1 + $0xe8] ss:$16 sps:$4 sm:$0xff]  }
  0x94   :  { %2646 = vmatpush1.bf16.msra.mxu1 %v3662_v45  ;;  %2606 = vmatprep.subr.bf16.mxu0 %v3667_v46  ;;  %v3741_v45 = vld [vmem:[%s5393_s1 + $0xc00] ss:$16 sps:$4 sm:$0xff]   ;;  %v3744_v46 = vld [vmem:[%s5393_s1 + $0xc8] ss:$16 sps:$4 sm:$0xff]  }
  0x95   :  { %2647 = vmatprep.subr.bf16.mxu1 %v3670_v47  ;;  %v3750_v47 = vld [vmem:[%s5393_s1 + $0xac] ss:$16 sps:$4 sm:$0xff]  }
  0x97   :  { %2607 = vmatpush1.bf16.msra.mxu0 %v3665_v49  ;;  %v3753_v49 = vld [vmem:[%s5393_s1 + $0x2ec] ss:$16 sps:$4 sm:$0xff]  }
  0x98   :  { %2648 = vmatpush1.bf16.msra.mxu1 %v3668_v50  ;;  %2608 = vmatprep.subr.bf16.mxu0 %v3673_v51  ;;  %v3747_v50 = vld [vmem:[%s5394_s0 + $0x30] ss:$0 sps:$4 sm:$0xff]   ;;  %v3748_v51 = vld [vmem:[%s5393_s1 + $0xa8] ss:$16 sps:$4 sm:$0xff]  }
  0x99   :  { %2649 = vmatprep.subr.bf16.mxu1 %v3676_v53  ;;  %v3751_v53 = vld [vmem:[%s5393_s1 + $0x2e8] ss:$16 sps:$4 sm:$0xff]  }
  0x9b   :  { %2609 = vmatpush1.bf16.msra.mxu0 %v3671_v54  ;;  %v3756_v54 = vld [vmem:[%s5393_s1 + $0x8c] ss:$16 sps:$4 sm:$0xff]  }
  0x9c   :  { %2650 = vmatpush1.bf16.msra.mxu1 %v3674_v55  ;;  %2610 = vmatprep.subr.bf16.mxu0 %v3679_v56  ;;  %v3754_v55 = vld [vmem:[%s5393_s1 + $0x88] ss:$16 sps:$4 sm:$0xff]  }
  0x9d   :  { %2651 = vmatprep.subr.bf16.mxu1 %v3682_v57  ;;  %v3757_v56 = vld [vmem:[%s5393_s1 + $0x2c8] ss:$16 sps:$4 sm:$0xff]   ;;  %v3762_v57 = vld [vmem:[%s5393_s1 + $0x6c] ss:$16 sps:$4 sm:$0xff]  }
  0x9f   :  { %2611 = vmatpush1.bf16.msra.mxu0 %v3677_v58  ;;  %v3765_v58 = vld [vmem:[%s5393_s1 + $0x2ac] ss:$16 sps:$4 sm:$0xff]  }
  0xa0   :  { %2652 = vmatpush1.bf16.msra.mxu1 %v3680_v59  ;;  %2612 = vmatprep.subr.bf16.mxu0 %v3685_v60  ;;  %v3760_v59 = vld [vmem:[%s5393_s1 + $0x68] ss:$16 sps:$4 sm:$0xff]  }
  0xa1   :  { %2653 = vmatprep.subr.bf16.mxu1 %v3688_v61  ;;  %v3763_v60 = vld [vmem:[%s5393_s1 + $0x2a8] ss:$16 sps:$4 sm:$0xff]   ;;  %v3768_v61 = vld [vmem:[%s5393_s1 + $0x4c] ss:$16 sps:$4 sm:$0xff]  }
  0xa3   :  { %2613 = vmatpush2.bf16.msra.mxu0 %v3683_v62  ;;  %v3766_v62 = vld [vmem:[%s5393_s1 + $0x48] ss:$16 sps:$4 sm:$0xff]  }
  0xa4   :  { %2654 = vmatpush2.bf16.msra.mxu1 %v3686_v63  ;;  %2614 = vmatprep.subr.bf16.mxu0 %v3691_v0  ;;  %v3769_v63 = vld [vmem:[%s5393_s1 + $0x288] ss:$16 sps:$4 sm:$0xff]   ;;  %v3774_v0 = vld [vmem:[%s5393_s1 + $0x2c] ss:$16 sps:$4 sm:$0xff]  }
  0xa5   :  { %2655 = vmatprep.subr.bf16.mxu1 %v3694_v1  ;;  %v3777_v1 = vld [vmem:[%s5393_s1 + $0x26c] ss:$16 sps:$4 sm:$0xff]  }
  0xa7   :  { %2615 = vmatpush2.bf16.msra.mxu0 %v3689_v2  ;;  %v3772_v2 = vld [vmem:[%s5393_s1 + $0x28] ss:$16 sps:$4 sm:$0xff]  }
  0xa8   :  { %2656 = vmatpush2.bf16.msra.mxu1 %v3692_v3  ;;  %2616 = vmatprep.subr.bf16.mxu0 %v3697_v4  ;;  %v3775_v3 = vld [vmem:[%s5393_s1 + $0x268] ss:$16 sps:$4 sm:$0xff]   ;;  %v3780_v4 = vld [vmem:[%s5393_s1 + $0xc] ss:$16 sps:$4 sm:$0xff]  }
  0xa9   :  { %2657 = vmatprep.subr.bf16.mxu1 %v3700_v5  ;;  %v3783_v5 = vld [vmem:[%s5393_s1 + $0x24c] ss:$16 sps:$4 sm:$0xff]  }
  0xab   :  { %2617 = vmatpush2.bf16.msra.mxu0 %v3695_v6  ;;  %v3778_v6 = vld [vmem:[%s5393_s1 + $0x8] ss:$16 sps:$4 sm:$0xff]  }
  0xac   :  { %2658 = vmatpush2.bf16.msra.mxu1 %v3698_v10  ;;  %2618 = vmatprep.subr.bf16.mxu0 %v3703_v11  ;;  %v3781_v10 = vld [vmem:[%s5393_s1 + $0x248] ss:$16 sps:$4 sm:$0xff]   ;;  %v3786_v11 = vld [vmem:[%s5393_s1 + $0x1ec] ss:$16 sps:$4 sm:$0xff]  }
  0xad   :  { %2659 = vmatprep.subr.bf16.mxu1 %v3706_v12  ;;  %v3789_v12 = vld [vmem:[%s5393_s1 + $0x22c] ss:$16 sps:$4 sm:$0xff]  }
  0xaf   :  { %2619 = vmatpush2.bf16.msra.mxu0 %v3701_v13  ;;  %v3784_v13 = vld [vmem:[%s5393_s1 + $0x1e8] ss:$16 sps:$4 sm:$0xff]  }
  0xb0   :  { %2660 = vmatpush2.bf16.msra.mxu1 %v3704_v14  ;;  %2620 = vmatprep.subr.bf16.mxu0 %v3709_v15  ;;  %v3787_v14 = vld [vmem:[%s5393_s1 + $0x228] ss:$16 sps:$4 sm:$0xff]   ;;  %v3792_v15 = vld [vmem:[%s5393_s1 + $0x1cc] ss:$16 sps:$4 sm:$0xff]  }
  0xb1   :  { %2661 = vmatprep.subr.bf16.mxu1 %v3712_v16  ;;  %v3795_v16 = vld [vmem:[%s5393_s1 + $0x20c] ss:$16 sps:$4 sm:$0xff]  }
  0xb3   :  { %2621 = vmatpush2.bf16.msra.mxu0 %v3707_v17  ;;  %v3790_v17 = vld [vmem:[%s5393_s1 + $0x1c8] ss:$16 sps:$4 sm:$0xff]  }
  0xb4   :  { %2662 = vmatpush2.bf16.msra.mxu1 %v3710_v18  ;;  %2622 = vmatprep.subr.bf16.mxu0 %v3715_v19  ;;  %v3793_v18 = vld [vmem:[%s5393_s1 + $0x208] ss:$16 sps:$4 sm:$0xff]   ;;  %v3798_v19 = vld [vmem:[%s5393_s1 + $0x1ac] ss:$16 sps:$4 sm:$0xff]  }
  0xb5   :  { %2663 = vmatprep.subr.bf16.mxu1 %v3718_v22  ;;  %v3801_v22 = vld [vmem:[%s5393_s1 + $0x3ec] ss:$16 sps:$4 sm:$0xff]  }
  0xb7   :  { %2623 = vmatpush2.bf16.msra.mxu0 %v3713_v23  ;;  %v3796_v23 = vld [vmem:[%s5393_s1 + $0x1a8] ss:$16 sps:$4 sm:$0xff]  }
  0xb8   :  { %2664 = vmatpush2.bf16.msra.mxu1 %v3716_v24  ;;  %2624 = vmatprep.subr.bf16.mxu0 %v3721_v25  ;;  %v3799_v24 = vld [vmem:[%s5393_s1 + $0x3e8] ss:$16 sps:$4 sm:$0xff]   ;;  %v3804_v25 = vld [vmem:[%s5393_s1 + $0x18c] ss:$16 sps:$4 sm:$0xff]  }
  0xb9   :  { %2665 = vmatprep.subr.bf16.mxu1 %v3724_v29  ;;  %v3807_v29 = vld [vmem:[%s5393_s1 + $0x3cc] ss:$16 sps:$4 sm:$0xff]  }
  0xbb   :  { %2625 = vmatpush2.bf16.msra.mxu0 %v3719_v31  ;;  %v3802_v31 = vld [vmem:[%s5393_s1 + $0x188] ss:$16 sps:$4 sm:$0xff]  }
  0xbc   :  { %2666 = vmatpush2.bf16.msra.mxu1 %v3722_v32  ;;  %2626 = vmatprep.subr.bf16.mxu0 %v3727_v33  ;;  %v3805_v32 = vld [vmem:[%s5393_s1 + $0x3c8] ss:$16 sps:$4 sm:$0xff]   ;;  %v3810_v33 = vld [vmem:[%s5393_s1 + $0x16c] ss:$16 sps:$4 sm:$0xff]  }
  0xbd   :  { %2667 = vmatprep.subr.bf16.mxu1 %v3730_v34  ;;  %v3813_v34 = vld [vmem:[%s5393_s1 + $0x3ac] ss:$16 sps:$4 sm:$0xff]  }
  0xbf   :  { %2627 = vmatpush2.bf16.msra.mxu0 %v3725_v35  ;;  %v3808_v35 = vld [vmem:[%s5393_s1 + $0x168] ss:$16 sps:$4 sm:$0xff]  }
  0xc0   :  { %2668 = vmatpush2.bf16.msra.mxu1 %v3728_v36  ;;  %2690 = vmatprep.subr.bf16.mxu0 %v3737_v37  ;;  %v3811_v36 = vld [vmem:[%s5393_s1 + $0x3a8] ss:$16 sps:$4 sm:$0xff]   ;;  %v3816_v37 = vld [vmem:[%s5393_s1 + $0x14c] ss:$16 sps:$4 sm:$0xff]  }
  0xc1   :  { %2719 = vmatprep.subr.bf16.mxu1 %v3740_v40  ;;  %v3819_v40 = vld [vmem:[%s5393_s1 + $0x38c] ss:$16 sps:$4 sm:$0xff]  }
  0xc2   :  { %2629 = vmatmul.mubr.bf16.vlgmr.msra.gmra.mxu0 %v4727_v41 }
  0xc3   :  { %2670 = vmatmul.mubr.bf16.vlgmr.msra.gmra.mxu1 %v4731_v42  ;;  %2691 = vmatpush1.bf16.msra.mxu0 %v3735_v43  ;;  %v3814_v43 = vld [vmem:[%s5393_s1 + $0x148] ss:$16 sps:$4 sm:$0xff]  }
  0xc4   :  { %2720 = vmatpush1.bf16.msra.mxu1 %v3738_v44  ;;  %2692 = vmatprep.subr.bf16.mxu0 %v3743_v26  ;;  %v3817_v44 = vld [vmem:[%s5393_s1 + $0x388] ss:$16 sps:$4 sm:$0xff]   ;;  %v3822_v26 = vld [vmem:[%s5393_s1 + $0x12c] ss:$16 sps:$4 sm:$0xff]  }
  0xc5   :  { %2721 = vmatprep.subr.bf16.mxu1 %v3746_v28  ;;  %2710 = vmatprep.mubr.bf16.mxu0 %v4045_v8  ;;  %v3825_v28 = vld [vmem:[%s5393_s1 + $0x36c] ss:$16 sps:$4 sm:$0xff]  }
  0xc6   :  { %2751 = vmatprep.mubr.bf16.mxu1 %v4213_v48  ;;  %v3759_v48 = vld [vmem:[%s5393_s1 + $0x2cc] ss:$16 sps:$4 sm:$0xff]  }
  0xc7   :  { %2693 = vmatpush1.bf16.msra.mxu0 %v3741_v45  ;;  %v3820_v45 = vld [vmem:[%s5393_s1 + $0x128] ss:$16 sps:$4 sm:$0xff]  }
  0xc8   :  { %2722 = vmatpush1.bf16.msra.mxu1 %v3744_v46  ;;  %2760 = vmatprep.subr.bf16.mxu0 %v3753_v49  ;;  %v3823_v46 = vld [vmem:[%s5393_s1 + $0x368] ss:$16 sps:$4 sm:$0xff]   ;;  %v3831_v49 = vld [vmem:[%s5393_s1 + $0x34c] ss:$16 sps:$4 sm:$0xff]  }
  0xc9   :  { %2723 = vmatprep.subr.bf16.mxu1 %v3750_v47  ;;  %v3828_v47 = vld [vmem:[%s5393_s1 + $0x10c] ss:$16 sps:$4 sm:$0xff]  }
  0xca   :  { %3431 = vmatmul.mubr.msk.bf16.vlgmr.msra.gmra.mxu0 %vm2428_vm0, %v3747_v50  ;;  %v3826_v50 = vld [vmem:[%s5393_s1 + $0x108] ss:$16 sps:$4 sm:$0xff]  }
  0xcb   :  { %2761 = vmatpush1.bf16.msra.mxu0 %v3751_v53  ;;  %2792 = vmatprep.mubr.bf16.mxu0 %v4224_v52  ;;  %v3771_v52 = vld [vmem:[%s5393_s1 + $0x28c] ss:$16 sps:$4 sm:$0xff]  }
  0xcc   :  { %2724 = vmatpush1.bf16.msra.mxu1 %v3748_v51  ;;  %2762 = vmatprep.subr.bf16.mxu0 %v3759_v48  ;;  %v3829_v51 = vld [vmem:[%s5393_s1 + $0x348] ss:$16 sps:$4 sm:$0xff]   ;;  %v3834_v53 = vld [vmem:[%s5393_s1 + $0x32c] ss:$16 sps:$4 sm:$0xff]  }
  0xcd   :  { %2725 = vmatprep.subr.bf16.mxu1 %v3756_v54  ;;  %v3837_v54 = vld [vmem:[%s5393_s1 + $0x4ec] ss:$16 sps:$4 sm:$0xff]   ;;  %v3832_v48 = vld [vmem:[%s5393_s1 + $0x328] ss:$16 sps:$4 sm:$0xff]  }
  0xcf   :  { %2763 = vmatpush1.bf16.msra.mxu0 %v3757_v56  ;;  %v4940_v56 = vpop.permute.xlu0 %420 }
  0xd0   :  { %2726 = vmatpush1.bf16.msra.mxu1 %v3754_v55  ;;  %2764 = vmatprep.subr.bf16.mxu0 %v3765_v58  ;;  %v3835_v55 = vld [vmem:[%s5393_s1 + $0x4e8] ss:$16 sps:$4 sm:$0xff]   ;;  %v3843_v58 = vld [vmem:[%s5393_s1 + $0x4cc] ss:$16 sps:$4 sm:$0xff]  }
  0xd1   :  { %2727 = vmatprep.subr.bf16.mxu1 %v3762_v57  ;;  %v3840_v57 = vld [vmem:[%s5393_s1 + $0x30c] ss:$16 sps:$4 sm:$0xff]  }
  0xd3   :  { %2765 = vmatpush1.bf16.msra.mxu0 %v3763_v60 }
  0xd4   :  { %2728 = vmatpush1.bf16.msra.mxu1 %v3760_v59  ;;  %2766 = vmatprep.subr.bf16.mxu0 %v3771_v52 }
  0xd5   :  { %2729 = vmatprep.subr.bf16.mxu1 %v3768_v61  ;;  %v3838_v61 = vld [vmem:[%s5393_s1 + $0x308] ss:$16 sps:$4 sm:$0xff]  }
  0xd7   :  { %2767 = vmatpush1.bf16.msra.mxu0 %v3769_v63 }
  0xd8   :  { %2730 = vmatpush1.bf16.msra.mxu1 %v3766_v62  ;;  %2768 = vmatprep.subr.bf16.mxu0 %v3777_v1  ;;  %v3841_v62 = vld [vmem:[%s5393_s1 + $0x4c8] ss:$16 sps:$4 sm:$0xff]   ;;  %v3849_v1 = vld [vmem:[%s5393_s1 + $0x6ec] ss:$16 sps:$4 sm:$0xff]  }
  0xd9   :  { %2731 = vmatprep.subr.bf16.mxu1 %v3774_v0 }
  0xdb   :  { %2769 = vmatpush1.bf16.msra.mxu0 %v3775_v3 }
  0xdc   :  { %2732 = vmatpush1.bf16.msra.mxu1 %v3772_v2  ;;  %2770 = vmatprep.subr.bf16.mxu0 %v3783_v5 }
  0xdd   :  { %2733 = vmatprep.subr.bf16.mxu1 %v3780_v4 }
  0xdf   :  { %2771 = vmatpush1.bf16.msra.mxu0 %v3781_v10  ;;  %v3844_v10 = vld [vmem:[%s5393_s1 + $0x4a8] ss:$16 sps:$4 sm:$0xff]  }
  0xe0   :  { %2734 = vmatpush1.bf16.msra.mxu1 %v3778_v6  ;;  %2772 = vmatprep.subr.bf16.mxu0 %v3789_v12 }
  0xe1   :  { %2735 = vmatprep.subr.bf16.mxu1 %v3786_v11  ;;  %v3847_v11 = vld [vmem:[%s5393_s1 + $0x6e8] ss:$16 sps:$4 sm:$0xff]  }
  0xe3   :  { %2773 = vmatpush1.bf16.msra.mxu0 %v3787_v14  ;;  %v3855_v14 = vld [vmem:[%s5393_s1 + $0x6cc] ss:$16 sps:$4 sm:$0xff]  }
  0xe4   :  { %2736 = vmatpush2.bf16.msra.mxu1 %v3784_v13  ;;  %2774 = vmatprep.subr.bf16.mxu0 %v3795_v16  ;;  %v3853_v16 = vld [vmem:[%s5393_s1 + $0x6c8] ss:$16 sps:$4 sm:$0xff]  }
  0xe5   :  { %2737 = vmatprep.subr.bf16.mxu1 %v3792_v15  ;;  %v3850_v15 = vld [vmem:[%s5393_s1 + $0x488] ss:$16 sps:$4 sm:$0xff]  }
  0xe7   :  { %2775 = vmatpush1.bf16.msra.mxu0 %v3793_v18  ;;  %v3856_v18 = vld [vmem:[%s5393_s1 + $0x468] ss:$16 sps:$4 sm:$0xff]  }
  0xe8   :  { %2738 = vmatpush2.bf16.msra.mxu1 %v3790_v17  ;;  %2776 = vmatprep.subr.bf16.mxu0 %v3801_v22  ;;  %v3858_v17 = vld [vmem:[%s5393_s1 + $0x46c] ss:$16 sps:$4 sm:$0xff]  }
  0xe9   :  { %2739 = vmatprep.subr.bf16.mxu1 %v3798_v19  ;;  %v3859_v19 = vld [vmem:[%s5393_s1 + $0x6a8] ss:$16 sps:$4 sm:$0xff]   ;;  %v3864_v22 = vld [vmem:[%s5393_s1 + $0x44c] ss:$16 sps:$4 sm:$0xff]  }
  0xeb   :  { %2777 = vmatpush2.bf16.msra.mxu0 %v3799_v24  ;;  %v3865_v24 = vld [vmem:[%s5393_s1 + $0x688] ss:$16 sps:$4 sm:$0xff]  }
  0xec   :  { %2740 = vmatpush2.bf16.msra.mxu1 %v3796_v23  ;;  %2778 = vmatprep.subr.bf16.mxu0 %v3807_v29  ;;  %v3862_v23 = vld [vmem:[%s5393_s1 + $0x448] ss:$16 sps:$4 sm:$0xff]   ;;  %v3873_v29 = vld [vmem:[%s5393_s1 + $0x66c] ss:$16 sps:$4 sm:$0xff]  }
  0xed   :  { %2741 = vmatprep.subr.bf16.mxu1 %v3804_v25  ;;  %v3870_v25 = vld [vmem:[%s5393_s1 + $0x42c] ss:$16 sps:$4 sm:$0xff]  }
  0xef   :  { %2779 = vmatpush2.bf16.msra.mxu0 %v3805_v32  ;;  %v3871_v32 = vld [vmem:[%s5393_s1 + $0x668] ss:$16 sps:$4 sm:$0xff]  }
  0xf0   :  { %2742 = vmatpush2.bf16.msra.mxu1 %v3802_v31  ;;  %2780 = vmatprep.subr.bf16.mxu0 %v3813_v34  ;;  %v3868_v31 = vld [vmem:[%s5393_s1 + $0x428] ss:$16 sps:$4 sm:$0xff]   ;;  %v3879_v34 = vld [vmem:[%s5393_s1 + $0x64c] ss:$16 sps:$4 sm:$0xff]  }
  0xf1   :  { %2743 = vmatprep.subr.bf16.mxu1 %v3810_v33  ;;  %v3876_v33 = vld [vmem:[%s5393_s1 + $0x40c] ss:$16 sps:$4 sm:$0xff]  }
  0xf3   :  { %2781 = vmatpush2.bf16.msra.mxu0 %v3811_v36  ;;  %v3877_v36 = vld [vmem:[%s5393_s1 + $0x648] ss:$16 sps:$4 sm:$0xff]  }
  0xf4   :  { %2744 = vmatpush2.bf16.msra.mxu1 %v3808_v35  ;;  %2782 = vmatprep.subr.bf16.mxu0 %v3819_v40  ;;  %v3874_v35 = vld [vmem:[%s5393_s1 + $0x408] ss:$16 sps:$4 sm:$0xff]   ;;  %v3885_v40 = vld [vmem:[%s5393_s1 + $0x62c] ss:$16 sps:$4 sm:$0xff]  }
  0xf5   :  { %2745 = vmatprep.subr.bf16.mxu1 %v3816_v37  ;;  %v3882_v37 = vld [vmem:[%s5393_s1 + $0x5ec] ss:$16 sps:$4 sm:$0xff]  }
  0xf7   :  { %2783 = vmatpush2.bf16.msra.mxu0 %v3817_v44  ;;  %v3883_v44 = vld [vmem:[%s5393_s1 + $0x628] ss:$16 sps:$4 sm:$0xff]  }
  0xf8   :  { %2746 = vmatpush2.bf16.msra.mxu1 %v3814_v43  ;;  %2784 = vmatprep.subr.bf16.mxu0 %v3825_v28  ;;  %v3880_v43 = vld [vmem:[%s5393_s1 + $0x5e8] ss:$16 sps:$4 sm:$0xff]   ;;  %v3891_v28 = vld [vmem:[%s5393_s1 + $0x60c] ss:$16 sps:$4 sm:$0xff]  }
  0xf9   :  { %2747 = vmatprep.subr.bf16.mxu1 %v3822_v26  ;;  %v3888_v26 = vld [vmem:[%s5393_s1 + $0x5cc] ss:$16 sps:$4 sm:$0xff]  }
  0xfb   :  { %2785 = vmatpush2.bf16.msra.mxu0 %v3823_v46  ;;  %v3889_v46 = vld [vmem:[%s5393_s1 + $0x608] ss:$16 sps:$4 sm:$0xff]  }
  0xfc   :  { %2748 = vmatpush2.bf16.msra.mxu1 %v3820_v45  ;;  %2786 = vmatprep.subr.bf16.mxu0 %v3831_v49  ;;  %v3886_v45 = vld [vmem:[%s5393_s1 + $0x5c8] ss:$16 sps:$4 sm:$0xff]   ;;  %v3897_v49 = vld [vmem:[%s5393_s1 + $0x7ec] ss:$16 sps:$4 sm:$0xff]  }
  0xfd   :  { %2749 = vmatprep.subr.bf16.mxu1 %v3828_v47  ;;  %v3894_v47 = vld [vmem:[%s5393_s1 + $0x5ac] ss:$16 sps:$4 sm:$0xff]  }
  0xff   :  { %2787 = vmatpush2.bf16.msra.mxu0 %v3829_v51  ;;  %v3895_v51 = vld [vmem:[%s5393_s1 + $0x7e8] ss:$16 sps:$4 sm:$0xff]  }
 0x100   :  { %2750 = vmatpush2.bf16.msra.mxu1 %v3826_v50  ;;  %2788 = vmatprep.subr.bf16.mxu0 %v3834_v53  ;;  %v3892_v50 = vld [vmem:[%s5393_s1 + $0x5a8] ss:$16 sps:$4 sm:$0xff]   ;;  %v3900_v53 = vld [vmem:[%s5393_s1 + $0x58c] ss:$16 sps:$4 sm:$0xff]  }
 0x101   :  { %2801 = vmatprep.subr.bf16.mxu1 %v3837_v54  ;;  %v3903_v54 = vld [vmem:[%s5393_s1 + $0x7cc] ss:$16 sps:$4 sm:$0xff]  }
 0x102   :  { %v2466_v59 = vpop.f32.mrf.mxu0 }
 0x103   :  { %v2507_v60 = vpop.f32.mrf.mxu1  ;;  %2752 = vmatmul.mubr.bf16.vlgmr.msra.gmra.mxu1 %v4282_v7  ;;  %v2467_v52 = vadd.f32 %v2466_v59, %v4940_v56  ;;  %2789 = vmatpush2.bf16.msra.mxu0 %v3832_v48  ;;  %v3846_v7 = vld [vmem:[%s5393_s1 + $0x4ac] ss:$16 sps:$4 sm:$0xff]   ;;  %v3898_v48 = vld [vmem:[%s5393_s1 + $0x588] ss:$16 sps:$4 sm:$0xff]  }
 0x104   :  { %2802 = vmatpush1.bf16.msra.mxu1 %v3835_v55  ;;  %v2468_v63 = vpop.f32.mrf.mxu0  ;;  %2790 = vmatprep.subr.bf16.mxu0 %v3840_v57  ;;  %v3901_v55 = vld [vmem:[%s5393_s1 + $0x7c8] ss:$16 sps:$4 sm:$0xff]   ;;  %v3906_v57 = vld [vmem:[%s5393_s1 + $0x56c] ss:$16 sps:$4 sm:$0xff]  }
 0x105   :  { %v2509_v0 = vpop.f32.mrf.mxu1  ;;  %2803 = vmatprep.subr.bf16.mxu1 %v3843_v58  ;;  %v4962_v2 = vadd.f32 %v2507_v60, %v2467_v52  ;;  %v2469_v3 = vadd.f32 %v2468_v63, %v4940_v56  ;;  %2833 = vmatprep.mubr.bf16.mxu1 %v4378_v38  ;;  %v3852_v38 = vld [vmem:[%s5393_s1 + $0x48c] ss:$16 sps:$4 sm:$0xff]   ;;  %v3904_v59 = vld [vmem:[%s5393_s1 + $0x568] ss:$16 sps:$4 sm:$0xff]  }
 0x106   :  { %v2470_v4 = vpop.f32.mrf.mxu0  ;;  %v3909_v58 = vld [vmem:[%s5393_s1 + $0x7ac] ss:$16 sps:$4 sm:$0xff]   ;;  %v3907_v60 = vld [vmem:[%s5393_s1 + $0x7a8] ss:$16 sps:$4 sm:$0xff]  }
 0x107   :  { %v2511_v5 = vpop.f32.mrf.mxu1  ;;  %v4966_v6 = vadd.f32 %v2509_v0, %v2469_v3  ;;  %2791 = vmatpush2.bf16.msra.mxu0 %v3838_v61  ;;  %v3912_v61 = vld [vmem:[%s5393_s1 + $0x54c] ss:$16 sps:$4 sm:$0xff]   ;;  %v3913_v63 = vld [vmem:[%s5393_s1 + $0x788] ss:$16 sps:$4 sm:$0xff]  }
 0x108   :  { %2804 = vmatpush1.bf16.msra.mxu1 %v3841_v62  ;;  %v2471_v12 = vpop.f32.mrf.mxu0  ;;  %2842 = vmatprep.subr.bf16.mxu0 %v3849_v1  ;;  %v3915_v52 = vld [vmem:[%s5393_s1 + $0x78c] ss:$16 sps:$4 sm:$0xff]   ;;  %v3910_v62 = vld [vmem:[%s5393_s1 + $0x548] ss:$16 sps:$4 sm:$0xff]  }
 0x109   :  { %v2512_v13 = vpop.f32.mrf.mxu1  ;;  %2805 = vmatprep.subr.bf16.mxu1 %v3846_v7  ;;  %v3918_v0 = vld [vmem:[%s5393_s1 + $0x52c] ss:$16 sps:$4 sm:$0xff]   ;;  %v3916_v1 = vld [vmem:[%s5393_s1 + $0x528] ss:$16 sps:$4 sm:$0xff]  }
 0x10a   :  { %2793 = vmatmul.mubr.bf16.vlgmr.msra.gmra.mxu0 %v4284_v9  ;;  %v3861_v9 = vld [vmem:[%s5393_s1 + $0x6ac] ss:$16 sps:$4 sm:$0xff]   ;;  %v3919_v3 = vld [vmem:[%s5393_s1 + $0x768] ss:$16 sps:$4 sm:$0xff]  }
 0x10b   :  { %2843 = vmatpush1.bf16.msra.mxu0 %v3847_v11  ;;  %2874 = vmatprep.mubr.bf16.mxu0 %v4382_v39  ;;  %v3867_v39 = vld [vmem:[%s5393_s1 + $0x68c] ss:$16 sps:$4 sm:$0xff]   ;;  %v3925_v11 = vld [vmem:[%s5393_s1 + $0x748] ss:$16 sps:$4 sm:$0xff]  }
 0x10c   :  { %2806 = vmatpush1.bf16.msra.mxu1 %v3844_v10  ;;  %2844 = vmatprep.subr.bf16.mxu0 %v3855_v14  ;;  %v3921_v7 = vld [vmem:[%s5393_s1 + $0x76c] ss:$16 sps:$4 sm:$0xff]   ;;  %v3922_v10 = vld [vmem:[%s5393_s1 + $0x508] ss:$16 sps:$4 sm:$0xff]  }
 0x10d   :  { %2807 = vmatprep.subr.bf16.mxu1 %v3852_v38  ;;  %v3924_v4 = vld [vmem:[%s5393_s1 + $0x50c] ss:$16 sps:$4 sm:$0xff]   ;;  %v3928_v38 = vld [vmem:[%s5393_s1 + $0x728] ss:$16 sps:$4 sm:$0xff]  }
 0x10e   :  { %v3927_v5 = vld [vmem:[%s5393_s1 + $0x74c] ss:$16 sps:$4 sm:$0xff]   ;;  %v3931_v14 = vld [vmem:[%s5393_s1 + $0x8e8] ss:$16 sps:$4 sm:$0xff]  }
 0x10f   :  { %2845 = vmatpush1.bf16.msra.mxu0 %v3853_v16  ;;  %v3930_v12 = vld [vmem:[%s5393_s1 + $0x72c] ss:$16 sps:$4 sm:$0xff]  }
 0x110   :  { %2808 = vmatpush1.bf16.msra.mxu1 %v3850_v15  ;;  %2846 = vmatprep.subr.bf16.mxu0 %v3861_v9  ;;  %v3933_v13 = vld [vmem:[%s5393_s1 + $0x8ec] ss:$16 sps:$4 sm:$0xff]  }
 0x111   :  { %2809 = vmatprep.subr.bf16.mxu1 %v3858_v17  ;;  %v3936_v15 = vld [vmem:[%s5393_s1 + $0x70c] ss:$16 sps:$4 sm:$0xff]  }
 0x112   :  { %v3939_v16 = vld [vmem:[%s5393_s1 + $0x8cc] ss:$16 sps:$4 sm:$0xff]  }
 0x113   :  { %2847 = vmatpush1.bf16.msra.mxu0 %v3859_v19  ;;  %v3934_v19 = vld [vmem:[%s5393_s1 + $0x708] ss:$16 sps:$4 sm:$0xff]  }
 0x114   :  { %2810 = vmatpush1.bf16.msra.mxu1 %v3856_v18  ;;  %2848 = vmatprep.subr.bf16.mxu0 %v3867_v39 }
 0x115   :  { %2811 = vmatprep.subr.bf16.mxu1 %v3864_v22  ;;  %v3937_v22 = vld [vmem:[%s5393_s1 + $0x8c8] ss:$16 sps:$4 sm:$0xff]  }
 0x117   :  { %2849 = vmatpush1.bf16.msra.mxu0 %v3865_v24 }
 0x118   :  { %2812 = vmatpush1.bf16.msra.mxu1 %v3862_v23  ;;  %2850 = vmatprep.subr.bf16.mxu0 %v3873_v29 }
 0x119   :  { %2813 = vmatprep.subr.bf16.mxu1 %v3870_v25 }
 0x11b   :  { %2851 = vmatpush1.bf16.msra.mxu0 %v3871_v32 }
 0x11c   :  { %2814 = vmatpush1.bf16.msra.mxu1 %v3868_v31  ;;  %2852 = vmatprep.subr.bf16.mxu0 %v3879_v34  ;;  %v3943_v34 = vld [vmem:[%s5393_s1 + $0xae8] ss:$16 sps:$4 sm:$0xff]  }
 0x11d   :  { %2815 = vmatprep.subr.bf16.mxu1 %v3876_v33  ;;  %v3940_v33 = vld [vmem:[%s5393_s1 + $0x8a8] ss:$16 sps:$4 sm:$0xff]  }
 0x11f   :  { %2853 = vmatpush1.bf16.msra.mxu0 %v3877_v36 }
 0x120   :  { %2816 = vmatpush1.bf16.msra.mxu1 %v3874_v35  ;;  %2854 = vmatprep.subr.bf16.mxu0 %v3885_v40  ;;  %v3949_v40 = vld [vmem:[%s5393_s1 + $0xac8] ss:$16 sps:$4 sm:$0xff]  }
 0x121   :  { %2817 = vmatprep.subr.bf16.mxu1 %v3882_v37  ;;  %v3946_v37 = vld [vmem:[%s5393_s1 + $0x888] ss:$16 sps:$4 sm:$0xff]  }
 0x123   :  { %2855 = vmatpush1.bf16.msra.mxu0 %v3883_v44  ;;  %v3952_v44 = vld [vmem:[%s5393_s1 + $0x868] ss:$16 sps:$4 sm:$0xff]  }
 0x124   :  { %2818 = vmatpush2.bf16.msra.mxu1 %v3880_v43  ;;  %2856 = vmatprep.subr.bf16.mxu0 %v3891_v28  ;;  %v3954_v43 = vld [vmem:[%s5393_s1 + $0x86c] ss:$16 sps:$4 sm:$0xff]  }
 0x125   :  { %2819 = vmatprep.subr.bf16.mxu1 %v3888_v26  ;;  %v3955_v26 = vld [vmem:[%s5393_s1 + $0xaa8] ss:$16 sps:$4 sm:$0xff]   ;;  %v3960_v28 = vld [vmem:[%s5393_s1 + $0x84c] ss:$16 sps:$4 sm:$0xff]  }
 0x127   :  { %2857 = vmatpush1.bf16.msra.mxu0 %v3889_v46  ;;  %v3961_v46 = vld [vmem:[%s5393_s1 + $0xa88] ss:$16 sps:$4 sm:$0xff]  }
 0x128   :  { %2820 = vmatpush2.bf16.msra.mxu1 %v3886_v45  ;;  %2858 = vmatprep.subr.bf16.mxu0 %v3897_v49  ;;  %v3958_v45 = vld [vmem:[%s5393_s1 + $0x848] ss:$16 sps:$4 sm:$0xff]   ;;  %v3969_v49 = vld [vmem:[%s5393_s1 + $0xa6c] ss:$16 sps:$4 sm:$0xff]  }
 0x129   :  { %2821 = vmatprep.subr.bf16.mxu1 %v3894_v47  ;;  %v3966_v47 = vld [vmem:[%s5393_s1 + $0x82c] ss:$16 sps:$4 sm:$0xff]  }
 0x12b   :  { %2859 = vmatpush2.bf16.msra.mxu0 %v3895_v51  ;;  %v3967_v51 = vld [vmem:[%s5393_s1 + $0xa68] ss:$16 sps:$4 sm:$0xff]  }
 0x12c   :  { %2822 = vmatpush2.bf16.msra.mxu1 %v3892_v50  ;;  %2860 = vmatprep.subr.bf16.mxu0 %v3903_v54  ;;  %v3964_v50 = vld [vmem:[%s5393_s1 + $0x828] ss:$16 sps:$4 sm:$0xff]   ;;  %v3975_v54 = vld [vmem:[%s5393_s1 + $0xa4c] ss:$16 sps:$4 sm:$0xff]  }
 0x12d   :  { %2823 = vmatprep.subr.bf16.mxu1 %v3900_v53  ;;  %v3972_v53 = vld [vmem:[%s5393_s1 + $0x80c] ss:$16 sps:$4 sm:$0xff]  }
 0x12f   :  { %2861 = vmatpush2.bf16.msra.mxu0 %v3901_v55  ;;  %v3973_v55 = vld [vmem:[%s5393_s1 + $0xa48] ss:$16 sps:$4 sm:$0xff]  }
 0x130   :  { %2824 = vmatpush2.bf16.msra.mxu1 %v3898_v48  ;;  %2862 = vmatprep.subr.bf16.mxu0 %v3909_v58  ;;  %v3970_v48 = vld [vmem:[%s5393_s1 + $0x808] ss:$16 sps:$4 sm:$0xff]   ;;  %v3981_v58 = vld [vmem:[%s5393_s1 + $0xa2c] ss:$16 sps:$4 sm:$0xff]  }
 0x131   :  { %2825 = vmatprep.subr.bf16.mxu1 %v3906_v57  ;;  %v3978_v57 = vld [vmem:[%s5393_s1 + $0x9ec] ss:$16 sps:$4 sm:$0xff]  }
 0x133   :  { %2863 = vmatpush2.bf16.msra.mxu0 %v3907_v60  ;;  %v3979_v60 = vld [vmem:[%s5393_s1 + $0xa28] ss:$16 sps:$4 sm:$0xff]  }
 0x134   :  { %2826 = vmatpush2.bf16.msra.mxu1 %v3904_v59  ;;  %2864 = vmatprep.subr.bf16.mxu0 %v3915_v52  ;;  %v3976_v59 = vld [vmem:[%s5393_s1 + $0x9e8] ss:$16 sps:$4 sm:$0xff]   ;;  %v3987_v52 = vld [vmem:[%s5393_s1 + $0xa0c] ss:$16 sps:$4 sm:$0xff]  }
 0x135   :  { %2827 = vmatprep.subr.bf16.mxu1 %v3912_v61  ;;  %v3984_v61 = vld [vmem:[%s5393_s1 + $0x9cc] ss:$16 sps:$4 sm:$0xff]  }
 0x137   :  { %2865 = vmatpush2.bf16.msra.mxu0 %v3913_v63  ;;  %v3985_v63 = vld [vmem:[%s5393_s1 + $0xa08] ss:$16 sps:$4 sm:$0xff]  }
 0x138   :  { %2828 = vmatpush2.bf16.msra.mxu1 %v3910_v62  ;;  %2866 = vmatprep.subr.bf16.mxu0 %v3921_v7  ;;  %v3982_v62 = vld [vmem:[%s5393_s1 + $0x9c8] ss:$16 sps:$4 sm:$0xff]   ;;  %v3993_v7 = vld [vmem:[%s5393_s1 + $0xbec] ss:$16 sps:$4 sm:$0xff]  }
 0x139   :  { %2829 = vmatprep.subr.bf16.mxu1 %v3918_v0  ;;  %v3990_v0 = vld [vmem:[%s5393_s1 + $0x9ac] ss:$16 sps:$4 sm:$0xff]  }
 0x13b   :  { %2867 = vmatpush2.bf16.msra.mxu0 %v3919_v3  ;;  %v3991_v3 = vld [vmem:[%s5393_s1 + $0xbe8] ss:$16 sps:$4 sm:$0xff]  }
 0x13c   :  { %2830 = vmatpush2.bf16.msra.mxu1 %v3916_v1  ;;  %2868 = vmatprep.subr.bf16.mxu0 %v3927_v5  ;;  %v3988_v1 = vld [vmem:[%s5393_s1 + $0x9a8] ss:$16 sps:$4 sm:$0xff]   ;;  %v3999_v5 = vld [vmem:[%s5393_s1 + $0xbcc] ss:$16 sps:$4 sm:$0xff]  }
 0x13d   :  { %2831 = vmatprep.subr.bf16.mxu1 %v3924_v4  ;;  %v3996_v4 = vld [vmem:[%s5393_s1 + $0x98c] ss:$16 sps:$4 sm:$0xff]  }
 0x13f   :  { %2869 = vmatpush2.bf16.msra.mxu0 %v3925_v11  ;;  %v3997_v11 = vld [vmem:[%s5393_s1 + $0xbc8] ss:$16 sps:$4 sm:$0xff]  }
 0x140   :  { %2832 = vmatpush2.bf16.msra.mxu1 %v3922_v10  ;;  %2870 = vmatprep.subr.bf16.mxu0 %v3930_v12  ;;  %v3994_v10 = vld [vmem:[%s5393_s1 + $0x988] ss:$16 sps:$4 sm:$0xff]   ;;  %v4002_v12 = vld [vmem:[%s5393_s1 + $0x96c] ss:$16 sps:$4 sm:$0xff]  }
 0x141   :  { %2883 = vmatprep.subr.bf16.mxu1 %v3933_v13  ;;  %v4005_v13 = vld [vmem:[%s5393_s1 + $0xbac] ss:$16 sps:$4 sm:$0xff]  }
 0x142   :  { %v2548_v17 = vpop.f32.mrf.mxu0 }
 0x143   :  { %v2589_v9 = vpop.f32.mrf.mxu1  ;;  %2834 = vmatmul.mubr.bf16.vlgmr.msra.gmra.mxu1 %v4505_v20  ;;  %v2549_v18 = vadd.f32 %v2548_v17, %v4962_v2  ;;  %2871 = vmatpush2.bf16.msra.mxu0 %v3928_v38  ;;  %v3942_v20 = vld [vmem:[%s5393_s1 + $0x8ac] ss:$16 sps:$4 sm:$0xff]   ;;  %v4000_v38 = vld [vmem:[%s5393_s1 + $0x968] ss:$16 sps:$4 sm:$0xff]  }
 0x144   :  { %2884 = vmatpush1.bf16.msra.mxu1 %v3931_v14  ;;  %v2550_v39 = vpop.f32.mrf.mxu0  ;;  %2872 = vmatprep.subr.bf16.mxu0 %v3936_v15  ;;  %v3945_v2 = vld [vmem:[%s5393_s1 + $0xaec] ss:$16 sps:$4 sm:$0xff]   ;;  %v4003_v14 = vld [vmem:[%s5393_s1 + $0xba8] ss:$16 sps:$4 sm:$0xff]  }
 0x145   :  { %v2591_v23 = vpop.f32.mrf.mxu1  ;;  %2885 = vmatprep.subr.bf16.mxu1 %v3939_v16  ;;  %v5164_v24 = vadd.f32 %v2589_v9, %v2549_v18  ;;  %v2551_v25 = vadd.f32 %v2550_v39, %v4966_v6  ;;  %2915 = vmatprep.mubr.bf16.mxu1 %v4530_v27  ;;  %v3948_v27 = vld [vmem:[%s5393_s1 + $0x88c] ss:$16 sps:$4 sm:$0xff]   ;;  %v4006_v17 = vld [vmem:[%s5393_s1 + $0x948] ss:$16 sps:$4 sm:$0xff]  }
 0x146   :  { %v2552_v29 = vpop.f32.mrf.mxu0  ;;  %v3951_v6 = vld [vmem:[%s5393_s1 + $0xacc] ss:$16 sps:$4 sm:$0xff]   ;;  %v4009_v9 = vld [vmem:[%s5393_s1 + $0xb88] ss:$16 sps:$4 sm:$0xff]  }
 0x147   :  { %v2593_v31 = vpop.f32.mrf.mxu1  ;;  %v5168_v32 = vadd.f32 %v2591_v23, %v2551_v25  ;;  %2873 = vmatpush2.bf16.msra.mxu0 %v3934_v19  ;;  %v4008_v15 = vld [vmem:[%s5393_s1 + $0x94c] ss:$16 sps:$4 sm:$0xff]   ;;  %v4015_v39 = vld [vmem:[%s5393_s1 + $0xb68] ss:$16 sps:$4 sm:$0xff]  }
 0x148   :  { %2886 = vmatpush1.bf16.msra.mxu1 %v3937_v22  ;;  %v2553_v35 = vpop.f32.mrf.mxu0  ;;  %2924 = vmatprep.subr.bf16.mxu0 %v3945_v2  ;;  %v4011_v16 = vld [vmem:[%s5393_s1 + $0xb8c] ss:$16 sps:$4 sm:$0xff]   ;;  %v4012_v22 = vld [vmem:[%s5393_s1 + $0x928] ss:$16 sps:$4 sm:$0xff]  }
 0x149   :  { %v2594_v36 = vpop.f32.mrf.mxu1  ;;  %2887 = vmatprep.subr.bf16.mxu1 %v3942_v20  ;;  %v4014_v18 = vld [vmem:[%s5393_s1 + $0x92c] ss:$16 sps:$4 sm:$0xff]   ;;  %v4018_v2 = vld [vmem:[%s5393_s1 + $0x908] ss:$16 sps:$4 sm:$0xff]  }
 0x14a   :  { %2875 = vmatmul.mubr.bf16.vlgmr.msra.gmra.mxu0 %v4509_v21  ;;  %v3957_v21 = vld [vmem:[%s5393_s1 + $0xaac] ss:$16 sps:$4 sm:$0xff]   ;;  %v4021_v25 = vld [vmem:[%s5393_s1 + $0xb48] ss:$16 sps:$4 sm:$0xff]  }
 0x14b   :  { %2925 = vmatpush1.bf16.msra.mxu0 %v3943_v34  ;;  %2956 = vmatprep.mubr.bf16.mxu0 %v4544_v30  ;;  %v3963_v30 = vld [vmem:[%s5393_s1 + $0xa8c] ss:$16 sps:$4 sm:$0xff]   ;;  %v4027_v34 = vld [vmem:[%s5393_s1 + $0xc28] ss:$16 sps:$4 sm:$0xff]  }
 0x14c   :  { %2888 = vmatpush1.bf16.msra.mxu1 %v3940_v33  ;;  %2926 = vmatprep.subr.bf16.mxu0 %v3951_v6  ;;  %v4017_v19 = vld [vmem:[%s5393_s1 + $0xb6c] ss:$16 sps:$4 sm:$0xff]   ;;  %v4024_v33 = vld [vmem:[%s5393_s1 + $0xb28] ss:$16 sps:$4 sm:$0xff]  }
 0x14d   :  { %2889 = vmatprep.subr.bf16.mxu1 %v3948_v27  ;;  %v4020_v23 = vld [vmem:[%s5393_s1 + $0x90c] ss:$16 sps:$4 sm:$0xff]  }
 0x14e   :  { %v4023_v20 = vld [vmem:[%s5393_s1 + $0xb4c] ss:$16 sps:$4 sm:$0xff]  }
 0x14f   :  { %2927 = vmatpush1.bf16.msra.mxu0 %v3949_v40  ;;  %v4026_v29 = vld [vmem:[%s5393_s1 + $0xb2c] ss:$16 sps:$4 sm:$0xff]   ;;  %v4033_v40 = vld [vmem:[%s5393_s1 + $0xc08] ss:$16 sps:$4 sm:$0xff]  }
 0x150   :  { %2890 = vmatpush1.bf16.msra.mxu1 %v3946_v37  ;;  %2928 = vmatprep.subr.bf16.mxu0 %v3957_v21  ;;  %v4029_v31 = vld [vmem:[%s5393_s1 + $0xc2c] ss:$16 sps:$4 sm:$0xff]   ;;  %v4030_v37 = vld [vmem:[%s5393_s1 + $0xb08] ss:$16 sps:$4 sm:$0xff]  }
 0x151   :  { %2891 = vmatprep.subr.bf16.mxu1 %v3954_v43  ;;  %v4032_v35 = vld [vmem:[%s5393_s1 + $0xb0c] ss:$16 sps:$4 sm:$0xff]  }
 0x152   :  { %v4035_v36 = vld [vmem:[%s5393_s1 + $0xc0c] ss:$16 sps:$4 sm:$0xff]  }
 0x153   :  { %2929 = vmatpush1.bf16.msra.mxu0 %v3955_v26 }
 0x154   :  { %2892 = vmatpush1.bf16.msra.mxu1 %v3952_v44  ;;  %2930 = vmatprep.subr.bf16.mxu0 %v3963_v30 }
 0x155   :  { %2893 = vmatprep.subr.bf16.mxu1 %v3960_v28 }
 0x157   :  { %2931 = vmatpush1.bf16.msra.mxu0 %v3961_v46 }
 0x158   :  { %2894 = vmatpush1.bf16.msra.mxu1 %v3958_v45  ;;  %2932 = vmatprep.subr.bf16.mxu0 %v3969_v49  ;;  %v3006_v49 = vld [vmem:[%s5396_s3] sm:$0xff] }
 0x159   :  { %2895 = vmatprep.subr.bf16.mxu1 %v3966_v47 }
 0x15b   :  { %2933 = vmatpush1.bf16.msra.mxu0 %v3967_v51  ;;  %v3007_v51 = vld [vmem:[%s5396_s3 + $0x8] sm:$0xff] }
 0x15c   :  { %2896 = vmatpush1.bf16.msra.mxu1 %v3964_v50  ;;  %2934 = vmatprep.subr.bf16.mxu0 %v3975_v54 }
 0x15d   :  { %2897 = vmatprep.subr.bf16.mxu1 %v3972_v53 }
 0x15f   :  { %2935 = vmatpush1.bf16.msra.mxu0 %v3973_v55 }
 0x160   :  { %2898 = vmatpush1.bf16.msra.mxu1 %v3970_v48  ;;  %2936 = vmatprep.subr.bf16.mxu0 %v3981_v58 }
 0x161   :  { %2899 = vmatprep.subr.bf16.mxu1 %v3978_v57 }
 0x163   :  { %2937 = vmatpush1.bf16.msra.mxu0 %v3979_v60 }
 0x164   :  { %2900 = vmatpush2.bf16.msra.mxu1 %v3976_v59  ;;  %2938 = vmatprep.subr.bf16.mxu0 %v3987_v52 }
 0x165   :  { %2901 = vmatprep.subr.bf16.mxu1 %v3984_v61 }
 0x167   :  { %2939 = vmatpush1.bf16.msra.mxu0 %v3985_v63 }
 0x168   :  { %2902 = vmatpush2.bf16.msra.mxu1 %v3982_v62  ;;  %2940 = vmatprep.subr.bf16.mxu0 %v3993_v7 }
 0x169   :  { %2903 = vmatprep.subr.bf16.mxu1 %v3990_v0 }
 0x16b   :  { %2941 = vmatpush2.bf16.msra.mxu0 %v3991_v3 }
 0x16c   :  { %2904 = vmatpush2.bf16.msra.mxu1 %v3988_v1  ;;  %2942 = vmatprep.subr.bf16.mxu0 %v3999_v5 }
 0x16d   :  { %2905 = vmatprep.subr.bf16.mxu1 %v3996_v4 }
 0x16f   :  { %2943 = vmatpush2.bf16.msra.mxu0 %v3997_v11 }
 0x170   :  { %2906 = vmatpush2.bf16.msra.mxu1 %v3994_v10  ;;  %2944 = vmatprep.subr.bf16.mxu0 %v4005_v13 }
 0x171   :  { %2907 = vmatprep.subr.bf16.mxu1 %v4002_v12 }
 0x173   :  { %2945 = vmatpush2.bf16.msra.mxu0 %v4003_v14 }
 0x174   :  { %2908 = vmatpush2.bf16.msra.mxu1 %v4000_v38  ;;  %2946 = vmatprep.subr.bf16.mxu0 %v4011_v16 }
 0x175   :  { %2909 = vmatprep.subr.bf16.mxu1 %v4008_v15 }
 0x177   :  { %2947 = vmatpush2.bf16.msra.mxu0 %v4009_v9 }
 0x178   :  { %2910 = vmatpush2.bf16.msra.mxu1 %v4006_v17  ;;  %2948 = vmatprep.subr.bf16.mxu0 %v4017_v19 }
 0x179   :  { %2911 = vmatprep.subr.bf16.mxu1 %v4014_v18 }
 0x17b   :  { %2949 = vmatpush2.bf16.msra.mxu0 %v4015_v39 }
 0x17c   :  { %2912 = vmatpush2.bf16.msra.mxu1 %v4012_v22  ;;  %2950 = vmatprep.subr.bf16.mxu0 %v4023_v20 }
 0x17d   :  { %2913 = vmatprep.subr.bf16.mxu1 %v4020_v23 }
 0x17f   :  { %2951 = vmatpush2.bf16.msra.mxu0 %v4021_v25 }
 0x180   :  { %2914 = vmatpush2.bf16.msra.mxu1 %v4018_v2  ;;  %2952 = vmatprep.subr.bf16.mxu0 %v4026_v29 }
 0x181   :  { %2977 = vmatprep.subr.bf16.mxu1 %v4029_v31 }
 0x182   :  { %v2630_v27 = vpop.f32.mrf.mxu0 }
 0x183   :  { %v2671_v6 = vpop.f32.mrf.mxu1  ;;  %2916 = vmatmul.mubr.bf16.vlgmr.msra.gmra.mxu1 %v4727_v41  ;;  %2953 = vmatpush2.bf16.msra.mxu0 %v4024_v33  ;;  %v2631_v44 = vadd.f32 %v2630_v27, %v5164_v24  ;;  %v3008_v33 = vld [vmem:[%s5396_s3 + $0x10] sm:$0xff] }
 0x184   :  { %2978 = vmatpush1.bf16.msra.mxu1 %v4027_v34  ;;  %v2632_v43 = vpop.f32.mrf.mxu0  ;;  %2954 = vmatprep.subr.bf16.mxu0 %v4032_v35 }
 0x185   :  { %v2673_v21 = vpop.f32.mrf.mxu1  ;;  %2979 = vmatprep.subr.bf16.mxu1 %v4035_v36  ;;  %2997 = vmatprep.mubr.bf16.mxu1 %v4045_v8  ;;  %v2633_v28 = vadd.f32 %v2632_v43, %v5168_v32  ;;  %v2672_v46 = vadd.f32 %v2671_v6, %v2631_v44  ;;  %v4044_v8 = vld [vmem:[%s5394_s0 + $0x30] ss:$0 sps:$4 sm:$0xff]   ;;  %v3009_v6 = vld [vmem:[%s5396_s3 + $0x18] sm:$0xff] }
 0x186   :  { %v2634_v26 = vpop.f32.mrf.mxu0 }
 0x187   :  { %v2675_v41 = vpop.f32.mrf.mxu1  ;;  %2955 = vmatpush2.bf16.msra.mxu0 %v4030_v37  ;;  %v2674_v24 = vadd.f32 %v2673_v21, %v2633_v28 }
 0x188   :  { %2980 = vmatpush1.bf16.msra.mxu1 %v4033_v40  ;;  %v2635_v30 = vpop.f32.mrf.mxu0 }
 0x189   :  { %v2676_v45 = vpop.f32.mrf.mxu1 }
 0x18a   :  { %v2712_v47 = vpop.f32.mrf.mxu0  ;;  %2957 = vmatmul.mubr.bf16.vlgmr.msra.gmra.mxu0 %v4731_v42 }
 0x18b   :  { %3432 = vmatmul.mubr.msk.bf16.vlgmr.msra.gmra.mxu1 %vm2428_vm0, %v4044_v8  ;;  %v2713_v32 = vadd.f32 %v2712_v47, %v2672_v46 }
 0x18c   :  { %v2714_v50 = vpop.f32.mrf.mxu0 }
 0x18d   :  { %v3010_v53 = vadd.f32 %v3006_v49, %v2713_v32  ;;  %v2715_v54 = vadd.f32 %v2714_v50, %v2674_v24 }
 0x18e   :  { %v2716_v48 = vpop.f32.mrf.mxu0 }
 0x18f   :  { %4036 = vtanh.f32 %v3010_v53  ;;  %v3011_v55 = vadd.f32 %v3007_v51, %v2715_v54 }
 0x190   :  { %v2717_v57 = vpop.f32.mrf.mxu0 }
 0x191   :  { %4038 = vtanh.f32 %v3011_v55 }
 0x19c   :  { %v4037_v42 = vpop.eup %4036 }
 0x19d   :  { %3018 = vst [vmem:[%s5397_s4] sm:$0xff] %v4037_v42 }
 0x19e   :  { %v4039_v58 = vpop.eup %4038 }
 0x19f   :  { %3019 = vst [vmem:[%s5397_s4 + $0x8] sm:$0xff] %v4039_v58 }
 0x1c3   :  { %v2753_v59 = vpop.f32.mrf.mxu1 }
 0x1c4   :  { %v2754_v62 = vadd.f32 %v2753_v59, %v4940_v56 }
 0x1c5   :  { %v2755_v60 = vpop.f32.mrf.mxu1 }
 0x1c6   :  { %v2756_v0 = vadd.f32 %v2755_v60, %v4940_v56 }
 0x1c7   :  { %v2757_v61 = vpop.f32.mrf.mxu1 }
 0x1c9   :  { %v2758_v52 = vpop.f32.mrf.mxu1 }
 0x1ca   :  { %v2794_v63 = vpop.f32.mrf.mxu0 }
 0x1cb   :  { %v2795_v7 = vadd.f32 %v2794_v63, %v2754_v62 }
 0x1cc   :  { %v2796_v1 = vpop.f32.mrf.mxu0 }
 0x1cd   :  { %v2797_v3 = vadd.f32 %v2796_v1, %v2756_v0 }
 0x1ce   :  { %v2798_v4 = vpop.f32.mrf.mxu0 }
 0x1d0   :  { %v2799_v5 = vpop.f32.mrf.mxu0 }
 0x203   :  { %v2835_v10 = vpop.f32.mrf.mxu1 }
 0x204   :  { %v2836_v11 = vadd.f32 %v2835_v10, %v2795_v7 }
 0x205   :  { %v2837_v12 = vpop.f32.mrf.mxu1 }
 0x206   :  { %v2838_v13 = vadd.f32 %v2837_v12, %v2797_v3 }
 0x207   :  { %v2839_v38 = vpop.f32.mrf.mxu1 }
 0x209   :  { %v2840_v14 = vpop.f32.mrf.mxu1 }
 0x20a   :  { %v2876_v15 = vpop.f32.mrf.mxu0 }
 0x20b   :  { %v2877_v39 = vadd.f32 %v2876_v15, %v2836_v11 }
 0x20c   :  { %v2878_v16 = vpop.f32.mrf.mxu0 }
 0x20d   :  { %v2879_v23 = vadd.f32 %v2878_v16, %v2838_v13 }
 0x20e   :  { %v2880_v17 = vpop.f32.mrf.mxu0 }
 0x210   :  { %v2881_v9 = vpop.f32.mrf.mxu0 }
 0x243   :  { %v2917_v18 = vpop.f32.mrf.mxu1 }
 0x244   :  { %v2918_v20 = vadd.f32 %v2917_v18, %v2877_v39 }
 0x245   :  { %v2919_v19 = vpop.f32.mrf.mxu1 }
 0x246   :  { %v2920_v29 = vadd.f32 %v2919_v19, %v2879_v23 }
 0x247   :  { %v2921_v22 = vpop.f32.mrf.mxu1 }
 0x249   :  { %v2922_v56 = vpop.f32.mrf.mxu1 }
 0x24a   :  { %v2958_v2 = vpop.f32.mrf.mxu0 }
 0x24b   :  { %v2999_v25 = vpop.f32.mrf.mxu1  ;;  %v2959_v31 = vadd.f32 %v2958_v2, %v2918_v20 }
 0x24c   :  { %v2960_v34 = vpop.f32.mrf.mxu0 }
 0x24d   :  { %v3001_v35 = vpop.f32.mrf.mxu1  ;;  %v3000_v36 = vadd.f32 %v2999_v25, %v2959_v31  ;;  %v2961_v27 = vadd.f32 %v2960_v34, %v2920_v29 }
 0x24e   :  { %v2962_v37 = vpop.f32.mrf.mxu0 }
 0x24f   :  { %v3003_v40 = vpop.f32.mrf.mxu1  ;;  %v3012_v43 = vadd.f32 %v3008_v33, %v3000_v36  ;;  %v3002_v21 = vadd.f32 %v3001_v35, %v2961_v27 }
 0x250   :  { %v2963_v44 = vpop.f32.mrf.mxu0 }
 0x251   :  { %v3004_v26 = vpop.f32.mrf.mxu1  ;;  %4040 = vtanh.f32 %v3012_v43  ;;  %v3013_v41 = vadd.f32 %v3009_v6, %v3002_v21 }
 0x253   :  { %4042 = vtanh.f32 %v3013_v41 }
 0x25e   :  { %v4041_v28 = vpop.eup %4040 }
 0x25f   :  { %3020 = vst [vmem:[%s5397_s4 + $0x10] sm:$0xff] %v4041_v28 }
 0x260   :  { %v4043_v30 = vpop.eup %4042 }
 0x261   :  { %3021 = vst [vmem:[%s5397_s4 + $0x18] sm:$0xff] %v4043_v30 }

</bundles_post_ra>
